<compile_context>
chip_gen: v7x
topology: tpu7x:2x2x1
jax: 0.10.0
libtpu: 0.0.40
codegen_flags: <defaults>
</compile_context>

<pallas_src>
import functools

import jax
import jax.numpy as jnp
from jax.experimental import pallas as pl
from jax.experimental.pallas import tpu as pltpu


def _unit_gru_kernel(h_ref, x_ref, whzr_ref, whq_ref, wx_ref, bzr_ref, bq_ref,
                     o_ref, *, H, W):
    """One batch element.  h_ref: (1,H,W,Ch) f32, x_ref: (1,H,W,Cx) f32.
    whzr_ref: (3, Ch, 3*2Ch) bf16   [per ky: kx-blocks of [z|r] columns]
    whq_ref : (3, Ch, 3*Ch)  bf16   [per ky: kx-blocks of [q] columns]
    wx_ref  : (3, Cx, 3*3Ch) bf16   [per ky: kx-blocks of [z|r|q] columns]
    bzr_ref : (1, 2Ch) f32,  bq_ref: (1, Ch) f32,  o_ref: (1,H,W,Ch)."""
    Ch = h_ref.shape[-1]
    Cx = x_ref.shape[-1]
    HW = H * W

    h32 = h_ref[0]                                     # (H, W, Ch) f32, kept for gating
    h_bf = h32.astype(jnp.bfloat16)
    x_bf = x_ref[0].astype(jnp.bfloat16)               # (H, W, Cx)

    # In-kernel zero padding along H only (leading, untiled dim).
    zrow_h = jnp.zeros((1, W, Ch), jnp.bfloat16)
    zrow_x = jnp.zeros((1, W, Cx), jnp.bfloat16)
    hH = jnp.concatenate([zrow_h, h_bf, zrow_h], axis=0)   # (H+2, W, Ch)
    xH = jnp.concatenate([zrow_x, x_bf, zrow_x], axis=0)   # (H+2, W, Cx)

    def conv_taps(vH, w_ref, cin, cout):
        """3x3 'same' conv taps: ky folded via leading-dim shifts, kx kept as
        three full-width f32 accumulators a_kx[y*W+x] = sum_ky v[y+ky-1,x] @ W[ky,kx]."""
        a0 = jnp.zeros((HW, cout), jnp.float32)
        a1 = jnp.zeros((HW, cout), jnp.float32)
        a2 = jnp.zeros((HW, cout), jnp.float32)
        for ky in range(3):                              # static, fully unrolled
            flat = vH[ky:ky + H].reshape(HW, cin)        # leading-dim slice only
            res = jnp.dot(flat, w_ref[ky],
                          preferred_element_type=jnp.float32)   # (HW, 3*cout)
            a0 = a0 + res[:, :cout]
            a1 = a1 + res[:, cout:2 * cout]
            a2 = a2 + res[:, 2 * cout:]
        return a0, a1, a2

    def combine_kx(a0, a1, a2):
        """o[y,x] = a0[y,x-1] + a1[y,x] + a2[y,x+1]  (zero outside [0, W))."""
        c = a1.shape[-1]
        a0 = a0.reshape(H, W, c)
        a1 = a1.reshape(H, W, c)
        a2 = a2.reshape(H, W, c)
        zcol = jnp.zeros((H, 1, c), jnp.float32)
        right = jnp.concatenate([zcol, a0[:, :W - 1, :]], axis=1)
        left = jnp.concatenate([a2[:, 1:, :], zcol], axis=1)
        return right + a1 + left

    # x contributes to all three gates (columns [z | r | q], 3*Ch wide).
    xa0, xa1, xa2 = conv_taps(xH, wx_ref, Cx, 3 * Ch)
    # h contributes to z and r (columns [z | r], 2*Ch wide).
    ha0, ha1, ha2 = conv_taps(hH, whzr_ref, Ch, 2 * Ch)

    zr_pre = combine_kx(ha0 + xa0[:, :2 * Ch],
                        ha1 + xa1[:, :2 * Ch],
                        ha2 + xa2[:, :2 * Ch]) + bzr_ref[...]
    z = jax.nn.sigmoid(zr_pre[:, :, :Ch])
    r = jax.nn.sigmoid(zr_pre[:, :, Ch:])

    # r*h contributes to q (stays in VMEM).
    rh_bf = (r * h32).astype(jnp.bfloat16)
    rhH = jnp.concatenate([zrow_h, rh_bf, zrow_h], axis=0)
    qa0, qa1, qa2 = conv_taps(rhH, whq_ref, Ch, Ch)

    q_pre = combine_kx(qa0 + xa0[:, 2 * Ch:],
                       qa1 + xa1[:, 2 * Ch:],
                       qa2 + xa2[:, 2 * Ch:]) + bq_ref[...]
    q = jnp.tanh(q_pre)

    h_new = (1.0 - z) * h32 + z * q
    o_ref[0] = h_new.astype(o_ref.dtype)


def pack_params(params, hidden_dim):
    """Split each HWIO conv weight along Cin into h-/x-parts, stack gate
    outputs along Cout, reorder to (ky, Cin, kx*Cout_total) bf16 slabs."""
    wz, bz = params["convz"]
    wr, br = params["convr"]
    wq, bq = params["convq"]
    Ch = hidden_dim

    def slab(parts):
        w = jnp.concatenate(parts, axis=-1)              # (3, 3, Cin, Ctot) HWIO
        ky, kx, cin, ctot = w.shape
        w = jnp.transpose(w, (0, 2, 1, 3))               # (ky, Cin, kx, Ctot)
        return w.reshape(ky, cin, kx * ctot).astype(jnp.bfloat16)

    return {
        "whzr": slab([wz[:, :, :Ch, :], wr[:, :, :Ch, :]]),                      # (3, Ch, 3*2Ch)
        "whq": slab([wq[:, :, :Ch, :]]),                                          # (3, Ch, 3*Ch)
        "wx": slab([wz[:, :, Ch:, :], wr[:, :, Ch:, :], wq[:, :, Ch:, :]]),       # (3, Cx, 3*3Ch)
        "bzr": jnp.concatenate([bz, br]).reshape(1, 2 * Ch).astype(jnp.float32),
        "bq": bq.reshape(1, Ch).astype(jnp.float32),
    }


def unit_gru(packed, h_nchw, x_nchw):
    """Fused UnitGRU forward.  Inputs/outputs are NCHW (PyTorch convention)."""
    h = jnp.transpose(h_nchw, (0, 2, 3, 1))      # NHWC: channels on the lane axis
    x = jnp.transpose(x_nchw, (0, 2, 3, 1))
    N, H, W, Ch = h.shape
    Cx = x.shape[-1]
    assert W % 8 == 0, "W must be a multiple of the sublane tile (8)"
    # TODO(synk): for large H*W add an H-strip grid axis (1-row halo) so the
    # VMEM-resident intermediates stay within the v7x 64 MiB budget.

    kernel = functools.partial(_unit_gru_kernel, H=H, W=W)
    out = pl.pallas_call(
        kernel,
        out_shape=jax.ShapeDtypeStruct((N, H, W, Ch), jnp.float32),
        grid=(N,),
        in_specs=[
            pl.BlockSpec((1, H, W, Ch), lambda n: (n, 0, 0, 0)),
            pl.BlockSpec((1, H, W, Cx), lambda n: (n, 0, 0, 0)),
            pl.BlockSpec((3, Ch, 3 * 2 * Ch), lambda n: (0, 0, 0)),   # constant block:
            pl.BlockSpec((3, Ch, 3 * Ch), lambda n: (0, 0, 0)),       # weights stay
            pl.BlockSpec((3, Cx, 3 * 3 * Ch), lambda n: (0, 0, 0)),   # resident in VMEM
            pl.BlockSpec((1, 2 * Ch), lambda n: (0, 0)),
            pl.BlockSpec((1, Ch), lambda n: (0, 0)),
        ],
        out_specs=pl.BlockSpec((1, H, W, Ch), lambda n: (n, 0, 0, 0)),
        compiler_params=pltpu.CompilerParams(
            dimension_semantics=("parallel",),
            vmem_limit_bytes=48 * 1024 * 1024),
    )(h, x, packed["whzr"], packed["whq"], packed["wx"],
      packed["bzr"], packed["bq"])
    return jnp.transpose(out, (0, 3, 1, 2))


def init_params(key, hidden_dim=128, input_dim=192 + 128):
    """Deterministic synthetic parameters (HWIO weights + biases)."""
    cin = hidden_dim + input_dim
    def conv_p(k):
        kw, kb = jax.random.split(k)
        scale = 1.0 / jnp.sqrt(jnp.float32(9 * cin))
        w = scale * jax.random.normal(kw, (3, 3, cin, hidden_dim), jnp.float32)
        b = 0.01 * jax.random.normal(kb, (hidden_dim,), jnp.float32)
        return w, b
    kz, kr, kq = jax.random.split(key, 3)
    return {"convz": conv_p(kz), "convr": conv_p(kr), "convq": conv_p(kq)}


# ----------------------------- pure-JAX reference ----------------------------
def _conv3x3_ref(v, w_hwio, b):
    out = jax.lax.conv_general_dilated(
        v.astype(jnp.bfloat16), w_hwio.astype(jnp.bfloat16),
        window_strides=(1, 1), padding="SAME",
        dimension_numbers=("NHWC", "HWIO", "NHWC"),
        preferred_element_type=jnp.float32)
    return out + b.reshape(1, 1, 1, -1)


def unit_gru_reference(params, h_nchw, x_nchw):
    """Mirrors UnitGRU.forward (same bf16 matmul operands, f32 accumulation)."""
    h = jnp.transpose(h_nchw, (0, 2, 3, 1))
    x = jnp.transpose(x_nchw, (0, 2, 3, 1))
    wz, bz = params["convz"]
    wr, br = params["convr"]
    wq, bq = params["convq"]
    hx = jnp.concatenate([h, x], axis=-1)
    z = jax.nn.sigmoid(_conv3x3_ref(hx, wz, bz))
    r = jax.nn.sigmoid(_conv3x3_ref(hx, wr, br))
    q = jnp.tanh(_conv3x3_ref(jnp.concatenate([r * h, x], axis=-1), wq, bq))
    h_new = (1.0 - z) * h + z * q
    return jnp.transpose(h_new, (0, 3, 1, 2))


if __name__ == "__main__":
    key = jax.random.PRNGKey(0)
    k_p, k_h, k_x = jax.random.split(key, 3)

    batch, hidden_dim, input_dim, Hs, Ws = 2, 128, 192 + 128, 16, 16
    params = init_params(k_p, hidden_dim, input_dim)
    h0 = jax.random.normal(k_h, (batch, hidden_dim, Hs, Ws), jnp.float32)
    x0 = jax.random.normal(k_x, (batch, input_dim, Hs, Ws), jnp.float32)

    packed = pack_params(params, hidden_dim)
    out = jax.block_until_ready(jax.jit(unit_gru)(packed, h0, x0))
    assert out.shape == (batch, hidden_dim, Hs, Ws), out.shape

    ref = jax.block_until_ready(jax.jit(unit_gru_reference)(params, h0, x0))
    max_err = float(jnp.max(jnp.abs(out - ref)))
    assert max_err < 5e-2, f"mismatch vs reference: max abs err = {max_err}"

    print("KERNEL_OK")
</pallas_src>

<mosaic_0001>
module attributes {stable_mosaic.version = 11 : i64} {
  func.func @_unit_gru_kernel(%arg0: i32, %arg1: memref<1x16x16x128xf32, #tpu.memory_space<vmem>>, %arg2: memref<1x16x16x320xf32, #tpu.memory_space<vmem>>, %arg3: memref<3x128x768xbf16, #tpu.memory_space<vmem>>, %arg4: memref<3x128x384xbf16, #tpu.memory_space<vmem>>, %arg5: memref<3x320x1152xbf16, #tpu.memory_space<vmem>>, %arg6: memref<1x256xf32, #tpu.memory_space<vmem>>, %arg7: memref<1x128xf32, #tpu.memory_space<vmem>>, %arg8: memref<1x16x16x128xf32, #tpu.memory_space<vmem>>) attributes {dimension_semantics = [#tpu.dimension_semantics<parallel>], iteration_bounds = array<i64: 2>, scalar_prefetch = 0 : i64, scratch_operands = 0 : i64, tpu.core_type = #tpu.core_type<tc>, window_params = [{transform_indices = @transform_0, window_bounds = array<i64: 1, 16, 16, 128>}, {transform_indices = @transform_1, window_bounds = array<i64: 1, 16, 16, 320>}, {pipeline_mode = #tpu.pipeline_mode<synchronous>, transform_indices = @transform_2, window_bounds = array<i64: 3, 128, 768>}, {pipeline_mode = #tpu.pipeline_mode<synchronous>, transform_indices = @transform_3, window_bounds = array<i64: 3, 128, 384>}, {pipeline_mode = #tpu.pipeline_mode<synchronous>, transform_indices = @transform_4, window_bounds = array<i64: 3, 320, 1152>}, {pipeline_mode = #tpu.pipeline_mode<synchronous>, transform_indices = @transform_5, window_bounds = array<i64: 1, 256>}, {pipeline_mode = #tpu.pipeline_mode<synchronous>, transform_indices = @transform_6, window_bounds = array<i64: 1, 128>}, {transform_indices = @transform_7, window_bounds = array<i64: 1, 16, 16, 128>}]} {
    %c0 = arith.constant 0 : index
    %c0_0 = arith.constant 0 : index
    %c0_1 = arith.constant 0 : index
    %c0_2 = arith.constant 0 : index
    %0 = vector.load %arg1[%c0, %c0_0, %c0_1, %c0_2] : memref<1x16x16x128xf32, #tpu.memory_space<vmem>>, vector<1x16x16x128xf32>
    %1 = vector.shape_cast %0 : vector<1x16x16x128xf32> to vector<16x16x128xf32>
    %2 = arith.truncf %1 : vector<16x16x128xf32> to vector<16x16x128xbf16>
    %c0_3 = arith.constant 0 : index
    %c0_4 = arith.constant 0 : index
    %c0_5 = arith.constant 0 : index
    %c0_6 = arith.constant 0 : index
    %3 = vector.load %arg2[%c0_3, %c0_4, %c0_5, %c0_6] : memref<1x16x16x320xf32, #tpu.memory_space<vmem>>, vector<1x16x16x320xf32>
    %4 = vector.shape_cast %3 : vector<1x16x16x320xf32> to vector<16x16x320xf32>
    %5 = arith.truncf %4 : vector<16x16x320xf32> to vector<16x16x320xbf16>
    %cst = arith.constant 0.000000e+00 : bf16
    %6 = vector.broadcast %cst : bf16 to vector<1x16x128xbf16>
    %cst_7 = arith.constant 0.000000e+00 : bf16
    %7 = vector.broadcast %cst_7 : bf16 to vector<1x16x320xbf16>
    %8 = tpu.concatenate %6, %2, %6 in 0 : vector<1x16x128xbf16>, vector<16x16x128xbf16>, vector<1x16x128xbf16> -> vector<18x16x128xbf16>
    %9 = tpu.concatenate %7, %5, %7 in 0 : vector<1x16x320xbf16>, vector<16x16x320xbf16>, vector<1x16x320xbf16> -> vector<18x16x320xbf16>
    %cst_8 = arith.constant 0.000000e+00 : f32
    %10 = vector.broadcast %cst_8 : f32 to vector<256x384xf32>
    %cst_9 = arith.constant 0.000000e+00 : f32
    %11 = vector.broadcast %cst_9 : f32 to vector<256x384xf32>
    %cst_10 = arith.constant 0.000000e+00 : f32
    %12 = vector.broadcast %cst_10 : f32 to vector<256x384xf32>
    %13 = vector.extract_strided_slice %9 {offsets = [0, 0, 0], sizes = [16, 16, 320], strides = [1, 1, 1]} : vector<18x16x320xbf16> to vector<16x16x320xbf16>
    %14 = vector.shape_cast %13 : vector<16x16x320xbf16> to vector<256x320xbf16>
    %c0_11 = arith.constant 0 : index
    %c0_12 = arith.constant 0 : index
    %c0_13 = arith.constant 0 : index
    %15 = vector.load %arg5[%c0_11, %c0_12, %c0_13] : memref<3x320x1152xbf16, #tpu.memory_space<vmem>>, vector<1x320x1152xbf16>
    %16 = vector.shape_cast %15 : vector<1x320x1152xbf16> to vector<320x1152xbf16>
    %cst_14 = arith.constant dense<0.000000e+00> : vector<256x1152xf32>
    %17 = tpu.matmul %14, %16, %cst_14 {dimension_numbers = #tpu.dot_dimension_numbers<[1], [0], [0], [1], [0, 0, 1, 1], [], []>} : vector<256x320xbf16>, vector<320x1152xbf16>, vector<256x1152xf32> -> vector<256x1152xf32>
    %18 = vector.extract_strided_slice %17 {offsets = [0, 0], sizes = [256, 384], strides = [1, 1]} : vector<256x1152xf32> to vector<256x384xf32>
    %19 = arith.addf %10, %18 : vector<256x384xf32>
    %20 = vector.extract_strided_slice %17 {offsets = [0, 384], sizes = [256, 384], strides = [1, 1]} : vector<256x1152xf32> to vector<256x384xf32>
    %21 = arith.addf %11, %20 : vector<256x384xf32>
    %22 = vector.extract_strided_slice %17 {offsets = [0, 768], sizes = [256, 384], strides = [1, 1]} : vector<256x1152xf32> to vector<256x384xf32>
    %23 = arith.addf %12, %22 : vector<256x384xf32>
    %24 = vector.extract_strided_slice %9 {offsets = [1, 0, 0], sizes = [16, 16, 320], strides = [1, 1, 1]} : vector<18x16x320xbf16> to vector<16x16x320xbf16>
    %25 = vector.shape_cast %24 : vector<16x16x320xbf16> to vector<256x320xbf16>
    %c1 = arith.constant 1 : index
    %c0_15 = arith.constant 0 : index
    %c0_16 = arith.constant 0 : index
    %26 = vector.load %arg5[%c1, %c0_15, %c0_16] : memref<3x320x1152xbf16, #tpu.memory_space<vmem>>, vector<1x320x1152xbf16>
    %27 = vector.shape_cast %26 : vector<1x320x1152xbf16> to vector<320x1152xbf16>
    %cst_17 = arith.constant dense<0.000000e+00> : vector<256x1152xf32>
    %28 = tpu.matmul %25, %27, %cst_17 {dimension_numbers = #tpu.dot_dimension_numbers<[1], [0], [0], [1], [0, 0, 1, 1], [], []>} : vector<256x320xbf16>, vector<320x1152xbf16>, vector<256x1152xf32> -> vector<256x1152xf32>
    %29 = vector.extract_strided_slice %28 {offsets = [0, 0], sizes = [256, 384], strides = [1, 1]} : vector<256x1152xf32> to vector<256x384xf32>
    %30 = arith.addf %19, %29 : vector<256x384xf32>
    %31 = vector.extract_strided_slice %28 {offsets = [0, 384], sizes = [256, 384], strides = [1, 1]} : vector<256x1152xf32> to vector<256x384xf32>
    %32 = arith.addf %21, %31 : vector<256x384xf32>
    %33 = vector.extract_strided_slice %28 {offsets = [0, 768], sizes = [256, 384], strides = [1, 1]} : vector<256x1152xf32> to vector<256x384xf32>
    %34 = arith.addf %23, %33 : vector<256x384xf32>
    %35 = vector.extract_strided_slice %9 {offsets = [2, 0, 0], sizes = [16, 16, 320], strides = [1, 1, 1]} : vector<18x16x320xbf16> to vector<16x16x320xbf16>
    %36 = vector.shape_cast %35 : vector<16x16x320xbf16> to vector<256x320xbf16>
    %c2 = arith.constant 2 : index
    %c0_18 = arith.constant 0 : index
    %c0_19 = arith.constant 0 : index
    %37 = vector.load %arg5[%c2, %c0_18, %c0_19] : memref<3x320x1152xbf16, #tpu.memory_space<vmem>>, vector<1x320x1152xbf16>
    %38 = vector.shape_cast %37 : vector<1x320x1152xbf16> to vector<320x1152xbf16>
    %cst_20 = arith.constant dense<0.000000e+00> : vector<256x1152xf32>
    %39 = tpu.matmul %36, %38, %cst_20 {dimension_numbers = #tpu.dot_dimension_numbers<[1], [0], [0], [1], [0, 0, 1, 1], [], []>} : vector<256x320xbf16>, vector<320x1152xbf16>, vector<256x1152xf32> -> vector<256x1152xf32>
    %40 = vector.extract_strided_slice %39 {offsets = [0, 0], sizes = [256, 384], strides = [1, 1]} : vector<256x1152xf32> to vector<256x384xf32>
    %41 = arith.addf %30, %40 : vector<256x384xf32>
    %42 = vector.extract_strided_slice %39 {offsets = [0, 384], sizes = [256, 384], strides = [1, 1]} : vector<256x1152xf32> to vector<256x384xf32>
    %43 = arith.addf %32, %42 : vector<256x384xf32>
    %44 = vector.extract_strided_slice %39 {offsets = [0, 768], sizes = [256, 384], strides = [1, 1]} : vector<256x1152xf32> to vector<256x384xf32>
    %45 = arith.addf %34, %44 : vector<256x384xf32>
    %cst_21 = arith.constant 0.000000e+00 : f32
    %46 = vector.broadcast %cst_21 : f32 to vector<256x256xf32>
    %cst_22 = arith.constant 0.000000e+00 : f32
    %47 = vector.broadcast %cst_22 : f32 to vector<256x256xf32>
    %cst_23 = arith.constant 0.000000e+00 : f32
    %48 = vector.broadcast %cst_23 : f32 to vector<256x256xf32>
    %49 = vector.extract_strided_slice %8 {offsets = [0, 0, 0], sizes = [16, 16, 128], strides = [1, 1, 1]} : vector<18x16x128xbf16> to vector<16x16x128xbf16>
    %50 = vector.shape_cast %49 : vector<16x16x128xbf16> to vector<256x128xbf16>
    %c0_24 = arith.constant 0 : index
    %c0_25 = arith.constant 0 : index
    %c0_26 = arith.constant 0 : index
    %51 = vector.load %arg3[%c0_24, %c0_25, %c0_26] : memref<3x128x768xbf16, #tpu.memory_space<vmem>>, vector<1x128x768xbf16>
    %52 = vector.shape_cast %51 : vector<1x128x768xbf16> to vector<128x768xbf16>
    %cst_27 = arith.constant dense<0.000000e+00> : vector<256x768xf32>
    %53 = tpu.matmul %50, %52, %cst_27 {dimension_numbers = #tpu.dot_dimension_numbers<[1], [0], [0], [1], [0, 0, 1, 1], [], []>} : vector<256x128xbf16>, vector<128x768xbf16>, vector<256x768xf32> -> vector<256x768xf32>
    %54 = vector.extract_strided_slice %53 {offsets = [0, 0], sizes = [256, 256], strides = [1, 1]} : vector<256x768xf32> to vector<256x256xf32>
    %55 = arith.addf %46, %54 : vector<256x256xf32>
    %56 = vector.extract_strided_slice %53 {offsets = [0, 256], sizes = [256, 256], strides = [1, 1]} : vector<256x768xf32> to vector<256x256xf32>
    %57 = arith.addf %47, %56 : vector<256x256xf32>
    %58 = vector.extract_strided_slice %53 {offsets = [0, 512], sizes = [256, 256], strides = [1, 1]} : vector<256x768xf32> to vector<256x256xf32>
    %59 = arith.addf %48, %58 : vector<256x256xf32>
    %60 = vector.extract_strided_slice %8 {offsets = [1, 0, 0], sizes = [16, 16, 128], strides = [1, 1, 1]} : vector<18x16x128xbf16> to vector<16x16x128xbf16>
    %61 = vector.shape_cast %60 : vector<16x16x128xbf16> to vector<256x128xbf16>
    %c1_28 = arith.constant 1 : index
    %c0_29 = arith.constant 0 : index
    %c0_30 = arith.constant 0 : index
    %62 = vector.load %arg3[%c1_28, %c0_29, %c0_30] : memref<3x128x768xbf16, #tpu.memory_space<vmem>>, vector<1x128x768xbf16>
    %63 = vector.shape_cast %62 : vector<1x128x768xbf16> to vector<128x768xbf16>
    %cst_31 = arith.constant dense<0.000000e+00> : vector<256x768xf32>
    %64 = tpu.matmul %61, %63, %cst_31 {dimension_numbers = #tpu.dot_dimension_numbers<[1], [0], [0], [1], [0, 0, 1, 1], [], []>} : vector<256x128xbf16>, vector<128x768xbf16>, vector<256x768xf32> -> vector<256x768xf32>
    %65 = vector.extract_strided_slice %64 {offsets = [0, 0], sizes = [256, 256], strides = [1, 1]} : vector<256x768xf32> to vector<256x256xf32>
    %66 = arith.addf %55, %65 : vector<256x256xf32>
    %67 = vector.extract_strided_slice %64 {offsets = [0, 256], sizes = [256, 256], strides = [1, 1]} : vector<256x768xf32> to vector<256x256xf32>
    %68 = arith.addf %57, %67 : vector<256x256xf32>
    %69 = vector.extract_strided_slice %64 {offsets = [0, 512], sizes = [256, 256], strides = [1, 1]} : vector<256x768xf32> to vector<256x256xf32>
    %70 = arith.addf %59, %69 : vector<256x256xf32>
    %71 = vector.extract_strided_slice %8 {offsets = [2, 0, 0], sizes = [16, 16, 128], strides = [1, 1, 1]} : vector<18x16x128xbf16> to vector<16x16x128xbf16>
    %72 = vector.shape_cast %71 : vector<16x16x128xbf16> to vector<256x128xbf16>
    %c2_32 = arith.constant 2 : index
    %c0_33 = arith.constant 0 : index
    %c0_34 = arith.constant 0 : index
    %73 = vector.load %arg3[%c2_32, %c0_33, %c0_34] : memref<3x128x768xbf16, #tpu.memory_space<vmem>>, vector<1x128x768xbf16>
    %74 = vector.shape_cast %73 : vector<1x128x768xbf16> to vector<128x768xbf16>
    %cst_35 = arith.constant dense<0.000000e+00> : vector<256x768xf32>
    %75 = tpu.matmul %72, %74, %cst_35 {dimension_numbers = #tpu.dot_dimension_numbers<[1], [0], [0], [1], [0, 0, 1, 1], [], []>} : vector<256x128xbf16>, vector<128x768xbf16>, vector<256x768xf32> -> vector<256x768xf32>
    %76 = vector.extract_strided_slice %75 {offsets = [0, 0], sizes = [256, 256], strides = [1, 1]} : vector<256x768xf32> to vector<256x256xf32>
    %77 = arith.addf %66, %76 : vector<256x256xf32>
    %78 = vector.extract_strided_slice %75 {offsets = [0, 256], sizes = [256, 256], strides = [1, 1]} : vector<256x768xf32> to vector<256x256xf32>
    %79 = arith.addf %68, %78 : vector<256x256xf32>
    %80 = vector.extract_strided_slice %75 {offsets = [0, 512], sizes = [256, 256], strides = [1, 1]} : vector<256x768xf32> to vector<256x256xf32>
    %81 = arith.addf %70, %80 : vector<256x256xf32>
    %82 = vector.extract_strided_slice %41 {offsets = [0, 0], sizes = [256, 256], strides = [1, 1]} : vector<256x384xf32> to vector<256x256xf32>
    %83 = arith.addf %77, %82 : vector<256x256xf32>
    %84 = vector.extract_strided_slice %43 {offsets = [0, 0], sizes = [256, 256], strides = [1, 1]} : vector<256x384xf32> to vector<256x256xf32>
    %85 = arith.addf %79, %84 : vector<256x256xf32>
    %86 = vector.extract_strided_slice %45 {offsets = [0, 0], sizes = [256, 256], strides = [1, 1]} : vector<256x384xf32> to vector<256x256xf32>
    %87 = arith.addf %81, %86 : vector<256x256xf32>
    %88 = vector.shape_cast %83 : vector<256x256xf32> to vector<16x16x256xf32>
    %89 = vector.shape_cast %85 : vector<256x256xf32> to vector<16x16x256xf32>
    %90 = vector.shape_cast %87 : vector<256x256xf32> to vector<16x16x256xf32>
    %cst_36 = arith.constant 0.000000e+00 : f32
    %91 = vector.broadcast %cst_36 : f32 to vector<16x1x256xf32>
    %92 = vector.extract_strided_slice %88 {offsets = [0, 0, 0], sizes = [16, 15, 256], strides = [1, 1, 1]} : vector<16x16x256xf32> to vector<16x15x256xf32>
    %93 = tpu.concatenate %91, %92 in 1 : vector<16x1x256xf32>, vector<16x15x256xf32> -> vector<16x16x256xf32>
    %94 = vector.extract_strided_slice %90 {offsets = [0, 1, 0], sizes = [16, 15, 256], strides = [1, 1, 1]} : vector<16x16x256xf32> to vector<16x15x256xf32>
    %95 = tpu.concatenate %94, %91 in 1 : vector<16x15x256xf32>, vector<16x1x256xf32> -> vector<16x16x256xf32>
    %96 = arith.addf %93, %89 : vector<16x16x256xf32>
    %97 = arith.addf %96, %95 : vector<16x16x256xf32>
    %c0_37 = arith.constant 0 : index
    %c0_38 = arith.constant 0 : index
    %98 = vector.load %arg6[%c0_37, %c0_38] : memref<1x256xf32, #tpu.memory_space<vmem>>, vector<1x256xf32>
    %99 = vector.shape_cast %98 : vector<1x256xf32> to vector<1x1x256xf32>
    %100 = vector.broadcast %99 : vector<1x1x256xf32> to vector<16x16x256xf32>
    %101 = arith.addf %97, %100 : vector<16x16x256xf32>
    %102 = vector.extract_strided_slice %101 {offsets = [0, 0, 0], sizes = [16, 16, 128], strides = [1, 1, 1]} : vector<16x16x256xf32> to vector<16x16x128xf32>
    %103 = arith.negf %102 : vector<16x16x128xf32>
    %104 = math.exp %103 : vector<16x16x128xf32>
    %cst_39 = arith.constant 1.000000e+00 : f32
    %105 = vector.broadcast %cst_39 : f32 to vector<16x16x128xf32>
    %106 = arith.addf %105, %104 : vector<16x16x128xf32>
    %107 = arith.divf %105, %106 : vector<16x16x128xf32>
    %108 = vector.extract_strided_slice %101 {offsets = [0, 0, 128], sizes = [16, 16, 128], strides = [1, 1, 1]} : vector<16x16x256xf32> to vector<16x16x128xf32>
    %109 = arith.negf %108 : vector<16x16x128xf32>
    %110 = math.exp %109 : vector<16x16x128xf32>
    %cst_40 = arith.constant 1.000000e+00 : f32
    %111 = vector.broadcast %cst_40 : f32 to vector<16x16x128xf32>
    %112 = arith.addf %111, %110 : vector<16x16x128xf32>
    %113 = arith.divf %111, %112 : vector<16x16x128xf32>
    %114 = arith.mulf %113, %1 : vector<16x16x128xf32>
    %115 = arith.truncf %114 : vector<16x16x128xf32> to vector<16x16x128xbf16>
    %116 = tpu.concatenate %6, %115, %6 in 0 : vector<1x16x128xbf16>, vector<16x16x128xbf16>, vector<1x16x128xbf16> -> vector<18x16x128xbf16>
    %cst_41 = arith.constant 0.000000e+00 : f32
    %117 = vector.broadcast %cst_41 : f32 to vector<256x128xf32>
    %cst_42 = arith.constant 0.000000e+00 : f32
    %118 = vector.broadcast %cst_42 : f32 to vector<256x128xf32>
    %cst_43 = arith.constant 0.000000e+00 : f32
    %119 = vector.broadcast %cst_43 : f32 to vector<256x128xf32>
    %120 = vector.extract_strided_slice %116 {offsets = [0, 0, 0], sizes = [16, 16, 128], strides = [1, 1, 1]} : vector<18x16x128xbf16> to vector<16x16x128xbf16>
    %121 = vector.shape_cast %120 : vector<16x16x128xbf16> to vector<256x128xbf16>
    %c0_44 = arith.constant 0 : index
    %c0_45 = arith.constant 0 : index
    %c0_46 = arith.constant 0 : index
    %122 = vector.load %arg4[%c0_44, %c0_45, %c0_46] : memref<3x128x384xbf16, #tpu.memory_space<vmem>>, vector<1x128x384xbf16>
    %123 = vector.shape_cast %122 : vector<1x128x384xbf16> to vector<128x384xbf16>
    %cst_47 = arith.constant dense<0.000000e+00> : vector<256x384xf32>
    %124 = tpu.matmul %121, %123, %cst_47 {dimension_numbers = #tpu.dot_dimension_numbers<[1], [0], [0], [1], [0, 0, 1, 1], [], []>} : vector<256x128xbf16>, vector<128x384xbf16>, vector<256x384xf32> -> vector<256x384xf32>
    %125 = vector.extract_strided_slice %124 {offsets = [0, 0], sizes = [256, 128], strides = [1, 1]} : vector<256x384xf32> to vector<256x128xf32>
    %126 = arith.addf %117, %125 : vector<256x128xf32>
    %127 = vector.extract_strided_slice %124 {offsets = [0, 128], sizes = [256, 128], strides = [1, 1]} : vector<256x384xf32> to vector<256x128xf32>
    %128 = arith.addf %118, %127 : vector<256x128xf32>
    %129 = vector.extract_strided_slice %124 {offsets = [0, 256], sizes = [256, 128], strides = [1, 1]} : vector<256x384xf32> to vector<256x128xf32>
    %130 = arith.addf %119, %129 : vector<256x128xf32>
    %131 = vector.extract_strided_slice %116 {offsets = [1, 0, 0], sizes = [16, 16, 128], strides = [1, 1, 1]} : vector<18x16x128xbf16> to vector<16x16x128xbf16>
    %132 = vector.shape_cast %131 : vector<16x16x128xbf16> to vector<256x128xbf16>
    %c1_48 = arith.constant 1 : index
    %c0_49 = arith.constant 0 : index
    %c0_50 = arith.constant 0 : index
    %133 = vector.load %arg4[%c1_48, %c0_49, %c0_50] : memref<3x128x384xbf16, #tpu.memory_space<vmem>>, vector<1x128x384xbf16>
    %134 = vector.shape_cast %133 : vector<1x128x384xbf16> to vector<128x384xbf16>
    %cst_51 = arith.constant dense<0.000000e+00> : vector<256x384xf32>
    %135 = tpu.matmul %132, %134, %cst_51 {dimension_numbers = #tpu.dot_dimension_numbers<[1], [0], [0], [1], [0, 0, 1, 1], [], []>} : vector<256x128xbf16>, vector<128x384xbf16>, vector<256x384xf32> -> vector<256x384xf32>
    %136 = vector.extract_strided_slice %135 {offsets = [0, 0], sizes = [256, 128], strides = [1, 1]} : vector<256x384xf32> to vector<256x128xf32>
    %137 = arith.addf %126, %136 : vector<256x128xf32>
    %138 = vector.extract_strided_slice %135 {offsets = [0, 128], sizes = [256, 128], strides = [1, 1]} : vector<256x384xf32> to vector<256x128xf32>
    %139 = arith.addf %128, %138 : vector<256x128xf32>
    %140 = vector.extract_strided_slice %135 {offsets = [0, 256], sizes = [256, 128], strides = [1, 1]} : vector<256x384xf32> to vector<256x128xf32>
    %141 = arith.addf %130, %140 : vector<256x128xf32>
    %142 = vector.extract_strided_slice %116 {offsets = [2, 0, 0], sizes = [16, 16, 128], strides = [1, 1, 1]} : vector<18x16x128xbf16> to vector<16x16x128xbf16>
    %143 = vector.shape_cast %142 : vector<16x16x128xbf16> to vector<256x128xbf16>
    %c2_52 = arith.constant 2 : index
    %c0_53 = arith.constant 0 : index
    %c0_54 = arith.constant 0 : index
    %144 = vector.load %arg4[%c2_52, %c0_53, %c0_54] : memref<3x128x384xbf16, #tpu.memory_space<vmem>>, vector<1x128x384xbf16>
    %145 = vector.shape_cast %144 : vector<1x128x384xbf16> to vector<128x384xbf16>
    %cst_55 = arith.constant dense<0.000000e+00> : vector<256x384xf32>
    %146 = tpu.matmul %143, %145, %cst_55 {dimension_numbers = #tpu.dot_dimension_numbers<[1], [0], [0], [1], [0, 0, 1, 1], [], []>} : vector<256x128xbf16>, vector<128x384xbf16>, vector<256x384xf32> -> vector<256x384xf32>
    %147 = vector.extract_strided_slice %146 {offsets = [0, 0], sizes = [256, 128], strides = [1, 1]} : vector<256x384xf32> to vector<256x128xf32>
    %148 = arith.addf %137, %147 : vector<256x128xf32>
    %149 = vector.extract_strided_slice %146 {offsets = [0, 128], sizes = [256, 128], strides = [1, 1]} : vector<256x384xf32> to vector<256x128xf32>
    %150 = arith.addf %139, %149 : vector<256x128xf32>
    %151 = vector.extract_strided_slice %146 {offsets = [0, 256], sizes = [256, 128], strides = [1, 1]} : vector<256x384xf32> to vector<256x128xf32>
    %152 = arith.addf %141, %151 : vector<256x128xf32>
    %153 = vector.extract_strided_slice %41 {offsets = [0, 256], sizes = [256, 128], strides = [1, 1]} : vector<256x384xf32> to vector<256x128xf32>
    %154 = arith.addf %148, %153 : vector<256x128xf32>
    %155 = vector.extract_strided_slice %43 {offsets = [0, 256], sizes = [256, 128], strides = [1, 1]} : vector<256x384xf32> to vector<256x128xf32>
    %156 = arith.addf %150, %155 : vector<256x128xf32>
    %157 = vector.extract_strided_slice %45 {offsets = [0, 256], sizes = [256, 128], strides = [1, 1]} : vector<256x384xf32> to vector<256x128xf32>
    %158 = arith.addf %152, %157 : vector<256x128xf32>
    %159 = vector.shape_cast %154 : vector<256x128xf32> to vector<16x16x128xf32>
    %160 = vector.shape_cast %156 : vector<256x128xf32> to vector<16x16x128xf32>
    %161 = vector.shape_cast %158 : vector<256x128xf32> to vector<16x16x128xf32>
    %cst_56 = arith.constant 0.000000e+00 : f32
    %162 = vector.broadcast %cst_56 : f32 to vector<16x1x128xf32>
    %163 = vector.extract_strided_slice %159 {offsets = [0, 0, 0], sizes = [16, 15, 128], strides = [1, 1, 1]} : vector<16x16x128xf32> to vector<16x15x128xf32>
    %164 = tpu.concatenate %162, %163 in 1 : vector<16x1x128xf32>, vector<16x15x128xf32> -> vector<16x16x128xf32>
    %165 = vector.extract_strided_slice %161 {offsets = [0, 1, 0], sizes = [16, 15, 128], strides = [1, 1, 1]} : vector<16x16x128xf32> to vector<16x15x128xf32>
    %166 = tpu.concatenate %165, %162 in 1 : vector<16x15x128xf32>, vector<16x1x128xf32> -> vector<16x16x128xf32>
    %167 = arith.addf %164, %160 : vector<16x16x128xf32>
    %168 = arith.addf %167, %166 : vector<16x16x128xf32>
    %c0_57 = arith.constant 0 : index
    %c0_58 = arith.constant 0 : index
    %169 = vector.load %arg7[%c0_57, %c0_58] : memref<1x128xf32, #tpu.memory_space<vmem>>, vector<1x128xf32>
    %170 = vector.shape_cast %169 : vector<1x128xf32> to vector<1x1x128xf32>
    %171 = vector.broadcast %170 : vector<1x1x128xf32> to vector<16x16x128xf32>
    %172 = arith.addf %168, %171 : vector<16x16x128xf32>
    %173 = math.tanh %172 : vector<16x16x128xf32>
    %cst_59 = arith.constant 1.000000e+00 : f32
    %174 = vector.broadcast %cst_59 : f32 to vector<16x16x128xf32>
    %175 = arith.subf %174, %107 : vector<16x16x128xf32>
    %176 = arith.mulf %175, %1 : vector<16x16x128xf32>
    %177 = arith.mulf %107, %173 : vector<16x16x128xf32>
    %178 = arith.addf %176, %177 : vector<16x16x128xf32>
    %c0_60 = arith.constant 0 : index
    %c0_61 = arith.constant 0 : index
    %c0_62 = arith.constant 0 : index
    %c0_63 = arith.constant 0 : index
    %179 = vector.load %arg8[%c0_60, %c0_61, %c0_62, %c0_63] : memref<1x16x16x128xf32, #tpu.memory_space<vmem>>, vector<1x16x16x128xf32>
    %180 = vector.shape_cast %179 : vector<1x16x16x128xf32> to vector<16x16x128xf32>
    %181 = vector.shape_cast %178 : vector<16x16x128xf32> to vector<1x16x16x128xf32>
    tpu.vector_store %arg8[%c0_60, %c0_61, %c0_62, %c0_63], %181 {strides = array<i32>} : memref<1x16x16x128xf32, #tpu.memory_space<vmem>>, vector<1x16x16x128xf32>,
    return
  }
  func.func @transform_0(%arg0: i32) -> (i32, i32, i32, i32) {
    %c0_i32 = arith.constant 0 : i32
    %c0_i32_0 = arith.constant 0 : i32
    %c0_i32_1 = arith.constant 0 : i32
    %c0_i32_2 = arith.constant 0 : i32
    return %arg0, %c0_i32, %c0_i32_0, %c0_i32_1 : i32, i32, i32, i32
  }
  func.func @transform_1(%arg0: i32) -> (i32, i32, i32, i32) {
    %c0_i32 = arith.constant 0 : i32
    %c0_i32_0 = arith.constant 0 : i32
    %c0_i32_1 = arith.constant 0 : i32
    %c0_i32_2 = arith.constant 0 : i32
    return %arg0, %c0_i32, %c0_i32_0, %c0_i32_1 : i32, i32, i32, i32
  }
  func.func @transform_2(%arg0: i32) -> (i32, i32, i32) {
    %c0_i32 = arith.constant 0 : i32
    %c0_i32_0 = arith.constant 0 : i32
    %c0_i32_1 = arith.constant 0 : i32
    %c0_i32_2 = arith.constant 0 : i32
    return %c0_i32, %c0_i32_0, %c0_i32_1 : i32, i32, i32
  }
  func.func @transform_3(%arg0: i32) -> (i32, i32, i32) {
    %c0_i32 = arith.constant 0 : i32
    %c0_i32_0 = arith.constant 0 : i32
    %c0_i32_1 = arith.constant 0 : i32
    %c0_i32_2 = arith.constant 0 : i32
    return %c0_i32, %c0_i32_0, %c0_i32_1 : i32, i32, i32
  }
  func.func @transform_4(%arg0: i32) -> (i32, i32, i32) {
    %c0_i32 = arith.constant 0 : i32
    %c0_i32_0 = arith.constant 0 : i32
    %c0_i32_1 = arith.constant 0 : i32
    %c0_i32_2 = arith.constant 0 : i32
    return %c0_i32, %c0_i32_0, %c0_i32_1 : i32, i32, i32
  }
  func.func @transform_5(%arg0: i32) -> (i32, i32) {
    %c0_i32 = arith.constant 0 : i32
    %c0_i32_0 = arith.constant 0 : i32
    %c0_i32_1 = arith.constant 0 : i32
    return %c0_i32, %c0_i32_0 : i32, i32
  }
  func.func @transform_6(%arg0: i32) -> (i32, i32) {
    %c0_i32 = arith.constant 0 : i32
    %c0_i32_0 = arith.constant 0 : i32
    %c0_i32_1 = arith.constant 0 : i32
    return %c0_i32, %c0_i32_0 : i32, i32
  }
  func.func @transform_7(%arg0: i32) -> (i32, i32, i32, i32) {
    %c0_i32 = arith.constant 0 : i32
    %c0_i32_0 = arith.constant 0 : i32
    %c0_i32_1 = arith.constant 0 : i32
    %c0_i32_2 = arith.constant 0 : i32
    return %arg0, %c0_i32, %c0_i32_0, %c0_i32_1 : i32, i32, i32, i32
  }
}

</mosaic_0001>

<bundles_post_ra>
// kernel: unit_gru.1
= control target key start
LH: loop header
LB: loop body
LE: loop exit
PB: predicated region body
PF: predicated region fallthrough
CT: control target
= control target key end

     0   :  { %s28156_s0 = inlined_call_operand.hbm [shape: f32[2,16,16,128], index: 0, kind: input, shape index: {}]   ;;  %s28157_s1 = inlined_call_operand.hbm [shape: f32[2,16,16,320], index: 1, kind: input, shape index: {}]   ;;  %s28158_s2 = inlined_call_operand.hbm [shape: bf16[3,128,768], index: 2, kind: input, shape index: {}]   ;;  %s28159_s3 = inlined_call_operand.hbm [shape: bf16[3,128,384], index: 3, kind: input, shape index: {}]   ;;  %s28160_s4 = inlined_call_operand.hbm [shape: bf16[3,320,1152], index: 4, kind: input, shape index: {}]   ;;  %s28161_s5 = inlined_call_operand.hbm [shape: f32[1,256], index: 5, kind: input, shape index: {}]   ;;  %s28162_s6 = inlined_call_operand.hbm [shape: f32[1,128], index: 6, kind: input, shape index: {}]   ;;  %s28163_s7 = inlined_call_operand.hbm [shape: f32[2,16,16,128], index: 7, kind: output, shape index: {}]  }
   0x1   :  { %28279 = sst [smem:[#allocation188_spill]] %s28156_s0 }
   0x2   :  { %28280 = sst [smem:[#allocation189_spill]] %s28158_s2 }
   0x3   :  { %28281 = sst [smem:[#allocation190_spill]] %s28159_s3 }
   0x4   :  { %28282 = sst [smem:[#allocation191_spill]] %s28160_s4 }
   0x5   :  { %28283 = sst [smem:[#allocation192_spill]] %s28161_s5 }
   0x6   :  { %12 = vsyncpa [#allocation3], 0 }
   0x7   :  { %14 = vsyncpa [#allocation3 + $0x1], 0 }
   0x8   :  { %15 = vsyncpa [#allocation6], 0 }
   0x9   :  { %17 = vsyncpa [#allocation6 + $0x1], 0 }
   0xa   :  { %18 = vsyncpa [#allocation9], 0 }
   0xb   :  { %19 = vsyncpa [#allocation12], 0 }
   0xc   :  { %20 = vsyncpa [#allocation4], 0 }
   0xd   :  { %22 = vsyncpa [#allocation4 + $0x1], 0  ;;  %s23561_s24 = smov 0   ;;  %s23563_s25 = smov 0  }
   0xe   :  { %s23565_s26 = smov 0   ;;  %s23567_s27 = smov 0  }
   0xf LB: > { %s23502_s28 = smov [#allocation7]   ;;  %s23582_s30 = sadd.s32 4294967295, %s23500_s27   ;;  %s23500_s27 = sphi %s23567_s27, %s29080_s27   ;;  %s23496_s26 = sphi %s23565_s26, %s29079_s26   ;;  %s23492_s25 = sphi %s23563_s25, %s29078_s25   ;;  %s23488_s24 = sphi %s23561_s24, %s29077_s24  }
  0x10   : > { %s228_s29 = sshll.u32 %s23502_s28, 4  ;;  %p17632_p0 = scmp.ge.s32.totalorder %s23500_s27, 1  ;;  %s23587_s29 = int_to_ptr.vmem [resolvable:$true] %s228_s29 }
  0x11   : > { %p28164_p1 = scmp.eq.s32.totalorder %s23582_s30, 0  ;;  %p216_p2 = scmp.lt.s32.totalorder %s23500_s27, 3 }
  0x12   : > { %s23503_s9 = smov [#allocation8]   ;;  %s23504_s12 = smov [#allocation11]  }
  0x13   : > { %p23589_p3 = pnand %p17632_p0, %p216_p2  ;;  %s241_s10 = sshll.u32 %s23503_s9, 4  ;;  %s23602_s10 = int_to_ptr.vmem [resolvable:$true] %s241_s10 }
  0x14   : > { %s23604_s13 = sshll.u32 %s23504_s12, 4  ;;  %s28286_s2 = sld [smem:[#allocation189_spill]]  ;;  %s269_s13 = int_to_ptr.vmem [resolvable:$true] %s23604_s13 }
  0x15   : > { %s28284_s8 = scalar_select %p23589_p3, 1, 0 }
  0x16   : > { %p21654_p5 = pneg %p23589_p3 }
  0x18   : > { %p23598_p6 = pnand %p21654_p5, %p28164_p1 }
  0x1a   : > { %s23218_s16 = scalar_lea.hbm %s28286_s2, 18432  ;;  %p23614_p8 = pneg %p23598_p6 }
  0x1b   : > { %p23219_p7 = scmp.ne.s32.totalorder %s28286_s2, %s23218_s16  ;;  %p23225_p11 = scmp.lt.u32.totalorder %s23218_s16, %s28286_s2 }
  0x1d   : > { %p23221_p9 = pnand %p23614_p8, %p23219_p7 }
  0x1f   : > { %p23222_p10 = pneg %p23221_p9 }
  0x21   : > { %p23227_p12 = pnand %p23225_p11, %p23222_p10 }
  0x23   : > { %23230 = shalt.err (!%p23227_p12)
}
  0x24   : > { %s23231_s22 = scalar_lea.vmem %s23587_s29, 18432  ;;  %p23239_p5 = scmp.lt.s32.totalorder %s23587_s29, %s23587_s29 }
  0x25   : > { %p23232_p13 = scmp.ne.s32.totalorder %s23587_s29, %s23231_s22  ;;  %p23240_p4 = scmp.lt.s32.totalorder %s23231_s22, %s23231_s22 }
  0x27   : > { %p23234_p0 = pnand %p23232_p13, %p23614_p8  ;;  %p23241_p7 = por %p23240_p4, %p23239_p5 }
  0x29   : > { %p23235_p2 = pneg %p23234_p0 }
  0x2b   : > { %p23242_p9 = pnand %p23241_p7, %p23235_p2 }
  0x2d   : > { %23245 = shalt.err (!%p23242_p9)
}
  0x2e   : > { %s28166_s23 = smov 384   ;;  %s28167_s28 = smov 24  }
  0x2f   : > { %21657 = dma.hbm_to_vmem [thread:$0]  (!%p23598_p6), %s28286_s2, 18432, %s23587_s29, [#allocation6], %s28166_s23, %s28166_s23, %s28167_s28  }
  0x30   : > { %s28288_s3 = sld [smem:[#allocation190_spill]] }
  0x36   : > { %s23246_s16 = scalar_lea.hbm %s28288_s3, 9216 }
  0x37   : > { %p23247_p4 = scmp.ne.s32.totalorder %s28288_s3, %s23246_s16  ;;  %p23253_p12 = scmp.lt.u32.totalorder %s23246_s16, %s28288_s3 }
  0x39   : > { %p23249_p10 = pnand %p23247_p4, %p23614_p8 }
  0x3b   : > { %p23250_p11 = pneg %p23249_p10 }
  0x3d   : > { %p23255_p13 = pnand %p23253_p12, %p23250_p11 }
  0x3f   : > { %23258 = shalt.err (!%p23255_p13)
}
  0x40   : > { %s23259_s29 = scalar_lea.vmem %s23602_s10, 9216  ;;  %p23267_p7 = scmp.lt.s32.totalorder %s23602_s10, %s23602_s10 }
  0x41   : > { %p23260_p0 = scmp.ne.s32.totalorder %s23602_s10, %s23259_s29  ;;  %p23268_p9 = scmp.lt.s32.totalorder %s23259_s29, %s23259_s29 }
  0x43   : > { %p23262_p2 = pnand %p23260_p0, %p23614_p8  ;;  %p23269_p4 = por %p23268_p9, %p23267_p7 }
  0x45   : > { %p23263_p5 = pneg %p23262_p2 }
  0x47   : > { %p23270_p10 = pnand %p23269_p4, %p23263_p5 }
  0x49   : > { %23273 = shalt.err (!%p23270_p10)
}
  0x4a   : > { %s23507_s22 = smov 192   ;;  %s23508_s9 = smov 12  }
  0x4b   : > { %21660 = dma.hbm_to_vmem [thread:$0]  (!%p23598_p6), %s28288_s3, 9216, %s23602_s10, [#allocation9], %s23507_s22, %s23507_s22, %s23508_s9  }
  0x4c   : > { %s28289_s5 = sld [smem:[#allocation192_spill]] }
  0x52   : > { %s23274_s17 = scalar_lea.hbm %s28289_s5, 32 }
  0x53   : > { %p23275_p11 = scmp.ne.s32.totalorder %s28289_s5, %s23274_s17  ;;  %p23281_p0 = scmp.lt.u32.totalorder %s23274_s17, %s28289_s5 }
  0x55   : > { %p23277_p12 = pnand %p23275_p11, %p23614_p8 }
  0x57   : > { %p23278_p13 = pneg %p23277_p12 }
  0x59   : > { %p23283_p2 = pnand %p23281_p0, %p23278_p13 }
  0x5b   : > { %23286 = shalt.err (!%p23283_p2)
}
  0x5c   : > { %s23287_s12 = scalar_lea.vmem %s269_s13, 32  ;;  %p23295_p4 = scmp.lt.s32.totalorder %s269_s13, %s269_s13 }
  0x5d   : > { %p23288_p5 = scmp.ne.s32.totalorder %s269_s13, %s23287_s12  ;;  %p23296_p10 = scmp.lt.s32.totalorder %s23287_s12, %s23287_s12 }
  0x5f   : > { %p23290_p7 = pnand %p23288_p5, %p23614_p8  ;;  %p23297_p1 = por %p23296_p10, %p23295_p4 }
  0x61   : > { %p23291_p9 = pneg %p23290_p7 }
  0x63   : > { %p23298_p3 = pnand %p23297_p1, %p23291_p9 }
  0x65   : > { %23301 = shalt.err (!%p23298_p3)
}
  0x66   : > { %21666 = dma.hbm_to_vmem [thread:$0]  (!%p23598_p6), %s28289_s5, 32, %s269_s13, [#allocation12]  }
  0x67   : > { %s23509_s9 = smov [#allocation10]   ;;  %s28290_s4 = sld [smem:[#allocation191_spill]] }
  0x68   : > { %s254_s14 = sshll.u32 %s23509_s9, 4  ;;  %s255_s14 = int_to_ptr.vmem [resolvable:$true] %s254_s14 }
  0x6d   : > { %s23302_s17 = scalar_lea.hbm %s28290_s4, 69120 }
  0x6e   : > { %p23303_p11 = scmp.ne.s32.totalorder %s28290_s4, %s23302_s17  ;;  %p23309_p12 = scmp.lt.u32.totalorder %s23302_s17, %s28290_s4 }
  0x70   : > { %p23305_p1 = pnand %p23303_p11, %p23614_p8 }
  0x72   : > { %p23306_p3 = pneg %p23305_p1 }
  0x74   : > { %p23311_p13 = pnand %p23309_p12, %p23306_p3 }
  0x76   : > { %23314 = shalt.err (!%p23311_p13)
}
  0x77   : > { %s23315_s13 = scalar_lea.vmem %s255_s14, 69120  ;;  %p23323_p7 = scmp.lt.s32.totalorder %s255_s14, %s255_s14 }
  0x78   : > { %p23316_p0 = scmp.ne.s32.totalorder %s255_s14, %s23315_s13  ;;  %p23324_p9 = scmp.lt.s32.totalorder %s23315_s13, %s23315_s13 }
  0x7a   : > { %p23318_p2 = pnand %p23316_p0, %p23614_p8  ;;  %p23325_p4 = por %p23324_p9, %p23323_p7 }
  0x7c   : > { %p23319_p5 = pneg %p23318_p2 }
  0x7e   : > { %p23326_p10 = pnand %p23325_p4, %p23319_p5 }
  0x80   : > { %23329 = shalt.err (!%p23326_p10)
}
  0x81   : > { %s23510_s12 = smov 576   ;;  %s23511_s10 = smov 36  }
  0x82   : > { %21663 = dma.hbm_to_vmem [thread:$0]  (!%p23598_p6), %s28290_s4, 69120, %s255_s14, [#allocation9], %s23510_s12, %s23510_s12, %s23511_s10  }
  0x83   : > { %s23512_s15 = smov [#allocation13]   ;;  %s23330_s20 = scalar_lea.hbm %s28162_s6, 16 }
  0x84   : > { %s279_s16 = sshll.u32 %s23512_s15, 4  ;;  %p23331_p11 = scmp.ne.s32.totalorder %s28162_s6, %s23330_s20  ;;  %s280_s16 = int_to_ptr.vmem [resolvable:$true] %s279_s16 }
  0x85   : > { %p23337_p12 = scmp.lt.u32.totalorder %s23330_s20, %s28162_s6 }
  0x86   : > { %p23333_p1 = pnand %p23331_p11, %p23614_p8 }
  0x88   : > { %p23334_p3 = pneg %p23333_p1 }
  0x8a   : > { %p23339_p13 = pnand %p23337_p12, %p23334_p3 }
  0x8c   : > { %23342 = shalt.err (!%p23339_p13)
}
  0x8d   : > { %s23343_s14 = scalar_lea.vmem %s280_s16, 16  ;;  %s23350_s12 = scalar_lea.vmem %s280_s16, 32 }
  0x8e   : > { %p23344_p0 = scmp.ne.s32.totalorder %s280_s16, %s23343_s14  ;;  %p23351_p7 = scmp.lt.s32.totalorder %s280_s16, %s280_s16 }
  0x8f   : > { %p23352_p9 = scmp.lt.s32.totalorder %s23350_s12, %s23343_s14 }
  0x90   : > { %p23346_p2 = pnand %p23344_p0, %p23614_p8 }
  0x91   : > { %p23353_p4 = por %p23352_p9, %p23351_p7 }
  0x92   : > { %p23347_p5 = pneg %p23346_p2 }
  0x94   : > { %p23354_p10 = pnand %p23353_p4, %p23347_p5 }
  0x96   : > { %23357 = shalt.err (!%p23354_p10)
}
  0x97   : > { %21669 = dma.hbm_to_vmem [thread:$0]  (!%p23598_p6), %s28162_s6, 16, %s280_s16, [#allocation12]  }
  0x98   : > { %s17631_s19 = sadd.s32 4294967294, %s23500_s27   ;;  %s23718_s11 = sadd.s32 1, %s23500_s27  }
  0x99   : > { %s35_s23 = sadd.s32 1, %s23496_s26  ;;  %s32_s9 = ssub.s32 %s23500_s27, %s23718_s11 }
  0x9a   : > { %p42_p8 = scmp.ne.s32.totalorder %s23496_s26, %s23492_s25  ;;  %p33_p11 = scmp.eq.s32.totalorder %s32_s9, 0 }
  0x9b   : > { %p43_p1 = scmp.eq.s32.totalorder %s23500_s27, 0  ;;  %p48_p3 = scmp.ne.s32.totalorder %s23492_s25, %s23488_s24 }
  0x9c   : > { %p203_p12 = scmp.eq.s32.totalorder %s23582_s30, 1  ;;  %p28291_p0 = scmp.eq.s32.totalorder %s23582_s30, 0 }
  0x9d   : > { %s23730_s15 = scalar_select %p33_p11, %s23496_s26, %s35_s23  }
  0x9e   : > { %p44_p13 = por %p43_p1, %p42_p8  ;;  %p23734_p2 = por %p28291_p0, %p48_p3 }
  0x9f   : > { %p23738_p6 = por %p203_p12, %p42_p8  ;;  %p209_p5 = scmp.eq.s32.totalorder %s17631_s19, 1 }
  0xa0   : > { %p21686_p7 = scmp.lt.s32.totalorder %s23500_s27, 2  ;;  %s23744_s18 = sand.u32 1, %s23496_s26  }
  0xa1   : > { %s28293_s16 = scalar_select %p23738_p6, 1, 0 }
  0xa2   : > { %p23746_p9 = por %p209_p5, %p48_p3  ;;  %s17639_s21 = sshll.u32 %s23744_s18, 8 }
  0xa3   : > { %s18707_s29 = sshll.u32 %s23500_s27, 12  ;;  %s28295_s0 = sld [smem:[#allocation188_spill]] }
  0xa4   : > { %s28294_s20 = scalar_select %p23746_p9, 1, 0 }
  0xa5   : > { %s294_s10 = scalar_lea.vmem [#allocation2], %s17639_s21  ;;  %p23757_p4 = pnand %p21686_p7, %p44_p13 }
  0xa6   : > { %s301_s22 = sshll.u32 %s294_s10, 4  ;;  %s291_s23 = scalar_lea.sflag [#allocation3], %s23744_s18  ;;  %s23761_s22 = int_to_ptr.vmem [resolvable:$true] %s301_s22 }
  0xa7   : > { %p23360_p8 = pneg %p23757_p4 }
  0xa9   : > { %s23755_s12 = scalar_lea.hbm %s28295_s0, %s18707_s29  ;;  %s23363_s13 = scalar_lea.hbm %s28295_s0, 8192 }
  0xaa   : > { %s23358_s9 = scalar_lea.hbm %s23755_s12, 4096  ;;  %p23364_p3 = scmp.lt.u32.totalorder %s23755_s12, %s28295_s0 }
  0xab   : > { %p23359_p10 = scmp.ne.s32.totalorder %s23755_s12, %s23358_s9  ;;  %p23365_p12 = scmp.lt.u32.totalorder %s23363_s13, %s23358_s9 }
  0xac   : > { %p23367_p0 = scmp.lt.u32.totalorder %s23358_s9, %s23755_s12 }
  0xad   : > { %p23361_p11 = pnand %p23360_p8, %p23359_p10  ;;  %p23366_p13 = por %p23365_p12, %p23364_p3 }
  0xaf   : > { %p23362_p1 = pneg %p23361_p11  ;;  %p23368_p5 = por %p23367_p0, %p23366_p13 }
  0xb1   : > { %p23369_p7 = pnand %p23368_p5, %p23362_p1 }
  0xb3   : > { %23372 = shalt.err (!%p23369_p7)
}
  0xb4   : > { %s23373_s28 = scalar_lea.vmem %s23761_s22, 4096  ;;  %s23513_s29 = smov [#allocation2]  }
  0xb5   : > { %p23374_p10 = scmp.ne.s32.totalorder %s23761_s22, %s23373_s28  ;;  %s23378_s21 = sshll.u32 %s23513_s29, 4  ;;  %s23379_s21 = int_to_ptr.vmem [resolvable:$false] %s23378_s21 }
  0xb6   : > { %s23380_s14 = scalar_lea.vmem %s23379_s21, 8192  ;;  %p23381_p6 = scmp.lt.s32.totalorder %s23761_s22, %s23379_s21 }
  0xb7   : > { %p23376_p11 = pnand %p23374_p10, %p23360_p8  ;;  %p23382_p3 = scmp.lt.s32.totalorder %s23380_s14, %s23373_s28 }
  0xb9   : > { %p23377_p9 = pneg %p23376_p11  ;;  %p23383_p12 = por %p23382_p3, %p23381_p6 }
  0xbb   : > { %p23384_p13 = pnand %p23383_p12, %p23377_p9 }
  0xbd   : > { %23387 = shalt.err (!%p23384_p13)
}
  0xbe   : > { %s23514_s9 = smov 128   ;;  %s23515_s13 = smov 8  }
  0xbf   : > { %21673 = dma.hbm_to_vmem [thread:$0]  (!%p23757_p4), %s23755_s12, 4096, %s23761_s22, %s291_s23, %s23514_s9, %s23514_s9, %s23515_s13  }
  0xc0   : > { %s311_s10 = sand.u32 1, %s23500_s27   ;;  %s21625_s29 = smul.u32 768, %s23744_s18 }
  0xc1   : > { %s21626_s21 = smul.u32 12288, %s23500_s27  ;;  %s23801_s4 = scalar_lea.sflag [#allocation6], %s311_s10 }
  0xc2   : > { %s315_s2 = scalar_lea.vmem [#allocation5], %s21625_s29  ;;  %s23393_s22 = scalar_lea.hbm %s28157_s1, 24576 }
  0xc3   : > { %s23797_s0 = scalar_lea.hbm %s28157_s1, %s21626_s21  ;;  %s322_s3 = sshll.u32 %s315_s2, 4  ;;  %s23799_s3 = int_to_ptr.vmem [resolvable:$true] %s322_s3 }
  0xc4   : > { %s23388_s5 = scalar_lea.hbm %s23797_s0, 12288  ;;  %p23394_p0 = scmp.lt.u32.totalorder %s23797_s0, %s28157_s1 }
  0xc5   : > { %p23389_p6 = scmp.ne.s32.totalorder %s23797_s0, %s23388_s5  ;;  %p23395_p5 = scmp.lt.u32.totalorder %s23393_s22, %s23388_s5 }
  0xc6   : > { %p23397_p10 = scmp.lt.u32.totalorder %s23388_s5, %s23797_s0 }
  0xc7   : > { %p23391_p9 = pnand %p23389_p6, %p23360_p8  ;;  %p23396_p7 = por %p23395_p5, %p23394_p0 }
  0xc9   : > { %p23392_p1 = pneg %p23391_p9  ;;  %p23398_p11 = por %p23397_p10, %p23396_p7 }
  0xcb   : > { %p23399_p3 = pnand %p23398_p11, %p23392_p1 }
  0xcd   : > { %23402 = shalt.err (!%p23399_p3)
}
  0xce   : > { %s23403_s2 = scalar_lea.vmem %s23799_s3, 12288  ;;  %s23516_s13 = smov [#allocation5]  }
  0xcf   : > { %p23404_p12 = scmp.ne.s32.totalorder %s23799_s3, %s23403_s2  ;;  %s23408_s10 = sshll.u32 %s23516_s13, 4  ;;  %s23409_s10 = int_to_ptr.vmem [resolvable:$false] %s23408_s10 }
  0xd0   : > { %s23410_s29 = scalar_lea.vmem %s23409_s10, 24576  ;;  %p23411_p9 = scmp.lt.s32.totalorder %s23799_s3, %s23409_s10 }
  0xd1   : > { %p23406_p13 = pnand %p23404_p12, %p23360_p8  ;;  %p23412_p0 = scmp.lt.s32.totalorder %s23410_s29, %s23403_s2 }
  0xd3   : > { %p23407_p6 = pneg %p23406_p13  ;;  %p23413_p5 = por %p23412_p0, %p23411_p9 }
  0xd5   : > { %p23414_p7 = pnand %p23413_p5, %p23407_p6 }
  0xd7   : > { %23417 = shalt.err (!%p23414_p7)
}
  0xd8   : > { %s28297_s5 = smov 24   ;;  %s28298_s21 = smov 384  }
  0xd9   : > { %21676 = dma.hbm_to_vmem [thread:$0]  (!%p23757_p4), %s23797_s0, 12288, %s23799_s3, %s23801_s4, %s28298_s21, %s28298_s21, %s28297_s5  }
  0xda   : > { %p28299_p8 = scmp.ne.s32.totalorder %s28284_s8, 0 }
  0xdc   : > { %334 = sbr.rel (%p28299_p8) target bundleno = 3545 (0xdd9), region = 48 }
  0xe3   : > { %s23833_s28 = sand.u32 1, %s23492_s25  }
  0xe4   : > { %s17644_s14 = sshll.u32 %s23833_s28, 8  ;;  %s337_s18 = scalar_lea.sflag [#allocation3], %s23833_s28 }
  0xe5   : > { %s23839_s19 = scalar_lea.vmem [#allocation2], %s17644_s14 }
  0xe6   : > { %23463 = dma.done.wait (%p23734_p2), %s337_s18, 4096  }
  0xe7   : > { %23465 = vsyncadd (%p23734_p2), %s337_s18, 4294963200  ;;  %s345_s0 = sand.u32 1, %s23582_s30   ;;  %s21627_s3 = smul.u32 768, %s23833_s28 }
  0xe8   : > { %s346_s4 = scalar_lea.sflag [#allocation6], %s345_s0 }
  0xe9   : > { %s23847_s8 = scalar_lea.vmem [#allocation5], %s21627_s3 }
  0xea   : > { %23467 = dma.done.wait (%p23734_p2), %s346_s4, 12288  }
  0xeb   : > { %23469 = vsyncadd (%p23734_p2), %s346_s4, 4294955008  ;;  %p28300_p4 = scmp.eq.s32.totalorder %s23582_s30, 0 }
  0xed   : > { %23471 = dma.done.wait (%p28300_p4), [#allocation6], 18432   ;;  %p28301_p1 = pmov %p28300_p4 }
  0xef   : > { %23473 = vsyncadd (%p28301_p1), [#allocation6], 4294948864  ;;  %p28302_p10 = pmov %p28301_p1 }
  0xf0   : > { %p28303_p11 = pmov %p28301_p1 }
  0xf1   : > { %23475 = dma.done.wait (%p28302_p10), [#allocation9], 78336  }
  0xf2   : > { %23477 = vsyncadd (%p28303_p11), [#allocation9], 4294888960  ;;  %p28304_p3 = pmov %p28301_p1 }
  0xf3   : > { %p28305_p12 = pmov %p28301_p1 }
  0xf4   : > { %23479 = dma.done.wait (%p28304_p3), [#allocation12], 48  }
  0xf5   : > { %23481 = vsyncadd (%p28305_p12), [#allocation12], 4294967248  ;;  %v28179_v0 = vmov 0   ;;  %v21741_v1 = vld [vmem:[#allocation10 + $0x4] ss:$36 sps:$4 sm:$0xff]   ;;  %v528_v17 = vld [vmem:[%s23847_s8 + $0x250] sm:$0xff] }
  0xf6   : > { %2122 = vmatprep.mubr.bf16.mxu1 %v28179_v0  ;;  %1799 = vmatprep.mubr.bf16.mxu0 %v28179_v0  ;;  %v23867_v2 = vld [vmem:[#allocation10 + $0x484] ss:$36 sps:$4 sm:$0xff]   ;;  %v21747_v5 = vld [vmem:[#allocation10 + $0x4c] ss:$36 sps:$4 sm:$0xff]   ;;  %v21753_v9 = vld [vmem:[#allocation10 + $0x94] ss:$36 sps:$4 sm:$0xff]  }
  0xf7   : > { %1767 = vmatprep.subr.bf16.mxu0 %v21741_v1  ;;  %v21745_v3 = vld [vmem:[#allocation10] ss:$36 sps:$4 sm:$0xff]   ;;  %19441 = vmatprep.subr.bf16.mxu1 %v23867_v2  ;;  %v23873_v6 = vld [vmem:[#allocation10 + $0x4cc] ss:$36 sps:$4 sm:$0xff]   ;;  %v23878_v10 = vld [vmem:[#allocation10 + $0x514] ss:$36 sps:$4 sm:$0xff]  }
  0xf8   : > { %v23869_v4 = vld [vmem:[#allocation10 + $0x480] ss:$36 sps:$4 sm:$0xff]   ;;  %1768 = vmatpush1.bf16.msra.mxu0 %v21745_v3  ;;  %v21751_v7 = vld [vmem:[#allocation10 + $0x48] ss:$36 sps:$4 sm:$0xff]   ;;  %v21757_v11 = vld [vmem:[#allocation10 + $0x90] ss:$36 sps:$4 sm:$0xff]  }
  0xf9   : > { %19445 = vmatpush1.bf16.msra.mxu1 %v23869_v4  ;;  %1769 = vmatprep.subr.bf16.mxu0 %v21747_v5  ;;  %v23875_v8 = vld [vmem:[#allocation10 + $0x4c8] ss:$36 sps:$4 sm:$0xff]   ;;  %v23880_v12 = vld [vmem:[#allocation10 + $0x510] ss:$36 sps:$4 sm:$0xff]   ;;  %v21759_v13 = vld [vmem:[#allocation10 + $0xdc] ss:$36 sps:$4 sm:$0xff]  }
  0xfa   : > { %19442 = vmatprep.subr.bf16.mxu1 %v23873_v6  ;;  %v23884_v14 = vld [vmem:[#allocation10 + $0x55c] ss:$36 sps:$4 sm:$0xff]   ;;  %v531_v18 = vld [vmem:[%s23847_s8 + $0x268] sm:$0xff]  ;;  %vm1718_vm0 = vcmask 523264   ;;  %v21776_v25 = vld [vmem:[#allocation10 + $0x4d4] ss:$36 sps:$4 sm:$0xff]  }
  0xfb   : > { %v21763_v15 = vld [vmem:[#allocation10 + $0xd8] ss:$36 sps:$4 sm:$0xff]   ;;  %v21765_v19 = vld [vmem:[#allocation10 + $0x124] ss:$36 sps:$4 sm:$0xff]   ;;  %v21769_v20 = vld [vmem:[#allocation10 + $0x48c] ss:$36 sps:$4 sm:$0xff]   ;;  %v23892_v21 = vpack.c.bf16 %v531_v18, %v528_v17 }
  0xfc   : > { %1770 = vmatpush1.bf16.msra.mxu0 %v21751_v7  ;;  %v23886_v16 = vld [vmem:[#allocation10 + $0x558] ss:$36 sps:$4 sm:$0xff]   ;;  %v21767_v22 = vld [vmem:[#allocation10 + $0x488] ss:$36 sps:$4 sm:$0xff]   ;;  %v21770_v23 = vld [vmem:[#allocation10 + $0x120] ss:$36 sps:$4 sm:$0xff]  }
  0xfd   : > { %19446 = vmatpush1.bf16.msra.mxu1 %v23875_v8  ;;  %1771 = vmatprep.subr.bf16.mxu0 %v21753_v9  ;;  %v21771_v24 = vld [vmem:[#allocation10 + $0x16c] ss:$36 sps:$4 sm:$0xff]   ;;  %v21777_v28 = vld [vmem:[#allocation10 + $0x1b4] ss:$36 sps:$4 sm:$0xff]   ;;  %v534_v29 = vld [vmem:[%s23847_s8 + $0x280] sm:$0xff]  ;;  %vm13909_vm1 = vcmask 1040384  }
  0xfe   : > { %19443 = vmatprep.subr.bf16.mxu1 %v23878_v10  ;;  %v21773_v26 = vld [vmem:[#allocation10 + $0x168] ss:$36 sps:$4 sm:$0xff]   ;;  %v21774_v27 = vld [vmem:[#allocation10 + $0x4d0] ss:$36 sps:$4 sm:$0xff]   ;;  %v537_v30 = vld [vmem:[%s23847_s8 + $0x298] sm:$0xff]  ;;  %vm14166_vm2 = vcmask 1046528  }
  0xff   : > { %v21784_v31 = vld [vmem:[#allocation10 + $0x51c] ss:$36 sps:$4 sm:$0xff]   ;;  %v23900_v32 = vpack.c.bf16 %v537_v30, %v534_v29  ;;  %v21779_v33 = vld [vmem:[#allocation10 + $0x1b0] ss:$36 sps:$4 sm:$0xff]   ;;  %v21791_v37 = vld [vmem:[#allocation10 + $0x564] ss:$36 sps:$4 sm:$0xff]  }
 0x100   : > { %1772 = vmatpush1.bf16.msra.mxu0 %v21757_v11  ;;  %v21782_v34 = vld [vmem:[#allocation10 + $0x518] ss:$36 sps:$4 sm:$0xff]   ;;  %v540_v38 = vld [vmem:[%s23847_s8 + $0x2b0] sm:$0xff]  ;;  %v543_v39 = vld [vmem:[%s23847_s8 + $0x2c8] sm:$0xff]  ;;  %s27745_s17 = scalar_lea.vmem [#allocation14], %s17644_s14  ;;  %s18708_s12 = sshll.u32 %s23582_s30, 12 }
 0x101   : > { %19447 = vmatpush1.bf16.msra.mxu1 %v23880_v12  ;;  %1773 = vmatprep.subr.bf16.mxu0 %v21759_v13  ;;  %28306 = vst [vmem:[#allocation21_spill] sm:$0xff] %v23900_v32  ;;  %v21780_v35 = vld [vmem:[#allocation10 + $0x1fc] ss:$36 sps:$4 sm:$0xff]   ;;  %v21786_v41 = vld [vmem:[#allocation10 + $0x244] ss:$36 sps:$4 sm:$0xff]   ;;  %v23907_v43 = vpack.c.bf16 %v543_v39, %v540_v38  ;;  %v456_v53 = vld [vmem:[%s23847_s8 + $0x10] sm:$0xff]  ;;  %s28108_s2 = scalar_lea.hbm %s28163_s7, %s18708_s12 }
 0x102   : > { %19444 = vmatprep.subr.bf16.mxu1 %v23884_v14  ;;  %v21785_v36 = vld [vmem:[#allocation10 + $0x1f8] ss:$36 sps:$4 sm:$0xff]   ;;  %v21789_v40 = vld [vmem:[#allocation10 + $0x560] ss:$36 sps:$4 sm:$0xff]   ;;  %v21792_v45 = vld [vmem:[#allocation10 + $0x28c] ss:$36 sps:$4 sm:$0xff]  }
 0x103   : > { %v21799_v42 = vld [vmem:[#allocation10 + $0x1c] ss:$36 sps:$4 sm:$0xff]   ;;  %28307 = vst [vmem:[#allocation22_spill] sm:$0xff] %v23907_v43  ;;  %v21794_v46 = vld [vmem:[#allocation10 + $0x288] ss:$36 sps:$4 sm:$0xff]   ;;  %s17488_s22 = sshll.u32 %s27745_s17, 4  ;;  %s28110_s22 = int_to_ptr.vmem [resolvable:$true] %s17488_s22 }
 0x104   : > { %1774 = vmatpush1.bf16.msra.mxu0 %v21763_v15  ;;  %v21788_v44 = vld [vmem:[#allocation10 + $0x240] ss:$36 sps:$4 sm:$0xff]   ;;  %v21795_v47 = vld [vmem:[#allocation10 + $0x2d4] ss:$36 sps:$4 sm:$0xff]   ;;  %v459_v54 = vld [vmem:[%s23847_s8 + $0x28] sm:$0xff]  ;;  %s17475_s30 = scalar_lea.sflag [#allocation4], %s23833_s28 }
 0x105   : > { %19448 = vmatpush1.bf16.msra.mxu1 %v23886_v16  ;;  %1775 = vmatprep.subr.bf16.mxu0 %v21765_v19  ;;  %v21797_v48 = vld [vmem:[#allocation10 + $0x18] ss:$36 sps:$4 sm:$0xff]   ;;  %v21800_v49 = vld [vmem:[#allocation10 + $0x2d0] ss:$36 sps:$4 sm:$0xff]   ;;  %v21808_v51 = vld [vmem:[#allocation10 + $0x64] ss:$36 sps:$4 sm:$0xff]   ;;  %v23916_v58 = vpack.c.bf16 %v459_v54, %v456_v53 }
 0x106   : > { %2346 = vmatprep.subr.bf16.mxu1 %v21769_v20  ;;  %v21801_v50 = vld [vmem:[#allocation10 + $0x31c] ss:$36 sps:$4 sm:$0xff]   ;;  %v21804_v56 = vld [vmem:[#allocation10 + $0x364] ss:$36 sps:$4 sm:$0xff]   ;;  %v21817_v57 = vld [vmem:[#allocation10 + $0xac] ss:$36 sps:$4 sm:$0xff]  }
 0x107   : > { %v21803_v52 = vld [vmem:[#allocation10 + $0x318] ss:$36 sps:$4 sm:$0xff]   ;;  %v21806_v55 = vld [vmem:[#allocation10 + $0x60] ss:$36 sps:$4 sm:$0xff]   ;;  %28308 = vst [vmem:[#allocation23_spill] sm:$0xff] %v23916_v58  ;;  %v468_v20 = vld [vmem:[%s23847_s8 + $0x70] sm:$0xff] }
 0x108   : > { %17843 = vmatmul.mubr.msk.bf16.vlgmr.msra.gmra.mrb[0].mxu1 %vm1718_vm0, %v23892_v21  ;;  %1776 = vmatpush1.bf16.msra.mxu0 %v21770_v23  ;;  %v21809_v59 = vld [vmem:[#allocation10 + $0x360] ss:$36 sps:$4 sm:$0xff]   ;;  %v21810_v60 = vld [vmem:[#allocation10 + $0x3ac] ss:$36 sps:$4 sm:$0xff]   ;;  %v21824_v62 = vld [vmem:[#allocation10 + $0xf4] ss:$36 sps:$4 sm:$0xff]  }
 0x109   : > { %2347 = vmatpush1.bf16.msra.mxu1 %v21767_v22  ;;  %1777 = vmatprep.subr.bf16.mxu0 %v21771_v24  ;;  %v21815_v61 = vld [vmem:[#allocation10 + $0xa8] ss:$36 sps:$4 sm:$0xff]   ;;  %v21813_v1 = vld [vmem:[#allocation10 + $0x3f4] ss:$36 sps:$4 sm:$0xff]   ;;  %v462_v3 = vld [vmem:[%s23847_s8 + $0x40] sm:$0xff]  ;;  %s23418_s13 = scalar_lea.vmem %s28110_s22, 4096 }
 0x10a   : > { %2348 = vmatprep.subr.bf16.mxu1 %v21776_v25  ;;  %2132 = vmatprep.mubr.bf16.mxu1 %v28179_v0  ;;  %v21812_v63 = vld [vmem:[#allocation10 + $0x3a8] ss:$36 sps:$4 sm:$0xff]   ;;  %v465_v5 = vld [vmem:[%s23847_s8 + $0x58] sm:$0xff]  ;;  %v21822_v7 = vld [vmem:[#allocation10 + $0xf0] ss:$36 sps:$4 sm:$0xff]   ;;  %p23419_p2 = scmp.ne.s32.totalorder %s28110_s22, %s23418_s13  ;;  %p29074_p13 = scmp.ne.s32.totalorder %s28293_s16, 0 }
 0x10b   : > { %v21827_v9 = vld [vmem:[#allocation10 + $0x13c] ss:$36 sps:$4 sm:$0xff]   ;;  %v23923_v11 = vpack.c.bf16 %v465_v5, %v462_v3  ;;  %v21818_v13 = vld [vmem:[#allocation10 + $0x3f0] ss:$36 sps:$4 sm:$0xff]   ;;  %v21830_v18 = vld [vmem:[#allocation10 + $0x184] ss:$36 sps:$4 sm:$0xff]  }
 0x10c   : > { %1778 = vmatpush1.bf16.msra.mxu0 %v21773_v26  ;;  %v21819_v15 = vld [vmem:[#allocation10 + $0x43c] ss:$36 sps:$4 sm:$0xff]   ;;  %v471_v22 = vld [vmem:[%s23847_s8 + $0x88] sm:$0xff]  ;;  %v21836_v30 = vld [vmem:[#allocation10 + $0x214] ss:$36 sps:$4 sm:$0xff]   ;;  %p23420_p6 = pnand %p23419_p2, %p29074_p13  ;;  %s23518_s10 = smov [#allocation14]  }
 0x10d   : > { %2349 = vmatpush1.bf16.msra.mxu1 %v21774_v27  ;;  %1779 = vmatprep.subr.bf16.mxu0 %v21777_v28  ;;  %28309 = vst [vmem:[#allocation24_spill] sm:$0xff] %v23923_v11  ;;  %v21825_v17 = vld [vmem:[#allocation10 + $0x138] ss:$36 sps:$4 sm:$0xff]   ;;  %v455_v23 = vld [vmem:[%s23847_s8 + $0x8] sm:$0xff]  ;;  %v458_v24 = vld [vmem:[%s23847_s8 + $0x20] sm:$0xff]  ;;  %v23932_v27 = vpack.c.bf16 %v471_v22, %v468_v20  ;;  %s23422_s29 = sshll.u32 %s23518_s10, 4  ;;  %s23423_s29 = int_to_ptr.vmem [resolvable:$false] %s23422_s29 }
 0x10e   : > { %2350 = vmatprep.subr.bf16.mxu1 %v21784_v31  ;;  %v21821_v19 = vld [vmem:[#allocation10 + $0x438] ss:$36 sps:$4 sm:$0xff]   ;;  %v21828_v25 = vld [vmem:[#allocation10 + $0x180] ss:$36 sps:$4 sm:$0xff]   ;;  %v21833_v26 = vld [vmem:[#allocation10 + $0x1cc] ss:$36 sps:$4 sm:$0xff]   ;;  %v23934_v28 = vpack.c.bf16 %v458_v24, %v455_v23  ;;  %p23421_p9 = pneg %p23420_p6  ;;  %p23425_p0 = scmp.lt.s32.totalorder %s28110_s22, %s23423_s29 }
 0x10f   : > { %28310 = vst [vmem:[#allocation25_spill] sm:$0xff] %v23932_v27  ;;  %v21831_v29 = vld [vmem:[#allocation10 + $0x1c8] ss:$36 sps:$4 sm:$0xff]   ;;  %v454_v31 = vld [vmem:[%s23847_s8] sm:$0xff]  ;;  %v21834_v38 = vld [vmem:[#allocation10 + $0x210] ss:$36 sps:$4 sm:$0xff]  }
 0x110   : > { %17844 = vmatmul.mubr.msk.bf16.gmra.mrb[4].mxu1 %vm1718_vm0, %v23900_v32  ;;  %1780 = vmatpush1.bf16.msra.mxu0 %v21779_v33  ;;  %28311 = vst [vmem:[#allocation26_spill] sm:$0xff] %v23934_v28  ;;  %v457_v33 = vld [vmem:[%s23847_s8 + $0x18] sm:$0xff]  ;;  %v466_v53 = vld [vmem:[%s23847_s8 + $0x60] sm:$0xff]  ;;  %v472_v3 = vld [vmem:[%s23847_s8 + $0x90] sm:$0xff]  ;;  %s23424_s5 = scalar_lea.vmem %s23423_s29, 8192 }
 0x111   : > { %2351 = vmatpush1.bf16.msra.mxu1 %v21782_v34  ;;  %1781 = vmatprep.subr.bf16.mxu0 %v21780_v35  ;;  %v474_v34 = vld [vmem:[%s23847_s8 + $0xa0] sm:$0xff]  ;;  %v477_v35 = vld [vmem:[%s23847_s8 + $0xb8] sm:$0xff]  ;;  %v23950_v39 = vpack.c.bf16 %v457_v33, %v454_v31  ;;  %v475_v5 = vld [vmem:[%s23847_s8 + $0xa8] sm:$0xff]  ;;  %p23426_p5 = scmp.lt.s32.totalorder %s23424_s5, %s23418_s13 }
 0x112   : > { %2142 = vmatprep.mubr.bf16.mxu1 %v28179_v0  ;;  %2352 = vmatprep.subr.bf16.mxu1 %v21791_v37  ;;  %v464_v37 = vld [vmem:[%s23847_s8 + $0x50] sm:$0xff]  ;;  %v486_v54 = vld [vmem:[%s23847_s8 + $0x100] sm:$0xff]  ;;  %v21855_v22 = vld [vmem:[#allocation10 + $0x408] ss:$36 sps:$4 sm:$0xff]  }
 0x113   : > { %v21860_v24 = vld [vmem:[#allocation10 + $0x454] ss:$36 sps:$4 sm:$0xff]   ;;  %p23427_p7 = por %p23426_p5, %p23425_p0 }
 0x114   : > { %1782 = vmatpush1.bf16.msra.mxu0 %v21785_v36  ;;  %v461_v36 = vld [vmem:[%s23847_s8 + $0x38] sm:$0xff]  ;;  %v488_v33 = vld [vmem:[%s23847_s8 + $0x110] sm:$0xff] }
 0x115   : > { %2353 = vmatpush1.bf16.msra.mxu1 %v21789_v40  ;;  %1783 = vmatprep.subr.bf16.mxu0 %v21786_v41  ;;  %v23952_v40 = vpack.c.bf16 %v477_v35, %v474_v34  ;;  %v23954_v41 = vpack.c.bf16 %v464_v37, %v461_v36  ;;  %v485_v31 = vld [vmem:[%s23847_s8 + $0xf8] sm:$0xff]  ;;  %v21858_v34 = vld [vmem:[#allocation10 + $0x450] ss:$36 sps:$4 sm:$0xff]   ;;  %p23428_p8 = pnand %p23427_p7, %p23421_p9 }
 0x116   : > { %2925 = vmatprep.subr.bf16.mxu1 %v21799_v42  ;;  %v21837_v42 = vld [vmem:[#allocation10 + $0x258] ss:$36 sps:$4 sm:$0xff]  }
 0x117   : > { %28312 = vst [vmem:[#allocation27_spill] sm:$0xff] %v23952_v40  ;;  %28313 = vst [vmem:[#allocation28_spill] sm:$0xff] %v23954_v41  ;;  %v21863_v35 = vld [vmem:[#allocation10 + $0x49c] ss:$36 sps:$4 sm:$0xff]  }
 0x118   : > { %17845 = vmatmul.mubr.msk.bf16.gmra.mrb[8].mxu1 %vm1718_vm0, %v23907_v43  ;;  %1784 = vmatpush1.bf16.msra.mxu0 %v21788_v44  ;;  %v463_v44 = vld [vmem:[%s23847_s8 + $0x48] sm:$0xff] }
 0x119   : > { %2378 = vmatprep.mubr.bf16.mxu1 %v28179_v0  ;;  %1785 = vmatprep.subr.bf16.mxu0 %v21792_v45  ;;  %v480_v45 = vld [vmem:[%s23847_s8 + $0xd0] sm:$0xff] }
 0x11c   : > { %1786 = vmatpush1.bf16.msra.mxu0 %v21794_v46  ;;  %v483_v46 = vld [vmem:[%s23847_s8 + $0xe8] sm:$0xff] }
 0x11d   : > { %1787 = vmatprep.subr.bf16.mxu0 %v21795_v47  ;;  %v467_v47 = vld [vmem:[%s23847_s8 + $0x68] sm:$0xff] }
 0x120   : > { %2379 = vmatmul.mubr.bf16.vlgmr.msra.gmra.mrb[12].mxu1 %v28179_v0  ;;  %1788 = vmatpush1.bf16.msra.mxu0 %v21800_v49 }
 0x121   : > { %2926 = vmatpush1.bf16.msra.mxu1 %v21797_v48  ;;  %1789 = vmatprep.subr.bf16.mxu0 %v21801_v50  ;;  %v21840_v48 = vld [vmem:[#allocation10 + $0x2a0] ss:$36 sps:$4 sm:$0xff]   ;;  %v23973_v50 = vpack.c.bf16 %v483_v46, %v480_v45  ;;  %v491_v45 = vld [vmem:[%s23847_s8 + $0x128] sm:$0xff] }
 0x122   : > { %2388 = vmatprep.mubr.bf16.mxu1 %v28179_v0  ;;  %2927 = vmatprep.subr.bf16.mxu1 %v21808_v51  ;;  %v494_v46 = vld [vmem:[%s23847_s8 + $0x140] sm:$0xff] }
 0x123   : > { %28314 = vst [vmem:[#allocation29_spill] sm:$0xff] %v23973_v50 }
 0x124   : > { %1790 = vmatpush1.bf16.msra.mxu0 %v21803_v52  ;;  %v21843_v52 = vld [vmem:[#allocation10 + $0x2e8] ss:$36 sps:$4 sm:$0xff]  }
 0x125   : > { %2928 = vmatpush1.bf16.msra.mxu1 %v21806_v55  ;;  %1791 = vmatprep.subr.bf16.mxu0 %v21804_v56  ;;  %v489_v55 = vld [vmem:[%s23847_s8 + $0x118] sm:$0xff]  ;;  %v476_v56 = vld [vmem:[%s23847_s8 + $0xb0] sm:$0xff] }
 0x126   : > { %2929 = vmatprep.subr.bf16.mxu1 %v21817_v57  ;;  %v21846_v57 = vld [vmem:[#allocation10 + $0x330] ss:$36 sps:$4 sm:$0xff]  }
 0x128   : > { %17846 = vmatmul.mubr.msk.bf16.gmra.mrb[16].mxu1 %vm1718_vm0, %v23916_v58  ;;  %1792 = vmatpush1.bf16.msra.mxu0 %v21809_v59  ;;  %v21851_v59 = vld [vmem:[#allocation10 + $0x37c] ss:$36 sps:$4 sm:$0xff]  }
 0x129   : > { %2398 = vmatprep.mubr.bf16.mxu1 %v28179_v0  ;;  %1793 = vmatprep.subr.bf16.mxu0 %v21810_v60 }
 0x12a   : > { %2930 = vmatpush1.bf16.msra.mxu1 %v21815_v61  ;;  %v23991_v61 = vpack.c.bf16 %v489_v55, %v486_v54  ;;  %v500_v54 = vld [vmem:[%s23847_s8 + $0x170] sm:$0xff] }
 0x12b   : > { %2931 = vmatprep.subr.bf16.mxu1 %v21824_v62  ;;  %v21849_v62 = vld [vmem:[#allocation10 + $0x378] ss:$36 sps:$4 sm:$0xff]  }
 0x12c   : > { %1794 = vmatpush1.bf16.msra.mxu0 %v21812_v63 }
 0x12d   : > { %1795 = vmatprep.subr.bf16.mxu0 %v21813_v1  ;;  %v21854_v1 = vld [vmem:[#allocation10 + $0x3c4] ss:$36 sps:$4 sm:$0xff]  }
 0x12e   : > { %2932 = vmatpush1.bf16.msra.mxu1 %v21822_v7  ;;  %v492_v7 = vld [vmem:[%s23847_s8 + $0x130] sm:$0xff] }
 0x12f   : > { %2933 = vmatprep.subr.bf16.mxu1 %v21827_v9  ;;  %v495_v9 = vld [vmem:[%s23847_s8 + $0x148] sm:$0xff] }
 0x130   : > { %17847 = vmatmul.mubr.msk.bf16.gmra.mrb[20].mxu1 %vm1718_vm0, %v23923_v11  ;;  %1796 = vmatpush1.bf16.msra.mxu0 %v21818_v13  ;;  %v479_v13 = vld [vmem:[%s23847_s8 + $0xc8] sm:$0xff]  ;;  %v24008_v20 = vpack.c.bf16 %v495_v9, %v492_v7 }
 0x131   : > { %2408 = vmatprep.mubr.bf16.mxu1 %v28179_v0  ;;  %1797 = vmatprep.subr.bf16.mxu0 %v21819_v15  ;;  %v482_v15 = vld [vmem:[%s23847_s8 + $0xe0] sm:$0xff] }
 0x132   : > { %2934 = vmatpush1.bf16.msra.mxu1 %v21825_v17  ;;  %v21852_v17 = vld [vmem:[#allocation10 + $0x3c0] ss:$36 sps:$4 sm:$0xff]   ;;  %v24010_v23 = vpack.c.bf16 %v482_v15, %v479_v13 }
 0x133   : > { %2935 = vmatprep.subr.bf16.mxu1 %v21830_v18  ;;  %v21857_v18 = vld [vmem:[#allocation10 + $0x40c] ss:$36 sps:$4 sm:$0xff]   ;;  %v502_v15 = vld [vmem:[%s23847_s8 + $0x180] sm:$0xff] }
 0x134   : > { %1798 = vmatpush1.bf16.msra.mxu0 %v21821_v19  ;;  %v24006_v19 = vpack.c.bf16 %v475_v5, %v472_v3  ;;  %28317 = vst [vmem:[#allocation32_spill] sm:$0xff] %v24010_v23  ;;  %v503_v3 = vld [vmem:[%s23847_s8 + $0x188] sm:$0xff]  ;;  %v506_v5 = vld [vmem:[%s23847_s8 + $0x1a0] sm:$0xff] }
 0x135   : > { %1960 = vmatprep.subr.bf16.mxu0 %v23867_v2  ;;  %v21839_v2 = vld [vmem:[#allocation10 + $0x25c] ss:$36 sps:$4 sm:$0xff]   ;;  %v24078_v13 = vpack.c.bf16 %v506_v5, %v503_v3  ;;  %v536_v3 = vld [vmem:[%s23847_s8 + $0x290] sm:$0xff] }
 0x136   : > { %2936 = vmatpush1.bf16.msra.mxu1 %v21828_v25  ;;  %28316 = vst [vmem:[#allocation31_spill] sm:$0xff] %v24006_v19  ;;  %v478_v25 = vld [vmem:[%s23847_s8 + $0xc0] sm:$0xff]  ;;  %v21861_v5 = vld [vmem:[#allocation10 + $0x498] ss:$36 sps:$4 sm:$0xff]  }
 0x137   : > { %2937 = vmatprep.subr.bf16.mxu1 %v21833_v26  ;;  %1800 = vmatmul.mubr.bf16.vlgmr.msra.gmra.mrb[0].mxu0 %v28179_v0  ;;  %v481_v26 = vld [vmem:[%s23847_s8 + $0xd8] sm:$0xff] }
 0x138   : > { %17848 = vmatmul.mubr.msk.bf16.gmra.mrb[24].mxu1 %vm1718_vm0, %v23932_v27  ;;  %1809 = vmatprep.mubr.bf16.mxu0 %v23934_v28  ;;  %v24023_v36 = vpack.c.bf16 %v481_v26, %v478_v25  ;;  %v512_v25 = vld [vmem:[%s23847_s8 + $0x1d0] sm:$0xff] }
 0x139   : > { %2418 = vmatprep.mubr.bf16.mxu1 %v28179_v0  ;;  %1961 = vmatpush1.bf16.msra.mxu0 %v23869_v4  ;;  %v21842_v4 = vld [vmem:[#allocation10 + $0x2a4] ss:$36 sps:$4 sm:$0xff]  }
 0x13a   : > { %2938 = vmatpush1.bf16.msra.mxu1 %v21831_v29  ;;  %1962 = vmatprep.subr.bf16.mxu0 %v23873_v6  ;;  %v460_v6 = vld [vmem:[%s23847_s8 + $0x30] sm:$0xff]  ;;  %v498_v29 = vld [vmem:[%s23847_s8 + $0x160] sm:$0xff]  ;;  %28318 = vst [vmem:[#allocation33_spill] sm:$0xff] %v24023_v36 }
 0x13b   : > { %2939 = vmatprep.subr.bf16.mxu1 %v21836_v30  ;;  %v23971_v49 = vpack.c.bf16 %v463_v44, %v460_v6  ;;  %v501_v30 = vld [vmem:[%s23847_s8 + $0x178] sm:$0xff]  ;;  %v504_v6 = vld [vmem:[%s23847_s8 + $0x190] sm:$0xff]  ;;  %v507_v44 = vld [vmem:[%s23847_s8 + $0x1a8] sm:$0xff] }
 0x13c   : > { %v24025_v37 = vpack.c.bf16 %v501_v30, %v498_v29 }
 0x13d   : > { %1963 = vmatpush1.bf16.msra.mxu0 %v23875_v8  ;;  %v470_v8 = vld [vmem:[%s23847_s8 + $0x80] sm:$0xff] }
 0x13e   : > { %2940 = vmatpush1.bf16.msra.mxu1 %v21834_v38  ;;  %1964 = vmatprep.subr.bf16.mxu0 %v23878_v10  ;;  %v21845_v10 = vld [vmem:[#allocation10 + $0x2ec] ss:$36 sps:$4 sm:$0xff]   ;;  %v23975_v51 = vpack.c.bf16 %v470_v8, %v467_v47  ;;  %v24027_v38 = vpack.c.bf16 %v488_v33, %v485_v31  ;;  %v24042_v8 = vpack.c.bf16 %v507_v44, %v504_v6  ;;  %v517_v6 = vld [vmem:[%s23847_s8 + $0x1f8] sm:$0xff] }
 0x13f   : > { %2941 = vmatprep.subr.bf16.mxu1 %v21839_v2  ;;  %1810 = vmatmul.mubr.bf16.gmra.mrb[4].mxu0 %v23950_v39  ;;  %v21869_v2 = vld [vmem:[#allocation10 + $0xc] ss:$36 sps:$4 sm:$0xff]   ;;  %v521_v44 = vld [vmem:[%s23847_s8 + $0x218] sm:$0xff] }
 0x140   : > { %17849 = vmatmul.mubr.msk.bf16.gmra.mrb[28].mxu1 %vm1718_vm0, %v23952_v40  ;;  %1819 = vmatprep.mubr.bf16.mxu0 %v23954_v41  ;;  %v508_v31 = vld [vmem:[%s23847_s8 + $0x1b0] sm:$0xff]  ;;  %v511_v33 = vld [vmem:[%s23847_s8 + $0x1c8] sm:$0xff] }
 0x141   : > { %2428 = vmatprep.mubr.bf16.mxu1 %v28179_v0  ;;  %1965 = vmatpush1.bf16.msra.mxu0 %v23880_v12  ;;  %v21848_v12 = vld [vmem:[#allocation10 + $0x334] ss:$36 sps:$4 sm:$0xff]  }
 0x142   : > { %2942 = vmatpush1.bf16.msra.mxu1 %v21837_v42  ;;  %1966 = vmatprep.subr.bf16.mxu0 %v23884_v14  ;;  %v469_v14 = vld [vmem:[%s23847_s8 + $0x78] sm:$0xff]  ;;  %v484_v42 = vld [vmem:[%s23847_s8 + $0xf0] sm:$0xff] }
 0x143   : > { %2943 = vmatprep.subr.bf16.mxu1 %v21842_v4  ;;  %v23989_v60 = vpack.c.bf16 %v469_v14, %v466_v53  ;;  %v487_v4 = vld [vmem:[%s23847_s8 + $0x108] sm:$0xff]  ;;  %v510_v53 = vld [vmem:[%s23847_s8 + $0x1c0] sm:$0xff]  ;;  %v497_v14 = vld [vmem:[%s23847_s8 + $0x158] sm:$0xff] }
 0x144   : > { %v24040_v47 = vpack.c.bf16 %v487_v4, %v484_v42  ;;  %v514_v4 = vld [vmem:[%s23847_s8 + $0x1e0] sm:$0xff] }
 0x145   : > { %1967 = vmatpush1.bf16.msra.mxu0 %v23886_v16  ;;  %v473_v16 = vld [vmem:[%s23847_s8 + $0x98] sm:$0xff] }
 0x146   : > { %2944 = vmatpush1.bf16.msra.mxu1 %v21840_v48  ;;  %v23993_v63 = vpack.c.bf16 %v476_v56, %v473_v16  ;;  %2153 = vmatprep.subr.bf16.mxu0 %v21869_v2  ;;  %v24044_v48 = vpack.c.bf16 %v494_v46, %v491_v45  ;;  %v24061_v56 = vpack.c.bf16 %v500_v54, %v497_v14  ;;  %v524_v45 = vld [vmem:[%s23847_s8 + $0x230] sm:$0xff]  ;;  %v530_v14 = vld [vmem:[%s23847_s8 + $0x260] sm:$0xff] }
 0x147   : > { %2945 = vmatprep.subr.bf16.mxu1 %v21845_v10  ;;  %1820 = vmatmul.mubr.bf16.gmra.mrb[8].mxu0 %v23971_v49  ;;  %v490_v10 = vld [vmem:[%s23847_s8 + $0x120] sm:$0xff]  ;;  %v24106_v2 = vpack.c.bf16 %v511_v33, %v508_v31  ;;  %v24119_v46 = vpack.c.bf16 %v517_v6, %v514_v4  ;;  %v539_v31 = vld [vmem:[%s23847_s8 + $0x2a8] sm:$0xff] }
 0x148   : > { %17850 = vmatmul.mubr.msk.bf16.gmra.mrb[32].mxu1 %vm1718_vm0, %v23973_v50  ;;  %1829 = vmatprep.mubr.bf16.mxu0 %v23975_v51  ;;  %28315 = vst [vmem:[#allocation30_spill] sm:$0xff] %v23993_v63  ;;  %v542_v33 = vld [vmem:[%s23847_s8 + $0x2c0] sm:$0xff]  ;;  %v21870_v4 = vld [vmem:[#allocation10 + $0x528] ss:$36 sps:$4 sm:$0xff]  }
 0x149   : > { %2438 = vmatprep.mubr.bf16.mxu1 %v28179_v0  ;;  %v24159_v6 = vpack.c.bf16 %v542_v33, %v539_v31  ;;  %v21887_v31 = vld [vmem:[#allocation10 + $0x174] ss:$36 sps:$4 sm:$0xff]  }
 0x14a   : > { %2946 = vmatpush1.bf16.msra.mxu1 %v21843_v52  ;;  %v493_v52 = vld [vmem:[%s23847_s8 + $0x138] sm:$0xff]  ;;  %v21885_v33 = vld [vmem:[#allocation10 + $0x170] ss:$36 sps:$4 sm:$0xff]  }
 0x14b   : > { %2947 = vmatprep.subr.bf16.mxu1 %v21848_v12  ;;  %v513_v12 = vld [vmem:[%s23847_s8 + $0x1d8] sm:$0xff]  ;;  %v24057_v55 = vpack.c.bf16 %v493_v52, %v490_v10  ;;  %v24121_v10 = vpack.c.bf16 %v524_v45, %v521_v44  ;;  %v520_v52 = vld [vmem:[%s23847_s8 + $0x210] sm:$0xff]  ;;  %28320 = vst [vmem:[#allocation35_spill] sm:$0xff] %v24159_v6  ;;  %v538_v45 = vld [vmem:[%s23847_s8 + $0x2a0] sm:$0xff] }
 0x14c   : > { %v24059_v16 = vpack.c.bf16 %v513_v12, %v510_v53  ;;  %v523_v53 = vld [vmem:[%s23847_s8 + $0x228] sm:$0xff]  ;;  %v21899_v44 = vld [vmem:[#allocation10 + $0x574] ss:$36 sps:$4 sm:$0xff]  }
 0x14d   : > { %v527_v12 = vld [vmem:[%s23847_s8 + $0x248] sm:$0xff]  ;;  %v24132_v54 = vpack.c.bf16 %v523_v53, %v520_v52  ;;  %v541_v52 = vld [vmem:[%s23847_s8 + $0x2b8] sm:$0xff]  ;;  %v21897_v53 = vld [vmem:[#allocation10 + $0x570] ss:$36 sps:$4 sm:$0xff]  }
 0x14e   : > { %2948 = vmatpush1.bf16.msra.mxu1 %v21846_v57  ;;  %v496_v57 = vld [vmem:[%s23847_s8 + $0x150] sm:$0xff] }
 0x14f   : > { %2949 = vmatprep.subr.bf16.mxu1 %v21851_v59  ;;  %1830 = vmatmul.mubr.bf16.gmra.mrb[12].mxu0 %v23989_v60  ;;  %v499_v59 = vld [vmem:[%s23847_s8 + $0x168] sm:$0xff] }
 0x150   : > { %17851 = vmatmul.mubr.msk.bf16.gmra.mrb[36].mxu1 %vm1718_vm0, %v23991_v61  ;;  %1839 = vmatprep.mubr.bf16.mxu0 %v23993_v63  ;;  %v24074_v7 = vpack.c.bf16 %v499_v59, %v496_v57  ;;  %v24134_v57 = vpack.c.bf16 %v530_v14, %v527_v12  ;;  %v526_v59 = vld [vmem:[%s23847_s8 + $0x240] sm:$0xff]  ;;  %v24169_v14 = vpack.c.bf16 %v541_v52, %v538_v45  ;;  %v21896_v52 = vld [vmem:[#allocation10 + $0x24c] ss:$36 sps:$4 sm:$0xff]  }
 0x151   : > { %2448 = vmatprep.mubr.bf16.mxu1 %v28179_v0  ;;  %v24167_v12 = vld [vmem:[#allocation10 + $0x4a0] ss:$36 sps:$4 sm:$0xff]  }
 0x152   : > { %2950 = vmatpush1.bf16.msra.mxu1 %v21849_v62  ;;  %v516_v62 = vld [vmem:[%s23847_s8 + $0x1f0] sm:$0xff]  ;;  %28321 = vst [vmem:[#allocation36_spill] sm:$0xff] %v24169_v14  ;;  %v21891_v45 = vld [vmem:[#allocation10 + $0x200] ss:$36 sps:$4 sm:$0xff]  }
 0x153   : > { %2951 = vmatprep.subr.bf16.mxu1 %v21854_v1  ;;  %v519_v1 = vld [vmem:[%s23847_s8 + $0x208] sm:$0xff] }
 0x154   : > { %v24076_v9 = vpack.c.bf16 %v519_v1, %v516_v62  ;;  %v529_v62 = vld [vmem:[%s23847_s8 + $0x258] sm:$0xff] }
 0x155   : > { %v533_v1 = vld [vmem:[%s23847_s8 + $0x278] sm:$0xff] }
 0x156   : > { %2952 = vmatpush1.bf16.msra.mxu1 %v21852_v17  ;;  %v505_v17 = vld [vmem:[%s23847_s8 + $0x198] sm:$0xff] }
 0x157   : > { %2953 = vmatprep.subr.bf16.mxu1 %v21857_v18  ;;  %1840 = vmatmul.mubr.bf16.gmra.mrb[16].mxu0 %v24006_v19  ;;  %v522_v18 = vld [vmem:[%s23847_s8 + $0x220] sm:$0xff]  ;;  %v24091_v26 = vpack.c.bf16 %v505_v17, %v502_v15  ;;  %v24145_v15 = vpack.c.bf16 %v529_v62, %v526_v59  ;;  %v21867_v59 = vld [vmem:[#allocation10 + $0x8] ss:$36 sps:$4 sm:$0xff]   ;;  %v21875_v62 = vld [vmem:[#allocation10 + $0x54] ss:$36 sps:$4 sm:$0xff]  }
 0x158   : > { %17852 = vmatmul.mubr.msk.bf16.gmra.mrb[40].mxu1 %vm1718_vm0, %v24008_v20  ;;  %1849 = vmatprep.mubr.bf16.mxu0 %v24010_v23  ;;  %v21866_v17 = vld [vmem:[#allocation10 + $0x4e4] ss:$36 sps:$4 sm:$0xff]  }
 0x159   : > { %2458 = vmatprep.mubr.bf16.mxu1 %v28179_v0 }
 0x15a   : > { %2954 = vmatpush1.bf16.msra.mxu1 %v21855_v22  ;;  %v525_v22 = vld [vmem:[%s23847_s8 + $0x238] sm:$0xff] }
 0x15b   : > { %2955 = vmatprep.subr.bf16.mxu1 %v21860_v24  ;;  %v509_v24 = vld [vmem:[%s23847_s8 + $0x1b8] sm:$0xff]  ;;  %v24093_v29 = vpack.c.bf16 %v525_v22, %v522_v18  ;;  %v24147_v18 = vpack.c.bf16 %v536_v3, %v533_v1  ;;  %v532_v22 = vld [vmem:[%s23847_s8 + $0x270] sm:$0xff] }
 0x15c   : > { %v24095_v30 = vpack.c.bf16 %v512_v25, %v509_v24  ;;  %v535_v24 = vld [vmem:[%s23847_s8 + $0x288] sm:$0xff]  ;;  %v21864_v25 = vld [vmem:[#allocation10 + $0x4e0] ss:$36 sps:$4 sm:$0xff]   ;;  %v21873_v1 = vld [vmem:[#allocation10 + $0x50] ss:$36 sps:$4 sm:$0xff]  }
 0x15d   : > { %v21878_v3 = vld [vmem:[#allocation10 + $0x9c] ss:$36 sps:$4 sm:$0xff]  }
 0x15e   : > { %2956 = vmatpush1.bf16.msra.mxu1 %v21858_v34  ;;  %v515_v34 = vld [vmem:[%s23847_s8 + $0x1e8] sm:$0xff] }
 0x15f   : > { %3118 = vmatprep.subr.bf16.mxu1 %v21863_v35  ;;  %1850 = vmatmul.mubr.bf16.gmra.mrb[20].mxu0 %v24023_v36  ;;  %v518_v35 = vld [vmem:[%s23847_s8 + $0x200] sm:$0xff] }
 0x160   : > { %17853 = vmatmul.mubr.msk.bf16.gmra.mrb[44].mxu1 %vm1718_vm0, %v24025_v37  ;;  %1859 = vmatprep.mubr.bf16.mxu0 %v24027_v38  ;;  %v24108_v42 = vpack.c.bf16 %v518_v35, %v515_v34  ;;  %v21872_v34 = vld [vmem:[#allocation10 + $0x52c] ss:$36 sps:$4 sm:$0xff]   ;;  %v24157_v35 = vpack.c.bf16 %v535_v24, %v532_v22  ;;  %v21879_v22 = vld [vmem:[#allocation10 + $0xe0] ss:$36 sps:$4 sm:$0xff]  }
 0x161   : > { %2468 = vmatprep.mubr.bf16.mxu1 %v28179_v0  ;;  %v21884_v24 = vld [vmem:[#allocation10 + $0x12c] ss:$36 sps:$4 sm:$0xff]  }
 0x162   : > { %28319 = vst [vmem:[#allocation34_spill] sm:$0xff] %v24157_v35 }
 0x167   : > { %1860 = vmatmul.mubr.bf16.gmra.mrb[24].mxu0 %v24040_v47 }
 0x168   : > { %17854 = vmatmul.mubr.msk.bf16.gmra.mrb[48].mxu1 %vm1718_vm0, %v24042_v8  ;;  %1869 = vmatprep.mubr.bf16.mxu0 %v24044_v48 }
 0x169   : > { %2478 = vmatprep.mubr.bf16.mxu1 %v28179_v0 }
 0x16f   : > { %1870 = vmatmul.mubr.bf16.gmra.mrb[28].mxu0 %v24057_v55 }
 0x170   : > { %17855 = vmatmul.mubr.msk.bf16.gmra.mrb[52].mxu1 %vm1718_vm0, %v24059_v16  ;;  %1879 = vmatprep.mubr.bf16.mxu0 %v24061_v56 }
 0x171   : > { %2488 = vmatprep.mubr.bf16.mxu1 %v28179_v0 }
 0x177   : > { %1880 = vmatmul.mubr.bf16.gmra.mrb[32].mxu0 %v24074_v7 }
 0x178   : > { %17856 = vmatmul.mubr.msk.bf16.gmra.mrb[56].mxu1 %vm1718_vm0, %v24076_v9  ;;  %1889 = vmatprep.mubr.bf16.mxu0 %v24078_v13 }
 0x179   : > { %2498 = vmatprep.mubr.bf16.mxu1 %v28179_v0 }
 0x17f   : > { %1890 = vmatmul.mubr.bf16.gmra.mrb[36].mxu0 %v24091_v26 }
 0x180   : > { %17857 = vmatmul.mubr.msk.bf16.gmra.mrb[60].mxu1 %vm1718_vm0, %v24093_v29  ;;  %1899 = vmatprep.mubr.bf16.mxu0 %v24095_v30 }
 0x181   : > { %2508 = vmatprep.mubr.bf16.mxu1 %v28179_v0 }
 0x187   : > { %1900 = vmatmul.mubr.bf16.gmra.mrb[40].mxu0 %v24106_v2 }
 0x188   : > { %17858 = vmatmul.mubr.msk.bf16.gmra.mrb[64].mxu1 %vm1718_vm0, %v23892_v21  ;;  %1909 = vmatprep.mubr.bf16.mxu0 %v24108_v42 }
 0x189   : > { %2518 = vmatprep.mubr.bf16.mxu1 %v28179_v0 }
 0x18f   : > { %1910 = vmatmul.mubr.bf16.gmra.mrb[44].mxu0 %v24119_v46 }
 0x190   : > { %17859 = vmatmul.mubr.msk.bf16.gmra.mrb[68].mxu1 %vm1718_vm0, %v23900_v32  ;;  %1919 = vmatprep.mubr.bf16.mxu0 %v24121_v10  ;;  %v21951_v32 = vld [vmem:[#allocation10 + $0x578] ss:$36 sps:$4 sm:$0xff]  }
 0x191   : > { %2528 = vmatprep.mubr.bf16.mxu1 %v28179_v0 }
 0x197   : > { %1920 = vmatmul.mubr.bf16.gmra.mrb[48].mxu0 %v24132_v54 }
 0x198   : > { %17860 = vmatmul.mubr.msk.bf16.gmra.mrb[72].mxu1 %vm1718_vm0, %v23907_v43  ;;  %1929 = vmatprep.mubr.bf16.mxu0 %v24134_v57  ;;  %v21920_v43 = vld [vmem:[#allocation10 + $0x444] ss:$36 sps:$4 sm:$0xff]  }
 0x199   : > { %2957 = vmatprep.mubr.bf16.mxu1 %v28179_v0 }
 0x19f   : > { %1930 = vmatmul.mubr.bf16.gmra.mrb[52].mxu0 %v24145_v15 }
 0x1a0   : > { %2958 = vmatmul.mubr.bf16.vlgmr.msra.gmra.mrb[76].mxu1 %v28179_v0  ;;  %1939 = vmatprep.mubr.bf16.mxu0 %v24147_v18 }
 0x1a1   : > { %3119 = vmatpush1.bf16.msra.mxu1 %v21861_v5  ;;  %2967 = vmatprep.mubr.bf16.mxu1 %v23934_v28  ;;  %v21876_v5 = vld [vmem:[#allocation10 + $0x98] ss:$36 sps:$4 sm:$0xff]  }
 0x1a2   : > { %3120 = vmatprep.subr.bf16.mxu1 %v21866_v17  ;;  %v21881_v17 = vld [vmem:[#allocation10 + $0xe4] ss:$36 sps:$4 sm:$0xff]  }
 0x1a5   : > { %3121 = vmatpush1.bf16.msra.mxu1 %v21864_v25  ;;  %v21882_v25 = vld [vmem:[#allocation10 + $0x128] ss:$36 sps:$4 sm:$0xff]  }
 0x1a6   : > { %3122 = vmatprep.subr.bf16.mxu1 %v21872_v34  ;;  %v21890_v34 = vld [vmem:[#allocation10 + $0x1bc] ss:$36 sps:$4 sm:$0xff]  }
 0x1a7   : > { %1940 = vmatmul.mubr.bf16.gmra.mrb[56].mxu0 %v24157_v35 }
 0x1a8   : > { %2968 = vmatmul.mubr.bf16.gmra.mrb[80].mxu1 %v23950_v39  ;;  %1949 = vmatprep.mubr.bf16.mxu0 %v24159_v6 }
 0x1a9   : > { %2977 = vmatprep.mubr.bf16.mxu1 %v23954_v41  ;;  %3123 = vmatpush1.bf16.msra.mxu1 %v21870_v4  ;;  %v21888_v4 = vld [vmem:[#allocation10 + $0x1b8] ss:$36 sps:$4 sm:$0xff]  }
 0x1aa   : > { %3124 = vmatprep.subr.bf16.mxu1 %v21899_v44  ;;  %v21893_v44 = vld [vmem:[#allocation10 + $0x204] ss:$36 sps:$4 sm:$0xff]  }
 0x1ad   : > { %3125 = vmatpush1.bf16.msra.mxu1 %v21897_v53  ;;  %v21894_v53 = vld [vmem:[#allocation10 + $0x248] ss:$36 sps:$4 sm:$0xff]  }
 0x1ae   : > { %19177 = vmatprep.subr.bf16.mxu1 %v24167_v12 }
 0x1af   : > { %1950 = vmatmul.mubr.bf16.gmra.mrb[60].mxu0 %v24169_v14 }
 0x1b0   : > { %2978 = vmatmul.mubr.bf16.gmra.mrb[84].mxu1 %v23971_v49  ;;  %1992 = vmatprep.mubr.bf16.mxu0 %v28179_v0 }
 0x1b1   : > { %2987 = vmatprep.mubr.bf16.mxu1 %v23975_v51 }
 0x1b7   : > { %1993 = vmatmul.mubr.bf16.vlgmr.msra.gmra.mrb[0].mxu0 %v28179_v0 }
 0x1b8   : > { %2988 = vmatmul.mubr.bf16.gmra.mrb[88].mxu1 %v23989_v60  ;;  %2002 = vmatprep.mubr.bf16.mxu0 %v28179_v0 }
 0x1b9   : > { %2997 = vmatprep.mubr.bf16.mxu1 %v23993_v63  ;;  %2154 = vmatpush1.bf16.msra.mxu0 %v21867_v59  ;;  %v21902_v59 = vld [vmem:[#allocation10 + $0x294] ss:$36 sps:$4 sm:$0xff]  }
 0x1ba   : > { %2155 = vmatprep.subr.bf16.mxu0 %v21875_v62  ;;  %v21900_v62 = vld [vmem:[#allocation10 + $0x290] ss:$36 sps:$4 sm:$0xff]  }
 0x1bd   : > { %2156 = vmatpush1.bf16.msra.mxu0 %v21873_v1  ;;  %v21905_v1 = vld [vmem:[#allocation10 + $0x2dc] ss:$36 sps:$4 sm:$0xff]  }
 0x1be   : > { %2157 = vmatprep.subr.bf16.mxu0 %v21878_v3 }
 0x1bf   : > { %17831 = vmatmul.mubr.msk.bf16.gmra.mrb[4].mxu0 %vm1718_vm0, %v23916_v58 }
 0x1c0   : > { %2998 = vmatmul.mubr.bf16.gmra.mrb[92].mxu1 %v24006_v19  ;;  %2012 = vmatprep.mubr.bf16.mxu0 %v28179_v0 }
 0x1c1   : > { %3007 = vmatprep.mubr.bf16.mxu1 %v24010_v23  ;;  %2158 = vmatpush1.bf16.msra.mxu0 %v21876_v5 }
 0x1c2   : > { %2159 = vmatprep.subr.bf16.mxu0 %v21881_v17 }
 0x1c5   : > { %2160 = vmatpush1.bf16.msra.mxu0 %v21879_v22 }
 0x1c6   : > { %2161 = vmatprep.subr.bf16.mxu0 %v21884_v24  ;;  %v21903_v24 = vld [vmem:[#allocation10 + $0x2d8] ss:$36 sps:$4 sm:$0xff]  }
 0x1c7   : > { %17832 = vmatmul.mubr.msk.bf16.gmra.mrb[8].mxu0 %vm1718_vm0, %v23923_v11 }
 0x1c8   : > { %3008 = vmatmul.mubr.bf16.gmra.mrb[96].mxu1 %v24023_v36  ;;  %2022 = vmatprep.mubr.bf16.mxu0 %v28179_v0 }
 0x1c9   : > { %3017 = vmatprep.mubr.bf16.mxu1 %v24027_v38  ;;  %2162 = vmatpush1.bf16.msra.mxu0 %v21882_v25  ;;  %v21908_v25 = vld [vmem:[#allocation10 + $0x324] ss:$36 sps:$4 sm:$0xff]  }
 0x1ca   : > { %2163 = vmatprep.subr.bf16.mxu0 %v21887_v31  ;;  %v21906_v31 = vld [vmem:[#allocation10 + $0x320] ss:$36 sps:$4 sm:$0xff]  }
 0x1cd   : > { %2164 = vmatpush1.bf16.msra.mxu0 %v21885_v33  ;;  %v21911_v33 = vld [vmem:[#allocation10 + $0x36c] ss:$36 sps:$4 sm:$0xff]  }
 0x1ce   : > { %2165 = vmatprep.subr.bf16.mxu0 %v21890_v34 }
 0x1cf   : > { %17833 = vmatmul.mubr.msk.bf16.gmra.mrb[12].mxu0 %vm1718_vm0, %v23932_v27 }
 0x1d0   : > { %3018 = vmatmul.mubr.bf16.gmra.mrb[100].mxu1 %v24040_v47  ;;  %2032 = vmatprep.mubr.bf16.mxu0 %v28179_v0 }
 0x1d1   : > { %3027 = vmatprep.mubr.bf16.mxu1 %v24044_v48  ;;  %2166 = vmatpush1.bf16.msra.mxu0 %v21888_v4 }
 0x1d2   : > { %2167 = vmatprep.subr.bf16.mxu0 %v21893_v44 }
 0x1d5   : > { %2168 = vmatpush1.bf16.msra.mxu0 %v21891_v45 }
 0x1d6   : > { %2169 = vmatprep.subr.bf16.mxu0 %v21896_v52  ;;  %v21909_v52 = vld [vmem:[#allocation10 + $0x368] ss:$36 sps:$4 sm:$0xff]  }
 0x1d7   : > { %17834 = vmatmul.mubr.msk.bf16.gmra.mrb[16].mxu0 %vm1718_vm0, %v23952_v40 }
 0x1d8   : > { %3028 = vmatmul.mubr.bf16.gmra.mrb[104].mxu1 %v24057_v55  ;;  %2042 = vmatprep.mubr.bf16.mxu0 %v28179_v0 }
 0x1d9   : > { %3037 = vmatprep.mubr.bf16.mxu1 %v24061_v56  ;;  %2170 = vmatpush1.bf16.msra.mxu0 %v21894_v53  ;;  %v21914_v53 = vld [vmem:[#allocation10 + $0x3b4] ss:$36 sps:$4 sm:$0xff]  }
 0x1da   : > { %2171 = vmatprep.subr.bf16.mxu0 %v21902_v59  ;;  %v21912_v59 = vld [vmem:[#allocation10 + $0x3b0] ss:$36 sps:$4 sm:$0xff]  }
 0x1db   : > { %v24200_v3 = vpop.f32.mrb[0].mxu1 }
 0x1dc   : > { %v24202_v5 = vpop.f32.mrb[1].mxu1 }
 0x1dd   : > { %v24204_v17 = vpop.f32.mrb[2].mxu1  ;;  %2172 = vmatpush1.bf16.msra.mxu0 %v21900_v62  ;;  %v21917_v62 = vld [vmem:[#allocation10 + $0x3fc] ss:$36 sps:$4 sm:$0xff]  }
 0x1de   : > { %v24206_v22 = vpop.f32.mrb[3].mxu1  ;;  %2173 = vmatprep.subr.bf16.mxu0 %v21905_v1 }
 0x1df   : > { %17835 = vmatmul.mubr.msk.bf16.gmra.mrb[20].mxu0 %vm1718_vm0, %v23973_v50 }
 0x1e0   : > { %3038 = vmatmul.mubr.bf16.gmra.mrb[108].mxu1 %v24074_v7  ;;  %2052 = vmatprep.mubr.bf16.mxu0 %v28179_v0 }
 0x1e1   : > { %3047 = vmatprep.mubr.bf16.mxu1 %v24078_v13  ;;  %2174 = vmatpush1.bf16.msra.mxu0 %v21903_v24 }
 0x1e2   : > { %2175 = vmatprep.subr.bf16.mxu0 %v21908_v25 }
 0x1e3   : > { %v24213_v34 = vpop.f32.mrb[4].mxu1 }
 0x1e4   : > { %v24215_v4 = vpop.f32.mrb[5].mxu1 }
 0x1e5   : > { %v24217_v44 = vpop.f32.mrb[6].mxu1  ;;  %2176 = vmatpush1.bf16.msra.mxu0 %v21906_v31 }
 0x1e6   : > { %v24219_v45 = vpop.f32.mrb[7].mxu1  ;;  %2177 = vmatprep.subr.bf16.mxu0 %v21911_v33  ;;  %v21915_v33 = vld [vmem:[#allocation10 + $0x3f8] ss:$36 sps:$4 sm:$0xff]  }
 0x1e7   : > { %17836 = vmatmul.mubr.msk.bf16.gmra.mrb[24].mxu0 %vm1718_vm0, %v23991_v61 }
 0x1e8   : > { %3048 = vmatmul.mubr.bf16.gmra.mrb[112].mxu1 %v24091_v26  ;;  %2062 = vmatprep.mubr.bf16.mxu0 %v28179_v0 }
 0x1e9   : > { %3057 = vmatprep.mubr.bf16.mxu1 %v24095_v30  ;;  %2178 = vmatpush1.bf16.msra.mxu0 %v21909_v52  ;;  %v21918_v52 = vld [vmem:[#allocation10 + $0x440] ss:$36 sps:$4 sm:$0xff]  }
 0x1ea   : > { %2179 = vmatprep.subr.bf16.mxu0 %v21914_v53  ;;  %v21925_v53 = vld [vmem:[#allocation10 + $0x14] ss:$36 sps:$4 sm:$0xff]  }
 0x1eb   : > { %v24226_v1 = vpop.f32.mrb[8].mxu1 }
 0x1ec   : > { %v24228_v24 = vpop.f32.mrb[9].mxu1 }
 0x1ed   : > { %v24230_v25 = vpop.f32.mrb[10].mxu1  ;;  %2180 = vmatpush1.bf16.msra.mxu0 %v21912_v59  ;;  %v21923_v59 = vld [vmem:[#allocation10 + $0x10] ss:$36 sps:$4 sm:$0xff]  }
 0x1ee   : > { %v24232_v31 = vpop.f32.mrb[11].mxu1  ;;  %2181 = vmatprep.subr.bf16.mxu0 %v21917_v62  ;;  %v21929_v62 = vld [vmem:[#allocation10 + $0x5c] ss:$36 sps:$4 sm:$0xff]  }
 0x1ef   : > { %17837 = vmatmul.mubr.msk.bf16.gmra.mrb[28].mxu0 %vm1718_vm0, %v24008_v20 }
 0x1f0   : > { %3058 = vmatmul.mubr.bf16.gmra.mrb[116].mxu1 %v24106_v2  ;;  %2072 = vmatprep.mubr.bf16.mxu0 %v28179_v0 }
 0x1f1   : > { %3067 = vmatprep.mubr.bf16.mxu1 %v24108_v42  ;;  %2182 = vmatpush1.bf16.msra.mxu0 %v21915_v33  ;;  %v21926_v33 = vld [vmem:[#allocation10 + $0x530] ss:$36 sps:$4 sm:$0xff]  }
 0x1f2   : > { %2183 = vmatprep.subr.bf16.mxu0 %v21920_v43  ;;  %v21922_v43 = vld [vmem:[#allocation10 + $0x4e8] ss:$36 sps:$4 sm:$0xff]  }
 0x1f5   : > { %2184 = vmatpush1.bf16.msra.mxu0 %v21918_v52  ;;  %v21927_v52 = vld [vmem:[#allocation10 + $0x58] ss:$36 sps:$4 sm:$0xff]  }
 0x1f6   : > { %2539 = vmatprep.subr.bf16.mxu0 %v21925_v53  ;;  %v21932_v53 = vld [vmem:[#allocation10 + $0xa4] ss:$36 sps:$4 sm:$0xff]  }
 0x1f7   : > { %17838 = vmatmul.mubr.msk.bf16.gmra.mrb[32].mxu0 %vm1718_vm0, %v24025_v37 }
 0x1f8   : > { %3068 = vmatmul.mubr.bf16.gmra.mrb[120].mxu1 %v24119_v46  ;;  %2082 = vmatprep.mubr.bf16.mxu0 %v28179_v0 }
 0x1f9   : > { %3077 = vmatprep.mubr.bf16.mxu1 %v24121_v10 }
 0x1ff   : > { %17839 = vmatmul.mubr.msk.bf16.gmra.mrb[36].mxu0 %vm1718_vm0, %v24042_v8 }
 0x200   : > { %3078 = vmatmul.mubr.bf16.gmra.mrb[124].mxu1 %v24132_v54  ;;  %2092 = vmatprep.mubr.bf16.mxu0 %v28179_v0 }
 0x201   : > { %3087 = vmatprep.mubr.bf16.mxu1 %v24134_v57 }
 0x207   : > { %17840 = vmatmul.mubr.msk.bf16.gmra.mrb[40].mxu0 %vm1718_vm0, %v24059_v16 }
 0x208   : > { %3088 = vmatmul.mubr.bf16.gmra.mrb[128].mxu1 %v24145_v15  ;;  %2102 = vmatprep.mubr.bf16.mxu0 %v28179_v0 }
 0x209   : > { %3097 = vmatprep.mubr.bf16.mxu1 %v24147_v18 }
 0x20f   : > { %17841 = vmatmul.mubr.msk.bf16.gmra.mrb[44].mxu0 %vm1718_vm0, %v24076_v9 }
 0x210   : > { %3098 = vmatmul.mubr.bf16.gmra.mrb[132].mxu1 %v24157_v35  ;;  %2112 = vmatprep.mubr.bf16.mxu0 %v28179_v0 }
 0x211   : > { %3107 = vmatprep.mubr.bf16.mxu1 %v24159_v6  ;;  %v21935_v6 = vld [vmem:[#allocation10 + $0xec] ss:$36 sps:$4 sm:$0xff]  }
 0x217   : > { %17842 = vmatmul.mubr.msk.bf16.gmra.mrb[48].mxu0 %vm1718_vm0, %v24093_v29 }
 0x218   : > { %3108 = vmatmul.mubr.bf16.gmra.mrb[136].mxu1 %v24169_v14  ;;  %2185 = vmatprep.mubr.bf16.mxu0 %v28179_v0  ;;  %v21930_v14 = vld [vmem:[#allocation10 + $0xa0] ss:$36 sps:$4 sm:$0xff]  }
 0x219   : > { %3150 = vmatprep.mubr.bf16.mxu1 %v28179_v0 }
 0x21f   : > { %2186 = vmatmul.mubr.bf16.vlgmr.msra.gmra.mrb[64].mxu0 %v28179_v0 }
 0x220   : > { %3151 = vmatmul.mubr.bf16.vlgmr.msra.gmra.mrb[76].mxu1 %v28179_v0  ;;  %2195 = vmatprep.mubr.bf16.mxu0 %v23934_v28  ;;  %v21975_v28 = vld [vmem:[#allocation10 + $0x5ac] ss:$36 sps:$4 sm:$0xff]  }
 0x221   : > { %19178 = vmatpush3.bf16.msra.mxu1 %v24167_v12  ;;  %3160 = vmatprep.mubr.bf16.mxu1 %v28179_v0  ;;  %v21933_v12 = vld [vmem:[#allocation10 + $0xe8] ss:$36 sps:$4 sm:$0xff]  }
 0x222   : > { %19179 = vmatprep.subr.bf16.mxu1 %v21922_v43  ;;  %2540 = vmatpush1.bf16.msra.mxu0 %v21923_v59  ;;  %v21936_v59 = vld [vmem:[#allocation10 + $0x130] ss:$36 sps:$4 sm:$0xff]  }
 0x223   : > { %2541 = vmatprep.subr.bf16.mxu0 %v21929_v62  ;;  %v21941_v62 = vld [vmem:[#allocation10 + $0x17c] ss:$36 sps:$4 sm:$0xff]  }
 0x225   : > { %19180 = vmatpush3.bf16.msra.mxu1 %v21922_v43  ;;  %v21938_v43 = vld [vmem:[#allocation10 + $0x134] ss:$36 sps:$4 sm:$0xff]  }
 0x226   : > { %19181 = vmatprep.subr.bf16.mxu1 %v21926_v33  ;;  %2542 = vmatpush1.bf16.msra.mxu0 %v21927_v52  ;;  %v21950_v52 = vld [vmem:[#allocation10 + $0x254] ss:$36 sps:$4 sm:$0xff]  }
 0x227   : > { %2196 = vmatmul.mubr.bf16.gmra.mrb[68].mxu0 %v23950_v39  ;;  %2543 = vmatprep.subr.bf16.mxu0 %v21932_v53  ;;  %v21948_v53 = vld [vmem:[#allocation10 + $0x250] ss:$36 sps:$4 sm:$0xff]  }
 0x228   : > { %17876 = vmatmul.mubr.msk.bf16.gmra.mrb[80].mxu1 %vm1718_vm0, %v23916_v58  ;;  %2205 = vmatprep.mubr.bf16.mxu0 %v23954_v41 }
 0x229   : > { %3170 = vmatprep.mubr.bf16.mxu1 %v28179_v0  ;;  %19182 = vmatpush3.bf16.msra.mxu1 %v21926_v33  ;;  %v21939_v33 = vld [vmem:[#allocation10 + $0x178] ss:$36 sps:$4 sm:$0xff]  }
 0x22a   : > { %2544 = vmatpush1.bf16.msra.mxu0 %v21930_v14  ;;  %19183 = vmatprep.subr.bf16.mxu1 %v21951_v32  ;;  %v21942_v14 = vld [vmem:[#allocation10 + $0x1c0] ss:$36 sps:$4 sm:$0xff]  }
 0x22b   : > { %2545 = vmatprep.subr.bf16.mxu0 %v21935_v6  ;;  %v21944_v6 = vld [vmem:[#allocation10 + $0x1c4] ss:$36 sps:$4 sm:$0xff]  }
 0x22d   : > { %19184 = vmatpush3.bf16.msra.mxu1 %v21951_v32  ;;  %v21947_v32 = vld [vmem:[#allocation10 + $0x20c] ss:$36 sps:$4 sm:$0xff]  }
 0x22e   : > { %2546 = vmatpush1.bf16.msra.mxu0 %v21933_v12  ;;  %5431 = vmatprep.subr.bf16.mxu1 %v21975_v28  ;;  %v21945_v28 = vld [vmem:[#allocation10 + $0x208] ss:$36 sps:$4 sm:$0xff]   ;;  %v21954_v12 = vld [vmem:[#allocation10 + $0x29c] ss:$36 sps:$4 sm:$0xff]  }
 0x22f   : > { %2206 = vmatmul.mubr.bf16.gmra.mrb[72].mxu0 %v23971_v49  ;;  %2547 = vmatprep.subr.bf16.mxu0 %v21938_v43  ;;  %v21952_v43 = vld [vmem:[#allocation10 + $0x298] ss:$36 sps:$4 sm:$0xff]  }
 0x230   : > { %17877 = vmatmul.mubr.msk.bf16.gmra.mrb[84].mxu1 %vm1718_vm0, %v23923_v11  ;;  %2215 = vmatprep.mubr.bf16.mxu0 %v23975_v51 }
 0x231   : > { %3180 = vmatprep.mubr.bf16.mxu1 %v28179_v0 }
 0x232   : > { %2548 = vmatpush1.bf16.msra.mxu0 %v21936_v59  ;;  %v21957_v59 = vld [vmem:[#allocation10 + $0x2e4] ss:$36 sps:$4 sm:$0xff]  }
 0x233   : > { %2549 = vmatprep.subr.bf16.mxu0 %v21941_v62  ;;  %v21955_v62 = vld [vmem:[#allocation10 + $0x2e0] ss:$36 sps:$4 sm:$0xff]  }
 0x236   : > { %2550 = vmatpush1.bf16.msra.mxu0 %v21939_v33  ;;  %v21960_v33 = vld [vmem:[#allocation10 + $0x32c] ss:$36 sps:$4 sm:$0xff]  }
 0x237   : > { %2216 = vmatmul.mubr.bf16.gmra.mrb[76].mxu0 %v23989_v60  ;;  %2551 = vmatprep.subr.bf16.mxu0 %v21944_v6  ;;  %v21958_v6 = vld [vmem:[#allocation10 + $0x328] ss:$36 sps:$4 sm:$0xff]  }
 0x238   : > { %17878 = vmatmul.mubr.msk.bf16.gmra.mrb[88].mxu1 %vm1718_vm0, %v23932_v27  ;;  %2225 = vmatprep.mubr.bf16.mxu0 %v23993_v63 }
 0x239   : > { %3190 = vmatprep.mubr.bf16.mxu1 %v28179_v0 }
 0x23a   : > { %2552 = vmatpush1.bf16.msra.mxu0 %v21942_v14  ;;  %v21963_v14 = vld [vmem:[#allocation10 + $0x374] ss:$36 sps:$4 sm:$0xff]  }
 0x23b   : > { %2553 = vmatprep.subr.bf16.mxu0 %v21947_v32  ;;  %v21961_v32 = vld [vmem:[#allocation10 + $0x370] ss:$36 sps:$4 sm:$0xff]  }
 0x23e   : > { %2554 = vmatpush1.bf16.msra.mxu0 %v21945_v28  ;;  %v21966_v28 = vld [vmem:[#allocation10 + $0x3bc] ss:$36 sps:$4 sm:$0xff]  }
 0x23f   : > { %2226 = vmatmul.mubr.bf16.gmra.mrb[80].mxu0 %v24006_v19  ;;  %2555 = vmatprep.subr.bf16.mxu0 %v21950_v52  ;;  %v21964_v52 = vld [vmem:[#allocation10 + $0x3b8] ss:$36 sps:$4 sm:$0xff]  }
 0x240   : > { %17879 = vmatmul.mubr.msk.bf16.gmra.mrb[92].mxu1 %vm1718_vm0, %v23952_v40  ;;  %2235 = vmatprep.mubr.bf16.mxu0 %v24010_v23 }
 0x241   : > { %3200 = vmatprep.mubr.bf16.mxu1 %v28179_v0 }
 0x242   : > { %2556 = vmatpush1.bf16.msra.mxu0 %v21948_v53  ;;  %v21969_v53 = vld [vmem:[#allocation10 + $0x404] ss:$36 sps:$4 sm:$0xff]  }
 0x243   : > { %2557 = vmatprep.subr.bf16.mxu0 %v21954_v12  ;;  %v21967_v12 = vld [vmem:[#allocation10 + $0x400] ss:$36 sps:$4 sm:$0xff]  }
 0x246   : > { %2558 = vmatpush1.bf16.msra.mxu0 %v21952_v43  ;;  %v21972_v43 = vld [vmem:[#allocation10 + $0x44c] ss:$36 sps:$4 sm:$0xff]  }
 0x247   : > { %2236 = vmatmul.mubr.bf16.gmra.mrb[84].mxu0 %v24023_v36  ;;  %2559 = vmatprep.subr.bf16.mxu0 %v21957_v59  ;;  %v21970_v59 = vld [vmem:[#allocation10 + $0x448] ss:$36 sps:$4 sm:$0xff]  }
 0x248   : > { %17880 = vmatmul.mubr.msk.bf16.gmra.mrb[96].mxu1 %vm1718_vm0, %v23973_v50  ;;  %2245 = vmatprep.mubr.bf16.mxu0 %v24027_v38 }
 0x249   : > { %3210 = vmatprep.mubr.bf16.mxu1 %v28179_v0 }
 0x24a   : > { %2560 = vmatpush1.bf16.msra.mxu0 %v21955_v62 }
 0x24b   : > { %2561 = vmatprep.subr.bf16.mxu0 %v21960_v33 }
 0x24e   : > { %2562 = vmatpush1.bf16.msra.mxu0 %v21958_v6 }
 0x24f   : > { %2246 = vmatmul.mubr.bf16.gmra.mrb[88].mxu0 %v24040_v47  ;;  %2563 = vmatprep.subr.bf16.mxu0 %v21963_v14 }
 0x250   : > { %17881 = vmatmul.mubr.msk.bf16.gmra.mrb[100].mxu1 %vm1718_vm0, %v23991_v61  ;;  %2255 = vmatprep.mubr.bf16.mxu0 %v24044_v48 }
 0x251   : > { %3220 = vmatprep.mubr.bf16.mxu1 %v28179_v0 }
 0x252   : > { %2564 = vmatpush1.bf16.msra.mxu0 %v21961_v32 }
 0x253   : > { %2565 = vmatprep.subr.bf16.mxu0 %v21966_v28 }
 0x256   : > { %2566 = vmatpush1.bf16.msra.mxu0 %v21964_v52 }
 0x257   : > { %2256 = vmatmul.mubr.bf16.gmra.mrb[92].mxu0 %v24057_v55  ;;  %2567 = vmatprep.subr.bf16.mxu0 %v21969_v53 }
 0x258   : > { %17882 = vmatmul.mubr.msk.bf16.gmra.mrb[104].mxu1 %vm1718_vm0, %v24008_v20  ;;  %2265 = vmatprep.mubr.bf16.mxu0 %v24061_v56 }
 0x259   : > { %3230 = vmatprep.mubr.bf16.mxu1 %v28179_v0 }
 0x25a   : > { %2568 = vmatpush1.bf16.msra.mxu0 %v21967_v12 }
 0x25b   : > { %2569 = vmatprep.subr.bf16.mxu0 %v21972_v43 }
 0x25e   : > { %2570 = vmatpush1.bf16.msra.mxu0 %v21970_v59 }
 0x25f   : > { %2266 = vmatmul.mubr.bf16.gmra.mrb[96].mxu0 %v24074_v7 }
 0x260   : > { %17883 = vmatmul.mubr.msk.bf16.gmra.mrb[108].mxu1 %vm1718_vm0, %v24025_v37  ;;  %2275 = vmatprep.mubr.bf16.mxu0 %v24078_v13 }
 0x261   : > { %3240 = vmatprep.mubr.bf16.mxu1 %v28179_v0 }
 0x267   : > { %2276 = vmatmul.mubr.bf16.gmra.mrb[100].mxu0 %v24091_v26 }
 0x268   : > { %17884 = vmatmul.mubr.msk.bf16.gmra.mrb[112].mxu1 %vm1718_vm0, %v24042_v8  ;;  %2285 = vmatprep.mubr.bf16.mxu0 %v24095_v30 }
 0x269   : > { %3250 = vmatprep.mubr.bf16.mxu1 %v28179_v0 }
 0x26f   : > { %2286 = vmatmul.mubr.bf16.gmra.mrb[104].mxu0 %v24106_v2 }
 0x270   : > { %17885 = vmatmul.mubr.msk.bf16.gmra.mrb[116].mxu1 %vm1718_vm0, %v24059_v16  ;;  %2295 = vmatprep.mubr.bf16.mxu0 %v24108_v42 }
 0x271   : > { %3260 = vmatprep.mubr.bf16.mxu1 %v28179_v0 }
 0x272   : > { %v1931_v62 = vpop.f32.mrb[52].mxu0 }
 0x273   : > { %v1933_v33 = vpop.f32.mrb[53].mxu0  ;;  %v24320_v6 = vadd.f32 %v24200_v3, %v1931_v62 }
 0x274   : > { %v1935_v14 = vpop.f32.mrb[54].mxu0  ;;  %v24323_v32 = vadd.f32 %v24202_v5, %v1933_v33 }
 0x275   : > { %28322 = vst [vmem:[#allocation37_spill] sm:$0xff] %v24320_v6  ;;  %v1937_v28 = vpop.f32.mrb[55].mxu0  ;;  %v24326_v52 = vadd.f32 %v24204_v17, %v1935_v14 }
 0x276   : > { %28323 = vst [vmem:[#allocation38_spill] sm:$0xff] %v24323_v32  ;;  %v24329_v53 = vadd.f32 %v24206_v22, %v1937_v28 }
 0x277   : > { %28324 = vst [vmem:[#allocation39_spill] sm:$0xff] %v24326_v52  ;;  %2296 = vmatmul.mubr.bf16.gmra.mrb[108].mxu0 %v24119_v46 }
 0x278   : > { %28325 = vst [vmem:[#allocation40_spill] sm:$0xff] %v24329_v53  ;;  %17886 = vmatmul.mubr.msk.bf16.gmra.mrb[120].mxu1 %vm1718_vm0, %v24076_v9  ;;  %2305 = vmatprep.mubr.bf16.mxu0 %v24121_v10 }
 0x279   : > { %3270 = vmatprep.mubr.bf16.mxu1 %v28179_v0 }
 0x27a   : > { %v1941_v3 = vpop.f32.mrb[56].mxu0 }
 0x27b   : > { %v1943_v12 = vpop.f32.mrb[57].mxu0  ;;  %v24337_v5 = vadd.f32 %v24213_v34, %v1941_v3 }
 0x27c   : > { %v1945_v43 = vpop.f32.mrb[58].mxu0  ;;  %v24340_v17 = vadd.f32 %v24215_v4, %v1943_v12  ;;  %v28337_v12 = vld [vmem:[#allocation22_spill] sm:$0xff] }
 0x27d   : > { %28326 = vst [vmem:[#allocation41_spill] sm:$0xff] %v24337_v5  ;;  %v1947_v22 = vpop.f32.mrb[59].mxu0  ;;  %v24343_v59 = vadd.f32 %v24217_v44, %v1945_v43  ;;  %v21973_v43 = vld [vmem:[#allocation10 + $0x5a8] ss:$36 sps:$4 sm:$0xff]   ;;  %v22083_v5 = vld [vmem:[#allocation10 + $0x458] ss:$36 sps:$4 sm:$0xff]  }
 0x27e   : > { %28327 = vst [vmem:[#allocation42_spill] sm:$0xff] %v24340_v17  ;;  %v24346_v62 = vadd.f32 %v24219_v45, %v1947_v22  ;;  %v21978_v22 = vld [vmem:[#allocation10 + $0x5f4] ss:$36 sps:$4 sm:$0xff]  }
 0x27f   : > { %28328 = vst [vmem:[#allocation43_spill] sm:$0xff] %v24343_v59  ;;  %2306 = vmatmul.mubr.bf16.gmra.mrb[112].mxu0 %v24132_v54  ;;  %v22082_v17 = vld [vmem:[#allocation10 + $0x1d0] ss:$36 sps:$4 sm:$0xff]  }
 0x280   : > { %28329 = vst [vmem:[#allocation44_spill] sm:$0xff] %v24346_v62  ;;  %17887 = vmatmul.mubr.msk.bf16.gmra.mrb[124].mxu1 %vm1718_vm0, %v24093_v29  ;;  %2315 = vmatprep.mubr.bf16.mxu0 %v24134_v57 }
 0x281   : > { %3280 = vmatprep.mubr.bf16.mxu1 %v28179_v0 }
 0x282   : > { %v1951_v34 = vpop.f32.mrb[60].mxu0 }
 0x283   : > { %v1953_v33 = vpop.f32.mrb[61].mxu0  ;;  %v24354_v4 = vadd.f32 %v24226_v1, %v1951_v34  ;;  %v22029_v1 = vld [vmem:[#allocation10 + $0x494] ss:$36 sps:$4 sm:$0xff]  }
 0x284   : > { %v1955_v14 = vpop.f32.mrb[62].mxu0  ;;  %v24357_v44 = vadd.f32 %v24228_v24, %v1953_v33  ;;  %v28334_v24 = vld [vmem:[#allocation21_spill] sm:$0xff]  ;;  %2732 = vmatprep.subr.bf16.mxu0 %v22029_v1  ;;  %v22027_v34 = vld [vmem:[#allocation10 + $0x490] ss:$36 sps:$4 sm:$0xff]   ;;  %v22032_v33 = vld [vmem:[#allocation10 + $0x4dc] ss:$36 sps:$4 sm:$0xff]  }
 0x285   : > { %28330 = vst [vmem:[#allocation45_spill] sm:$0xff] %v24354_v4  ;;  %v1957_v45 = vpop.f32.mrb[63].mxu0  ;;  %v24360_v28 = vadd.f32 %v24230_v25, %v1955_v14  ;;  %v28335_v25 = vld [vmem:[#allocation35_spill] sm:$0xff]  ;;  %v21981_v1 = vld [vmem:[#allocation10 + $0x63c] ss:$36 sps:$4 sm:$0xff]  }
 0x286   : > { %28331 = vst [vmem:[#allocation46_spill] sm:$0xff] %v24357_v44  ;;  %v24363_v3 = vadd.f32 %v24232_v31, %v1957_v45  ;;  %v28336_v31 = vld [vmem:[#allocation36_spill] sm:$0xff]  ;;  %v21976_v14 = vld [vmem:[#allocation10 + $0x5f0] ss:$36 sps:$4 sm:$0xff]   ;;  %v22035_v44 = vld [vmem:[#allocation10 + $0x524] ss:$36 sps:$4 sm:$0xff]  }
 0x287   : > { %28332 = vst [vmem:[#allocation47_spill] sm:$0xff] %v24360_v28  ;;  %2316 = vmatmul.mubr.bf16.gmra.mrb[116].mxu0 %v24145_v15  ;;  %v28338_v45 = vld [vmem:[#allocation26_spill] sm:$0xff]  ;;  %v21979_v28 = vld [vmem:[#allocation10 + $0x638] ss:$36 sps:$4 sm:$0xff]  }
 0x288   : > { %28333 = vst [vmem:[#allocation48_spill] sm:$0xff] %v24363_v3  ;;  %17888 = vmatmul.mubr.msk.bf16.gmra.mrb[128].mxu1 %vm1718_vm0, %v23892_v21  ;;  %2325 = vmatprep.mubr.bf16.mxu0 %v24147_v18  ;;  %v22030_v3 = vld [vmem:[#allocation10 + $0x4d8] ss:$36 sps:$4 sm:$0xff]   ;;  %v22038_v4 = vld [vmem:[#allocation10 + $0x56c] ss:$36 sps:$4 sm:$0xff]  }
 0x289   : > { %3290 = vmatprep.mubr.bf16.mxu1 %v28179_v0 }
 0x28f   : > { %2326 = vmatmul.mubr.bf16.gmra.mrb[120].mxu0 %v24157_v35 }
 0x290   : > { %17889 = vmatmul.mubr.msk.bf16.gmra.mrb[132].mxu1 %vm1718_vm0, %v28334_v24  ;;  %2335 = vmatprep.mubr.bf16.mxu0 %v28335_v25 }
 0x291   : > { %3300 = vmatprep.mubr.bf16.mxu1 %v28179_v0 }
 0x297   : > { %2336 = vmatmul.mubr.bf16.gmra.mrb[124].mxu0 %v28336_v31 }
 0x298   : > { %17890 = vmatmul.mubr.msk.bf16.gmra.mrb[136].mxu1 %vm1718_vm0, %v28337_v12  ;;  %2571 = vmatprep.mubr.bf16.mxu0 %v28179_v0 }
 0x299   : > { %19185 = vmatprep.mubr.bf16.mxu1 %v28179_v0 }
 0x29f   : > { %2572 = vmatmul.mubr.bf16.vlgmr.msra.gmra.mrb[128].mxu0 %v28179_v0  ;;  %v21984_v0 = vld [vmem:[#allocation10 + $0x684] ss:$36 sps:$4 sm:$0xff]  }
 0x2a0   : > { %19186 = vmatmul.mubr.msk.bf16.vlgmr.msra.gmra.mrb[140].mxu1 %vm1718_vm0, %v23916_v58  ;;  %2581 = vmatprep.mubr.bf16.mxu0 %v28338_v45 }
 0x2a1   : > { %5432 = vmatpush1.bf16.msra.mxu1 %v21973_v43  ;;  %19189 = vmatprep.mubr.msk.bf16.mxu1 %vm1718_vm0, %v23923_v11  ;;  %v22033_v43 = vld [vmem:[#allocation10 + $0x520] ss:$36 sps:$4 sm:$0xff]  }
 0x2a2   : > { %5433 = vmatprep.subr.bf16.mxu1 %v21978_v22  ;;  %2733 = vmatpush1.bf16.msra.mxu0 %v22027_v34  ;;  %v21982_v22 = vld [vmem:[#allocation10 + $0x680] ss:$36 sps:$4 sm:$0xff]   ;;  %v21987_v34 = vld [vmem:[#allocation10 + $0x6cc] ss:$36 sps:$4 sm:$0xff]  }
 0x2a3   : > { %2734 = vmatprep.subr.bf16.mxu0 %v22032_v33  ;;  %v21990_v33 = vld [vmem:[#allocation10 + $0x714] ss:$36 sps:$4 sm:$0xff]  }
 0x2a5   : > { %5434 = vmatpush1.bf16.msra.mxu1 %v21976_v14  ;;  %v22036_v14 = vld [vmem:[#allocation10 + $0x568] ss:$36 sps:$4 sm:$0xff]  }
 0x2a6   : > { %5435 = vmatprep.subr.bf16.mxu1 %v21981_v1  ;;  %2735 = vmatpush1.bf16.msra.mxu0 %v22030_v3  ;;  %v21985_v3 = vld [vmem:[#allocation10 + $0x6c8] ss:$36 sps:$4 sm:$0xff]   ;;  %v21994_v1 = vld [vmem:[#allocation10 + $0x7a0] ss:$36 sps:$4 sm:$0xff]  }
 0x2a7   : > { %2582 = vmatmul.mubr.bf16.gmra.mrb[132].mxu0 %v23950_v39  ;;  %2736 = vmatprep.subr.bf16.mxu0 %v22035_v44  ;;  %v21996_v44 = vld [vmem:[#allocation10 + $0x7a4] ss:$36 sps:$4 sm:$0xff]  }
 0x2a8   : > { %19190 = vmatmul.mubr.msk.bf16.gmra.mrb[144].mxu1 %vm1718_vm0, %v23932_v27  ;;  %2591 = vmatprep.mubr.bf16.mxu0 %v23954_v41 }
 0x2a9   : > { %5436 = vmatpush1.bf16.msra.mxu1 %v21979_v28  ;;  %19193 = vmatprep.mubr.msk.bf16.mxu1 %vm1718_vm0, %v23952_v40  ;;  %v21988_v28 = vld [vmem:[#allocation10 + $0x710] ss:$36 sps:$4 sm:$0xff]  }
 0x2aa   : > { %5437 = vmatprep.subr.bf16.mxu1 %v21984_v0  ;;  %2737 = vmatpush1.bf16.msra.mxu0 %v22033_v43  ;;  %v21993_v0 = vld [vmem:[#allocation10 + $0x75c] ss:$36 sps:$4 sm:$0xff]   ;;  %v21999_v43 = vld [vmem:[#allocation10 + $0x7ec] ss:$36 sps:$4 sm:$0xff]  }
 0x2ab   : > { %2738 = vmatprep.subr.bf16.mxu0 %v22038_v4  ;;  %v21991_v4 = vld [vmem:[#allocation10 + $0x758] ss:$36 sps:$4 sm:$0xff]  }
 0x2ad   : > { %5438 = vmatpush1.bf16.msra.mxu1 %v21982_v22  ;;  %v21997_v22 = vld [vmem:[#allocation10 + $0x7e8] ss:$36 sps:$4 sm:$0xff]  }
 0x2ae   : > { %5439 = vmatprep.subr.bf16.mxu1 %v21987_v34  ;;  %2739 = vmatpush1.bf16.msra.mxu0 %v22036_v14  ;;  %v22002_v34 = vld [vmem:[#allocation10 + $0x834] ss:$36 sps:$4 sm:$0xff]  }
 0x2af   : > { %2592 = vmatmul.mubr.bf16.gmra.mrb[136].mxu0 %v23971_v49  ;;  %v22003_v14 = vld [vmem:[#allocation10 + $0x878] ss:$36 sps:$4 sm:$0xff]  }
 0x2b0   : > { %19194 = vmatmul.mubr.msk.bf16.gmra.mrb[148].mxu1 %vm1718_vm0, %v23973_v50  ;;  %2601 = vmatprep.mubr.bf16.mxu0 %v23975_v51 }
 0x2b1   : > { %5440 = vmatpush1.bf16.msra.mxu1 %v21985_v3  ;;  %19197 = vmatprep.mubr.msk.bf16.mxu1 %vm1718_vm0, %v23991_v61  ;;  %v22000_v3 = vld [vmem:[#allocation10 + $0x830] ss:$36 sps:$4 sm:$0xff]  }
 0x2b2   : > { %5441 = vmatprep.subr.bf16.mxu1 %v21990_v33  ;;  %v22005_v33 = vld [vmem:[#allocation10 + $0x87c] ss:$36 sps:$4 sm:$0xff]  }
 0x2b5   : > { %5442 = vmatpush1.bf16.msra.mxu1 %v21988_v28  ;;  %v22008_v28 = vld [vmem:[#allocation10 + $0x8c4] ss:$36 sps:$4 sm:$0xff]  }
 0x2b6   : > { %5443 = vmatprep.subr.bf16.mxu1 %v21993_v0  ;;  %v22006_v0 = vld [vmem:[#allocation10 + $0x8c0] ss:$36 sps:$4 sm:$0xff]  }
 0x2b7   : > { %2602 = vmatmul.mubr.bf16.gmra.mrb[140].mxu0 %v23989_v60 }
 0x2b8   : > { %19198 = vmatmul.mubr.msk.bf16.gmra.mrb[152].mxu1 %vm1718_vm0, %v24008_v20  ;;  %2611 = vmatprep.mubr.bf16.mxu0 %v23993_v63 }
 0x2b9   : > { %5444 = vmatpush1.bf16.msra.mxu1 %v21991_v4  ;;  %19201 = vmatprep.mubr.msk.bf16.mxu1 %vm1718_vm0, %v24025_v37  ;;  %v22011_v4 = vld [vmem:[#allocation10 + $0x90c] ss:$36 sps:$4 sm:$0xff]  }
 0x2ba   : > { %5445 = vmatprep.subr.bf16.mxu1 %v21996_v44  ;;  %v22009_v44 = vld [vmem:[#allocation10 + $0x908] ss:$36 sps:$4 sm:$0xff]  }
 0x2bd   : > { %5446 = vmatpush1.bf16.msra.mxu1 %v21994_v1  ;;  %v22014_v1 = vld [vmem:[#allocation10 + $0x954] ss:$36 sps:$4 sm:$0xff]  }
 0x2be   : > { %5447 = vmatprep.subr.bf16.mxu1 %v21999_v43  ;;  %v22012_v43 = vld [vmem:[#allocation10 + $0x950] ss:$36 sps:$4 sm:$0xff]  }
 0x2bf   : > { %2612 = vmatmul.mubr.bf16.gmra.mrb[144].mxu0 %v24006_v19 }
 0x2c0   : > { %19202 = vmatmul.mubr.msk.bf16.gmra.mrb[156].mxu1 %vm1718_vm0, %v24042_v8  ;;  %2621 = vmatprep.mubr.bf16.mxu0 %v24010_v23 }
 0x2c1   : > { %5448 = vmatpush1.bf16.msra.mxu1 %v21997_v22  ;;  %19205 = vmatprep.mubr.msk.bf16.mxu1 %vm1718_vm0, %v24059_v16  ;;  %v22017_v22 = vld [vmem:[#allocation10 + $0x99c] ss:$36 sps:$4 sm:$0xff]  }
 0x2c2   : > { %5449 = vmatprep.subr.bf16.mxu1 %v22002_v34  ;;  %v22015_v34 = vld [vmem:[#allocation10 + $0x998] ss:$36 sps:$4 sm:$0xff]  }
 0x2c5   : > { %5450 = vmatpush1.bf16.msra.mxu1 %v22000_v3  ;;  %v22020_v3 = vld [vmem:[#allocation10 + $0x9e4] ss:$36 sps:$4 sm:$0xff]  }
 0x2c6   : > { %5451 = vmatprep.subr.bf16.mxu1 %v22005_v33  ;;  %v22018_v33 = vld [vmem:[#allocation10 + $0x9e0] ss:$36 sps:$4 sm:$0xff]  }
 0x2c7   : > { %2622 = vmatmul.mubr.bf16.gmra.mrb[148].mxu0 %v24023_v36 }
 0x2c8   : > { %19206 = vmatmul.mubr.msk.bf16.gmra.mrb[160].mxu1 %vm1718_vm0, %v24076_v9  ;;  %2631 = vmatprep.mubr.bf16.mxu0 %v24027_v38 }
 0x2c9   : > { %5452 = vmatpush1.bf16.msra.mxu1 %v22003_v14  ;;  %19209 = vmatprep.mubr.msk.bf16.mxu1 %vm1718_vm0, %v24093_v29  ;;  %v22023_v14 = vld [vmem:[#allocation10 + $0xa2c] ss:$36 sps:$4 sm:$0xff]  }
 0x2ca   : > { %5453 = vmatprep.subr.bf16.mxu1 %v22008_v28  ;;  %v22021_v28 = vld [vmem:[#allocation10 + $0xa28] ss:$36 sps:$4 sm:$0xff]  }
 0x2cd   : > { %5454 = vmatpush1.bf16.msra.mxu1 %v22006_v0  ;;  %v22026_v0 = vld [vmem:[#allocation10 + $0xa74] ss:$36 sps:$4 sm:$0xff]  }
 0x2ce   : > { %5455 = vmatprep.subr.bf16.mxu1 %v22011_v4  ;;  %v22024_v4 = vld [vmem:[#allocation10 + $0xa70] ss:$36 sps:$4 sm:$0xff]  }
 0x2cf   : > { %2632 = vmatmul.mubr.bf16.gmra.mrb[152].mxu0 %v24040_v47 }
 0x2d0   : > { %19210 = vmatmul.mubr.msk.bf16.gmra.mrb[164].mxu1 %vm1718_vm0, %v23892_v21  ;;  %2641 = vmatprep.mubr.bf16.mxu0 %v24044_v48 }
 0x2d1   : > { %5456 = vmatpush1.bf16.msra.mxu1 %v22009_v44  ;;  %19213 = vmatprep.mubr.msk.bf16.mxu1 %vm1718_vm0, %v28334_v24  ;;  %v22041_v44 = vld [vmem:[#allocation10 + $0xabc] ss:$36 sps:$4 sm:$0xff]  }
 0x2d2   : > { %5457 = vmatprep.subr.bf16.mxu1 %v22014_v1  ;;  %v22039_v1 = vld [vmem:[#allocation10 + $0xab8] ss:$36 sps:$4 sm:$0xff]  }
 0x2d5   : > { %5458 = vmatpush1.bf16.msra.mxu1 %v22012_v43  ;;  %v22044_v43 = vld [vmem:[#allocation10 + $0xb04] ss:$36 sps:$4 sm:$0xff]  }
 0x2d6   : > { %5459 = vmatprep.subr.bf16.mxu1 %v22017_v22  ;;  %v22042_v22 = vld [vmem:[#allocation10 + $0xb00] ss:$36 sps:$4 sm:$0xff]  }
 0x2d7   : > { %2642 = vmatmul.mubr.bf16.gmra.mrb[156].mxu0 %v24057_v55 }
 0x2d8   : > { %19214 = vmatmul.mubr.msk.bf16.gmra.mrb[168].mxu1 %vm1718_vm0, %v28337_v12  ;;  %2651 = vmatprep.mubr.bf16.mxu0 %v24061_v56 }
 0x2d9   : > { %5460 = vmatpush1.bf16.msra.mxu1 %v22015_v34  ;;  %5463 = vmatprep.mubr.bf16.mxu1 %v28338_v45  ;;  %v22047_v34 = vld [vmem:[#allocation10 + $0x5bc] ss:$36 sps:$4 sm:$0xff]  }
 0x2da   : > { %5461 = vmatprep.subr.bf16.mxu1 %v22020_v3  ;;  %v22057_v3 = vld [vmem:[#allocation10 + $0x260] ss:$36 sps:$4 sm:$0xff]  }
 0x2db   : > { %18709 = vmatprep.subr.bf16.mxu0 %v22057_v3 }
 0x2dd   : > { %5462 = vmatpush1.bf16.msra.mxu1 %v22018_v33  ;;  %v28339_v33 = vmov 0  }
 0x2de   : > { %5624 = vmatprep.subr.bf16.mxu1 %v22023_v14  ;;  %v22061_v14 = vld [vmem:[#allocation10 + $0x20] ss:$36 sps:$4 sm:$0xff]  }
 0x2df   : > { %2652 = vmatmul.mubr.bf16.gmra.mrb[160].mxu0 %v24074_v7 }
 0x2e0   : > { %5464 = vmatmul.mubr.bf16.vlgmr.msra.gmra.mrb[12].mxu1 %v23950_v39  ;;  %2661 = vmatprep.mubr.bf16.mxu0 %v24078_v13 }
 0x2e1   : > { %5625 = vmatpush1.bf16.msra.mxu1 %v22021_v28  ;;  %5473 = vmatprep.mubr.bf16.mxu1 %v23954_v41  ;;  %v22062_v28 = vld [vmem:[#allocation10 + $0x2a8] ss:$36 sps:$4 sm:$0xff]  }
 0x2e2   : > { %5626 = vmatprep.subr.bf16.mxu1 %v22026_v0  ;;  %v22063_v0 = vld [vmem:[#allocation10 + $0x68] ss:$36 sps:$4 sm:$0xff]  }
 0x2e5   : > { %5627 = vmatpush1.bf16.msra.mxu1 %v22024_v4  ;;  %v22064_v4 = vld [vmem:[#allocation10 + $0x2f0] ss:$36 sps:$4 sm:$0xff]  }
 0x2e6   : > { %5628 = vmatprep.subr.bf16.mxu1 %v22041_v44  ;;  %v22068_v44 = vld [vmem:[#allocation10 + $0xb0] ss:$36 sps:$4 sm:$0xff]  }
 0x2e7   : > { %2662 = vmatmul.mubr.bf16.gmra.mrb[164].mxu0 %v24091_v26 }
 0x2e8   : > { %5474 = vmatmul.mubr.bf16.gmra.mrb[16].mxu1 %v23971_v49  ;;  %2671 = vmatprep.mubr.bf16.mxu0 %v24095_v30 }
 0x2e9   : > { %5483 = vmatprep.mubr.bf16.mxu1 %v23975_v51  ;;  %5629 = vmatpush1.bf16.msra.mxu1 %v22039_v1  ;;  %v22069_v1 = vld [vmem:[#allocation10 + $0x338] ss:$36 sps:$4 sm:$0xff]  }
 0x2ea   : > { %5630 = vmatprep.subr.bf16.mxu1 %v22044_v43 }
 0x2ed   : > { %5631 = vmatpush1.bf16.msra.mxu1 %v22042_v22 }
 0x2ee   : > { %6203 = vmatprep.subr.bf16.mxu1 %v22047_v34  ;;  %v22070_v34 = vld [vmem:[#allocation10 + $0xf8] ss:$36 sps:$4 sm:$0xff]  }
 0x2ef   : > { %2672 = vmatmul.mubr.bf16.gmra.mrb[168].mxu0 %v24106_v2 }
 0x2f0   : > { %5484 = vmatmul.mubr.bf16.gmra.mrb[20].mxu1 %v23989_v60  ;;  %2681 = vmatprep.mubr.bf16.mxu0 %v24108_v42 }
 0x2f1   : > { %5493 = vmatprep.mubr.bf16.mxu1 %v23993_v63 }
 0x2f2   : > { %v24466_v43 = vpop.f32.mrb[64].mxu0 }
 0x2f3   : > { %28340 = vst [vmem:[#allocation21_spill] sm:$0xff] %v24466_v43  ;;  %v24470_v22 = vpop.f32.mrb[65].mxu0  ;;  %v22221_v43 = vld [vmem:[#allocation10 + $0x7ac] ss:$36 sps:$4 sm:$0xff]  }
 0x2f4   : > { %28341 = vst [vmem:[#allocation26_spill] sm:$0xff] %v24470_v22  ;;  %v24472_v3 = vpop.f32.mrb[66].mxu0  ;;  %v22216_v22 = vld [vmem:[#allocation10 + $0x760] ss:$36 sps:$4 sm:$0xff]  }
 0x2f5   : > { %28342 = vst [vmem:[#allocation49_spill] sm:$0xff] %v24472_v3 }
 0x2f7   : > { %2682 = vmatmul.mubr.bf16.gmra.mrb[172].mxu0 %v24119_v46 }
 0x2f8   : > { %5494 = vmatmul.mubr.bf16.gmra.mrb[24].mxu1 %v24006_v19  ;;  %2691 = vmatprep.mubr.bf16.mxu0 %v24121_v10 }
 0x2f9   : > { %5503 = vmatprep.mubr.bf16.mxu1 %v24010_v23 }
 0x2ff   : > { %2692 = vmatmul.mubr.bf16.gmra.mrb[176].mxu0 %v24132_v54 }
 0x300   : > { %5504 = vmatmul.mubr.bf16.gmra.mrb[28].mxu1 %v24023_v36  ;;  %2701 = vmatprep.mubr.bf16.mxu0 %v24134_v57 }
 0x301   : > { %5513 = vmatprep.mubr.bf16.mxu1 %v24027_v38 }
 0x307   : > { %2702 = vmatmul.mubr.bf16.gmra.mrb[180].mxu0 %v24145_v15 }
 0x308   : > { %5514 = vmatmul.mubr.bf16.gmra.mrb[32].mxu1 %v24040_v47  ;;  %2711 = vmatprep.mubr.bf16.mxu0 %v24147_v18 }
 0x309   : > { %5523 = vmatprep.mubr.bf16.mxu1 %v24044_v48 }
 0x30f   : > { %2712 = vmatmul.mubr.bf16.gmra.mrb[184].mxu0 %v24157_v35 }
 0x310   : > { %5524 = vmatmul.mubr.bf16.gmra.mrb[36].mxu1 %v24057_v55  ;;  %2721 = vmatprep.mubr.bf16.mxu0 %v28335_v25 }
 0x311   : > { %5533 = vmatprep.mubr.bf16.mxu1 %v24061_v56 }
 0x317   : > { %2722 = vmatmul.mubr.bf16.gmra.mrb[188].mxu0 %v28336_v31 }
 0x318   : > { %5534 = vmatmul.mubr.bf16.gmra.mrb[40].mxu1 %v24074_v7  ;;  %2764 = vmatprep.mubr.bf16.mxu0 %v28339_v33 }
 0x319   : > { %5543 = vmatprep.mubr.bf16.mxu1 %v24078_v13 }
 0x31f   : > { %2765 = vmatmul.mubr.bf16.vlgmr.msra.gmra.mrb[128].mxu0 %v28339_v33 }
 0x320   : > { %5544 = vmatmul.mubr.bf16.gmra.mrb[44].mxu1 %v24091_v26  ;;  %2774 = vmatprep.mubr.bf16.mxu0 %v28339_v33 }
 0x321   : > { %5553 = vmatprep.mubr.bf16.mxu1 %v24095_v30  ;;  %18710 = vmatpush3.bf16.msra.mxu0 %v22061_v14  ;;  %v22071_v14 = vld [vmem:[#allocation10 + $0x380] ss:$36 sps:$4 sm:$0xff]  }
 0x322   : > { %18711 = vmatprep.subr.bf16.mxu0 %v22062_v28  ;;  %v24474_v28 = vpop.f32.mrb[67].mxu0 }
 0x323   : > { %28343 = vst [vmem:[#allocation50_spill] sm:$0xff] %v24474_v28  ;;  %v24479_v62 = vpop.f32.mrb[68].mxu0 }
 0x324   : > { %28344 = vst [vmem:[#allocation51_spill] sm:$0xff] %v24479_v62  ;;  %v22215_v62 = vld [vmem:[#allocation10 + $0x71c] ss:$36 sps:$4 sm:$0xff]  }
 0x325   : > { %18712 = vmatpush3.bf16.msra.mxu0 %v22063_v0  ;;  %v22075_v0 = vld [vmem:[#allocation10 + $0x140] ss:$36 sps:$4 sm:$0xff]  }
 0x326   : > { %18713 = vmatprep.subr.bf16.mxu0 %v22064_v4  ;;  %v22076_v4 = vld [vmem:[#allocation10 + $0x3c8] ss:$36 sps:$4 sm:$0xff]  }
 0x327   : > { %17861 = vmatmul.mubr.msk.bf16.gmra.mrb[132].mxu0 %vm1718_vm0, %v23916_v58 }
 0x328   : > { %5554 = vmatmul.mubr.bf16.gmra.mrb[48].mxu1 %v24106_v2  ;;  %2784 = vmatprep.mubr.bf16.mxu0 %v28339_v33 }
 0x329   : > { %5563 = vmatprep.mubr.bf16.mxu1 %v24108_v42  ;;  %18714 = vmatpush3.bf16.msra.mxu0 %v22068_v44  ;;  %v24483_v44 = vpop.f32.mrb[69].mxu0 }
 0x32a   : > { %18715 = vmatprep.subr.bf16.mxu0 %v22069_v1  ;;  %28345 = vst [vmem:[#allocation52_spill] sm:$0xff] %v24483_v44  ;;  %v22077_v1 = vld [vmem:[#allocation10 + $0x188] ss:$36 sps:$4 sm:$0xff]   ;;  %v24485_v59 = vpop.f32.mrb[70].mxu0 }
 0x32b   : > { %28346 = vst [vmem:[#allocation53_spill] sm:$0xff] %v24485_v59  ;;  %v22051_v59 = vld [vmem:[#allocation10 + $0x648] ss:$36 sps:$4 sm:$0xff]  }
 0x32d   : > { %18716 = vmatpush3.bf16.msra.mxu0 %v22070_v34  ;;  %v22078_v34 = vld [vmem:[#allocation10 + $0x410] ss:$36 sps:$4 sm:$0xff]  }
 0x32e   : > { %18717 = vmatprep.subr.bf16.mxu0 %v22071_v14  ;;  %v24487_v14 = vpop.f32.mrb[71].mxu0 }
 0x32f   : > { %17862 = vmatmul.mubr.msk.bf16.gmra.mrb[136].mxu0 %vm1718_vm0, %v23923_v11  ;;  %28347 = vst [vmem:[#allocation54_spill] sm:$0xff] %v24487_v14  ;;  %v24492_v53 = vpop.f32.mrb[72].mxu0 }
 0x330   : > { %5564 = vmatmul.mubr.bf16.gmra.mrb[52].mxu1 %v24119_v46  ;;  %2794 = vmatprep.mubr.bf16.mxu0 %v28339_v33  ;;  %28348 = vst [vmem:[#allocation55_spill] sm:$0xff] %v24492_v53 }
 0x331   : > { %5573 = vmatprep.mubr.bf16.mxu1 %v24121_v10  ;;  %18718 = vmatpush3.bf16.msra.mxu0 %v22075_v0  ;;  %v24496_v0 = vpop.f32.mrb[73].mxu0 }
 0x332   : > { %18719 = vmatprep.subr.bf16.mxu0 %v22076_v4  ;;  %28349 = vst [vmem:[#allocation56_spill] sm:$0xff] %v24496_v0  ;;  %v22084_v4 = vld [vmem:[#allocation10 + $0x218] ss:$36 sps:$4 sm:$0xff]   ;;  %v24498_v52 = vpop.f32.mrb[74].mxu0 }
 0x333   : > { %28350 = vst [vmem:[#allocation57_spill] sm:$0xff] %v24498_v52  ;;  %v547_v52 = vld [vmem:[%s23847_s8 + $0x2e8] sm:$0xff] }
 0x335   : > { %18720 = vmatpush3.bf16.msra.mxu0 %v22077_v1  ;;  %v24500_v1 = vpop.f32.mrb[75].mxu0 }
 0x336   : > { %18721 = vmatprep.subr.bf16.mxu0 %v22078_v34  ;;  %28351 = vst [vmem:[#allocation58_spill] sm:$0xff] %v24500_v1  ;;  %v24505_v34 = vpop.f32.mrb[76].mxu0 }
 0x337   : > { %17863 = vmatmul.mubr.msk.bf16.gmra.mrb[140].mxu0 %vm1718_vm0, %v23932_v27  ;;  %28352 = vst [vmem:[#allocation59_spill] sm:$0xff] %v24505_v34  ;;  %v548_v34 = vld [vmem:[%s23847_s8 + $0x2f0] sm:$0xff] }
 0x338   : > { %5574 = vmatmul.mubr.bf16.gmra.mrb[56].mxu1 %v24132_v54  ;;  %2804 = vmatprep.mubr.bf16.mxu0 %v28339_v33 }
 0x339   : > { %5583 = vmatprep.mubr.bf16.mxu1 %v24134_v57  ;;  %18722 = vmatpush3.bf16.msra.mxu0 %v22082_v17  ;;  %v24509_v17 = vpop.f32.mrb[77].mxu0 }
 0x33a   : > { %18723 = vmatprep.subr.bf16.mxu0 %v22083_v5  ;;  %28353 = vst [vmem:[#allocation60_spill] sm:$0xff] %v24509_v17  ;;  %v24511_v32 = vpop.f32.mrb[78].mxu0  ;;  %v545_v17 = vld [vmem:[%s23847_s8 + $0x2d8] sm:$0xff] }
 0x33b   : > { %28354 = vst [vmem:[#allocation61_spill] sm:$0xff] %v24511_v32  ;;  %v24513_v5 = vpop.f32.mrb[79].mxu0  ;;  %v24530_v1 = vpack.c.bf16 %v548_v34, %v545_v17 }
 0x33c   : > { %28355 = vst [vmem:[#allocation62_spill] sm:$0xff] %v24513_v5 }
 0x33d   : > { %18724 = vmatpush3.bf16.msra.mxu0 %v22084_v4  ;;  %v24518_v4 = vpop.f32.mrb[80].mxu0  ;;  %28360 = vst [vmem:[#allocation67_spill] sm:$0xff] %v24530_v1 }
 0x33e   : > { %28356 = vst [vmem:[#allocation63_spill] sm:$0xff] %v24518_v4  ;;  %v24522_v6 = vpop.f32.mrb[81].mxu0 }
 0x33f   : > { %17864 = vmatmul.mubr.msk.bf16.gmra.mrb[144].mxu0 %vm1718_vm0, %v23952_v40  ;;  %28357 = vst [vmem:[#allocation64_spill] sm:$0xff] %v24522_v6  ;;  %v24526_v32 = vpop.f32.mrb[82].mxu0  ;;  %v544_v6 = vld [vmem:[%s23847_s8 + $0x2d0] sm:$0xff] }
 0x340   : > { %5584 = vmatmul.mubr.bf16.gmra.mrb[60].mxu1 %v24145_v15  ;;  %2814 = vmatprep.mubr.bf16.mxu0 %v28339_v33  ;;  %28358 = vst [vmem:[#allocation65_spill] sm:$0xff] %v24526_v32  ;;  %v24528_v5 = vpop.f32.mrb[83].mxu0  ;;  %v24547_v34 = vpack.c.bf16 %v547_v52, %v544_v6  ;;  %v22050_v6 = vld [vmem:[#allocation10 + $0x604] ss:$36 sps:$4 sm:$0xff]  }
 0x341   : > { %5593 = vmatprep.mubr.bf16.mxu1 %v24147_v18  ;;  %28359 = vst [vmem:[#allocation66_spill] sm:$0xff] %v24528_v5  ;;  %v24535_v4 = vpop.f32.mrb[84].mxu0  ;;  %v22111_v52 = vld [vmem:[#allocation10 + $0x5a4] ss:$36 sps:$4 sm:$0xff]  }
 0x342   : > { %28361 = vst [vmem:[#allocation68_spill] sm:$0xff] %v24535_v4  ;;  %v24541_v0 = vpop.f32.mrb[85].mxu0  ;;  %28365 = vst [vmem:[#allocation72_spill] sm:$0xff] %v24547_v34  ;;  %5045 = vmatprep.subr.bf16.mxu0 %v22111_v52  ;;  %v22054_v52 = vld [vmem:[#allocation10 + $0x690] ss:$36 sps:$4 sm:$0xff]  }
 0x343   : > { %28362 = vst [vmem:[#allocation69_spill] sm:$0xff] %v24541_v0  ;;  %v24543_v32 = vpop.f32.mrb[86].mxu0 }
 0x344   : > { %28363 = vst [vmem:[#allocation70_spill] sm:$0xff] %v24543_v32  ;;  %v24545_v5 = vpop.f32.mrb[87].mxu0 }
 0x345   : > { %28364 = vst [vmem:[#allocation71_spill] sm:$0xff] %v24545_v5  ;;  %v24552_v17 = vpop.f32.mrb[88].mxu0  ;;  %v22045_v5 = vld [vmem:[#allocation10 + $0x5b8] ss:$36 sps:$4 sm:$0xff]  }
 0x346   : > { %28366 = vst [vmem:[#allocation73_spill] sm:$0xff] %v24552_v17  ;;  %v24556_v4 = vpop.f32.mrb[89].mxu0  ;;  %v22048_v17 = vld [vmem:[#allocation10 + $0x600] ss:$36 sps:$4 sm:$0xff]  }
 0x347   : > { %17865 = vmatmul.mubr.msk.bf16.gmra.mrb[148].mxu0 %vm1718_vm0, %v23973_v50  ;;  %28367 = vst [vmem:[#allocation74_spill] sm:$0xff] %v24556_v4  ;;  %v24558_v0 = vpop.f32.mrb[90].mxu0 }
 0x348   : > { %5594 = vmatmul.mubr.bf16.gmra.mrb[64].mxu1 %v24157_v35  ;;  %2824 = vmatprep.mubr.bf16.mxu0 %v28339_v33  ;;  %28368 = vst [vmem:[#allocation75_spill] sm:$0xff] %v24558_v0  ;;  %v24560_v32 = vpop.f32.mrb[91].mxu0  ;;  %v22053_v0 = vld [vmem:[#allocation10 + $0x64c] ss:$36 sps:$4 sm:$0xff]  }
 0x349   : > { %5603 = vmatprep.mubr.bf16.mxu1 %v28335_v25  ;;  %28369 = vst [vmem:[#allocation76_spill] sm:$0xff] %v24560_v32  ;;  %v24567_v53 = vpop.f32.mrb[92].mxu0 }
 0x34a   : > { %28370 = vst [vmem:[#allocation77_spill] sm:$0xff] %v24567_v53  ;;  %v24570_v32 = vpop.f32.mrb[93].mxu0 }
 0x34b   : > { %28371 = vst [vmem:[#allocation78_spill] sm:$0xff] %v24570_v32  ;;  %v24572_v4 = vpop.f32.mrb[94].mxu0  ;;  %v22067_v32 = vld [vmem:[#allocation10 + $0x724] ss:$36 sps:$4 sm:$0xff]  }
 0x34c   : > { %28372 = vst [vmem:[#allocation79_spill] sm:$0xff] %v24572_v4  ;;  %v24574_v14 = vpop.f32.mrb[95].mxu0  ;;  %v22058_v4 = vld [vmem:[#allocation10 + $0x6d8] ss:$36 sps:$4 sm:$0xff]  }
 0x34d   : > { %28373 = vst [vmem:[#allocation80_spill] sm:$0xff] %v24574_v14  ;;  %v24580_v53 = vpop.f32.mrb[96].mxu0 }
 0x34e   : > { %28374 = vst [vmem:[#allocation81_spill] sm:$0xff] %v24580_v53 }
 0x34f   : > { %17866 = vmatmul.mubr.msk.bf16.gmra.mrb[152].mxu0 %vm1718_vm0, %v23991_v61 }
 0x350   : > { %5604 = vmatmul.mubr.bf16.gmra.mrb[68].mxu1 %v28336_v31  ;;  %2834 = vmatprep.mubr.bf16.mxu0 %v28339_v33 }
 0x351   : > { %5613 = vmatprep.mubr.bf16.mxu1 %v24530_v1 }
 0x357   : > { %17867 = vmatmul.mubr.msk.bf16.gmra.mrb[156].mxu0 %vm1718_vm0, %v24008_v20 }
 0x358   : > { %5614 = vmatmul.mubr.bf16.gmra.mrb[72].mxu1 %v24547_v34  ;;  %2844 = vmatprep.mubr.bf16.mxu0 %v28339_v33 }
 0x359   : > { %5656 = vmatprep.mubr.bf16.mxu1 %v28339_v33 }
 0x35f   : > { %17868 = vmatmul.mubr.msk.bf16.gmra.mrb[160].mxu0 %vm1718_vm0, %v24025_v37 }
 0x360   : > { %18102 = vmatmul.mubr.msk.bf16.vlgmr.msra.gmra.mrb[12].mxu1 %vm1718_vm0, %v23916_v58  ;;  %2854 = vmatprep.mubr.bf16.mxu0 %v28339_v33 }
 0x361   : > { %6204 = vmatpush1.bf16.msra.mxu1 %v22045_v5  ;;  %5666 = vmatprep.mubr.bf16.mxu1 %v28339_v33  ;;  %v22056_v5 = vld [vmem:[#allocation10 + $0x694] ss:$36 sps:$4 sm:$0xff]  }
 0x362   : > { %6205 = vmatprep.subr.bf16.mxu1 %v22050_v6  ;;  %v24584_v6 = vpop.f32.mrb[97].mxu0 }
 0x363   : > { %28375 = vst [vmem:[#allocation82_spill] sm:$0xff] %v24584_v6  ;;  %v22081_v6 = vld [vmem:[#allocation10 + $0x7b4] ss:$36 sps:$4 sm:$0xff]  }
 0x365   : > { %6206 = vmatpush1.bf16.msra.mxu1 %v22048_v17  ;;  %v24586_v17 = vpop.f32.mrb[98].mxu0 }
 0x366   : > { %6207 = vmatprep.subr.bf16.mxu1 %v22053_v0  ;;  %28376 = vst [vmem:[#allocation83_spill] sm:$0xff] %v24586_v17  ;;  %v22060_v0 = vld [vmem:[#allocation10 + $0x6dc] ss:$36 sps:$4 sm:$0xff]   ;;  %v24588_v14 = vpop.f32.mrb[99].mxu0  ;;  %v22072_v17 = vld [vmem:[#allocation10 + $0x768] ss:$36 sps:$4 sm:$0xff]  }
 0x367   : > { %17869 = vmatmul.mubr.msk.bf16.gmra.mrb[164].mxu0 %vm1718_vm0, %v24042_v8  ;;  %28377 = vst [vmem:[#allocation84_spill] sm:$0xff] %v24588_v14  ;;  %v24594_v53 = vpop.f32.mrb[100].mxu0 }
 0x368   : > { %18103 = vmatmul.mubr.msk.bf16.gmra.mrb[16].mxu1 %vm1718_vm0, %v23923_v11  ;;  %2864 = vmatprep.mubr.bf16.mxu0 %v28339_v33  ;;  %28378 = vst [vmem:[#allocation85_spill] sm:$0xff] %v24594_v53 }
 0x369   : > { %5676 = vmatprep.mubr.bf16.mxu1 %v28339_v33  ;;  %6208 = vmatpush1.bf16.msra.mxu1 %v22051_v59  ;;  %v24598_v59 = vpop.f32.mrb[101].mxu0 }
 0x36a   : > { %6209 = vmatprep.subr.bf16.mxu1 %v22056_v5  ;;  %28379 = vst [vmem:[#allocation86_spill] sm:$0xff] %v24598_v59  ;;  %v22065_v5 = vld [vmem:[#allocation10 + $0x720] ss:$36 sps:$4 sm:$0xff]  }
 0x36b   : > { %v22090_v59 = vld [vmem:[#allocation10 + $0x844] ss:$36 sps:$4 sm:$0xff]  }
 0x36d   : > { %6210 = vmatpush1.bf16.msra.mxu1 %v22054_v52  ;;  %v24600_v52 = vpop.f32.mrb[102].mxu0 }
 0x36e   : > { %6211 = vmatprep.subr.bf16.mxu1 %v22060_v0  ;;  %28380 = vst [vmem:[#allocation87_spill] sm:$0xff] %v24600_v52  ;;  %v22074_v0 = vld [vmem:[#allocation10 + $0x76c] ss:$36 sps:$4 sm:$0xff]   ;;  %v24602_v14 = vpop.f32.mrb[103].mxu0  ;;  %v22085_v52 = vld [vmem:[#allocation10 + $0x7f8] ss:$36 sps:$4 sm:$0xff]  }
 0x36f   : > { %17870 = vmatmul.mubr.msk.bf16.gmra.mrb[168].mxu0 %vm1718_vm0, %v24059_v16  ;;  %28381 = vst [vmem:[#allocation88_spill] sm:$0xff] %v24602_v14  ;;  %v24608_v53 = vpop.f32.mrb[104].mxu0 }
 0x370   : > { %18104 = vmatmul.mubr.msk.bf16.gmra.mrb[20].mxu1 %vm1718_vm0, %v23932_v27  ;;  %2874 = vmatprep.mubr.bf16.mxu0 %v28339_v33  ;;  %28382 = vst [vmem:[#allocation89_spill] sm:$0xff] %v24608_v53  ;;  %v22096_v53 = vld [vmem:[#allocation10 + $0x8d4] ss:$36 sps:$4 sm:$0xff]  }
 0x371   : > { %5686 = vmatprep.mubr.bf16.mxu1 %v28339_v33  ;;  %6212 = vmatpush1.bf16.msra.mxu1 %v22058_v4  ;;  %v22079_v4 = vld [vmem:[#allocation10 + $0x7b0] ss:$36 sps:$4 sm:$0xff]  }
 0x372   : > { %6213 = vmatprep.subr.bf16.mxu1 %v22067_v32  ;;  %v24612_v32 = vpop.f32.mrb[105].mxu0 }
 0x373   : > { %28383 = vst [vmem:[#allocation90_spill] sm:$0xff] %v24612_v32  ;;  %v22091_v32 = vld [vmem:[#allocation10 + $0x888] ss:$36 sps:$4 sm:$0xff]  }
 0x375   : > { %6214 = vmatpush1.bf16.msra.mxu1 %v22065_v5  ;;  %v24614_v5 = vpop.f32.mrb[106].mxu0 }
 0x376   : > { %6215 = vmatprep.subr.bf16.mxu1 %v22074_v0  ;;  %28384 = vst [vmem:[#allocation91_spill] sm:$0xff] %v24614_v5  ;;  %v22087_v0 = vld [vmem:[#allocation10 + $0x7fc] ss:$36 sps:$4 sm:$0xff]   ;;  %v24616_v14 = vpop.f32.mrb[107].mxu0 }
 0x377   : > { %17871 = vmatmul.mubr.msk.bf16.gmra.mrb[172].mxu0 %vm1718_vm0, %v24076_v9  ;;  %28385 = vst [vmem:[#allocation92_spill] sm:$0xff] %v24616_v14 }
 0x378   : > { %18105 = vmatmul.mubr.msk.bf16.gmra.mrb[24].mxu1 %vm1718_vm0, %v23952_v40  ;;  %2884 = vmatprep.mubr.bf16.mxu0 %v28339_v33 }
 0x379   : > { %5696 = vmatprep.mubr.bf16.mxu1 %v28339_v33  ;;  %6216 = vmatpush1.bf16.msra.mxu1 %v22072_v17  ;;  %v24624_v17 = vpop.f32.mrb[108].mxu0 }
 0x37a   : > { %6217 = vmatprep.subr.bf16.mxu1 %v22081_v6  ;;  %28386 = vst [vmem:[#allocation93_spill] sm:$0xff] %v24624_v17  ;;  %v22088_v6 = vld [vmem:[#allocation10 + $0x840] ss:$36 sps:$4 sm:$0xff]   ;;  %v24626_v5 = vpop.f32.mrb[109].mxu0 }
 0x37b   : > { %28387 = vst [vmem:[#allocation94_spill] sm:$0xff] %v24626_v5  ;;  %v22097_v5 = vld [vmem:[#allocation10 + $0x918] ss:$36 sps:$4 sm:$0xff]   ;;  %v22102_v17 = vld [vmem:[#allocation10 + $0x964] ss:$36 sps:$4 sm:$0xff]  }
 0x37d   : > { %6218 = vmatpush1.bf16.msra.mxu1 %v22079_v4  ;;  %v22093_v4 = vld [vmem:[#allocation10 + $0x88c] ss:$36 sps:$4 sm:$0xff]  }
 0x37e   : > { %6219 = vmatprep.subr.bf16.mxu1 %v22087_v0  ;;  %v24628_v0 = vpop.f32.mrb[110].mxu0 }
 0x37f   : > { %17872 = vmatmul.mubr.msk.bf16.gmra.mrb[176].mxu0 %vm1718_vm0, %v24093_v29  ;;  %28388 = vst [vmem:[#allocation95_spill] sm:$0xff] %v24628_v0  ;;  %v24630_v14 = vpop.f32.mrb[111].mxu0 }
 0x380   : > { %18106 = vmatmul.mubr.msk.bf16.gmra.mrb[28].mxu1 %vm1718_vm0, %v23973_v50  ;;  %2894 = vmatprep.mubr.bf16.mxu0 %v28339_v33  ;;  %28389 = vst [vmem:[#allocation96_spill] sm:$0xff] %v24630_v14  ;;  %v22094_v14 = vld [vmem:[#allocation10 + $0x8d0] ss:$36 sps:$4 sm:$0xff]  }
 0x381   : > { %5706 = vmatprep.mubr.bf16.mxu1 %v28339_v33  ;;  %6220 = vmatpush1.bf16.msra.mxu1 %v22085_v52  ;;  %v24636_v52 = vpop.f32.mrb[112].mxu0 }
 0x382   : > { %6221 = vmatprep.subr.bf16.mxu1 %v22090_v59  ;;  %28390 = vst [vmem:[#allocation97_spill] sm:$0xff] %v24636_v52  ;;  %v24640_v59 = vpop.f32.mrb[113].mxu0 }
 0x383   : > { %28391 = vst [vmem:[#allocation98_spill] sm:$0xff] %v24640_v59  ;;  %v22108_v59 = vld [vmem:[#allocation10 + $0x9f4] ss:$36 sps:$4 sm:$0xff]  }
 0x385   : > { %6222 = vmatpush1.bf16.msra.mxu1 %v22088_v6  ;;  %v24642_v6 = vpop.f32.mrb[114].mxu0 }
 0x386   : > { %6223 = vmatprep.subr.bf16.mxu1 %v22093_v4  ;;  %28392 = vst [vmem:[#allocation99_spill] sm:$0xff] %v24642_v6  ;;  %v22099_v4 = vld [vmem:[#allocation10 + $0x91c] ss:$36 sps:$4 sm:$0xff]   ;;  %v24644_v0 = vpop.f32.mrb[115].mxu0  ;;  %v22103_v6 = vld [vmem:[#allocation10 + $0x9a8] ss:$36 sps:$4 sm:$0xff]  }
 0x387   : > { %17873 = vmatmul.mubr.msk.bf16.gmra.mrb[180].mxu0 %vm1718_vm0, %v23892_v21  ;;  %28393 = vst [vmem:[#allocation100_spill] sm:$0xff] %v24644_v0  ;;  %v24650_v52 = vpop.f32.mrb[116].mxu0 }
 0x388   : > { %18107 = vmatmul.mubr.msk.bf16.gmra.mrb[32].mxu1 %vm1718_vm0, %v23991_v61  ;;  %2904 = vmatprep.mubr.bf16.mxu0 %v28339_v33  ;;  %28394 = vst [vmem:[#allocation101_spill] sm:$0xff] %v24650_v52 }
 0x389   : > { %5716 = vmatprep.mubr.bf16.mxu1 %v28339_v33  ;;  %6224 = vmatpush1.bf16.msra.mxu1 %v22091_v32  ;;  %v22100_v32 = vld [vmem:[#allocation10 + $0x960] ss:$36 sps:$4 sm:$0xff]  }
 0x38a   : > { %6225 = vmatprep.subr.bf16.mxu1 %v22096_v53  ;;  %v24654_v53 = vpop.f32.mrb[117].mxu0 }
 0x38b   : > { %28395 = vst [vmem:[#allocation102_spill] sm:$0xff] %v24654_v53  ;;  %v22117_v53 = vld [vmem:[#allocation10 + $0x5ec] ss:$36 sps:$4 sm:$0xff]  }
 0x38d   : > { %6226 = vmatpush1.bf16.msra.mxu1 %v22094_v14  ;;  %v24656_v14 = vpop.f32.mrb[118].mxu0 }
 0x38e   : > { %6227 = vmatprep.subr.bf16.mxu1 %v22099_v4  ;;  %28396 = vst [vmem:[#allocation103_spill] sm:$0xff] %v24656_v14  ;;  %v22105_v4 = vld [vmem:[#allocation10 + $0x9ac] ss:$36 sps:$4 sm:$0xff]   ;;  %v24658_v0 = vpop.f32.mrb[119].mxu0  ;;  %v22109_v14 = vld [vmem:[#allocation10 + $0x5a0] ss:$36 sps:$4 sm:$0xff]  }
 0x38f   : > { %17874 = vmatmul.mubr.msk.bf16.gmra.mrb[184].mxu0 %vm1718_vm0, %v28334_v24  ;;  %28397 = vst [vmem:[#allocation104_spill] sm:$0xff] %v24658_v0  ;;  %v24664_v52 = vpop.f32.mrb[120].mxu0 }
 0x390   : > { %18108 = vmatmul.mubr.msk.bf16.gmra.mrb[36].mxu1 %vm1718_vm0, %v24008_v20  ;;  %2914 = vmatprep.mubr.bf16.mxu0 %v28339_v33  ;;  %28398 = vst [vmem:[#allocation105_spill] sm:$0xff] %v24664_v52 }
 0x391   : > { %5726 = vmatprep.mubr.bf16.mxu1 %v28339_v33  ;;  %6228 = vmatpush1.bf16.msra.mxu1 %v22097_v5  ;;  %v24668_v5 = vpop.f32.mrb[121].mxu0 }
 0x392   : > { %6229 = vmatprep.subr.bf16.mxu1 %v22102_v17  ;;  %28399 = vst [vmem:[#allocation106_spill] sm:$0xff] %v24668_v5  ;;  %v22106_v17 = vld [vmem:[#allocation10 + $0x9f0] ss:$36 sps:$4 sm:$0xff]   ;;  %v22123_v5 = vld [vmem:[#allocation10 + $0x67c] ss:$36 sps:$4 sm:$0xff]  }
 0x395   : > { %6230 = vmatpush1.bf16.msra.mxu1 %v22100_v32  ;;  %v24670_v32 = vpop.f32.mrb[122].mxu0 }
 0x396   : > { %6231 = vmatprep.subr.bf16.mxu1 %v22105_v4  ;;  %28400 = vst [vmem:[#allocation107_spill] sm:$0xff] %v24670_v32  ;;  %v22114_v4 = vld [vmem:[#allocation10 + $0xa3c] ss:$36 sps:$4 sm:$0xff]   ;;  %v24672_v0 = vpop.f32.mrb[123].mxu0  ;;  %v22118_v32 = vld [vmem:[#allocation10 + $0x630] ss:$36 sps:$4 sm:$0xff]  }
 0x397   : > { %17875 = vmatmul.mubr.msk.bf16.gmra.mrb[188].mxu0 %vm1718_vm0, %v28337_v12  ;;  %28401 = vst [vmem:[#allocation108_spill] sm:$0xff] %v24672_v0  ;;  %v24677_v52 = vpop.f32.mrb[124].mxu0 }
 0x398   : > { %18109 = vmatmul.mubr.msk.bf16.gmra.mrb[40].mxu1 %vm1718_vm0, %v24025_v37  ;;  %3343 = vmatprep.mubr.bf16.mxu0 %v28339_v33  ;;  %28402 = vst [vmem:[#allocation109_spill] sm:$0xff] %v24677_v52  ;;  %v22141_v52 = vld [vmem:[#allocation10 + $0xa84] ss:$36 sps:$4 sm:$0xff]  }
 0x399   : > { %5736 = vmatprep.mubr.bf16.mxu1 %v28339_v33  ;;  %6232 = vmatpush1.bf16.msra.mxu1 %v22103_v6  ;;  %v24681_v6 = vpop.f32.mrb[125].mxu0 }
 0x39a   : > { %6233 = vmatprep.subr.bf16.mxu1 %v22108_v59  ;;  %28403 = vst [vmem:[#allocation110_spill] sm:$0xff] %v24681_v6  ;;  %v22115_v59 = vld [vmem:[#allocation10 + $0x5e8] ss:$36 sps:$4 sm:$0xff]   ;;  %v24683_v0 = vpop.f32.mrb[126].mxu0 }
 0x39b   : > { %28404 = vst [vmem:[#allocation111_spill] sm:$0xff] %v24683_v0  ;;  %v22124_v0 = vld [vmem:[#allocation10 + $0x6c0] ss:$36 sps:$4 sm:$0xff]  }
 0x39d   : > { %6234 = vmatpush1.bf16.msra.mxu1 %v22106_v17  ;;  %v22120_v17 = vld [vmem:[#allocation10 + $0x634] ss:$36 sps:$4 sm:$0xff]  }
 0x39e   : > { %6396 = vmatprep.subr.bf16.mxu1 %v22114_v4  ;;  %v24685_v4 = vpop.f32.mrb[127].mxu0 }
 0x39f   : > { %3344 = vmatmul.mubr.bf16.vlgmr.msra.gmra.mrb[192].mxu0 %v28339_v33  ;;  %28405 = vst [vmem:[#allocation112_spill] sm:$0xff] %v24685_v4  ;;  %v549_v4 = vld [vmem:[%s23847_s8 + $0x2f8] sm:$0xff] }
 0x3a0   : > { %18110 = vmatmul.mubr.msk.bf16.gmra.mrb[44].mxu1 %vm1718_vm0, %v24042_v8  ;;  %3351 = vmatprep.mubr.bf16.mxu0 %v28338_v45 }
 0x3a1   : > { %5746 = vmatprep.mubr.bf16.mxu1 %v28339_v33  ;;  %5046 = vmatpush1.bf16.msra.mxu0 %v22109_v14  ;;  %v22121_v14 = vld [vmem:[#allocation10 + $0x678] ss:$36 sps:$4 sm:$0xff]  }
 0x3a2   : > { %5047 = vmatprep.subr.bf16.mxu0 %v22117_v53  ;;  %v22126_v53 = vld [vmem:[#allocation10 + $0x6c4] ss:$36 sps:$4 sm:$0xff]  }
 0x3a5   : > { %5048 = vmatpush1.bf16.msra.mxu0 %v22115_v59  ;;  %v22129_v59 = vld [vmem:[#allocation10 + $0x70c] ss:$36 sps:$4 sm:$0xff]  }
 0x3a6   : > { %5049 = vmatprep.subr.bf16.mxu0 %v22120_v17  ;;  %v22127_v17 = vld [vmem:[#allocation10 + $0x708] ss:$36 sps:$4 sm:$0xff]  }
 0x3a7   : > { %3352 = vmatmul.mubr.bf16.gmra.mrb[196].mxu0 %v23950_v39 }
 0x3a8   : > { %18111 = vmatmul.mubr.msk.bf16.gmra.mrb[48].mxu1 %vm1718_vm0, %v24059_v16  ;;  %3359 = vmatprep.mubr.bf16.mxu0 %v23954_v41 }
 0x3a9   : > { %5756 = vmatprep.mubr.bf16.mxu1 %v28339_v33  ;;  %5050 = vmatpush1.bf16.msra.mxu0 %v22118_v32  ;;  %v22132_v32 = vld [vmem:[#allocation10 + $0x754] ss:$36 sps:$4 sm:$0xff]  }
 0x3aa   : > { %5051 = vmatprep.subr.bf16.mxu0 %v22123_v5  ;;  %v22130_v5 = vld [vmem:[#allocation10 + $0x750] ss:$36 sps:$4 sm:$0xff]  }
 0x3ad   : > { %5052 = vmatpush1.bf16.msra.mxu0 %v22121_v14  ;;  %v22135_v14 = vld [vmem:[#allocation10 + $0x79c] ss:$36 sps:$4 sm:$0xff]  }
 0x3ae   : > { %5053 = vmatprep.subr.bf16.mxu0 %v22126_v53  ;;  %v22133_v53 = vld [vmem:[#allocation10 + $0x798] ss:$36 sps:$4 sm:$0xff]  }
 0x3af   : > { %3360 = vmatmul.mubr.bf16.gmra.mrb[200].mxu0 %v23971_v49 }
 0x3b0   : > { %18112 = vmatmul.mubr.msk.bf16.gmra.mrb[52].mxu1 %vm1718_vm0, %v24076_v9  ;;  %3367 = vmatprep.mubr.bf16.mxu0 %v23975_v51 }
 0x3b1   : > { %5766 = vmatprep.mubr.bf16.mxu1 %v28339_v33  ;;  %5054 = vmatpush1.bf16.msra.mxu0 %v22124_v0  ;;  %v22138_v0 = vld [vmem:[#allocation10 + $0x7e4] ss:$36 sps:$4 sm:$0xff]  }
 0x3b2   : > { %5055 = vmatprep.subr.bf16.mxu0 %v22129_v59  ;;  %v22136_v59 = vld [vmem:[#allocation10 + $0x7e0] ss:$36 sps:$4 sm:$0xff]  }
 0x3b5   : > { %5056 = vmatpush1.bf16.msra.mxu0 %v22127_v17  ;;  %v22144_v17 = vld [vmem:[#allocation10 + $0x82c] ss:$36 sps:$4 sm:$0xff]  }
 0x3b6   : > { %5057 = vmatprep.subr.bf16.mxu0 %v22132_v32  ;;  %v22142_v32 = vld [vmem:[#allocation10 + $0x828] ss:$36 sps:$4 sm:$0xff]  }
 0x3b7   : > { %3368 = vmatmul.mubr.bf16.gmra.mrb[204].mxu0 %v23989_v60 }
 0x3b8   : > { %18113 = vmatmul.mubr.msk.bf16.gmra.mrb[56].mxu1 %vm1718_vm0, %v24093_v29  ;;  %3375 = vmatprep.mubr.bf16.mxu0 %v23993_v63 }
 0x3b9   : > { %5776 = vmatprep.mubr.bf16.mxu1 %v28339_v33  ;;  %5058 = vmatpush1.bf16.msra.mxu0 %v22130_v5  ;;  %v22147_v5 = vld [vmem:[#allocation10 + $0x874] ss:$36 sps:$4 sm:$0xff]  }
 0x3ba   : > { %5059 = vmatprep.subr.bf16.mxu0 %v22135_v14  ;;  %v22145_v14 = vld [vmem:[#allocation10 + $0x870] ss:$36 sps:$4 sm:$0xff]  }
 0x3bd   : > { %5060 = vmatpush1.bf16.msra.mxu0 %v22133_v53  ;;  %v22150_v53 = vld [vmem:[#allocation10 + $0x8bc] ss:$36 sps:$4 sm:$0xff]  }
 0x3be   : > { %5061 = vmatprep.subr.bf16.mxu0 %v22138_v0  ;;  %v22148_v0 = vld [vmem:[#allocation10 + $0x8b8] ss:$36 sps:$4 sm:$0xff]  }
 0x3bf   : > { %3376 = vmatmul.mubr.bf16.gmra.mrb[208].mxu0 %v24006_v19 }
 0x3c0   : > { %18114 = vmatmul.mubr.msk.bf16.gmra.mrb[60].mxu1 %vm1718_vm0, %v23892_v21  ;;  %3383 = vmatprep.mubr.bf16.mxu0 %v24010_v23 }
 0x3c1   : > { %5786 = vmatprep.mubr.bf16.mxu1 %v28339_v33  ;;  %5062 = vmatpush1.bf16.msra.mxu0 %v22136_v59  ;;  %v22153_v59 = vld [vmem:[#allocation10 + $0x904] ss:$36 sps:$4 sm:$0xff]  }
 0x3c2   : > { %5063 = vmatprep.subr.bf16.mxu0 %v22144_v17  ;;  %v22151_v17 = vld [vmem:[#allocation10 + $0x900] ss:$36 sps:$4 sm:$0xff]  }
 0x3c5   : > { %5064 = vmatpush1.bf16.msra.mxu0 %v22142_v32  ;;  %v22156_v32 = vld [vmem:[#allocation10 + $0x94c] ss:$36 sps:$4 sm:$0xff]  }
 0x3c6   : > { %5065 = vmatprep.subr.bf16.mxu0 %v22147_v5  ;;  %v546_v5 = vld [vmem:[%s23847_s8 + $0x2e0] sm:$0xff] }
 0x3c7   : > { %3384 = vmatmul.mubr.bf16.gmra.mrb[212].mxu0 %v24023_v36  ;;  %v24719_v6 = vpack.c.bf16 %v549_v4, %v546_v5  ;;  %v22139_v4 = vld [vmem:[#allocation10 + $0xa80] ss:$36 sps:$4 sm:$0xff]   ;;  %v22165_v5 = vld [vmem:[#allocation10 + $0xacc] ss:$36 sps:$4 sm:$0xff]  }
 0x3c8   : > { %18115 = vmatmul.mubr.msk.bf16.gmra.mrb[64].mxu1 %vm1718_vm0, %v28334_v24  ;;  %3391 = vmatprep.mubr.bf16.mxu0 %v24027_v38 }
 0x3c9   : > { %5796 = vmatprep.mubr.bf16.mxu1 %v28339_v33  ;;  %5066 = vmatpush1.bf16.msra.mxu0 %v22145_v14  ;;  %v22154_v14 = vld [vmem:[#allocation10 + $0x948] ss:$36 sps:$4 sm:$0xff]   ;;  %28406 = vst [vmem:[#allocation113_spill] sm:$0xff] %v24719_v6 }
 0x3ca   : > { %5067 = vmatprep.subr.bf16.mxu0 %v22150_v53  ;;  %v22159_v53 = vld [vmem:[#allocation10 + $0x994] ss:$36 sps:$4 sm:$0xff]  }
 0x3cd   : > { %5068 = vmatpush1.bf16.msra.mxu0 %v22148_v0  ;;  %v22157_v0 = vld [vmem:[#allocation10 + $0x990] ss:$36 sps:$4 sm:$0xff]  }
 0x3ce   : > { %5069 = vmatprep.subr.bf16.mxu0 %v22153_v59  ;;  %v22162_v59 = vld [vmem:[#allocation10 + $0x9dc] ss:$36 sps:$4 sm:$0xff]  }
 0x3cf   : > { %3392 = vmatmul.mubr.bf16.gmra.mrb[216].mxu0 %v24040_v47 }
 0x3d0   : > { %18116 = vmatmul.mubr.msk.bf16.gmra.mrb[68].mxu1 %vm1718_vm0, %v28337_v12  ;;  %3399 = vmatprep.mubr.bf16.mxu0 %v24044_v48 }
 0x3d1   : > { %5806 = vmatprep.mubr.bf16.mxu1 %v28339_v33  ;;  %5070 = vmatpush1.bf16.msra.mxu0 %v22151_v17  ;;  %v22160_v17 = vld [vmem:[#allocation10 + $0x9d8] ss:$36 sps:$4 sm:$0xff]  }
 0x3d2   : > { %5071 = vmatprep.subr.bf16.mxu0 %v22156_v32  ;;  %v22112_v32 = vld [vmem:[#allocation10 + $0xa38] ss:$36 sps:$4 sm:$0xff]  }
 0x3d5   : > { %5072 = vmatpush1.bf16.msra.mxu0 %v22154_v14  ;;  %v22163_v14 = vld [vmem:[#allocation10 + $0xac8] ss:$36 sps:$4 sm:$0xff]  }
 0x3d6   : > { %5073 = vmatprep.subr.bf16.mxu0 %v22159_v53  ;;  %v22168_v53 = vld [vmem:[#allocation10 + $0xb14] ss:$36 sps:$4 sm:$0xff]  }
 0x3d7   : > { %3400 = vmatmul.mubr.bf16.gmra.mrb[220].mxu0 %v24057_v55 }
 0x3d8   : > { %18117 = vmatmul.mubr.msk.bf16.gmra.mrb[72].mxu1 %vm1718_vm0, %v24719_v6  ;;  %3407 = vmatprep.mubr.bf16.mxu0 %v24061_v56 }
 0x3d9   : > { %6235 = vmatprep.mubr.bf16.mxu1 %v28338_v45  ;;  %5074 = vmatpush1.bf16.msra.mxu0 %v22157_v0  ;;  %v22166_v0 = vld [vmem:[#allocation10 + $0xb10] ss:$36 sps:$4 sm:$0xff]  }
 0x3da   : > { %5075 = vmatprep.subr.bf16.mxu0 %v22162_v59  ;;  %v22169_v59 = vld [vmem:[#allocation10 + $0x800] ss:$36 sps:$4 sm:$0xff]  }
 0x3dd   : > { %5076 = vmatpush1.bf16.msra.mxu0 %v22160_v17  ;;  %v22175_v17 = vld [vmem:[#allocation10 + $0xa20] ss:$36 sps:$4 sm:$0xff]  }
 0x3df   : > { %3408 = vmatmul.mubr.bf16.gmra.mrb[224].mxu0 %v24074_v7 }
 0x3e0   : > { %6236 = vmatmul.mubr.bf16.vlgmr.msra.gmra.mrb[76].mxu1 %v23950_v39  ;;  %3415 = vmatprep.mubr.bf16.mxu0 %v24078_v13 }
 0x3e1   : > { %6397 = vmatpush1.bf16.msra.mxu1 %v22112_v32  ;;  %6245 = vmatprep.mubr.bf16.mxu1 %v23954_v41  ;;  %v22182_v32 = vld [vmem:[#allocation10 + $0xa6c] ss:$36 sps:$4 sm:$0xff]  }
 0x3e2   : > { %6398 = vmatprep.subr.bf16.mxu1 %v22141_v52  ;;  %v22177_v52 = vld [vmem:[#allocation10 + $0xa24] ss:$36 sps:$4 sm:$0xff]  }
 0x3e3   : > { %5238 = vmatprep.subr.bf16.mxu0 %v22177_v52  ;;  %v22171_v52 = vld [vmem:[#allocation10 + $0x848] ss:$36 sps:$4 sm:$0xff]  }
 0x3e5   : > { %6399 = vmatpush1.bf16.msra.mxu1 %v22139_v4  ;;  %v22180_v4 = vld [vmem:[#allocation10 + $0xa68] ss:$36 sps:$4 sm:$0xff]  }
 0x3e6   : > { %6400 = vmatprep.subr.bf16.mxu1 %v22165_v5  ;;  %v22185_v5 = vld [vmem:[#allocation10 + $0xab4] ss:$36 sps:$4 sm:$0xff]  }
 0x3e7   : > { %3416 = vmatmul.mubr.bf16.gmra.mrb[228].mxu0 %v24091_v26 }
 0x3e8   : > { %6246 = vmatmul.mubr.bf16.gmra.mrb[80].mxu1 %v23971_v49  ;;  %3423 = vmatprep.mubr.bf16.mxu0 %v24095_v30 }
 0x3e9   : > { %6255 = vmatprep.mubr.bf16.mxu1 %v23975_v51  ;;  %6401 = vmatpush1.bf16.msra.mxu1 %v22163_v14  ;;  %v22183_v14 = vld [vmem:[#allocation10 + $0xab0] ss:$36 sps:$4 sm:$0xff]  }
 0x3ea   : > { %6402 = vmatprep.subr.bf16.mxu1 %v22168_v53  ;;  %v22188_v53 = vld [vmem:[#allocation10 + $0xafc] ss:$36 sps:$4 sm:$0xff]  }
 0x3ed   : > { %6403 = vmatpush1.bf16.msra.mxu1 %v22166_v0  ;;  %v22186_v0 = vld [vmem:[#allocation10 + $0xaf8] ss:$36 sps:$4 sm:$0xff]  }
 0x3ee   : > { %18841 = vmatprep.subr.bf16.mxu1 %v22169_v59  ;;  %v22170_v59 = vld [vmem:[#allocation10 + $0x5c0] ss:$36 sps:$4 sm:$0xff]  }
 0x3ef   : > { %3424 = vmatmul.mubr.bf16.gmra.mrb[232].mxu0 %v24106_v2 }
 0x3f0   : > { %6256 = vmatmul.mubr.bf16.gmra.mrb[84].mxu1 %v23989_v60  ;;  %3431 = vmatprep.mubr.bf16.mxu0 %v24108_v42 }
 0x3f1   : > { %6265 = vmatprep.mubr.bf16.mxu1 %v23993_v63 }
 0x3f7   : > { %3432 = vmatmul.mubr.bf16.gmra.mrb[236].mxu0 %v24119_v46 }
 0x3f8   : > { %6266 = vmatmul.mubr.bf16.gmra.mrb[88].mxu1 %v24006_v19  ;;  %3439 = vmatprep.mubr.bf16.mxu0 %v24121_v10 }
 0x3f9   : > { %6275 = vmatprep.mubr.bf16.mxu1 %v24010_v23 }
 0x3ff   : > { %3440 = vmatmul.mubr.bf16.gmra.mrb[240].mxu0 %v24132_v54 }
 0x400   : > { %6276 = vmatmul.mubr.bf16.gmra.mrb[92].mxu1 %v24023_v36  ;;  %3447 = vmatprep.mubr.bf16.mxu0 %v24134_v57 }
 0x401   : > { %6285 = vmatprep.mubr.bf16.mxu1 %v24027_v38 }
 0x407   : > { %3448 = vmatmul.mubr.bf16.gmra.mrb[244].mxu0 %v24145_v15 }
 0x408   : > { %6286 = vmatmul.mubr.bf16.gmra.mrb[96].mxu1 %v24040_v47  ;;  %3455 = vmatprep.mubr.bf16.mxu0 %v24147_v18 }
 0x409   : > { %6295 = vmatprep.mubr.bf16.mxu1 %v24044_v48 }
 0x40f   : > { %3456 = vmatmul.mubr.bf16.gmra.mrb[248].mxu0 %v24157_v35 }
 0x410   : > { %6296 = vmatmul.mubr.bf16.gmra.mrb[100].mxu1 %v24057_v55  ;;  %3463 = vmatprep.mubr.bf16.mxu0 %v28335_v25 }
 0x411   : > { %6305 = vmatprep.mubr.bf16.mxu1 %v24061_v56 }
 0x417   : > { %3464 = vmatmul.mubr.bf16.gmra.mrb[252].mxu0 %v28336_v31 }
 0x418   : > { %6306 = vmatmul.mubr.bf16.gmra.mrb[104].mxu1 %v24074_v7  ;;  %5077 = vmatprep.mubr.bf16.mxu0 %v28338_v45 }
 0x419   : > { %6315 = vmatprep.mubr.bf16.mxu1 %v24078_v13 }
 0x41f   : > { %5078 = vmatmul.mubr.bf16.vlgmr.msra.gmra.mrb[0].mxu0 %v23950_v39 }
 0x420   : > { %6316 = vmatmul.mubr.bf16.gmra.mrb[108].mxu1 %v24091_v26  ;;  %5087 = vmatprep.mubr.bf16.mxu0 %v23954_v41 }
 0x421   : > { %6325 = vmatprep.mubr.bf16.mxu1 %v24095_v30  ;;  %5239 = vmatpush1.bf16.msra.mxu0 %v22175_v17  ;;  %v22199_v17 = vld [vmem:[#allocation10 + $0x5b4] ss:$36 sps:$4 sm:$0xff]  }
 0x422   : > { %5240 = vmatprep.subr.bf16.mxu0 %v22182_v32  ;;  %v22172_v32 = vld [vmem:[#allocation10 + $0x608] ss:$36 sps:$4 sm:$0xff]  }
 0x425   : > { %5241 = vmatpush1.bf16.msra.mxu0 %v22180_v4  ;;  %v22173_v4 = vld [vmem:[#allocation10 + $0x890] ss:$36 sps:$4 sm:$0xff]  }
 0x426   : > { %5242 = vmatprep.subr.bf16.mxu0 %v22185_v5  ;;  %v22174_v5 = vld [vmem:[#allocation10 + $0x650] ss:$36 sps:$4 sm:$0xff]  }
 0x427   : > { %5088 = vmatmul.mubr.bf16.gmra.mrb[4].mxu0 %v23971_v49 }
 0x428   : > { %6326 = vmatmul.mubr.bf16.gmra.mrb[112].mxu1 %v24106_v2  ;;  %5097 = vmatprep.mubr.bf16.mxu0 %v23975_v51 }
 0x429   : > { %6335 = vmatprep.mubr.bf16.mxu1 %v24108_v42  ;;  %5243 = vmatpush1.bf16.msra.mxu0 %v22183_v14  ;;  %v22178_v14 = vld [vmem:[#allocation10 + $0x8d8] ss:$36 sps:$4 sm:$0xff]  }
 0x42a   : > { %5244 = vmatprep.subr.bf16.mxu0 %v22188_v53  ;;  %v22179_v53 = vld [vmem:[#allocation10 + $0x698] ss:$36 sps:$4 sm:$0xff]  }
 0x42d   : > { %5245 = vmatpush1.bf16.msra.mxu0 %v22186_v0  ;;  %v22189_v0 = vld [vmem:[#allocation10 + $0x920] ss:$36 sps:$4 sm:$0xff]  }
 0x42e   : > { %5817 = vmatprep.subr.bf16.mxu0 %v22199_v17  ;;  %v22192_v17 = vld [vmem:[#allocation10 + $0x728] ss:$36 sps:$4 sm:$0xff]  }
 0x42f   : > { %5098 = vmatmul.mubr.bf16.gmra.mrb[8].mxu0 %v23989_v60 }
 0x430   : > { %6336 = vmatmul.mubr.bf16.gmra.mrb[116].mxu1 %v24119_v46  ;;  %5107 = vmatprep.mubr.bf16.mxu0 %v23993_v63 }
 0x431   : > { %6345 = vmatprep.mubr.bf16.mxu1 %v24121_v10 }
 0x437   : > { %5108 = vmatmul.mubr.bf16.gmra.mrb[12].mxu0 %v24006_v19 }
 0x438   : > { %6346 = vmatmul.mubr.bf16.gmra.mrb[120].mxu1 %v24132_v54  ;;  %5117 = vmatprep.mubr.bf16.mxu0 %v24010_v23 }
 0x439   : > { %6355 = vmatprep.mubr.bf16.mxu1 %v24134_v57 }
 0x43f   : > { %5118 = vmatmul.mubr.bf16.gmra.mrb[16].mxu0 %v24023_v36 }
 0x440   : > { %6356 = vmatmul.mubr.bf16.gmra.mrb[124].mxu1 %v24145_v15  ;;  %5127 = vmatprep.mubr.bf16.mxu0 %v24027_v38 }
 0x441   : > { %6365 = vmatprep.mubr.bf16.mxu1 %v24147_v18 }
 0x447   : > { %5128 = vmatmul.mubr.bf16.gmra.mrb[20].mxu0 %v24040_v47 }
 0x448   : > { %6366 = vmatmul.mubr.bf16.gmra.mrb[128].mxu1 %v24157_v35  ;;  %5137 = vmatprep.mubr.bf16.mxu0 %v24044_v48 }
 0x449   : > { %6375 = vmatprep.mubr.bf16.mxu1 %v28335_v25 }
 0x44f   : > { %5138 = vmatmul.mubr.bf16.gmra.mrb[24].mxu0 %v24057_v55 }
 0x450   : > { %6376 = vmatmul.mubr.bf16.gmra.mrb[132].mxu1 %v28336_v31  ;;  %5147 = vmatprep.mubr.bf16.mxu0 %v24061_v56 }
 0x451   : > { %6385 = vmatprep.mubr.bf16.mxu1 %v24530_v1 }
 0x457   : > { %5148 = vmatmul.mubr.bf16.gmra.mrb[28].mxu0 %v24074_v7 }
 0x458   : > { %6386 = vmatmul.mubr.bf16.gmra.mrb[136].mxu1 %v24547_v34  ;;  %5157 = vmatprep.mubr.bf16.mxu0 %v24078_v13 }
 0x459   : > { %6428 = vmatprep.mubr.bf16.mxu1 %v28339_v33 }
 0x45f   : > { %5158 = vmatmul.mubr.bf16.gmra.mrb[32].mxu0 %v24091_v26 }
 0x460   : > { %18134 = vmatmul.mubr.msk.bf16.vlgmr.msra.gmra.mrb[76].mxu1 %vm1718_vm0, %v23916_v58  ;;  %5167 = vmatprep.mubr.bf16.mxu0 %v24095_v30 }
 0x461   : > { %18842 = vmatpush3.bf16.msra.mxu1 %v22170_v59  ;;  %6438 = vmatprep.mubr.bf16.mxu1 %v28339_v33  ;;  %v22190_v59 = vld [vmem:[#allocation10 + $0x6e0] ss:$36 sps:$4 sm:$0xff]  }
 0x462   : > { %18843 = vmatprep.subr.bf16.mxu1 %v22171_v52  ;;  %v22191_v52 = vld [vmem:[#allocation10 + $0x968] ss:$36 sps:$4 sm:$0xff]  }
 0x465   : > { %18844 = vmatpush3.bf16.msra.mxu1 %v22172_v32  ;;  %v22193_v32 = vld [vmem:[#allocation10 + $0x9b0] ss:$36 sps:$4 sm:$0xff]  }
 0x466   : > { %18845 = vmatprep.subr.bf16.mxu1 %v22173_v4  ;;  %v22194_v4 = vld [vmem:[#allocation10 + $0x770] ss:$36 sps:$4 sm:$0xff]  }
 0x467   : > { %5168 = vmatmul.mubr.bf16.gmra.mrb[36].mxu0 %v24106_v2 }
 0x468   : > { %18135 = vmatmul.mubr.msk.bf16.gmra.mrb[80].mxu1 %vm1718_vm0, %v23923_v11  ;;  %5177 = vmatprep.mubr.bf16.mxu0 %v24108_v42 }
 0x469   : > { %6448 = vmatprep.mubr.bf16.mxu1 %v28339_v33  ;;  %18846 = vmatpush3.bf16.msra.mxu1 %v22174_v5  ;;  %v22195_v5 = vld [vmem:[#allocation10 + $0x9f8] ss:$36 sps:$4 sm:$0xff]  }
 0x46a   : > { %18847 = vmatprep.subr.bf16.mxu1 %v22178_v14  ;;  %v22196_v14 = vld [vmem:[#allocation10 + $0x7b8] ss:$36 sps:$4 sm:$0xff]  }
 0x46d   : > { %18848 = vmatpush3.bf16.msra.mxu1 %v22179_v53  ;;  %v24810_v53 = vld [vmem:[#allocation10 + $0xa40] ss:$36 sps:$4 sm:$0xff]  }
 0x46e   : > { %18849 = vmatprep.subr.bf16.mxu1 %v22189_v0  ;;  %v22197_v0 = vld [vmem:[#allocation10 + $0x5b0] ss:$36 sps:$4 sm:$0xff]  }
 0x46f   : > { %5178 = vmatmul.mubr.bf16.gmra.mrb[40].mxu0 %v24119_v46 }
 0x470   : > { %18136 = vmatmul.mubr.msk.bf16.gmra.mrb[84].mxu1 %vm1718_vm0, %v23932_v27  ;;  %5187 = vmatprep.mubr.bf16.mxu0 %v24121_v10 }
 0x471   : > { %6458 = vmatprep.mubr.bf16.mxu1 %v28339_v33  ;;  %18850 = vmatpush3.bf16.msra.mxu1 %v22190_v59  ;;  %v22203_v59 = vld [vmem:[#allocation10 + $0x5fc] ss:$36 sps:$4 sm:$0xff]  }
 0x472   : > { %18851 = vmatprep.subr.bf16.mxu1 %v22191_v52  ;;  %v22201_v52 = vld [vmem:[#allocation10 + $0x5f8] ss:$36 sps:$4 sm:$0xff]  }
 0x475   : > { %18852 = vmatpush3.bf16.msra.mxu1 %v22192_v17  ;;  %v22206_v17 = vld [vmem:[#allocation10 + $0x644] ss:$36 sps:$4 sm:$0xff]  }
 0x476   : > { %18853 = vmatprep.subr.bf16.mxu1 %v22193_v32  ;;  %v22204_v32 = vld [vmem:[#allocation10 + $0x640] ss:$36 sps:$4 sm:$0xff]  }
 0x477   : > { %5188 = vmatmul.mubr.bf16.gmra.mrb[44].mxu0 %v24132_v54 }
 0x478   : > { %18137 = vmatmul.mubr.msk.bf16.gmra.mrb[88].mxu1 %vm1718_vm0, %v23952_v40  ;;  %5197 = vmatprep.mubr.bf16.mxu0 %v24134_v57 }
 0x479   : > { %6468 = vmatprep.mubr.bf16.mxu1 %v28339_v33  ;;  %18854 = vmatpush3.bf16.msra.mxu1 %v22194_v4  ;;  %v22209_v4 = vld [vmem:[#allocation10 + $0x68c] ss:$36 sps:$4 sm:$0xff]  }
 0x47a   : > { %18855 = vmatprep.subr.bf16.mxu1 %v22195_v5  ;;  %v18725_v5 = vpop.f32.mrb[192].mxu0 }
 0x47d   : > { %18856 = vmatpush3.bf16.msra.mxu1 %v22196_v14  ;;  %v18726_v14 = vpop.f32.mrb[193].mxu0 }
 0x47e   : > { %19217 = vmatprep.subr.bf16.mxu1 %v24810_v53 }
 0x47f   : > { %5198 = vmatmul.mubr.bf16.gmra.mrb[48].mxu0 %v24145_v15 }
 0x480   : > { %18138 = vmatmul.mubr.msk.bf16.gmra.mrb[92].mxu1 %vm1718_vm0, %v23973_v50  ;;  %5207 = vmatprep.mubr.bf16.mxu0 %v24147_v18 }
 0x481   : > { %6478 = vmatprep.mubr.bf16.mxu1 %v28339_v33 }
 0x487   : > { %5208 = vmatmul.mubr.bf16.gmra.mrb[52].mxu0 %v24157_v35 }
 0x488   : > { %18139 = vmatmul.mubr.msk.bf16.gmra.mrb[96].mxu1 %vm1718_vm0, %v23991_v61  ;;  %5217 = vmatprep.mubr.bf16.mxu0 %v28335_v25  ;;  %v24871_v25 = vadd.f32 %v18726_v14, %v18725_v5  ;;  %v22237_v5 = vld [vmem:[#allocation10 + $0x914] ss:$36 sps:$4 sm:$0xff]  }
 0x489   : > { %6488 = vmatprep.mubr.bf16.mxu1 %v28339_v33  ;;  %v22235_v14 = vld [vmem:[#allocation10 + $0x910] ss:$36 sps:$4 sm:$0xff]  }
 0x48a   : > { %28407 = vst [vmem:[#allocation114_spill] sm:$0xff] %v24871_v25 }
 0x48f   : > { %5218 = vmatmul.mubr.bf16.gmra.mrb[56].mxu0 %v28336_v31  ;;  %v22229_v31 = vld [vmem:[#allocation10 + $0x880] ss:$36 sps:$4 sm:$0xff]  }
 0x490   : > { %18140 = vmatmul.mubr.msk.bf16.gmra.mrb[100].mxu1 %vm1718_vm0, %v24008_v20  ;;  %5227 = vmatprep.mubr.bf16.mxu0 %v24530_v1 }
 0x491   : > { %6498 = vmatprep.mubr.bf16.mxu1 %v28339_v33 }
 0x497   : > { %5228 = vmatmul.mubr.bf16.gmra.mrb[60].mxu0 %v24547_v34 }
 0x498   : > { %18141 = vmatmul.mubr.msk.bf16.gmra.mrb[104].mxu1 %vm1718_vm0, %v24025_v37  ;;  %5270 = vmatprep.mubr.bf16.mxu0 %v28339_v33 }
 0x499   : > { %6508 = vmatprep.mubr.bf16.mxu1 %v28339_v33 }
 0x49f   : > { %18086 = vmatmul.mubr.msk.bf16.vlgmr.msra.gmra.mrb[0].mxu0 %vm1718_vm0, %v23916_v58  ;;  %v22222_v58 = vld [vmem:[#allocation10 + $0x7f0] ss:$36 sps:$4 sm:$0xff]  }
 0x4a0   : > { %18142 = vmatmul.mubr.msk.bf16.gmra.mrb[108].mxu1 %vm1718_vm0, %v24042_v8  ;;  %5280 = vmatprep.mubr.bf16.mxu0 %v28339_v33 }
 0x4a1   : > { %6518 = vmatprep.mubr.bf16.mxu1 %v28339_v33  ;;  %5818 = vmatpush1.bf16.msra.mxu0 %v22197_v0  ;;  %v22207_v0 = vld [vmem:[#allocation10 + $0x688] ss:$36 sps:$4 sm:$0xff]  }
 0x4a2   : > { %5819 = vmatprep.subr.bf16.mxu0 %v22203_v59  ;;  %v18728_v59 = vpop.f32.mrb[194].mxu0 }
 0x4a3   : > { %v18729_v44 = vpop.f32.mrb[195].mxu0 }
 0x4a4   : > { %v24849_v28 = vpop.f32.mrb[196].mxu0  ;;  %v24873_v35 = vadd.f32 %v18729_v44, %v18728_v59  ;;  %v22240_v59 = vld [vmem:[#allocation10 + $0x95c] ss:$36 sps:$4 sm:$0xff]  }
 0x4a5   : > { %5820 = vmatpush1.bf16.msra.mxu0 %v22201_v52  ;;  %v22212_v52 = vld [vmem:[#allocation10 + $0x6d4] ss:$36 sps:$4 sm:$0xff]  }
 0x4a6   : > { %5821 = vmatprep.subr.bf16.mxu0 %v22206_v17  ;;  %v22210_v17 = vld [vmem:[#allocation10 + $0x6d0] ss:$36 sps:$4 sm:$0xff]   ;;  %28408 = vst [vmem:[#allocation115_spill] sm:$0xff] %v24873_v35 }
 0x4a7   : > { %18087 = vmatmul.mubr.msk.bf16.gmra.mrb[4].mxu0 %vm1718_vm0, %v23923_v11 }
 0x4a8   : > { %18143 = vmatmul.mubr.msk.bf16.gmra.mrb[112].mxu1 %vm1718_vm0, %v24059_v16  ;;  %5290 = vmatprep.mubr.bf16.mxu0 %v28339_v33 }
 0x4a9   : > { %6528 = vmatprep.mubr.bf16.mxu1 %v28339_v33  ;;  %5822 = vmatpush1.bf16.msra.mxu0 %v22204_v32  ;;  %v18732_v32 = vpop.f32.mrb[197].mxu0 }
 0x4aa   : > { %5823 = vmatprep.subr.bf16.mxu0 %v22209_v4  ;;  %v22213_v4 = vld [vmem:[#allocation10 + $0x718] ss:$36 sps:$4 sm:$0xff]   ;;  %v18734_v3 = vpop.f32.mrb[198].mxu0  ;;  %v24884_v35 = vadd.f32 %v18732_v32, %v24849_v28  ;;  %v22243_v28 = vld [vmem:[#allocation10 + $0x9a4] ss:$36 sps:$4 sm:$0xff]  }
 0x4ac   : > { %28409 = vst [vmem:[#allocation116_spill] sm:$0xff] %v24884_v35 }
 0x4ad   : > { %5824 = vmatpush1.bf16.msra.mxu0 %v22207_v0  ;;  %v22218_v0 = vld [vmem:[#allocation10 + $0x764] ss:$36 sps:$4 sm:$0xff]  }
 0x4ae   : > { %5825 = vmatprep.subr.bf16.mxu0 %v22212_v52  ;;  %v18735_v52 = vpop.f32.mrb[199].mxu0 }
 0x4af   : > { %18088 = vmatmul.mubr.msk.bf16.gmra.mrb[8].mxu0 %vm1718_vm0, %v23932_v27  ;;  %v24857_v27 = vpop.f32.mrb[200].mxu0  ;;  %v24886_v25 = vadd.f32 %v18735_v52, %v18734_v3  ;;  %v22241_v3 = vld [vmem:[#allocation10 + $0x9a0] ss:$36 sps:$4 sm:$0xff]   ;;  %v22246_v52 = vld [vmem:[#allocation10 + $0x9ec] ss:$36 sps:$4 sm:$0xff]  }
 0x4b0   : > { %18144 = vmatmul.mubr.msk.bf16.gmra.mrb[116].mxu1 %vm1718_vm0, %v24076_v9  ;;  %5300 = vmatprep.mubr.bf16.mxu0 %v28339_v33 }
 0x4b1   : > { %6538 = vmatprep.mubr.bf16.mxu1 %v28339_v33  ;;  %5826 = vmatpush1.bf16.msra.mxu0 %v22210_v17  ;;  %v24861_v17 = vpop.f32.mrb[201].mxu0  ;;  %28410 = vst [vmem:[#allocation117_spill] sm:$0xff] %v24886_v25 }
 0x4b2   : > { %5827 = vmatprep.subr.bf16.mxu0 %v22215_v62  ;;  %v22219_v62 = vld [vmem:[#allocation10 + $0x7a8] ss:$36 sps:$4 sm:$0xff]   ;;  %v24896_v25 = vadd.f32 %v24861_v17, %v24857_v27 }
 0x4b3   : > { %v22225_v17 = vld [vmem:[#allocation10 + $0xa88] ss:$36 sps:$4 sm:$0xff]  }
 0x4b5   : > { %5828 = vmatpush1.bf16.msra.mxu0 %v22213_v4  ;;  %v18740_v4 = vpop.f32.mrb[202].mxu0 }
 0x4b6   : > { %5829 = vmatprep.subr.bf16.mxu0 %v22218_v0  ;;  %v22224_v0 = vld [vmem:[#allocation10 + $0x7f4] ss:$36 sps:$4 sm:$0xff]   ;;  %v18741_v11 = vpop.f32.mrb[203].mxu0 }
 0x4b7   : > { %18089 = vmatmul.mubr.msk.bf16.gmra.mrb[12].mxu0 %vm1718_vm0, %v23952_v40  ;;  %v22228_v40 = vld [vmem:[#allocation10 + $0x83c] ss:$36 sps:$4 sm:$0xff]   ;;  %v24867_v34 = vpop.f32.mrb[204].mxu0  ;;  %v24898_v35 = vadd.f32 %v18741_v11, %v18740_v4 }
 0x4b8   : > { %18145 = vmatmul.mubr.msk.bf16.gmra.mrb[120].mxu1 %vm1718_vm0, %v24093_v29  ;;  %5310 = vmatprep.mubr.bf16.mxu0 %v28339_v33 }
 0x4b9   : > { %6548 = vmatprep.mubr.bf16.mxu1 %v28339_v33  ;;  %5830 = vmatpush1.bf16.msra.mxu0 %v22216_v22  ;;  %v18744_v22 = vpop.f32.mrb[205].mxu0  ;;  %28411 = vst [vmem:[#allocation118_spill] sm:$0xff] %v24898_v35 }
 0x4ba   : > { %5831 = vmatprep.subr.bf16.mxu0 %v22221_v43  ;;  %v22226_v43 = vld [vmem:[#allocation10 + $0x838] ss:$36 sps:$4 sm:$0xff]   ;;  %v18746_v1 = vpop.f32.mrb[206].mxu0  ;;  %v24907_v11 = vadd.f32 %v18744_v22, %v24867_v34 }
 0x4bc   : > { %28412 = vst [vmem:[#allocation119_spill] sm:$0xff] %v24907_v11 }
 0x4bd   : > { %5832 = vmatpush1.bf16.msra.mxu0 %v22219_v62  ;;  %v22231_v62 = vld [vmem:[#allocation10 + $0x884] ss:$36 sps:$4 sm:$0xff]  }
 0x4be   : > { %5833 = vmatprep.subr.bf16.mxu0 %v22224_v0  ;;  %v18747_v0 = vpop.f32.mrb[207].mxu0 }
 0x4bf   : > { %18090 = vmatmul.mubr.msk.bf16.gmra.mrb[16].mxu0 %vm1718_vm0, %v23973_v50  ;;  %v22234_v50 = vld [vmem:[#allocation10 + $0x8cc] ss:$36 sps:$4 sm:$0xff]   ;;  %v24909_v4 = vadd.f32 %v18747_v0, %v18746_v1  ;;  %v22248_v1 = vld [vmem:[#allocation10 + $0xb18] ss:$36 sps:$4 sm:$0xff]  }
 0x4c0   : > { %18146 = vmatmul.mubr.msk.bf16.gmra.mrb[124].mxu1 %vm1718_vm0, %v23892_v21  ;;  %5320 = vmatprep.mubr.bf16.mxu0 %v28339_v33 }
 0x4c1   : > { %6558 = vmatprep.mubr.bf16.mxu1 %v28339_v33  ;;  %5834 = vmatpush1.bf16.msra.mxu0 %v22222_v58  ;;  %v24879_v58 = vpop.f32.mrb[208].mxu0  ;;  %28413 = vst [vmem:[#allocation120_spill] sm:$0xff] %v24909_v4 }
 0x4c2   : > { %5835 = vmatprep.subr.bf16.mxu0 %v22228_v40  ;;  %v18750_v40 = vpop.f32.mrb[209].mxu0 }
 0x4c3   : > { %v24918_v0 = vadd.f32 %v18750_v40, %v24879_v58 }
 0x4c5   : > { %5836 = vmatpush1.bf16.msra.mxu0 %v22226_v43  ;;  %v22232_v43 = vld [vmem:[#allocation10 + $0x8c8] ss:$36 sps:$4 sm:$0xff]  }
 0x4c6   : > { %5837 = vmatprep.subr.bf16.mxu0 %v22231_v62  ;;  %v18752_v62 = vpop.f32.mrb[210].mxu0 }
 0x4c7   : > { %18091 = vmatmul.mubr.msk.bf16.gmra.mrb[20].mxu0 %vm1718_vm0, %v23991_v61  ;;  %v18753_v44 = vpop.f32.mrb[211].mxu0 }
 0x4c8   : > { %18147 = vmatmul.mubr.msk.bf16.gmra.mrb[128].mxu1 %vm1718_vm0, %v28334_v24  ;;  %5330 = vmatprep.mubr.bf16.mxu0 %v28339_v33  ;;  %v24920_v4 = vadd.f32 %v18753_v44, %v18752_v62 }
 0x4c9   : > { %6568 = vmatprep.mubr.bf16.mxu1 %v28339_v33  ;;  %5838 = vmatpush1.bf16.msra.mxu0 %v22229_v31  ;;  %v18755_v31 = vpop.f32.mrb[212].mxu0 }
 0x4ca   : > { %5839 = vmatprep.subr.bf16.mxu0 %v22234_v50  ;;  %v18756_v50 = vpop.f32.mrb[213].mxu0  ;;  %28414 = vst [vmem:[#allocation121_spill] sm:$0xff] %v24920_v4 }
 0x4cb   : > { %v24927_v40 = vadd.f32 %v18756_v50, %v18755_v31 }
 0x4cd   : > { %5840 = vmatpush1.bf16.msra.mxu0 %v22232_v43  ;;  %v22238_v43 = vld [vmem:[#allocation10 + $0x958] ss:$36 sps:$4 sm:$0xff]  }
 0x4ce   : > { %5841 = vmatprep.subr.bf16.mxu0 %v22237_v5  ;;  %v18758_v5 = vpop.f32.mrb[214].mxu0 }
 0x4cf   : > { %18092 = vmatmul.mubr.msk.bf16.gmra.mrb[24].mxu0 %vm1718_vm0, %v24008_v20  ;;  %v18759_v32 = vpop.f32.mrb[215].mxu0 }
 0x4d0   : > { %18148 = vmatmul.mubr.msk.bf16.gmra.mrb[132].mxu1 %vm1718_vm0, %v28337_v12  ;;  %5340 = vmatprep.mubr.bf16.mxu0 %v28339_v33  ;;  %v24929_v62 = vadd.f32 %v18759_v32, %v18758_v5 }
 0x4d1   : > { %6578 = vmatprep.mubr.bf16.mxu1 %v28339_v33  ;;  %5842 = vmatpush1.bf16.msra.mxu0 %v22235_v14  ;;  %v18761_v14 = vpop.f32.mrb[216].mxu0 }
 0x4d2   : > { %5843 = vmatprep.subr.bf16.mxu0 %v22240_v59  ;;  %v18762_v59 = vpop.f32.mrb[217].mxu0 }
 0x4d3   : > { %v24940_v50 = vadd.f32 %v18762_v59, %v18761_v14 }
 0x4d5   : > { %5844 = vmatpush1.bf16.msra.mxu0 %v22238_v43  ;;  %v22244_v43 = vld [vmem:[#allocation10 + $0x9e8] ss:$36 sps:$4 sm:$0xff]  }
 0x4d6   : > { %5845 = vmatprep.subr.bf16.mxu0 %v22243_v28  ;;  %v18764_v28 = vpop.f32.mrb[218].mxu0 }
 0x4d7   : > { %18093 = vmatmul.mubr.msk.bf16.gmra.mrb[28].mxu0 %vm1718_vm0, %v24025_v37  ;;  %v18765_v27 = vpop.f32.mrb[219].mxu0 }
 0x4d8   : > { %18149 = vmatmul.mubr.msk.bf16.gmra.mrb[136].mxu1 %vm1718_vm0, %v24719_v6  ;;  %5350 = vmatprep.mubr.bf16.mxu0 %v28339_v33  ;;  %v24942_v5 = vadd.f32 %v18765_v27, %v18764_v28 }
 0x4d9   : > { %6621 = vmatprep.mubr.bf16.mxu1 %v28338_v45  ;;  %5846 = vmatpush1.bf16.msra.mxu0 %v22241_v3  ;;  %v22247_v3 = vld [vmem:[#allocation10 + $0xad0] ss:$36 sps:$4 sm:$0xff]  }
 0x4da   : > { %5847 = vmatprep.subr.bf16.mxu0 %v22246_v52  ;;  %v18767_v52 = vpop.f32.mrb[220].mxu0 }
 0x4dd   : > { %5848 = vmatpush1.bf16.msra.mxu0 %v22244_v43  ;;  %v18768_v43 = vpop.f32.mrb[221].mxu0 }
 0x4de   : > { %v18770_v34 = vpop.f32.mrb[222].mxu0  ;;  %v24953_v59 = vadd.f32 %v18768_v43, %v18767_v52 }
 0x4df   : > { %18094 = vmatmul.mubr.msk.bf16.gmra.mrb[32].mxu0 %vm1718_vm0, %v24042_v8  ;;  %v18771_v22 = vpop.f32.mrb[223].mxu0 }
 0x4e0   : > { %6622 = vmatmul.mubr.bf16.vlgmr.msra.gmra.mrb[172].mxu1 %v23950_v39  ;;  %5360 = vmatprep.mubr.bf16.mxu0 %v28339_v33  ;;  %v24955_v28 = vadd.f32 %v18771_v22, %v18770_v34 }
 0x4e1   : > { %19218 = vmatpush3.bf16.msra.mxu1 %v24810_v53  ;;  %6629 = vmatprep.mubr.bf16.mxu1 %v23954_v41  ;;  %v18773_v53 = vpop.f32.mrb[224].mxu0 }
 0x4e2   : > { %19219 = vmatprep.subr.bf16.mxu1 %v22225_v17  ;;  %v18774_v11 = vpop.f32.mrb[225].mxu0 }
 0x4e3   : > { %v18776_v35 = vpop.f32.mrb[226].mxu0  ;;  %v24934_v44 = vadd.f32 %v18774_v11, %v18773_v53 }
 0x4e4   : > { %v18777_v58 = vpop.f32.mrb[227].mxu0 }
 0x4e5   : > { %19220 = vmatpush3.bf16.msra.mxu1 %v22225_v17  ;;  %v22251_v17 = vld [vmem:[#allocation10 + $0xb4c] ss:$36 sps:$4 sm:$0xff]  }
 0x4e6   : > { %19221 = vmatprep.subr.bf16.mxu1 %v22247_v3 }
 0x4e7   : > { %18095 = vmatmul.mubr.msk.bf16.gmra.mrb[36].mxu0 %vm1718_vm0, %v24059_v16 }
 0x4e8   : > { %6630 = vmatmul.mubr.bf16.gmra.mrb[176].mxu1 %v23971_v49  ;;  %5370 = vmatprep.mubr.bf16.mxu0 %v28339_v33 }
 0x4e9   : > { %6637 = vmatprep.mubr.bf16.mxu1 %v23975_v51  ;;  %19222 = vmatpush3.bf16.msra.mxu1 %v22247_v3  ;;  %v24936_v3 = vadd.f32 %v18777_v58, %v18776_v35 }
 0x4ea   : > { %19223 = vmatprep.subr.bf16.mxu1 %v22248_v1 }
 0x4ed   : > { %19224 = vmatpush3.bf16.msra.mxu1 %v22248_v1  ;;  %v18779_v1 = vpop.f32.mrb[228].mxu0 }
 0x4ee   : > { %8706 = vmatprep.subr.bf16.mxu1 %v22251_v17  ;;  %v18780_v17 = vpop.f32.mrb[229].mxu0 }
 0x4ef   : > { %18096 = vmatmul.mubr.msk.bf16.gmra.mrb[40].mxu0 %vm1718_vm0, %v24076_v9  ;;  %v18782_v4 = vpop.f32.mrb[230].mxu0  ;;  %v24947_v32 = vadd.f32 %v18780_v17, %v18779_v1 }
 0x4f0   : > { %6638 = vmatmul.mubr.bf16.gmra.mrb[180].mxu1 %v23989_v60  ;;  %5380 = vmatprep.mubr.bf16.mxu0 %v28339_v33  ;;  %v18783_v31 = vpop.f32.mrb[231].mxu0 }
 0x4f1   : > { %6645 = vmatprep.mubr.bf16.mxu1 %v23993_v63  ;;  %28415 = vst [vmem:[#allocation122_spill] sm:$0xff] %v24947_v32  ;;  %v24949_v35 = vadd.f32 %v18783_v31, %v18782_v4  ;;  %v18785_v11 = vpop.f32.mrb[232].mxu0  ;;  %v22263_v32 = vld [vmem:[#allocation10 + $0xc6c] ss:$36 sps:$4 sm:$0xff]  }
 0x4f2   : > { %v18786_v53 = vpop.f32.mrb[233].mxu0 }
 0x4f3   : > { %28416 = vst [vmem:[#allocation123_spill] sm:$0xff] %v24949_v35  ;;  %v18788_v58 = vpop.f32.mrb[234].mxu0  ;;  %v24960_v27 = vadd.f32 %v18786_v53, %v18785_v11  ;;  %v22305_v35 = vld [vmem:[#allocation10 + $0xb0c] ss:$36 sps:$4 sm:$0xff]  }
 0x4f4   : > { %v18789_v14 = vpop.f32.mrb[235].mxu0 }
 0x4f5   : > { %28417 = vst [vmem:[#allocation124_spill] sm:$0xff] %v24960_v27  ;;  %v24962_v4 = vadd.f32 %v18789_v14, %v18788_v58  ;;  %v18791_v1 = vpop.f32.mrb[236].mxu0  ;;  %v22287_v58 = vld [vmem:[#allocation10 + $0xa34] ss:$36 sps:$4 sm:$0xff]  }
 0x4f6   : > { %v18792_v17 = vpop.f32.mrb[237].mxu0  ;;  %6010 = vmatprep.subr.bf16.mxu0 %v22287_v58  ;;  %v22285_v58 = vld [vmem:[#allocation10 + $0xa30] ss:$36 sps:$4 sm:$0xff]  }
 0x4f7   : > { %18097 = vmatmul.mubr.msk.bf16.gmra.mrb[44].mxu0 %vm1718_vm0, %v24093_v29  ;;  %28418 = vst [vmem:[#allocation125_spill] sm:$0xff] %v24962_v4  ;;  %v18794_v31 = vpop.f32.mrb[238].mxu0  ;;  %v24969_v43 = vadd.f32 %v18792_v17, %v18791_v1 }
 0x4f8   : > { %6646 = vmatmul.mubr.bf16.gmra.mrb[184].mxu1 %v24006_v19  ;;  %5390 = vmatprep.mubr.bf16.mxu0 %v28339_v33  ;;  %v18795_v52 = vpop.f32.mrb[239].mxu0 }
 0x4f9   : > { %6653 = vmatprep.mubr.bf16.mxu1 %v24010_v23  ;;  %28419 = vst [vmem:[#allocation126_spill] sm:$0xff] %v24969_v43  ;;  %v24971_v34 = vadd.f32 %v18795_v52, %v18794_v31  ;;  %v18797_v22 = vpop.f32.mrb[240].mxu0 }
 0x4fa   : > { %v18798_v11 = vpop.f32.mrb[241].mxu0 }
 0x4fb   : > { %28420 = vst [vmem:[#allocation127_spill] sm:$0xff] %v24971_v34  ;;  %v18800_v53 = vpop.f32.mrb[242].mxu0  ;;  %v24978_v4 = vadd.f32 %v18798_v11, %v18797_v22 }
 0x4fc   : > { %v18801_v14 = vpop.f32.mrb[243].mxu0 }
 0x4fd   : > { %28421 = vst [vmem:[#allocation128_spill] sm:$0xff] %v24978_v4  ;;  %v24980_v1 = vadd.f32 %v18801_v14, %v18800_v53  ;;  %v18803_v17 = vpop.f32.mrb[244].mxu0 }
 0x4fe   : > { %v18804_v31 = vpop.f32.mrb[245].mxu0 }
 0x4ff   : > { %18098 = vmatmul.mubr.msk.bf16.gmra.mrb[48].mxu0 %vm1718_vm0, %v23892_v21  ;;  %28422 = vst [vmem:[#allocation129_spill] sm:$0xff] %v24980_v1  ;;  %v18806_v52 = vpop.f32.mrb[246].mxu0  ;;  %v24987_v43 = vadd.f32 %v18804_v31, %v18803_v17  ;;  %v22293_v1 = vld [vmem:[#allocation10 + $0xa7c] ss:$36 sps:$4 sm:$0xff]  }
 0x500   : > { %6654 = vmatmul.mubr.bf16.gmra.mrb[188].mxu1 %v24023_v36  ;;  %5400 = vmatprep.mubr.bf16.mxu0 %v28339_v33  ;;  %v18807_v34 = vpop.f32.mrb[247].mxu0 }
 0x501   : > { %6661 = vmatprep.mubr.bf16.mxu1 %v24027_v38  ;;  %28423 = vst [vmem:[#allocation130_spill] sm:$0xff] %v24987_v43  ;;  %v24989_v22 = vadd.f32 %v18807_v34, %v18806_v52  ;;  %v18809_v11 = vpop.f32.mrb[248].mxu0  ;;  %v22291_v34 = vld [vmem:[#allocation10 + $0xa78] ss:$36 sps:$4 sm:$0xff]   ;;  %v22299_v52 = vld [vmem:[#allocation10 + $0xac4] ss:$36 sps:$4 sm:$0xff]  }
 0x502   : > { %v18810_v53 = vpop.f32.mrb[249].mxu0 }
 0x503   : > { %28424 = vst [vmem:[#allocation131_spill] sm:$0xff] %v24989_v22  ;;  %v18812_v14 = vpop.f32.mrb[250].mxu0  ;;  %v24995_v27 = vadd.f32 %v18810_v53, %v18809_v11  ;;  %v28432_v53 = vld [vmem:[#allocation67_spill] sm:$0xff] }
 0x504   : > { %v18813_v4 = vpop.f32.mrb[251].mxu0 }
 0x505   : > { %28425 = vst [vmem:[#allocation132_spill] sm:$0xff] %v24995_v27  ;;  %v24997_v17 = vadd.f32 %v18813_v4, %v18812_v14  ;;  %v28434_v14 = vld [vmem:[#allocation23_spill] sm:$0xff] }
 0x506   : > { %v28437_v27 = vld [vmem:[#allocation27_spill] sm:$0xff] }
 0x507   : > { %18099 = vmatmul.mubr.msk.bf16.gmra.mrb[52].mxu0 %vm1718_vm0, %v28334_v24  ;;  %28426 = vst [vmem:[#allocation133_spill] sm:$0xff] %v24997_v17  ;;  %v22260_v17 = vld [vmem:[#allocation10 + $0xc24] ss:$36 sps:$4 sm:$0xff]  }
 0x508   : > { %6662 = vmatmul.mubr.bf16.gmra.mrb[192].mxu1 %v24040_v47  ;;  %5410 = vmatprep.mubr.bf16.mxu0 %v28339_v33 }
 0x509   : > { %6669 = vmatprep.mubr.bf16.mxu1 %v24044_v48 }
 0x50f   : > { %18100 = vmatmul.mubr.msk.bf16.gmra.mrb[56].mxu0 %vm1718_vm0, %v28337_v12 }
 0x510   : > { %6670 = vmatmul.mubr.bf16.gmra.mrb[196].mxu1 %v24057_v55  ;;  %5420 = vmatprep.mubr.bf16.mxu0 %v28339_v33 }
 0x511   : > { %6677 = vmatprep.mubr.bf16.mxu1 %v24061_v56 }
 0x517   : > { %18101 = vmatmul.mubr.msk.bf16.gmra.mrb[60].mxu0 %vm1718_vm0, %v24719_v6 }
 0x518   : > { %6678 = vmatmul.mubr.bf16.gmra.mrb[200].mxu1 %v24074_v7  ;;  %5849 = vmatprep.mubr.bf16.mxu0 %v28338_v45  ;;  %v18815_v45 = vpop.f32.mrb[252].mxu0 }
 0x519   : > { %6685 = vmatprep.mubr.bf16.mxu1 %v24078_v13  ;;  %v18816_v31 = vpop.f32.mrb[253].mxu0 }
 0x51a   : > { %v18818_v22 = vpop.f32.mrb[254].mxu0  ;;  %v25003_v4 = vadd.f32 %v18816_v31, %v18815_v45  ;;  %v22249_v45 = vld [vmem:[#allocation10 + $0xb48] ss:$36 sps:$4 sm:$0xff]  }
 0x51b   : > { %v18819_v43 = vpop.f32.mrb[255].mxu0  ;;  %v22317_v31 = vld [vmem:[#allocation10 + $0xb44] ss:$36 sps:$4 sm:$0xff]  }
 0x51c   : > { %28427 = vst [vmem:[#allocation134_spill] sm:$0xff] %v25003_v4  ;;  %v25005_v11 = vadd.f32 %v18819_v43, %v18818_v22  ;;  %v28430_v43 = vld [vmem:[#allocation35_spill] sm:$0xff]  ;;  %v28431_v22 = vld [vmem:[#allocation36_spill] sm:$0xff] }
 0x51d   : > { %v22255_v4 = vld [vmem:[#allocation10 + $0xbd8] ss:$36 sps:$4 sm:$0xff]  }
 0x51e   : > { %28428 = vst [vmem:[#allocation135_spill] sm:$0xff] %v25005_v11  ;;  %v22257_v11 = vld [vmem:[#allocation10 + $0xbdc] ss:$36 sps:$4 sm:$0xff]  }
 0x51f   : > { %5850 = vmatmul.mubr.bf16.vlgmr.msra.gmra.mrb[128].mxu0 %v23950_v39  ;;  %v22297_v39 = vld [vmem:[#allocation10 + $0xac0] ss:$36 sps:$4 sm:$0xff]  }
 0x520   : > { %6686 = vmatmul.mubr.bf16.gmra.mrb[204].mxu1 %v24091_v26  ;;  %5859 = vmatprep.mubr.bf16.mxu0 %v23954_v41 }
 0x521   : > { %6693 = vmatprep.mubr.bf16.mxu1 %v24095_v30  ;;  %6011 = vmatpush1.bf16.msra.mxu0 %v22285_v58  ;;  %v28433_v58 = vld [vmem:[#allocation72_spill] sm:$0xff] }
 0x522   : > { %6012 = vmatprep.subr.bf16.mxu0 %v22293_v1  ;;  %v22303_v1 = vld [vmem:[#allocation10 + $0xb08] ss:$36 sps:$4 sm:$0xff]  }
 0x525   : > { %6013 = vmatpush1.bf16.msra.mxu0 %v22291_v34  ;;  %v22254_v34 = vld [vmem:[#allocation10 + $0xb94] ss:$36 sps:$4 sm:$0xff]  }
 0x526   : > { %6014 = vmatprep.subr.bf16.mxu0 %v22299_v52  ;;  %v28435_v52 = vld [vmem:[#allocation24_spill] sm:$0xff] }
 0x527   : > { %5860 = vmatmul.mubr.bf16.gmra.mrb[132].mxu0 %v23971_v49 }
 0x528   : > { %6694 = vmatmul.mubr.bf16.gmra.mrb[208].mxu1 %v24106_v2  ;;  %5869 = vmatprep.mubr.bf16.mxu0 %v23975_v51 }
 0x529   : > { %6701 = vmatprep.mubr.bf16.mxu1 %v24108_v42  ;;  %6015 = vmatpush1.bf16.msra.mxu0 %v22297_v39  ;;  %v22252_v39 = vld [vmem:[#allocation10 + $0xb90] ss:$36 sps:$4 sm:$0xff]  }
 0x52a   : > { %6016 = vmatprep.subr.bf16.mxu0 %v22305_v35  ;;  %v28429_v35 = vld [vmem:[#allocation34_spill] sm:$0xff] }
 0x52d   : > { %6017 = vmatpush1.bf16.msra.mxu0 %v22303_v1  ;;  %v28436_v1 = vld [vmem:[#allocation25_spill] sm:$0xff] }
 0x52e   : > { %8320 = vmatprep.subr.bf16.mxu0 %v22317_v31  ;;  %v22261_v31 = vld [vmem:[#allocation10 + $0xc68] ss:$36 sps:$4 sm:$0xff]  }
 0x52f   : > { %5870 = vmatmul.mubr.bf16.gmra.mrb[136].mxu0 %v23989_v60 }
 0x530   : > { %6702 = vmatmul.mubr.bf16.gmra.mrb[212].mxu1 %v24119_v46  ;;  %5879 = vmatprep.mubr.bf16.mxu0 %v23993_v63 }
 0x531   : > { %6709 = vmatprep.mubr.bf16.mxu1 %v24121_v10 }
 0x537   : > { %5880 = vmatmul.mubr.bf16.gmra.mrb[140].mxu0 %v24006_v19 }
 0x538   : > { %6710 = vmatmul.mubr.bf16.gmra.mrb[216].mxu1 %v24132_v54  ;;  %5889 = vmatprep.mubr.bf16.mxu0 %v24010_v23 }
 0x539   : > { %6717 = vmatprep.mubr.bf16.mxu1 %v24134_v57 }
 0x53f   : > { %5890 = vmatmul.mubr.bf16.gmra.mrb[144].mxu0 %v24023_v36 }
 0x540   : > { %6718 = vmatmul.mubr.bf16.gmra.mrb[220].mxu1 %v24145_v15  ;;  %5899 = vmatprep.mubr.bf16.mxu0 %v24027_v38 }
 0x541   : > { %6725 = vmatprep.mubr.bf16.mxu1 %v24147_v18 }
 0x547   : > { %5900 = vmatmul.mubr.bf16.gmra.mrb[148].mxu0 %v24040_v47 }
 0x548   : > { %6726 = vmatmul.mubr.bf16.gmra.mrb[224].mxu1 %v28429_v35  ;;  %5909 = vmatprep.mubr.bf16.mxu0 %v24044_v48 }
 0x549   : > { %6733 = vmatprep.mubr.bf16.mxu1 %v28430_v43 }
 0x54f   : > { %5910 = vmatmul.mubr.bf16.gmra.mrb[152].mxu0 %v24057_v55 }
 0x550   : > { %6734 = vmatmul.mubr.bf16.gmra.mrb[228].mxu1 %v28431_v22  ;;  %5919 = vmatprep.mubr.bf16.mxu0 %v24061_v56 }
 0x551   : > { %6741 = vmatprep.mubr.bf16.mxu1 %v28432_v53 }
 0x557   : > { %5920 = vmatmul.mubr.bf16.gmra.mrb[156].mxu0 %v24074_v7 }
 0x558   : > { %6742 = vmatmul.mubr.bf16.gmra.mrb[232].mxu1 %v28433_v58  ;;  %5929 = vmatprep.mubr.bf16.mxu0 %v24078_v13 }
 0x559   : > { %19225 = vmatprep.mubr.msk.bf16.mxu1 %vm1718_vm0, %v28434_v14 }
 0x55f   : > { %5930 = vmatmul.mubr.bf16.gmra.mrb[160].mxu0 %v24091_v26 }
 0x560   : > { %19226 = vmatmul.mubr.msk.bf16.vlgmr.msra.gmra.mrb[140].mxu1 %vm1718_vm0, %v28435_v52  ;;  %5939 = vmatprep.mubr.bf16.mxu0 %v24095_v30 }
 0x561   : > { %8707 = vmatpush1.bf16.msra.mxu1 %v22249_v45  ;;  %19229 = vmatprep.mubr.msk.bf16.mxu1 %vm1718_vm0, %v28436_v1  ;;  %v22258_v45 = vld [vmem:[#allocation10 + $0xc20] ss:$36 sps:$4 sm:$0xff]  }
 0x562   : > { %8708 = vmatprep.subr.bf16.mxu1 %v22254_v34  ;;  %v28438_v34 = vld [vmem:[#allocation29_spill] sm:$0xff] }
 0x565   : > { %8709 = vmatpush1.bf16.msra.mxu1 %v22252_v39  ;;  %v22266_v39 = vld [vmem:[#allocation10 + $0xcb4] ss:$36 sps:$4 sm:$0xff]  }
 0x566   : > { %8710 = vmatprep.subr.bf16.mxu1 %v22257_v11  ;;  %v22264_v11 = vld [vmem:[#allocation10 + $0xcb0] ss:$36 sps:$4 sm:$0xff]  }
 0x567   : > { %5940 = vmatmul.mubr.bf16.gmra.mrb[164].mxu0 %v24106_v2 }
 0x568   : > { %19230 = vmatmul.mubr.msk.bf16.gmra.mrb[144].mxu1 %vm1718_vm0, %v28437_v27  ;;  %5949 = vmatprep.mubr.bf16.mxu0 %v24108_v42 }
 0x569   : > { %8711 = vmatpush1.bf16.msra.mxu1 %v22255_v4  ;;  %19233 = vmatprep.mubr.msk.bf16.mxu1 %vm1718_vm0, %v28438_v34  ;;  %v22267_v4 = vld [vmem:[#allocation10 + $0xcf8] ss:$36 sps:$4 sm:$0xff]  }
 0x56a   : > { %8712 = vmatprep.subr.bf16.mxu1 %v22260_v17  ;;  %v22269_v17 = vld [vmem:[#allocation10 + $0xcfc] ss:$36 sps:$4 sm:$0xff]  }
 0x56d   : > { %8713 = vmatpush1.bf16.msra.mxu1 %v22258_v45  ;;  %v22272_v45 = vld [vmem:[#allocation10 + $0xd44] ss:$36 sps:$4 sm:$0xff]  }
 0x56e   : > { %8714 = vmatprep.subr.bf16.mxu1 %v22263_v32  ;;  %v22270_v32 = vld [vmem:[#allocation10 + $0xd40] ss:$36 sps:$4 sm:$0xff]  }
 0x56f   : > { %5950 = vmatmul.mubr.bf16.gmra.mrb[168].mxu0 %v24119_v46 }
 0x570   : > { %19234 = vmatmul.mubr.msk.bf16.gmra.mrb[148].mxu1 %vm1718_vm0, %v23991_v61  ;;  %5959 = vmatprep.mubr.bf16.mxu0 %v24121_v10 }
 0x571   : > { %8715 = vmatpush1.bf16.msra.mxu1 %v22261_v31  ;;  %19237 = vmatprep.mubr.msk.bf16.mxu1 %vm1718_vm0, %v24008_v20  ;;  %v22275_v31 = vld [vmem:[#allocation10 + $0xd8c] ss:$36 sps:$4 sm:$0xff]  }
 0x572   : > { %8716 = vmatprep.subr.bf16.mxu1 %v22266_v39  ;;  %v22273_v39 = vld [vmem:[#allocation10 + $0xd88] ss:$36 sps:$4 sm:$0xff]  }
 0x575   : > { %8717 = vmatpush1.bf16.msra.mxu1 %v22264_v11  ;;  %v22278_v11 = vld [vmem:[#allocation10 + $0xdd4] ss:$36 sps:$4 sm:$0xff]  }
 0x576   : > { %8718 = vmatprep.subr.bf16.mxu1 %v22269_v17  ;;  %v22276_v17 = vld [vmem:[#allocation10 + $0xdd0] ss:$36 sps:$4 sm:$0xff]  }
 0x577   : > { %5960 = vmatmul.mubr.bf16.gmra.mrb[172].mxu0 %v24132_v54 }
 0x578   : > { %19238 = vmatmul.mubr.msk.bf16.gmra.mrb[152].mxu1 %vm1718_vm0, %v24025_v37  ;;  %5969 = vmatprep.mubr.bf16.mxu0 %v24134_v57 }
 0x579   : > { %8719 = vmatpush1.bf16.msra.mxu1 %v22267_v4  ;;  %19241 = vmatprep.mubr.msk.bf16.mxu1 %vm1718_vm0, %v24042_v8  ;;  %v22281_v4 = vld [vmem:[#allocation10 + $0xe1c] ss:$36 sps:$4 sm:$0xff]  }
 0x57a   : > { %8720 = vmatprep.subr.bf16.mxu1 %v22272_v45  ;;  %v22279_v45 = vld [vmem:[#allocation10 + $0xe18] ss:$36 sps:$4 sm:$0xff]  }
 0x57d   : > { %8721 = vmatpush1.bf16.msra.mxu1 %v22270_v32  ;;  %v22284_v32 = vld [vmem:[#allocation10 + $0xe64] ss:$36 sps:$4 sm:$0xff]  }
 0x57e   : > { %8722 = vmatprep.subr.bf16.mxu1 %v22275_v31  ;;  %v22282_v31 = vld [vmem:[#allocation10 + $0xe60] ss:$36 sps:$4 sm:$0xff]  }
 0x57f   : > { %5970 = vmatmul.mubr.bf16.gmra.mrb[176].mxu0 %v24145_v15 }
 0x580   : > { %19242 = vmatmul.mubr.msk.bf16.gmra.mrb[156].mxu1 %vm1718_vm0, %v24059_v16  ;;  %5979 = vmatprep.mubr.bf16.mxu0 %v24147_v18 }
 0x581   : > { %8723 = vmatpush1.bf16.msra.mxu1 %v22273_v39  ;;  %19245 = vmatprep.mubr.msk.bf16.mxu1 %vm1718_vm0, %v24076_v9  ;;  %v22290_v39 = vld [vmem:[#allocation10 + $0xeac] ss:$36 sps:$4 sm:$0xff]  }
 0x582   : > { %8724 = vmatprep.subr.bf16.mxu1 %v22278_v11  ;;  %v22288_v11 = vld [vmem:[#allocation10 + $0xea8] ss:$36 sps:$4 sm:$0xff]  }
 0x585   : > { %8725 = vmatpush1.bf16.msra.mxu1 %v22276_v17  ;;  %v22296_v17 = vld [vmem:[#allocation10 + $0xef4] ss:$36 sps:$4 sm:$0xff]  }
 0x586   : > { %8726 = vmatprep.subr.bf16.mxu1 %v22281_v4  ;;  %v22294_v4 = vld [vmem:[#allocation10 + $0xef0] ss:$36 sps:$4 sm:$0xff]  }
 0x587   : > { %5980 = vmatmul.mubr.bf16.gmra.mrb[180].mxu0 %v28429_v35 }
 0x588   : > { %19246 = vmatmul.mubr.msk.bf16.gmra.mrb[160].mxu1 %vm1718_vm0, %v24093_v29  ;;  %5989 = vmatprep.mubr.bf16.mxu0 %v28430_v43 }
 0x589   : > { %8727 = vmatpush1.bf16.msra.mxu1 %v22279_v45  ;;  %19249 = vmatprep.mubr.msk.bf16.mxu1 %vm1718_vm0, %v23892_v21  ;;  %v22302_v45 = vld [vmem:[#allocation10 + $0xf3c] ss:$36 sps:$4 sm:$0xff]  }
 0x58a   : > { %8728 = vmatprep.subr.bf16.mxu1 %v22284_v32  ;;  %v22300_v32 = vld [vmem:[#allocation10 + $0xf38] ss:$36 sps:$4 sm:$0xff]  }
 0x58d   : > { %8729 = vmatpush1.bf16.msra.mxu1 %v22282_v31  ;;  %v22308_v31 = vld [vmem:[#allocation10 + $0xf84] ss:$36 sps:$4 sm:$0xff]  }
 0x58e   : > { %8730 = vmatprep.subr.bf16.mxu1 %v22290_v39  ;;  %v22306_v39 = vld [vmem:[#allocation10 + $0xf80] ss:$36 sps:$4 sm:$0xff]  }
 0x58f   : > { %5990 = vmatmul.mubr.bf16.gmra.mrb[184].mxu0 %v28431_v22 }
 0x590   : > { %19250 = vmatmul.mubr.msk.bf16.gmra.mrb[164].mxu1 %vm1718_vm0, %v28334_v24  ;;  %5999 = vmatprep.mubr.bf16.mxu0 %v28432_v53 }
 0x591   : > { %8731 = vmatpush1.bf16.msra.mxu1 %v22288_v11  ;;  %19253 = vmatprep.mubr.msk.bf16.mxu1 %vm1718_vm0, %v28337_v12  ;;  %v22311_v11 = vld [vmem:[#allocation10 + $0xfcc] ss:$36 sps:$4 sm:$0xff]   ;;  %v22315_v12 = vld [vmem:[#allocation10 + $0xb40] ss:$36 sps:$4 sm:$0xff]  }
 0x592   : > { %8732 = vmatprep.subr.bf16.mxu1 %v22296_v17  ;;  %v22309_v17 = vld [vmem:[#allocation10 + $0xfc8] ss:$36 sps:$4 sm:$0xff]  }
 0x595   : > { %8733 = vmatpush1.bf16.msra.mxu1 %v22294_v4  ;;  %v22314_v4 = vld [vmem:[#allocation10 + $0x1014] ss:$36 sps:$4 sm:$0xff]  }
 0x596   : > { %8734 = vmatprep.subr.bf16.mxu1 %v22302_v45  ;;  %v22323_v45 = vld [vmem:[#allocation10 + $0xb8c] ss:$36 sps:$4 sm:$0xff]  }
 0x597   : > { %6000 = vmatmul.mubr.bf16.gmra.mrb[188].mxu0 %v28433_v58 }
 0x598   : > { %19254 = vmatmul.mubr.msk.bf16.gmra.mrb[168].mxu1 %vm1718_vm0, %v24719_v6  ;;  %6042 = vmatprep.mubr.bf16.mxu0 %v28339_v33  ;;  %v22347_v6 = vld [vmem:[#allocation10 + $0x10a4] ss:$36 sps:$4 sm:$0xff]  }
 0x599   : > { %8735 = vmatpush1.bf16.msra.mxu1 %v22300_v32  ;;  %8738 = vmatprep.mubr.bf16.mxu1 %v23954_v41  ;;  %v22312_v32 = vld [vmem:[#allocation10 + $0x1010] ss:$36 sps:$4 sm:$0xff]  }
 0x59a   : > { %8736 = vmatprep.subr.bf16.mxu1 %v22308_v31  ;;  %v22320_v31 = vld [vmem:[#allocation10 + $0x105c] ss:$36 sps:$4 sm:$0xff]   ;;  %v22326_v41 = vld [vmem:[#allocation10 + $0xbd4] ss:$36 sps:$4 sm:$0xff]  }
 0x59d   : > { %8737 = vmatpush1.bf16.msra.mxu1 %v22306_v39  ;;  %v22321_v39 = vld [vmem:[#allocation10 + $0xb88] ss:$36 sps:$4 sm:$0xff]  }
 0x59e   : > { %8899 = vmatprep.subr.bf16.mxu1 %v22311_v11  ;;  %v22318_v11 = vld [vmem:[#allocation10 + $0x1058] ss:$36 sps:$4 sm:$0xff]  }
 0x59f   : > { %18118 = vmatmul.mubr.msk.bf16.vlgmr.msra.gmra.mrb[128].mxu0 %vm1718_vm0, %v28434_v14  ;;  %v22324_v14 = vld [vmem:[#allocation10 + $0xbd0] ss:$36 sps:$4 sm:$0xff]  }
 0x5a0   : > { %8739 = vmatmul.mubr.bf16.vlgmr.msra.gmra.mrb[12].mxu1 %v23971_v49  ;;  %6052 = vmatprep.mubr.bf16.mxu0 %v28339_v33 }
 0x5a1   : > { %8900 = vmatpush1.bf16.msra.mxu1 %v22309_v17  ;;  %8748 = vmatprep.mubr.bf16.mxu1 %v23975_v51  ;;  %v22329_v17 = vld [vmem:[#allocation10 + $0xc1c] ss:$36 sps:$4 sm:$0xff]  }
 0x5a2   : > { %8901 = vmatprep.subr.bf16.mxu1 %v22314_v4  ;;  %8321 = vmatpush1.bf16.msra.mxu0 %v22315_v12  ;;  %v22345_v12 = vld [vmem:[#allocation10 + $0x10a0] ss:$36 sps:$4 sm:$0xff]   ;;  %v22327_v4 = vld [vmem:[#allocation10 + $0xc18] ss:$36 sps:$4 sm:$0xff]  }
 0x5a3   : > { %8322 = vmatprep.subr.bf16.mxu0 %v22323_v45  ;;  %v22371_v45 = vld [vmem:[#allocation10 + $0xb5c] ss:$36 sps:$4 sm:$0xff]  }
 0x5a5   : > { %8902 = vmatpush1.bf16.msra.mxu1 %v22312_v32  ;;  %v22332_v32 = vld [vmem:[#allocation10 + $0xc64] ss:$36 sps:$4 sm:$0xff]  }
 0x5a6   : > { %8903 = vmatprep.subr.bf16.mxu1 %v22320_v31  ;;  %8323 = vmatpush1.bf16.msra.mxu0 %v22321_v39  ;;  %v22330_v31 = vld [vmem:[#allocation10 + $0xc60] ss:$36 sps:$4 sm:$0xff]   ;;  %v22335_v39 = vld [vmem:[#allocation10 + $0xcac] ss:$36 sps:$4 sm:$0xff]  }
 0x5a7   : > { %18119 = vmatmul.mubr.msk.bf16.gmra.mrb[132].mxu0 %vm1718_vm0, %v28435_v52  ;;  %8324 = vmatprep.subr.bf16.mxu0 %v22326_v41 }
 0x5a8   : > { %8749 = vmatmul.mubr.bf16.gmra.mrb[16].mxu1 %v23989_v60  ;;  %6062 = vmatprep.mubr.bf16.mxu0 %v28339_v33 }
 0x5a9   : > { %8758 = vmatprep.mubr.bf16.mxu1 %v23993_v63  ;;  %8904 = vmatpush1.bf16.msra.mxu1 %v22318_v11  ;;  %v28439_v63 = vld [vmem:[#allocation114_spill] sm:$0xff] }
 0x5aa   : > { %8325 = vmatpush1.bf16.msra.mxu0 %v22324_v14  ;;  %8905 = vmatprep.subr.bf16.mxu1 %v22347_v6  ;;  %v22333_v6 = vld [vmem:[#allocation10 + $0xca8] ss:$36 sps:$4 sm:$0xff]  }
 0x5ab   : > { %8326 = vmatprep.subr.bf16.mxu0 %v22329_v17 }
 0x5ad   : > { %8906 = vmatpush1.bf16.msra.mxu1 %v22345_v12 }
 0x5ae   : > { %8327 = vmatpush1.bf16.msra.mxu0 %v22327_v4  ;;  %9478 = vmatprep.subr.bf16.mxu1 %v22371_v45  ;;  %v22338_v4 = vld [vmem:[#allocation10 + $0xcf4] ss:$36 sps:$4 sm:$0xff]  }
 0x5af   : > { %18120 = vmatmul.mubr.msk.bf16.gmra.mrb[136].mxu0 %vm1718_vm0, %v28436_v1  ;;  %8328 = vmatprep.subr.bf16.mxu0 %v22332_v32  ;;  %v22336_v45 = vld [vmem:[#allocation10 + $0xcf0] ss:$36 sps:$4 sm:$0xff]   ;;  %v22341_v32 = vld [vmem:[#allocation10 + $0xd3c] ss:$36 sps:$4 sm:$0xff]  }
 0x5b0   : > { %8759 = vmatmul.mubr.bf16.gmra.mrb[20].mxu1 %v24006_v19  ;;  %6072 = vmatprep.mubr.bf16.mxu0 %v28339_v33 }
 0x5b1   : > { %8768 = vmatprep.mubr.bf16.mxu1 %v24010_v23 }
 0x5b2   : > { %8329 = vmatpush1.bf16.msra.mxu0 %v22330_v31  ;;  %v28441_v31 = vld [vmem:[#allocation115_spill] sm:$0xff] }
 0x5b3   : > { %v18857_v41 = vpop.f32.mrb[172].mxu1  ;;  %8330 = vmatprep.subr.bf16.mxu0 %v22335_v39 }
 0x5b4   : > { %v18858_v11 = vpop.f32.mrb[173].mxu1 }
 0x5b5   : > { %v18860_v14 = vpop.f32.mrb[174].mxu1  ;;  %v18859_v17 = vadd.f32 %v18858_v11, %v18857_v41 }
 0x5b6   : > { %v18861_v12 = vpop.f32.mrb[175].mxu1  ;;  %8331 = vmatpush1.bf16.msra.mxu0 %v22333_v6  ;;  %v22339_v6 = vld [vmem:[#allocation10 + $0xd38] ss:$36 sps:$4 sm:$0xff]  }
 0x5b7   : > { %v25097_v1 = vadd.f32 %v18859_v17, %v28439_v63  ;;  %v18862_v19 = vadd.f32 %v18861_v12, %v18860_v14  ;;  %18121 = vmatmul.mubr.msk.bf16.gmra.mrb[140].mxu0 %vm1718_vm0, %v28437_v27  ;;  %8332 = vmatprep.subr.bf16.mxu0 %v22338_v4  ;;  %v22344_v12 = vld [vmem:[#allocation10 + $0xd84] ss:$36 sps:$4 sm:$0xff]  }
 0x5b8   : > { %8769 = vmatmul.mubr.bf16.gmra.mrb[24].mxu1 %v24023_v36  ;;  %6082 = vmatprep.mubr.bf16.mxu0 %v28339_v33  ;;  %v28443_v36 = vld [vmem:[#allocation116_spill] sm:$0xff]  ;;  %v28445_v4 = vld [vmem:[#allocation117_spill] sm:$0xff] }
 0x5b9   : > { %28440 = vst [vmem:[#allocation34_spill] sm:$0xff] %v25097_v1  ;;  %8778 = vmatprep.mubr.bf16.mxu1 %v24027_v38  ;;  %v25105_v39 = vadd.f32 %v18862_v19, %v28441_v31  ;;  %v22342_v1 = vld [vmem:[#allocation10 + $0xd80] ss:$36 sps:$4 sm:$0xff]   ;;  %v22350_v19 = vld [vmem:[#allocation10 + $0xdcc] ss:$36 sps:$4 sm:$0xff]  }
 0x5ba   : > { %8333 = vmatpush1.bf16.msra.mxu0 %v22336_v45  ;;  %v22348_v31 = vld [vmem:[#allocation10 + $0xdc8] ss:$36 sps:$4 sm:$0xff]  }
 0x5bb   : > { %28442 = vst [vmem:[#allocation35_spill] sm:$0xff] %v25105_v39  ;;  %v18863_v41 = vpop.f32.mrb[176].mxu1  ;;  %8334 = vmatprep.subr.bf16.mxu0 %v22341_v32 }
 0x5bc   : > { %v18864_v63 = vpop.f32.mrb[177].mxu1 }
 0x5bd   : > { %v18866_v11 = vpop.f32.mrb[178].mxu1  ;;  %v18865_v14 = vadd.f32 %v18864_v63, %v18863_v41 }
 0x5be   : > { %v18867_v17 = vpop.f32.mrb[179].mxu1  ;;  %8335 = vmatpush1.bf16.msra.mxu0 %v22339_v6 }
 0x5bf   : > { %v25108_v23 = vadd.f32 %v18865_v14, %v28443_v36  ;;  %v18868_v27 = vadd.f32 %v18867_v17, %v18866_v11  ;;  %18122 = vmatmul.mubr.msk.bf16.gmra.mrb[144].mxu0 %vm1718_vm0, %v28438_v34  ;;  %8336 = vmatprep.subr.bf16.mxu0 %v22344_v12  ;;  %v22353_v11 = vld [vmem:[#allocation10 + $0xe14] ss:$36 sps:$4 sm:$0xff]  }
 0x5c0   : > { %8779 = vmatmul.mubr.bf16.gmra.mrb[28].mxu1 %v24040_v47  ;;  %6092 = vmatprep.mubr.bf16.mxu0 %v28339_v33  ;;  %v22351_v14 = vld [vmem:[#allocation10 + $0xe10] ss:$36 sps:$4 sm:$0xff]  }
 0x5c1   : > { %28444 = vst [vmem:[#allocation36_spill] sm:$0xff] %v25108_v23  ;;  %8788 = vmatprep.mubr.bf16.mxu1 %v24044_v48  ;;  %v25116_v45 = vadd.f32 %v18868_v27, %v28445_v4  ;;  %v22356_v27 = vld [vmem:[#allocation10 + $0xe5c] ss:$36 sps:$4 sm:$0xff]  }
 0x5c2   : > { %8337 = vmatpush1.bf16.msra.mxu0 %v22342_v1  ;;  %v28448_v1 = vld [vmem:[#allocation118_spill] sm:$0xff]  ;;  %v22354_v4 = vld [vmem:[#allocation10 + $0xe58] ss:$36 sps:$4 sm:$0xff]  }
 0x5c3   : > { %28446 = vst [vmem:[#allocation67_spill] sm:$0xff] %v25116_v45  ;;  %v18869_v32 = vpop.f32.mrb[180].mxu1  ;;  %8338 = vmatprep.subr.bf16.mxu0 %v22350_v19 }
 0x5c4   : > { %v18870_v36 = vpop.f32.mrb[181].mxu1 }
 0x5c5   : > { %v18872_v41 = vpop.f32.mrb[182].mxu1  ;;  %v18871_v6 = vadd.f32 %v18870_v36, %v18869_v32 }
 0x5c6   : > { %v18873_v63 = vpop.f32.mrb[183].mxu1  ;;  %8339 = vmatpush1.bf16.msra.mxu0 %v22348_v31 }
 0x5c7   : > { %v25119_v17 = vadd.f32 %v18871_v6, %v24896_v25  ;;  %v18874_v23 = vadd.f32 %v18873_v63, %v18872_v41  ;;  %18123 = vmatmul.mubr.msk.bf16.gmra.mrb[148].mxu0 %vm1718_vm0, %v23991_v61  ;;  %8340 = vmatprep.subr.bf16.mxu0 %v22353_v11  ;;  %v22359_v41 = vld [vmem:[#allocation10 + $0xea4] ss:$36 sps:$4 sm:$0xff]   ;;  %v28450_v63 = vld [vmem:[#allocation119_spill] sm:$0xff]  ;;  %v28452_v11 = vld [vmem:[#allocation120_spill] sm:$0xff] }
 0x5c8   : > { %8789 = vmatmul.mubr.bf16.gmra.mrb[32].mxu1 %v24057_v55  ;;  %6102 = vmatprep.mubr.bf16.mxu0 %v28339_v33  ;;  %v22357_v6 = vld [vmem:[#allocation10 + $0xea0] ss:$36 sps:$4 sm:$0xff]  }
 0x5c9   : > { %28447 = vst [vmem:[#allocation72_spill] sm:$0xff] %v25119_v17  ;;  %8798 = vmatprep.mubr.bf16.mxu1 %v24061_v56  ;;  %v25127_v12 = vadd.f32 %v18874_v23, %v28448_v1  ;;  %v22362_v23 = vld [vmem:[#allocation10 + $0xeec] ss:$36 sps:$4 sm:$0xff]  }
 0x5ca   : > { %8341 = vmatpush1.bf16.msra.mxu0 %v22351_v14  ;;  %v22360_v1 = vld [vmem:[#allocation10 + $0xee8] ss:$36 sps:$4 sm:$0xff]  }
 0x5cb   : > { %28449 = vst [vmem:[#allocation23_spill] sm:$0xff] %v25127_v12  ;;  %v18875_v19 = vpop.f32.mrb[184].mxu1  ;;  %8342 = vmatprep.subr.bf16.mxu0 %v22356_v27  ;;  %v28555_v12 = vld [vmem:[#allocation76_spill] sm:$0xff] }
 0x5cc   : > { %v18876_v25 = vpop.f32.mrb[185].mxu1 }
 0x5cd   : > { %v18878_v32 = vpop.f32.mrb[186].mxu1  ;;  %v18877_v31 = vadd.f32 %v18876_v25, %v18875_v19 }
 0x5ce   : > { %v18879_v36 = vpop.f32.mrb[187].mxu1  ;;  %8343 = vmatpush1.bf16.msra.mxu0 %v22354_v4 }
 0x5cf   : > { %v25130_v17 = vadd.f32 %v18877_v31, %v28450_v63  ;;  %v18880_v45 = vadd.f32 %v18879_v36, %v18878_v32  ;;  %18124 = vmatmul.mubr.msk.bf16.gmra.mrb[152].mxu0 %vm1718_vm0, %v24008_v20  ;;  %8344 = vmatprep.subr.bf16.mxu0 %v22359_v41  ;;  %v22365_v31 = vld [vmem:[#allocation10 + $0xf34] ss:$36 sps:$4 sm:$0xff]   ;;  %v28455_v41 = vld [vmem:[#allocation121_spill] sm:$0xff] }
 0x5d0   : > { %8799 = vmatmul.mubr.bf16.gmra.mrb[36].mxu1 %v24074_v7  ;;  %6112 = vmatprep.mubr.bf16.mxu0 %v28339_v33  ;;  %v22363_v36 = vld [vmem:[#allocation10 + $0xf30] ss:$36 sps:$4 sm:$0xff]  }
 0x5d1   : > { %28451 = vst [vmem:[#allocation24_spill] sm:$0xff] %v25130_v17  ;;  %8808 = vmatprep.mubr.bf16.mxu1 %v24078_v13  ;;  %v25138_v14 = vadd.f32 %v18880_v45, %v28452_v11  ;;  %v22368_v45 = vld [vmem:[#allocation10 + $0xf7c] ss:$36 sps:$4 sm:$0xff]  }
 0x5d2   : > { %8345 = vmatpush1.bf16.msra.mxu0 %v22357_v6  ;;  %v22366_v11 = vld [vmem:[#allocation10 + $0xf78] ss:$36 sps:$4 sm:$0xff]  }
 0x5d3   : > { %28453 = vst [vmem:[#allocation29_spill] sm:$0xff] %v25138_v14  ;;  %v18881_v27 = vpop.f32.mrb[188].mxu1  ;;  %8346 = vmatprep.subr.bf16.mxu0 %v22362_v23  ;;  %v22501_v14 = vld [vmem:[#allocation10 + $0x1064] ss:$36 sps:$4 sm:$0xff]  }
 0x5d4   : > { %v18882_v19 = vpop.f32.mrb[189].mxu1 }
 0x5d5   : > { %v18884_v4 = vpop.f32.mrb[190].mxu1  ;;  %v18883_v25 = vadd.f32 %v18882_v19, %v18881_v27 }
 0x5d6   : > { %v18885_v32 = vpop.f32.mrb[191].mxu1  ;;  %8347 = vmatpush1.bf16.msra.mxu0 %v22360_v1 }
 0x5d7   : > { %v25141_v63 = vadd.f32 %v18883_v25, %v24918_v0  ;;  %v18886_v17 = vadd.f32 %v18885_v32, %v18884_v4  ;;  %18125 = vmatmul.mubr.msk.bf16.gmra.mrb[156].mxu0 %vm1718_vm0, %v24025_v37  ;;  %8348 = vmatprep.subr.bf16.mxu0 %v22365_v31 }
 0x5d8   : > { %8809 = vmatmul.mubr.bf16.gmra.mrb[40].mxu1 %v24091_v26  ;;  %6122 = vmatprep.mubr.bf16.mxu0 %v28339_v33 }
 0x5d9   : > { %28454 = vst [vmem:[#allocation114_spill] sm:$0xff] %v25141_v63  ;;  %8818 = vmatprep.mubr.bf16.mxu1 %v24095_v30  ;;  %v25149_v6 = vadd.f32 %v18886_v17, %v28455_v41  ;;  %v22493_v63 = vld [vmem:[#allocation10 + $0xfd0] ss:$36 sps:$4 sm:$0xff]  }
 0x5da   : > { %8349 = vmatpush1.bf16.msra.mxu0 %v22363_v36 }
 0x5db   : > { %28456 = vst [vmem:[#allocation115_spill] sm:$0xff] %v25149_v6  ;;  %v18887_v23 = vpop.f32.mrb[192].mxu1  ;;  %8350 = vmatprep.subr.bf16.mxu0 %v22368_v45 }
 0x5dc   : > { %v18888_v0 = vpop.f32.mrb[193].mxu1 }
 0x5dd   : > { %v18890_v27 = vpop.f32.mrb[194].mxu1  ;;  %v18889_v1 = vadd.f32 %v18888_v0, %v18887_v23 }
 0x5de   : > { %v18891_v19 = vpop.f32.mrb[195].mxu1  ;;  %8351 = vmatpush1.bf16.msra.mxu0 %v22366_v11 }
 0x5df   : > { %v25152_v4 = vadd.f32 %v18889_v1, %v24927_v40  ;;  %v18892_v25 = vadd.f32 %v18891_v19, %v18890_v27  ;;  %18126 = vmatmul.mubr.msk.bf16.gmra.mrb[160].mxu0 %vm1718_vm0, %v24042_v8 }
 0x5e0   : > { %8819 = vmatmul.mubr.bf16.gmra.mrb[44].mxu1 %v24106_v2  ;;  %6132 = vmatprep.mubr.bf16.mxu0 %v28339_v33 }
 0x5e1   : > { %28457 = vst [vmem:[#allocation116_spill] sm:$0xff] %v25152_v4  ;;  %8828 = vmatprep.mubr.bf16.mxu1 %v24108_v42  ;;  %v25160_v17 = vadd.f32 %v18892_v25, %v24929_v62 }
 0x5e3   : > { %28458 = vst [vmem:[#allocation117_spill] sm:$0xff] %v25160_v17  ;;  %v18893_v32 = vpop.f32.mrb[196].mxu1 }
 0x5e4   : > { %v18894_v31 = vpop.f32.mrb[197].mxu1 }
 0x5e5   : > { %v18896_v36 = vpop.f32.mrb[198].mxu1  ;;  %v18895_v45 = vadd.f32 %v18894_v31, %v18893_v32 }
 0x5e6   : > { %v18897_v41 = vpop.f32.mrb[199].mxu1 }
 0x5e7   : > { %v25163_v40 = vadd.f32 %v18895_v45, %v24940_v50  ;;  %v18898_v23 = vadd.f32 %v18897_v41, %v18896_v36  ;;  %18127 = vmatmul.mubr.msk.bf16.gmra.mrb[164].mxu0 %vm1718_vm0, %v24059_v16 }
 0x5e8   : > { %8829 = vmatmul.mubr.bf16.gmra.mrb[48].mxu1 %v24119_v46  ;;  %6142 = vmatprep.mubr.bf16.mxu0 %v28339_v33 }
 0x5e9   : > { %28459 = vst [vmem:[#allocation118_spill] sm:$0xff] %v25163_v40  ;;  %8838 = vmatprep.mubr.bf16.mxu1 %v24121_v10  ;;  %v25171_v62 = vadd.f32 %v18898_v23, %v24942_v5  ;;  %v22380_v40 = vld [vmem:[#allocation10 + $0xc34] ss:$36 sps:$4 sm:$0xff]  }
 0x5eb   : > { %28460 = vst [vmem:[#allocation119_spill] sm:$0xff] %v25171_v62  ;;  %v18899_v11 = vpop.f32.mrb[200].mxu1  ;;  %v22375_v62 = vld [vmem:[#allocation10 + $0xbe8] ss:$36 sps:$4 sm:$0xff]  }
 0x5ec   : > { %v18900_v0 = vpop.f32.mrb[201].mxu1 }
 0x5ed   : > { %v18902_v27 = vpop.f32.mrb[202].mxu1  ;;  %v18901_v1 = vadd.f32 %v18900_v0, %v18899_v11 }
 0x5ee   : > { %v18903_v19 = vpop.f32.mrb[203].mxu1 }
 0x5ef   : > { %v25174_v50 = vadd.f32 %v18901_v1, %v24953_v59  ;;  %v18904_v25 = vadd.f32 %v18903_v19, %v18902_v27  ;;  %18128 = vmatmul.mubr.msk.bf16.gmra.mrb[168].mxu0 %vm1718_vm0, %v24076_v9 }
 0x5f0   : > { %8839 = vmatmul.mubr.bf16.gmra.mrb[52].mxu1 %v24132_v54  ;;  %6152 = vmatprep.mubr.bf16.mxu0 %v28339_v33 }
 0x5f1   : > { %28461 = vst [vmem:[#allocation120_spill] sm:$0xff] %v25174_v50  ;;  %8848 = vmatprep.mubr.bf16.mxu1 %v24134_v57  ;;  %v25182_v5 = vadd.f32 %v18904_v25, %v24955_v28 }
 0x5f3   : > { %28462 = vst [vmem:[#allocation121_spill] sm:$0xff] %v25182_v5  ;;  %v18905_v32 = vpop.f32.mrb[204].mxu1  ;;  %v22411_v5 = vld [vmem:[#allocation10 + $0xfc0] ss:$36 sps:$4 sm:$0xff]  }
 0x5f4   : > { %v18906_v31 = vpop.f32.mrb[205].mxu1 }
 0x5f5   : > { %v18907_v36 = vadd.f32 %v18906_v31, %v18905_v32  ;;  %v18908_v45 = vpop.f32.mrb[206].mxu1 }
 0x5f6   : > { %v18909_v41 = vpop.f32.mrb[207].mxu1 }
 0x5f7   : > { %v25185_v59 = vadd.f32 %v18907_v36, %v24934_v44  ;;  %v18910_v23 = vadd.f32 %v18909_v41, %v18908_v45  ;;  %18129 = vmatmul.mubr.msk.bf16.gmra.mrb[172].mxu0 %vm1718_vm0, %v24093_v29  ;;  %v28465_v44 = vld [vmem:[#allocation122_spill] sm:$0xff] }
 0x5f8   : > { %8849 = vmatmul.mubr.bf16.gmra.mrb[56].mxu1 %v24145_v15  ;;  %6162 = vmatprep.mubr.bf16.mxu0 %v28339_v33 }
 0x5f9   : > { %28463 = vst [vmem:[#allocation136_spill] sm:$0xff] %v25185_v59  ;;  %v25191_v11 = vadd.f32 %v18910_v23, %v24936_v3  ;;  %8858 = vmatprep.mubr.bf16.mxu1 %v24147_v18  ;;  %v28467_v3 = vld [vmem:[#allocation123_spill] sm:$0xff] }
 0x5fa   : > { %v22369_v59 = vld [vmem:[#allocation10 + $0xb58] ss:$36 sps:$4 sm:$0xff]  }
 0x5fb   : > { %28464 = vst [vmem:[#allocation137_spill] sm:$0xff] %v25191_v11  ;;  %v18911_v28 = vpop.f32.mrb[208].mxu1 }
 0x5fc   : > { %v18912_v0 = vpop.f32.mrb[209].mxu1 }
 0x5fd   : > { %v18913_v27 = vadd.f32 %v18912_v0, %v18911_v28  ;;  %v18914_v1 = vpop.f32.mrb[210].mxu1  ;;  %v28469_v0 = vld [vmem:[#allocation124_spill] sm:$0xff] }
 0x5fe   : > { %v18915_v19 = vpop.f32.mrb[211].mxu1 }
 0x5ff   : > { %v25196_v25 = vadd.f32 %v18913_v27, %v28465_v44  ;;  %v18916_v32 = vadd.f32 %v18915_v19, %v18914_v1  ;;  %18130 = vmatmul.mubr.msk.bf16.gmra.mrb[176].mxu0 %vm1718_vm0, %v23892_v21  ;;  %v28471_v19 = vld [vmem:[#allocation125_spill] sm:$0xff] }
 0x600   : > { %8859 = vmatmul.mubr.bf16.gmra.mrb[60].mxu1 %v28429_v35  ;;  %6172 = vmatprep.mubr.bf16.mxu0 %v28339_v33 }
 0x601   : > { %28466 = vst [vmem:[#allocation122_spill] sm:$0xff] %v25196_v25  ;;  %v25202_v31 = vadd.f32 %v18916_v32, %v28467_v3  ;;  %8868 = vmatprep.mubr.bf16.mxu1 %v28430_v43 }
 0x603   : > { %28468 = vst [vmem:[#allocation123_spill] sm:$0xff] %v25202_v31  ;;  %v18917_v36 = vpop.f32.mrb[212].mxu1 }
 0x604   : > { %v18918_v45 = vpop.f32.mrb[213].mxu1 }
 0x605   : > { %v18919_v41 = vadd.f32 %v18918_v45, %v18917_v36  ;;  %v18920_v23 = vpop.f32.mrb[214].mxu1 }
 0x606   : > { %v18921_v28 = vpop.f32.mrb[215].mxu1 }
 0x607   : > { %v25207_v27 = vadd.f32 %v18919_v41, %v28469_v0  ;;  %v18922_v1 = vadd.f32 %v18921_v28, %v18920_v23  ;;  %18131 = vmatmul.mubr.msk.bf16.gmra.mrb[180].mxu0 %vm1718_vm0, %v28334_v24  ;;  %v22413_v41 = vld [vmem:[#allocation10 + $0xfc4] ss:$36 sps:$4 sm:$0xff]   ;;  %v28473_v0 = vld [vmem:[#allocation126_spill] sm:$0xff] }
 0x608   : > { %8869 = vmatmul.mubr.bf16.gmra.mrb[64].mxu1 %v28431_v22  ;;  %6182 = vmatprep.mubr.bf16.mxu0 %v28339_v33 }
 0x609   : > { %28470 = vst [vmem:[#allocation124_spill] sm:$0xff] %v25207_v27  ;;  %v25213_v44 = vadd.f32 %v18922_v1, %v28471_v19  ;;  %8878 = vmatprep.mubr.bf16.mxu1 %v28432_v53  ;;  %v28475_v27 = vld [vmem:[#allocation22_spill] sm:$0xff]  ;;  %v28476_v1 = vld [vmem:[#allocation127_spill] sm:$0xff]  ;;  %8513 = vmatprep.subr.bf16.mxu0 %v22413_v41 }
 0x60b   : > { %28472 = vst [vmem:[#allocation125_spill] sm:$0xff] %v25213_v44  ;;  %v18923_v32 = vpop.f32.mrb[216].mxu1 }
 0x60c   : > { %v18924_v3 = vpop.f32.mrb[217].mxu1 }
 0x60d   : > { %v18925_v36 = vadd.f32 %v18924_v3, %v18923_v32  ;;  %v18926_v45 = vpop.f32.mrb[218].mxu1 }
 0x60e   : > { %v18927_v31 = vpop.f32.mrb[219].mxu1 }
 0x60f   : > { %v25218_v23 = vadd.f32 %v18925_v36, %v28473_v0  ;;  %v18928_v28 = vadd.f32 %v18927_v31, %v18926_v45  ;;  %18132 = vmatmul.mubr.msk.bf16.gmra.mrb[184].mxu0 %vm1718_vm0, %v28475_v27  ;;  %v28478_v0 = vld [vmem:[#allocation128_spill] sm:$0xff] }
 0x610   : > { %8879 = vmatmul.mubr.bf16.gmra.mrb[68].mxu1 %v28433_v58  ;;  %6192 = vmatprep.mubr.bf16.mxu0 %v28339_v33 }
 0x611   : > { %28474 = vst [vmem:[#allocation126_spill] sm:$0xff] %v25218_v23  ;;  %v25224_v19 = vadd.f32 %v18928_v28, %v28476_v1  ;;  %8888 = vmatprep.mubr.bf16.mxu1 %v28339_v33  ;;  %v28480_v23 = vld [vmem:[#allocation113_spill] sm:$0xff] }
 0x612   : > { %v28481_v28 = vld [vmem:[#allocation129_spill] sm:$0xff] }
 0x613   : > { %28477 = vst [vmem:[#allocation22_spill] sm:$0xff] %v25224_v19  ;;  %v18929_v32 = vpop.f32.mrb[220].mxu1  ;;  %v28483_v19 = vld [vmem:[#allocation28_spill] sm:$0xff] }
 0x614   : > { %v18930_v3 = vpop.f32.mrb[221].mxu1 }
 0x615   : > { %v18931_v44 = vadd.f32 %v18930_v3, %v18929_v32  ;;  %v18932_v25 = vpop.f32.mrb[222].mxu1 }
 0x616   : > { %v18933_v36 = vpop.f32.mrb[223].mxu1 }
 0x617   : > { %v25229_v31 = vadd.f32 %v18931_v44, %v28478_v0  ;;  %v18934_v45 = vadd.f32 %v18933_v36, %v18932_v25  ;;  %18133 = vmatmul.mubr.msk.bf16.gmra.mrb[188].mxu0 %vm1718_vm0, %v28480_v23  ;;  %v22374_v0 = vld [vmem:[#allocation10 + $0xba4] ss:$36 sps:$4 sm:$0xff]   ;;  %v28484_v25 = vld [vmem:[#allocation130_spill] sm:$0xff] }
 0x618   : > { %8889 = vmatmul.mubr.bf16.gmra.mrb[72].mxu1 %v28339_v33  ;;  %8352 = vmatprep.mubr.bf16.mxu0 %v28483_v19 }
 0x619   : > { %28479 = vst [vmem:[#allocation127_spill] sm:$0xff] %v25229_v31  ;;  %v25235_v1 = vadd.f32 %v18934_v45, %v28481_v28  ;;  %8931 = vmatprep.mubr.bf16.mxu1 %v28339_v33  ;;  %v22419_v45 = vld [vmem:[#allocation10 + $0x100c] ss:$36 sps:$4 sm:$0xff]   ;;  %v28486_v28 = vld [vmem:[#allocation131_spill] sm:$0xff] }
 0x61b   : > { %28482 = vst [vmem:[#allocation128_spill] sm:$0xff] %v25235_v1  ;;  %v18935_v41 = vpop.f32.mrb[224].mxu1 }
 0x61c   : > { %v18936_v32 = vpop.f32.mrb[225].mxu1 }
 0x61d   : > { %v18937_v3 = vadd.f32 %v18936_v32, %v18935_v41  ;;  %v18938_v11 = vpop.f32.mrb[226].mxu1  ;;  %v22372_v41 = vld [vmem:[#allocation10 + $0xba0] ss:$36 sps:$4 sm:$0xff]   ;;  %v22377_v32 = vld [vmem:[#allocation10 + $0xbec] ss:$36 sps:$4 sm:$0xff]  }
 0x61e   : > { %v18939_v44 = vpop.f32.mrb[227].mxu1 }
 0x61f   : > { %v25240_v36 = vadd.f32 %v18937_v3, %v28484_v25  ;;  %v18940_v31 = vadd.f32 %v18939_v44, %v18938_v11  ;;  %8353 = vmatmul.mubr.bf16.vlgmr.msra.gmra.mrb[0].mxu0 %v23971_v49  ;;  %v22417_v11 = vld [vmem:[#allocation10 + $0x1008] ss:$36 sps:$4 sm:$0xff]  }
 0x620   : > { %18361 = vmatmul.mubr.msk.bf16.vlgmr.msra.gmra.mrb[12].mxu1 %vm1718_vm0, %v28435_v52  ;;  %8362 = vmatprep.mubr.bf16.mxu0 %v23975_v51 }
 0x621   : > { %28485 = vst [vmem:[#allocation113_spill] sm:$0xff] %v25240_v36  ;;  %v25246_v1 = vadd.f32 %v18940_v31, %v28486_v28  ;;  %9479 = vmatpush1.bf16.msra.mxu1 %v22369_v59  ;;  %8941 = vmatprep.mubr.bf16.mxu1 %v28339_v33  ;;  %v22422_v31 = vld [vmem:[#allocation10 + $0x1054] ss:$36 sps:$4 sm:$0xff]   ;;  %v28488_v59 = vld [vmem:[#allocation132_spill] sm:$0xff] }
 0x622   : > { %9480 = vmatprep.subr.bf16.mxu1 %v22374_v0  ;;  %8514 = vmatpush1.bf16.msra.mxu0 %v22411_v5  ;;  %v22420_v0 = vld [vmem:[#allocation10 + $0x1050] ss:$36 sps:$4 sm:$0xff]   ;;  %v28490_v5 = vld [vmem:[#allocation25_spill] sm:$0xff] }
 0x623   : > { %28487 = vst [vmem:[#allocation129_spill] sm:$0xff] %v25246_v1  ;;  %v18941_v3 = vpop.f32.mrb[228].mxu1  ;;  %8515 = vmatprep.subr.bf16.mxu0 %v22419_v45  ;;  %v22428_v45 = vld [vmem:[#allocation10 + $0x109c] ss:$36 sps:$4 sm:$0xff]  }
 0x624   : > { %v18942_v44 = vpop.f32.mrb[229].mxu1 }
 0x625   : > { %v18943_v25 = vadd.f32 %v18942_v44, %v18941_v3  ;;  %v18944_v36 = vpop.f32.mrb[230].mxu1  ;;  %9481 = vmatpush1.bf16.msra.mxu1 %v22372_v41  ;;  %v28491_v3 = vld [vmem:[#allocation133_spill] sm:$0xff]  ;;  %v28493_v41 = vld [vmem:[#allocation30_spill] sm:$0xff] }
 0x626   : > { %v18945_v50 = vpop.f32.mrb[231].mxu1  ;;  %9482 = vmatprep.subr.bf16.mxu1 %v22377_v32  ;;  %8516 = vmatpush1.bf16.msra.mxu0 %v22417_v11  ;;  %v22378_v32 = vld [vmem:[#allocation10 + $0xc30] ss:$36 sps:$4 sm:$0xff]   ;;  %v22426_v11 = vld [vmem:[#allocation10 + $0x1098] ss:$36 sps:$4 sm:$0xff]  }
 0x627   : > { %v25251_v28 = vadd.f32 %v18943_v25, %v28488_v59  ;;  %v18946_v1 = vadd.f32 %v18945_v50, %v18944_v36  ;;  %8363 = vmatmul.mubr.bf16.gmra.mrb[4].mxu0 %v23989_v60  ;;  %8517 = vmatprep.subr.bf16.mxu0 %v22422_v31  ;;  %v22383_v36 = vld [vmem:[#allocation10 + $0xc7c] ss:$36 sps:$4 sm:$0xff]   ;;  %v28496_v31 = vld [vmem:[#allocation31_spill] sm:$0xff] }
 0x628   : > { %18362 = vmatmul.mubr.msk.bf16.gmra.mrb[16].mxu1 %vm1718_vm0, %v28490_v5  ;;  %8372 = vmatprep.mubr.bf16.mxu0 %v28493_v41 }
 0x629   : > { %28489 = vst [vmem:[#allocation28_spill] sm:$0xff] %v25251_v28  ;;  %v25257_v44 = vadd.f32 %v18946_v1, %v28491_v3  ;;  %8951 = vmatprep.mubr.bf16.mxu1 %v28339_v33  ;;  %9483 = vmatpush1.bf16.msra.mxu1 %v22375_v62  ;;  %v22381_v1 = vld [vmem:[#allocation10 + $0xc78] ss:$36 sps:$4 sm:$0xff]   ;;  %v28494_v3 = vld [vmem:[#allocation134_spill] sm:$0xff]  ;;  %v22386_v62 = vld [vmem:[#allocation10 + $0xcc4] ss:$36 sps:$4 sm:$0xff]  }
 0x62a   : > { %9484 = vmatprep.subr.bf16.mxu1 %v22380_v40  ;;  %8518 = vmatpush1.bf16.msra.mxu0 %v22420_v0  ;;  %v28497_v40 = vld [vmem:[#allocation27_spill] sm:$0xff] }
 0x62b   : > { %28492 = vst [vmem:[#allocation130_spill] sm:$0xff] %v25257_v44  ;;  %v18947_v50 = vpop.f32.mrb[232].mxu1  ;;  %8519 = vmatprep.subr.bf16.mxu0 %v22428_v45  ;;  %v28498_v0 = vld [vmem:[#allocation135_spill] sm:$0xff]  ;;  %v28500_v45 = vld [vmem:[#allocation32_spill] sm:$0xff] }
 0x62c   : > { %v18948_v25 = vpop.f32.mrb[233].mxu1 }
 0x62d   : > { %v18949_v59 = vadd.f32 %v18948_v25, %v18947_v50  ;;  %v18950_v28 = vpop.f32.mrb[234].mxu1  ;;  %9485 = vmatpush1.bf16.msra.mxu1 %v22378_v32  ;;  %v22384_v32 = vld [vmem:[#allocation10 + $0xcc0] ss:$36 sps:$4 sm:$0xff]   ;;  %v22389_v50 = vld [vmem:[#allocation10 + $0xd0c] ss:$36 sps:$4 sm:$0xff]  }
 0x62e   : > { %v18951_v17 = vpop.f32.mrb[235].mxu1  ;;  %9486 = vmatprep.subr.bf16.mxu1 %v22383_v36  ;;  %8520 = vmatpush1.bf16.msra.mxu0 %v22426_v11  ;;  %v28501_v36 = vld [vmem:[#allocation33_spill] sm:$0xff]  ;;  %v22395_v11 = vld [vmem:[#allocation10 + $0xd9c] ss:$36 sps:$4 sm:$0xff]  }
 0x62f   : > { %v25262_v44 = vadd.f32 %v18949_v59, %v28494_v3  ;;  %v18952_v4 = vadd.f32 %v18951_v17, %v18950_v28  ;;  %8373 = vmatmul.mubr.bf16.gmra.mrb[8].mxu0 %v28496_v31  ;;  %v22387_v17 = vld [vmem:[#allocation10 + $0xd08] ss:$36 sps:$4 sm:$0xff]   ;;  %v22392_v28 = vld [vmem:[#allocation10 + $0xd54] ss:$36 sps:$4 sm:$0xff]  }
 0x630   : > { %18363 = vmatmul.mubr.msk.bf16.gmra.mrb[20].mxu1 %vm1718_vm0, %v28497_v40  ;;  %8382 = vmatprep.mubr.bf16.mxu0 %v28500_v45  ;;  %v22393_v25 = vld [vmem:[#allocation10 + $0xd98] ss:$36 sps:$4 sm:$0xff]   ;;  %v22398_v59 = vld [vmem:[#allocation10 + $0xde4] ss:$36 sps:$4 sm:$0xff]   ;;  %v22401_v3 = vld [vmem:[#allocation10 + $0xe2c] ss:$36 sps:$4 sm:$0xff]  }
 0x631   : > { %28495 = vst [vmem:[#allocation131_spill] sm:$0xff] %v25262_v44  ;;  %v25268_v6 = vadd.f32 %v18952_v4, %v28498_v0  ;;  %8961 = vmatprep.mubr.bf16.mxu1 %v28339_v33  ;;  %9487 = vmatpush1.bf16.msra.mxu1 %v22381_v1  ;;  %v22390_v4 = vld [vmem:[#allocation10 + $0xd50] ss:$36 sps:$4 sm:$0xff]   ;;  %v22396_v1 = vld [vmem:[#allocation10 + $0xde0] ss:$36 sps:$4 sm:$0xff]  }
 0x632   : > { %9488 = vmatprep.subr.bf16.mxu1 %v22386_v62  ;;  %v22399_v62 = vld [vmem:[#allocation10 + $0xe28] ss:$36 sps:$4 sm:$0xff]   ;;  %v22404_v0 = vld [vmem:[#allocation10 + $0xe74] ss:$36 sps:$4 sm:$0xff]  }
 0x633   : > { %28499 = vst [vmem:[#allocation132_spill] sm:$0xff] %v25268_v6 }
 0x635   : > { %9489 = vmatpush1.bf16.msra.mxu1 %v22384_v32  ;;  %v22402_v32 = vld [vmem:[#allocation10 + $0xe70] ss:$36 sps:$4 sm:$0xff]  }
 0x636   : > { %9490 = vmatprep.subr.bf16.mxu1 %v22389_v50  ;;  %v22407_v50 = vld [vmem:[#allocation10 + $0xebc] ss:$36 sps:$4 sm:$0xff]  }
 0x637   : > { %8383 = vmatmul.mubr.bf16.gmra.mrb[12].mxu0 %v28501_v36 }
 0x638   : > { %18364 = vmatmul.mubr.msk.bf16.gmra.mrb[24].mxu1 %vm1718_vm0, %v28438_v34  ;;  %8392 = vmatprep.mubr.bf16.mxu0 %v24027_v38 }
 0x639   : > { %8971 = vmatprep.mubr.bf16.mxu1 %v28339_v33  ;;  %9491 = vmatpush1.bf16.msra.mxu1 %v22387_v17  ;;  %v22405_v17 = vld [vmem:[#allocation10 + $0xeb8] ss:$36 sps:$4 sm:$0xff]  }
 0x63a   : > { %9492 = vmatprep.subr.bf16.mxu1 %v22392_v28  ;;  %v22410_v28 = vld [vmem:[#allocation10 + $0xf04] ss:$36 sps:$4 sm:$0xff]  }
 0x63d   : > { %9493 = vmatpush1.bf16.msra.mxu1 %v22390_v4  ;;  %v22408_v4 = vld [vmem:[#allocation10 + $0xf00] ss:$36 sps:$4 sm:$0xff]  }
 0x63e   : > { %9494 = vmatprep.subr.bf16.mxu1 %v22395_v11  ;;  %v22416_v11 = vld [vmem:[#allocation10 + $0xf4c] ss:$36 sps:$4 sm:$0xff]  }
 0x63f   : > { %8393 = vmatmul.mubr.bf16.gmra.mrb[16].mxu0 %v24040_v47 }
 0x640   : > { %18365 = vmatmul.mubr.msk.bf16.gmra.mrb[28].mxu1 %vm1718_vm0, %v23991_v61  ;;  %8402 = vmatprep.mubr.bf16.mxu0 %v24044_v48 }
 0x641   : > { %8981 = vmatprep.mubr.bf16.mxu1 %v28339_v33  ;;  %9495 = vmatpush1.bf16.msra.mxu1 %v22393_v25  ;;  %v22414_v25 = vld [vmem:[#allocation10 + $0xf48] ss:$36 sps:$4 sm:$0xff]  }
 0x642   : > { %9496 = vmatprep.subr.bf16.mxu1 %v22398_v59  ;;  %v22425_v59 = vld [vmem:[#allocation10 + $0xf94] ss:$36 sps:$4 sm:$0xff]  }
 0x645   : > { %9497 = vmatpush1.bf16.msra.mxu1 %v22396_v1  ;;  %v22423_v1 = vld [vmem:[#allocation10 + $0xf90] ss:$36 sps:$4 sm:$0xff]  }
 0x646   : > { %9498 = vmatprep.subr.bf16.mxu1 %v22401_v3  ;;  %v22431_v3 = vld [vmem:[#allocation10 + $0xfdc] ss:$36 sps:$4 sm:$0xff]  }
 0x647   : > { %8403 = vmatmul.mubr.bf16.gmra.mrb[20].mxu0 %v24057_v55 }
 0x648   : > { %18366 = vmatmul.mubr.msk.bf16.gmra.mrb[32].mxu1 %vm1718_vm0, %v24008_v20  ;;  %8412 = vmatprep.mubr.bf16.mxu0 %v24061_v56 }
 0x649   : > { %8991 = vmatprep.mubr.bf16.mxu1 %v28339_v33  ;;  %9499 = vmatpush1.bf16.msra.mxu1 %v22399_v62  ;;  %v22437_v62 = vld [vmem:[#allocation10 + $0xb54] ss:$36 sps:$4 sm:$0xff]  }
 0x64a   : > { %9500 = vmatprep.subr.bf16.mxu1 %v22404_v0  ;;  %9092 = vmatprep.subr.bf16.mxu0 %v22437_v62  ;;  %v22429_v0 = vld [vmem:[#allocation10 + $0xfd8] ss:$36 sps:$4 sm:$0xff]   ;;  %v22449_v62 = vld [vmem:[#allocation10 + $0xc2c] ss:$36 sps:$4 sm:$0xff]  }
 0x64d   : > { %9501 = vmatpush1.bf16.msra.mxu1 %v22402_v32  ;;  %v22434_v32 = vld [vmem:[#allocation10 + $0x1024] ss:$36 sps:$4 sm:$0xff]  }
 0x64e   : > { %9502 = vmatprep.subr.bf16.mxu1 %v22407_v50  ;;  %v22435_v50 = vld [vmem:[#allocation10 + $0xb50] ss:$36 sps:$4 sm:$0xff]  }
 0x64f   : > { %8413 = vmatmul.mubr.bf16.gmra.mrb[24].mxu0 %v24074_v7 }
 0x650   : > { %18367 = vmatmul.mubr.msk.bf16.gmra.mrb[36].mxu1 %vm1718_vm0, %v24025_v37  ;;  %8422 = vmatprep.mubr.bf16.mxu0 %v24078_v13 }
 0x651   : > { %9001 = vmatprep.mubr.bf16.mxu1 %v28339_v33  ;;  %9503 = vmatpush1.bf16.msra.mxu1 %v22405_v17  ;;  %v22443_v17 = vld [vmem:[#allocation10 + $0xb9c] ss:$36 sps:$4 sm:$0xff]  }
 0x652   : > { %9504 = vmatprep.subr.bf16.mxu1 %v22410_v28  ;;  %v22432_v28 = vld [vmem:[#allocation10 + $0x1020] ss:$36 sps:$4 sm:$0xff]  }
 0x655   : > { %9505 = vmatpush1.bf16.msra.mxu1 %v22408_v4  ;;  %v22440_v4 = vld [vmem:[#allocation10 + $0x106c] ss:$36 sps:$4 sm:$0xff]  }
 0x656   : > { %9506 = vmatprep.subr.bf16.mxu1 %v22416_v11  ;;  %v22441_v11 = vld [vmem:[#allocation10 + $0xb98] ss:$36 sps:$4 sm:$0xff]  }
 0x657   : > { %8423 = vmatmul.mubr.bf16.gmra.mrb[28].mxu0 %v24091_v26 }
 0x658   : > { %18368 = vmatmul.mubr.msk.bf16.gmra.mrb[40].mxu1 %vm1718_vm0, %v24042_v8  ;;  %8432 = vmatprep.mubr.bf16.mxu0 %v24095_v30 }
 0x659   : > { %9011 = vmatprep.mubr.bf16.mxu1 %v28339_v33  ;;  %9507 = vmatpush1.bf16.msra.mxu1 %v22414_v25  ;;  %v22438_v25 = vld [vmem:[#allocation10 + $0x1068] ss:$36 sps:$4 sm:$0xff]  }
 0x65a   : > { %9508 = vmatprep.subr.bf16.mxu1 %v22425_v59  ;;  %v22446_v59 = vld [vmem:[#allocation10 + $0xbe4] ss:$36 sps:$4 sm:$0xff]  }
 0x65d   : > { %9509 = vmatpush1.bf16.msra.mxu1 %v22423_v1  ;;  %v22444_v1 = vld [vmem:[#allocation10 + $0xbe0] ss:$36 sps:$4 sm:$0xff]  }
 0x65e   : > { %9671 = vmatprep.subr.bf16.mxu1 %v22431_v3  ;;  %v22467_v3 = vld [vmem:[#allocation10 + $0x10b4] ss:$36 sps:$4 sm:$0xff]  }
 0x65f   : > { %8433 = vmatmul.mubr.bf16.gmra.mrb[32].mxu0 %v24106_v2 }
 0x660   : > { %18369 = vmatmul.mubr.msk.bf16.gmra.mrb[44].mxu1 %vm1718_vm0, %v24059_v16  ;;  %8442 = vmatprep.mubr.bf16.mxu0 %v24108_v42 }
 0x661   : > { %9021 = vmatprep.mubr.bf16.mxu1 %v28339_v33 }
 0x667   : > { %8443 = vmatmul.mubr.bf16.gmra.mrb[36].mxu0 %v24119_v46 }
 0x668   : > { %18370 = vmatmul.mubr.msk.bf16.gmra.mrb[48].mxu1 %vm1718_vm0, %v24076_v9  ;;  %8452 = vmatprep.mubr.bf16.mxu0 %v24121_v10 }
 0x669   : > { %9031 = vmatprep.mubr.bf16.mxu1 %v28339_v33 }
 0x66f   : > { %8453 = vmatmul.mubr.bf16.gmra.mrb[40].mxu0 %v24132_v54 }
 0x670   : > { %18371 = vmatmul.mubr.msk.bf16.gmra.mrb[52].mxu1 %vm1718_vm0, %v24093_v29  ;;  %8462 = vmatprep.mubr.bf16.mxu0 %v24134_v57 }
 0x671   : > { %9041 = vmatprep.mubr.bf16.mxu1 %v28339_v33 }
 0x677   : > { %8463 = vmatmul.mubr.bf16.gmra.mrb[44].mxu0 %v24145_v15 }
 0x678   : > { %18372 = vmatmul.mubr.msk.bf16.gmra.mrb[56].mxu1 %vm1718_vm0, %v23892_v21  ;;  %8472 = vmatprep.mubr.bf16.mxu0 %v24147_v18 }
 0x679   : > { %9051 = vmatprep.mubr.bf16.mxu1 %v28339_v33 }
 0x67f   : > { %8473 = vmatmul.mubr.bf16.gmra.mrb[48].mxu0 %v28429_v35 }
 0x680   : > { %18373 = vmatmul.mubr.msk.bf16.gmra.mrb[60].mxu1 %vm1718_vm0, %v28334_v24  ;;  %8482 = vmatprep.mubr.bf16.mxu0 %v28430_v43 }
 0x681   : > { %9061 = vmatprep.mubr.bf16.mxu1 %v28339_v33 }
 0x687   : > { %8483 = vmatmul.mubr.bf16.gmra.mrb[52].mxu0 %v28431_v22 }
 0x688   : > { %18374 = vmatmul.mubr.msk.bf16.gmra.mrb[64].mxu1 %vm1718_vm0, %v28475_v27  ;;  %8492 = vmatprep.mubr.bf16.mxu0 %v28432_v53 }
 0x689   : > { %9071 = vmatprep.mubr.bf16.mxu1 %v28339_v33 }
 0x68f   : > { %8493 = vmatmul.mubr.bf16.gmra.mrb[56].mxu0 %v28433_v58 }
 0x690   : > { %18375 = vmatmul.mubr.msk.bf16.gmra.mrb[68].mxu1 %vm1718_vm0, %v28480_v23  ;;  %8502 = vmatprep.mubr.bf16.mxu0 %v28339_v33 }
 0x691   : > { %9081 = vmatprep.mubr.bf16.mxu1 %v28339_v33 }
 0x697   : > { %8503 = vmatmul.mubr.bf16.gmra.mrb[60].mxu0 %v28339_v33 }
 0x698   : > { %9082 = vmatmul.mubr.bf16.gmra.mrb[72].mxu1 %v28339_v33  ;;  %8545 = vmatprep.mubr.bf16.mxu0 %v28339_v33 }
 0x699   : > { %9510 = vmatprep.mubr.bf16.mxu1 %v28483_v19 }
 0x69f   : > { %18346 = vmatmul.mubr.msk.bf16.vlgmr.msra.gmra.mrb[0].mxu0 %vm1718_vm0, %v28435_v52 }
 0x6a0   : > { %9511 = vmatmul.mubr.bf16.vlgmr.msra.gmra.mrb[76].mxu1 %v23971_v49  ;;  %8555 = vmatprep.mubr.bf16.mxu0 %v28339_v33 }
 0x6a1   : > { %9672 = vmatpush1.bf16.msra.mxu1 %v22429_v0  ;;  %9520 = vmatprep.mubr.bf16.mxu1 %v23975_v51  ;;  %v22465_v0 = vld [vmem:[#allocation10 + $0x10b0] ss:$36 sps:$4 sm:$0xff]  }
 0x6a2   : > { %9673 = vmatprep.subr.bf16.mxu1 %v22434_v32  ;;  %9093 = vmatpush1.bf16.msra.mxu0 %v22435_v50  ;;  %v22447_v32 = vld [vmem:[#allocation10 + $0xc28] ss:$36 sps:$4 sm:$0xff]   ;;  %v25346_v50 = vld [vmem:[#allocation10 + $0xfe0] ss:$36 sps:$4 sm:$0xff]  }
 0x6a3   : > { %9094 = vmatprep.subr.bf16.mxu0 %v22443_v17  ;;  %v22452_v17 = vld [vmem:[#allocation10 + $0xc74] ss:$36 sps:$4 sm:$0xff]  }
 0x6a5   : > { %9674 = vmatpush1.bf16.msra.mxu1 %v22432_v28  ;;  %v22450_v28 = vld [vmem:[#allocation10 + $0xc70] ss:$36 sps:$4 sm:$0xff]  }
 0x6a6   : > { %9675 = vmatprep.subr.bf16.mxu1 %v22440_v4  ;;  %9095 = vmatpush1.bf16.msra.mxu0 %v22441_v11  ;;  %v22455_v4 = vld [vmem:[#allocation10 + $0xcbc] ss:$36 sps:$4 sm:$0xff]  }
 0x6a7   : > { %18347 = vmatmul.mubr.msk.bf16.gmra.mrb[4].mxu0 %vm1718_vm0, %v28490_v5  ;;  %9096 = vmatprep.subr.bf16.mxu0 %v22446_v59  ;;  %v22453_v11 = vld [vmem:[#allocation10 + $0xcb8] ss:$36 sps:$4 sm:$0xff]   ;;  %v22456_v59 = vld [vmem:[#allocation10 + $0xd00] ss:$36 sps:$4 sm:$0xff]  }
 0x6a8   : > { %9521 = vmatmul.mubr.bf16.gmra.mrb[80].mxu1 %v23989_v60  ;;  %8565 = vmatprep.mubr.bf16.mxu0 %v28339_v33 }
 0x6a9   : > { %9530 = vmatprep.mubr.bf16.mxu1 %v28493_v41  ;;  %9676 = vmatpush1.bf16.msra.mxu1 %v22438_v25  ;;  %v22458_v25 = vld [vmem:[#allocation10 + $0xd04] ss:$36 sps:$4 sm:$0xff]  }
 0x6aa   : > { %9097 = vmatpush1.bf16.msra.mxu0 %v22444_v1  ;;  %9677 = vmatprep.subr.bf16.mxu1 %v22467_v3  ;;  %v22461_v1 = vld [vmem:[#allocation10 + $0xd4c] ss:$36 sps:$4 sm:$0xff]  }
 0x6ab   : > { %9098 = vmatprep.subr.bf16.mxu0 %v22449_v62  ;;  %v22459_v3 = vld [vmem:[#allocation10 + $0xd48] ss:$36 sps:$4 sm:$0xff]   ;;  %v22464_v62 = vld [vmem:[#allocation10 + $0xd94] ss:$36 sps:$4 sm:$0xff]  }
 0x6ad   : > { %9678 = vmatpush1.bf16.msra.mxu1 %v22465_v0  ;;  %v22462_v0 = vld [vmem:[#allocation10 + $0xd90] ss:$36 sps:$4 sm:$0xff]  }
 0x6ae   : > { %9099 = vmatpush1.bf16.msra.mxu0 %v22447_v32  ;;  %19257 = vmatprep.subr.bf16.mxu1 %v25346_v50  ;;  %v22470_v32 = vld [vmem:[#allocation10 + $0xddc] ss:$36 sps:$4 sm:$0xff]  }
 0x6af   : > { %18348 = vmatmul.mubr.msk.bf16.gmra.mrb[8].mxu0 %vm1718_vm0, %v28497_v40  ;;  %9100 = vmatprep.subr.bf16.mxu0 %v22452_v17  ;;  %v22468_v17 = vld [vmem:[#allocation10 + $0xdd8] ss:$36 sps:$4 sm:$0xff]  }
 0x6b0   : > { %9531 = vmatmul.mubr.bf16.gmra.mrb[84].mxu1 %v28496_v31  ;;  %8575 = vmatprep.mubr.bf16.mxu0 %v28339_v33 }
 0x6b1   : > { %9540 = vmatprep.mubr.bf16.mxu1 %v28500_v45 }
 0x6b2   : > { %9101 = vmatpush1.bf16.msra.mxu0 %v22450_v28  ;;  %v22473_v28 = vld [vmem:[#allocation10 + $0xe24] ss:$36 sps:$4 sm:$0xff]  }
 0x6b3   : > { %9102 = vmatprep.subr.bf16.mxu0 %v22455_v4  ;;  %v22471_v4 = vld [vmem:[#allocation10 + $0xe20] ss:$36 sps:$4 sm:$0xff]  }
 0x6b6   : > { %9103 = vmatpush1.bf16.msra.mxu0 %v22453_v11  ;;  %v22476_v11 = vld [vmem:[#allocation10 + $0xe6c] ss:$36 sps:$4 sm:$0xff]  }
 0x6b7   : > { %18349 = vmatmul.mubr.msk.bf16.gmra.mrb[12].mxu0 %vm1718_vm0, %v28438_v34  ;;  %9104 = vmatprep.subr.bf16.mxu0 %v22458_v25  ;;  %v22474_v25 = vld [vmem:[#allocation10 + $0xe68] ss:$36 sps:$4 sm:$0xff]  }
 0x6b8   : > { %9541 = vmatmul.mubr.bf16.gmra.mrb[88].mxu1 %v28501_v36  ;;  %8585 = vmatprep.mubr.bf16.mxu0 %v28339_v33 }
 0x6b9   : > { %9550 = vmatprep.mubr.bf16.mxu1 %v24027_v38 }
 0x6ba   : > { %9105 = vmatpush1.bf16.msra.mxu0 %v22456_v59  ;;  %v22479_v59 = vld [vmem:[#allocation10 + $0xeb4] ss:$36 sps:$4 sm:$0xff]  }
 0x6bb   : > { %9106 = vmatprep.subr.bf16.mxu0 %v22461_v1  ;;  %v22477_v1 = vld [vmem:[#allocation10 + $0xeb0] ss:$36 sps:$4 sm:$0xff]  }
 0x6be   : > { %9107 = vmatpush1.bf16.msra.mxu0 %v22459_v3  ;;  %v22482_v3 = vld [vmem:[#allocation10 + $0xefc] ss:$36 sps:$4 sm:$0xff]  }
 0x6bf   : > { %18350 = vmatmul.mubr.msk.bf16.gmra.mrb[16].mxu0 %vm1718_vm0, %v23991_v61  ;;  %9108 = vmatprep.subr.bf16.mxu0 %v22464_v62  ;;  %v22480_v62 = vld [vmem:[#allocation10 + $0xef8] ss:$36 sps:$4 sm:$0xff]  }
 0x6c0   : > { %9551 = vmatmul.mubr.bf16.gmra.mrb[92].mxu1 %v24040_v47  ;;  %8595 = vmatprep.mubr.bf16.mxu0 %v28339_v33 }
 0x6c1   : > { %9560 = vmatprep.mubr.bf16.mxu1 %v24044_v48 }
 0x6c2   : > { %9109 = vmatpush1.bf16.msra.mxu0 %v22462_v0  ;;  %v22485_v0 = vld [vmem:[#allocation10 + $0xf44] ss:$36 sps:$4 sm:$0xff]  }
 0x6c3   : > { %9110 = vmatprep.subr.bf16.mxu0 %v22470_v32  ;;  %v22483_v32 = vld [vmem:[#allocation10 + $0xf40] ss:$36 sps:$4 sm:$0xff]  }
 0x6c6   : > { %9111 = vmatpush1.bf16.msra.mxu0 %v22468_v17  ;;  %v22488_v17 = vld [vmem:[#allocation10 + $0xf8c] ss:$36 sps:$4 sm:$0xff]  }
 0x6c7   : > { %18351 = vmatmul.mubr.msk.bf16.gmra.mrb[20].mxu0 %vm1718_vm0, %v24008_v20  ;;  %9112 = vmatprep.subr.bf16.mxu0 %v22473_v28  ;;  %v22486_v28 = vld [vmem:[#allocation10 + $0xf88] ss:$36 sps:$4 sm:$0xff]  }
 0x6c8   : > { %9561 = vmatmul.mubr.bf16.gmra.mrb[96].mxu1 %v24057_v55  ;;  %8605 = vmatprep.mubr.bf16.mxu0 %v28339_v33 }
 0x6c9   : > { %9570 = vmatprep.mubr.bf16.mxu1 %v24061_v56 }
 0x6ca   : > { %9113 = vmatpush1.bf16.msra.mxu0 %v22471_v4 }
 0x6cb   : > { %9114 = vmatprep.subr.bf16.mxu0 %v22476_v11  ;;  %v28502_v11 = vld [vmem:[#allocation21_spill] sm:$0xff] }
 0x6ce   : > { %9115 = vmatpush1.bf16.msra.mxu0 %v22474_v25 }
 0x6cf   : > { %18352 = vmatmul.mubr.msk.bf16.gmra.mrb[24].mxu0 %vm1718_vm0, %v24025_v37  ;;  %9116 = vmatprep.subr.bf16.mxu0 %v22479_v59 }
 0x6d0   : > { %9571 = vmatmul.mubr.bf16.gmra.mrb[100].mxu1 %v24074_v7  ;;  %8615 = vmatprep.mubr.bf16.mxu0 %v28339_v33 }
 0x6d1   : > { %9580 = vmatprep.mubr.bf16.mxu1 %v24078_v13 }
 0x6d2   : > { %9117 = vmatpush1.bf16.msra.mxu0 %v22477_v1  ;;  %v28504_v1 = vld [vmem:[#allocation26_spill] sm:$0xff] }
 0x6d3   : > { %9118 = vmatprep.subr.bf16.mxu0 %v22482_v3 }
 0x6d6   : > { %9119 = vmatpush1.bf16.msra.mxu0 %v22480_v62 }
 0x6d7   : > { %18353 = vmatmul.mubr.msk.bf16.gmra.mrb[28].mxu0 %vm1718_vm0, %v24042_v8  ;;  %9120 = vmatprep.subr.bf16.mxu0 %v22485_v0  ;;  %v28506_v0 = vld [vmem:[#allocation49_spill] sm:$0xff] }
 0x6d8   : > { %9581 = vmatmul.mubr.bf16.gmra.mrb[104].mxu1 %v24091_v26  ;;  %8625 = vmatprep.mubr.bf16.mxu0 %v28339_v33 }
 0x6d9   : > { %9590 = vmatprep.mubr.bf16.mxu1 %v24095_v30 }
 0x6da   : > { %9121 = vmatpush1.bf16.msra.mxu0 %v22483_v32 }
 0x6db   : > { %9122 = vmatprep.subr.bf16.mxu0 %v22488_v17 }
 0x6de   : > { %9123 = vmatpush1.bf16.msra.mxu0 %v22486_v28  ;;  %v28508_v28 = vld [vmem:[#allocation50_spill] sm:$0xff] }
 0x6df   : > { %18354 = vmatmul.mubr.msk.bf16.gmra.mrb[32].mxu0 %vm1718_vm0, %v24059_v16 }
 0x6e0   : > { %9591 = vmatmul.mubr.bf16.gmra.mrb[108].mxu1 %v24106_v2  ;;  %8635 = vmatprep.mubr.bf16.mxu0 %v28339_v33 }
 0x6e1   : > { %9600 = vmatprep.mubr.bf16.mxu1 %v24108_v42 }
 0x6e7   : > { %18355 = vmatmul.mubr.msk.bf16.gmra.mrb[36].mxu0 %vm1718_vm0, %v24076_v9 }
 0x6e8   : > { %9601 = vmatmul.mubr.bf16.gmra.mrb[112].mxu1 %v24119_v46  ;;  %8645 = vmatprep.mubr.bf16.mxu0 %v28339_v33 }
 0x6e9   : > { %9610 = vmatprep.mubr.bf16.mxu1 %v24121_v10 }
 0x6ef   : > { %18356 = vmatmul.mubr.msk.bf16.gmra.mrb[40].mxu0 %vm1718_vm0, %v24093_v29 }
 0x6f0   : > { %9611 = vmatmul.mubr.bf16.gmra.mrb[116].mxu1 %v24132_v54  ;;  %8655 = vmatprep.mubr.bf16.mxu0 %v28339_v33 }
 0x6f1   : > { %9620 = vmatprep.mubr.bf16.mxu1 %v24134_v57 }
 0x6f3   : > { %v8933_v4 = vpop.f32.mrb[12].mxu1 }
 0x6f4   : > { %v25395_v25 = vadd.f32 %v8933_v4, %v28502_v11  ;;  %v8935_v59 = vpop.f32.mrb[13].mxu1  ;;  %v28510_v11 = vld [vmem:[#allocation51_spill] sm:$0xff] }
 0x6f5   : > { %v25398_v3 = vadd.f32 %v8935_v59, %v28504_v1  ;;  %v8937_v62 = vpop.f32.mrb[14].mxu1 }
 0x6f6   : > { %28503 = vst [vmem:[#allocation25_spill] sm:$0xff] %v25395_v25  ;;  %v25401_v32 = vadd.f32 %v8937_v62, %v28506_v0  ;;  %v8939_v17 = vpop.f32.mrb[15].mxu1  ;;  %v28512_v62 = vld [vmem:[#allocation52_spill] sm:$0xff] }
 0x6f7   : > { %28505 = vst [vmem:[#allocation133_spill] sm:$0xff] %v25398_v3  ;;  %v25404_v6 = vadd.f32 %v8939_v17, %v28508_v28  ;;  %18357 = vmatmul.mubr.msk.bf16.gmra.mrb[44].mxu0 %vm1718_vm0, %v23892_v21  ;;  %v28514_v17 = vld [vmem:[#allocation53_spill] sm:$0xff] }
 0x6f8   : > { %28507 = vst [vmem:[#allocation30_spill] sm:$0xff] %v25401_v32  ;;  %9621 = vmatmul.mubr.bf16.gmra.mrb[120].mxu1 %v24145_v15  ;;  %8665 = vmatprep.mubr.bf16.mxu0 %v28339_v33 }
 0x6f9   : > { %28509 = vst [vmem:[#allocation134_spill] sm:$0xff] %v25404_v6  ;;  %9630 = vmatprep.mubr.bf16.mxu1 %v24147_v18  ;;  %v28516_v6 = vld [vmem:[#allocation54_spill] sm:$0xff] }
 0x6fb   : > { %v8943_v4 = vpop.f32.mrb[16].mxu1 }
 0x6fc   : > { %v25412_v59 = vadd.f32 %v8943_v4, %v28510_v11  ;;  %v8945_v1 = vpop.f32.mrb[17].mxu1  ;;  %v28518_v11 = vld [vmem:[#allocation55_spill] sm:$0xff] }
 0x6fd   : > { %v25415_v0 = vadd.f32 %v8945_v1, %v28512_v62  ;;  %v8947_v32 = vpop.f32.mrb[18].mxu1 }
 0x6fe   : > { %28511 = vst [vmem:[#allocation31_spill] sm:$0xff] %v25412_v59  ;;  %v25418_v28 = vadd.f32 %v8947_v32, %v28514_v17  ;;  %v8949_v25 = vpop.f32.mrb[19].mxu1  ;;  %v28520_v32 = vld [vmem:[#allocation56_spill] sm:$0xff] }
 0x6ff   : > { %28513 = vst [vmem:[#allocation27_spill] sm:$0xff] %v25415_v0  ;;  %v25421_v3 = vadd.f32 %v8949_v25, %v28516_v6  ;;  %18358 = vmatmul.mubr.msk.bf16.gmra.mrb[48].mxu0 %vm1718_vm0, %v28334_v24  ;;  %v28522_v6 = vld [vmem:[#allocation57_spill] sm:$0xff] }
 0x700   : > { %28515 = vst [vmem:[#allocation135_spill] sm:$0xff] %v25418_v28  ;;  %9631 = vmatmul.mubr.bf16.gmra.mrb[124].mxu1 %v28429_v35  ;;  %8675 = vmatprep.mubr.bf16.mxu0 %v28339_v33 }
 0x701   : > { %28517 = vst [vmem:[#allocation32_spill] sm:$0xff] %v25421_v3  ;;  %9640 = vmatprep.mubr.bf16.mxu1 %v28430_v43  ;;  %v28524_v3 = vld [vmem:[#allocation58_spill] sm:$0xff] }
 0x703   : > { %v8953_v4 = vpop.f32.mrb[20].mxu1 }
 0x704   : > { %v25429_v1 = vadd.f32 %v8953_v4, %v28518_v11  ;;  %v8955_v62 = vpop.f32.mrb[21].mxu1  ;;  %v28526_v11 = vld [vmem:[#allocation59_spill] sm:$0xff] }
 0x705   : > { %v25432_v17 = vadd.f32 %v8955_v62, %v28520_v32  ;;  %v8957_v28 = vpop.f32.mrb[22].mxu1 }
 0x706   : > { %28519 = vst [vmem:[#allocation33_spill] sm:$0xff] %v25429_v1  ;;  %v25435_v25 = vadd.f32 %v8957_v28, %v28522_v6  ;;  %v8959_v59 = vpop.f32.mrb[23].mxu1  ;;  %v28528_v28 = vld [vmem:[#allocation60_spill] sm:$0xff] }
 0x707   : > { %28521 = vst [vmem:[#allocation21_spill] sm:$0xff] %v25432_v17  ;;  %v25438_v0 = vadd.f32 %v8959_v59, %v28524_v3  ;;  %18359 = vmatmul.mubr.msk.bf16.gmra.mrb[52].mxu0 %vm1718_vm0, %v28475_v27  ;;  %v28530_v3 = vld [vmem:[#allocation61_spill] sm:$0xff]  ;;  %v28532_v17 = vld [vmem:[#allocation62_spill] sm:$0xff] }
 0x708   : > { %28523 = vst [vmem:[#allocation26_spill] sm:$0xff] %v25435_v25  ;;  %9641 = vmatmul.mubr.bf16.gmra.mrb[128].mxu1 %v28431_v22  ;;  %8685 = vmatprep.mubr.bf16.mxu0 %v28339_v33 }
 0x709   : > { %28525 = vst [vmem:[#allocation49_spill] sm:$0xff] %v25438_v0  ;;  %9650 = vmatprep.mubr.bf16.mxu1 %v28432_v53  ;;  %v22495_v0 = vld [vmem:[#allocation10 + $0xfd4] ss:$36 sps:$4 sm:$0xff]  }
 0x70a   : > { %9285 = vmatprep.subr.bf16.mxu0 %v22495_v0 }
 0x70b   : > { %v8963_v4 = vpop.f32.mrb[24].mxu1 }
 0x70c   : > { %v25446_v62 = vadd.f32 %v8963_v4, %v28526_v11  ;;  %v8965_v32 = vpop.f32.mrb[25].mxu1  ;;  %v28534_v11 = vld [vmem:[#allocation63_spill] sm:$0xff] }
 0x70d   : > { %v25449_v6 = vadd.f32 %v8965_v32, %v28528_v28  ;;  %v8967_v25 = vpop.f32.mrb[26].mxu1  ;;  %v28536_v28 = vld [vmem:[#allocation64_spill] sm:$0xff] }
 0x70e   : > { %28527 = vst [vmem:[#allocation50_spill] sm:$0xff] %v25446_v62  ;;  %v25452_v59 = vadd.f32 %v8967_v25, %v28530_v3  ;;  %v8969_v1 = vpop.f32.mrb[27].mxu1 }
 0x70f   : > { %28529 = vst [vmem:[#allocation51_spill] sm:$0xff] %v25449_v6  ;;  %v25455_v44 = vadd.f32 %v8969_v1, %v28532_v17  ;;  %18360 = vmatmul.mubr.msk.bf16.gmra.mrb[56].mxu0 %vm1718_vm0, %v28480_v23  ;;  %v28538_v17 = vld [vmem:[#allocation65_spill] sm:$0xff] }
 0x710   : > { %28531 = vst [vmem:[#allocation52_spill] sm:$0xff] %v25452_v59  ;;  %9651 = vmatmul.mubr.bf16.gmra.mrb[132].mxu1 %v28433_v58  ;;  %8695 = vmatprep.mubr.bf16.mxu0 %v28339_v33 }
 0x711   : > { %28533 = vst [vmem:[#allocation53_spill] sm:$0xff] %v25455_v44  ;;  %9660 = vmatprep.mubr.bf16.mxu1 %v28339_v33  ;;  %v28540_v44 = vld [vmem:[#allocation66_spill] sm:$0xff] }
 0x713   : > { %v8973_v4 = vpop.f32.mrb[28].mxu1 }
 0x714   : > { %v25463_v32 = vadd.f32 %v8973_v4, %v28534_v11  ;;  %v8975_v25 = vpop.f32.mrb[29].mxu1  ;;  %v28542_v4 = vld [vmem:[#allocation68_spill] sm:$0xff] }
 0x715   : > { %v25466_v3 = vadd.f32 %v8975_v25, %v28536_v28  ;;  %v8977_v1 = vpop.f32.mrb[30].mxu1  ;;  %v28544_v28 = vld [vmem:[#allocation69_spill] sm:$0xff] }
 0x716   : > { %28535 = vst [vmem:[#allocation54_spill] sm:$0xff] %v25463_v32  ;;  %v25469_v59 = vadd.f32 %v8977_v1, %v28538_v17  ;;  %v8979_v62 = vpop.f32.mrb[31].mxu1  ;;  %v22490_v32 = vld [vmem:[#allocation10 + $0x1028] ss:$36 sps:$4 sm:$0xff]  }
 0x717   : > { %28537 = vst [vmem:[#allocation55_spill] sm:$0xff] %v25466_v3  ;;  %v25472_v6 = vadd.f32 %v8979_v62, %v28540_v44  ;;  %8696 = vmatmul.mubr.bf16.gmra.mrb[60].mxu0 %v28339_v33 }
 0x718   : > { %28539 = vst [vmem:[#allocation56_spill] sm:$0xff] %v25469_v59  ;;  %9661 = vmatmul.mubr.bf16.gmra.mrb[136].mxu1 %v28339_v33  ;;  %9124 = vmatprep.mubr.bf16.mxu0 %v28483_v19  ;;  %v28546_v59 = vld [vmem:[#allocation70_spill] sm:$0xff] }
 0x719   : > { %28541 = vst [vmem:[#allocation57_spill] sm:$0xff] %v25472_v6  ;;  %9703 = vmatprep.mubr.bf16.mxu1 %v28339_v33  ;;  %v28548_v6 = vld [vmem:[#allocation71_spill] sm:$0xff] }
 0x71b   : > { %v8983_v0 = vpop.f32.mrb[32].mxu1 }
 0x71c   : > { %v25479_v11 = vadd.f32 %v8983_v0, %v28542_v4  ;;  %v8985_v25 = vpop.f32.mrb[33].mxu1  ;;  %v22498_v0 = vld [vmem:[#allocation10 + $0x101c] ss:$36 sps:$4 sm:$0xff]  }
 0x71d   : > { %v25482_v1 = vadd.f32 %v8985_v25, %v28544_v28  ;;  %v8987_v17 = vpop.f32.mrb[34].mxu1  ;;  %v22496_v25 = vld [vmem:[#allocation10 + $0x1018] ss:$36 sps:$4 sm:$0xff]  }
 0x71e   : > { %28543 = vst [vmem:[#allocation58_spill] sm:$0xff] %v25479_v11  ;;  %v25485_v44 = vadd.f32 %v8987_v17, %v28546_v59  ;;  %v8989_v62 = vpop.f32.mrb[35].mxu1  ;;  %v22491_v59 = vld [vmem:[#allocation10 + $0x1070] ss:$36 sps:$4 sm:$0xff]  }
 0x71f   : > { %28545 = vst [vmem:[#allocation59_spill] sm:$0xff] %v25482_v1  ;;  %v25488_v3 = vadd.f32 %v8989_v62, %v28548_v6  ;;  %9125 = vmatmul.mubr.bf16.vlgmr.msra.gmra.mrb[128].mxu0 %v23971_v49  ;;  %v28550_v6 = vld [vmem:[#allocation73_spill] sm:$0xff]  ;;  %v28552_v62 = vld [vmem:[#allocation74_spill] sm:$0xff] }
 0x720   : > { %28547 = vst [vmem:[#allocation60_spill] sm:$0xff] %v25485_v44  ;;  %18391 = vmatmul.mubr.msk.bf16.vlgmr.msra.gmra.mrb[76].mxu1 %vm1718_vm0, %v28435_v52  ;;  %9134 = vmatprep.mubr.bf16.mxu0 %v23975_v51 }
 0x721   : > { %28549 = vst [vmem:[#allocation61_spill] sm:$0xff] %v25488_v3  ;;  %19258 = vmatpush3.bf16.msra.mxu1 %v25346_v50  ;;  %9713 = vmatprep.mubr.bf16.mxu1 %v28339_v33  ;;  %v28553_v50 = vld [vmem:[#allocation75_spill] sm:$0xff] }
 0x722   : > { %19259 = vmatprep.subr.bf16.mxu1 %v22490_v32  ;;  %9286 = vmatpush1.bf16.msra.mxu0 %v22493_v63  ;;  %v22492_v63 = vld [vmem:[#allocation10 + $0x10b8] ss:$36 sps:$4 sm:$0xff]  }
 0x723   : > { %v8993_v4 = vpop.f32.mrb[36].mxu1  ;;  %9287 = vmatprep.subr.bf16.mxu0 %v22498_v0  ;;  %v22504_v0 = vld [vmem:[#allocation10 + $0x10ac] ss:$36 sps:$4 sm:$0xff]  }
 0x724   : > { %v25497_v28 = vadd.f32 %v8993_v4, %v28550_v6  ;;  %v8995_v17 = vpop.f32.mrb[37].mxu1  ;;  %v22499_v4 = vld [vmem:[#allocation10 + $0x1060] ss:$36 sps:$4 sm:$0xff]  }
 0x725   : > { %v25500_v44 = vadd.f32 %v8995_v17, %v28552_v62  ;;  %v8997_v11 = vpop.f32.mrb[38].mxu1  ;;  %19260 = vmatpush3.bf16.msra.mxu1 %v22490_v32  ;;  %v28559_v17 = vld [vmem:[#allocation78_spill] sm:$0xff] }
 0x726   : > { %28551 = vst [vmem:[#allocation62_spill] sm:$0xff] %v25497_v28  ;;  %v25503_v3 = vadd.f32 %v8997_v11, %v28553_v50  ;;  %v8999_v1 = vpop.f32.mrb[39].mxu1  ;;  %19261 = vmatprep.subr.bf16.mxu1 %v22491_v59  ;;  %9288 = vmatpush1.bf16.msra.mxu0 %v22496_v25  ;;  %v22507_v11 = vld [vmem:[#allocation7 + $0xc] ss:$24 sps:$4 sm:$0xff]  }
 0x727   : > { %v25506_v39 = vadd.f32 %v8999_v1, %v28555_v12  ;;  %9135 = vmatmul.mubr.bf16.gmra.mrb[132].mxu0 %v23989_v60  ;;  %9289 = vmatprep.subr.bf16.mxu0 %v22501_v14  ;;  %v22502_v12 = vld [vmem:[#allocation10 + $0x10a8] ss:$36 sps:$4 sm:$0xff]   ;;  %v28563_v14 = vld [vmem:[#allocation80_spill] sm:$0xff] }
 0x728   : > { %28554 = vst [vmem:[#allocation63_spill] sm:$0xff] %v25503_v3  ;;  %18392 = vmatmul.mubr.msk.bf16.gmra.mrb[80].mxu1 %vm1718_vm0, %v28490_v5  ;;  %9144 = vmatprep.mubr.bf16.mxu0 %v28493_v41  ;;  %v28557_v1 = vld [vmem:[#allocation77_spill] sm:$0xff]  ;;  %v28561_v3 = vld [vmem:[#allocation79_spill] sm:$0xff] }
 0x729   : > { %28556 = vst [vmem:[#allocation64_spill] sm:$0xff] %v25506_v39  ;;  %9723 = vmatprep.mubr.bf16.mxu1 %v28339_v33  ;;  %19262 = vmatpush3.bf16.msra.mxu1 %v22491_v59 }
 0x72a   : > { %19263 = vmatprep.subr.bf16.mxu1 %v22492_v63  ;;  %9290 = vmatpush1.bf16.msra.mxu0 %v22499_v4 }
 0x72b   : > { %v9003_v32 = vpop.f32.mrb[40].mxu1  ;;  %9291 = vmatprep.subr.bf16.mxu0 %v22504_v0  ;;  %v28565_v0 = vld [vmem:[#allocation81_spill] sm:$0xff] }
 0x72c   : > { %v25514_v25 = vadd.f32 %v9003_v32, %v28557_v1  ;;  %v9005_v6 = vpop.f32.mrb[41].mxu1 }
 0x72d   : > { %v25517_v62 = vadd.f32 %v9005_v6, %v28559_v17  ;;  %v9007_v50 = vpop.f32.mrb[42].mxu1  ;;  %19264 = vmatpush3.bf16.msra.mxu1 %v22492_v63  ;;  %v28567_v63 = vld [vmem:[#allocation82_spill] sm:$0xff]  ;;  %v28571_v17 = vld [vmem:[#allocation84_spill] sm:$0xff] }
 0x72e   : > { %28558 = vst [vmem:[#allocation65_spill] sm:$0xff] %v25514_v25  ;;  %v25520_v28 = vadd.f32 %v9007_v50, %v28561_v3  ;;  %v9009_v39 = vpop.f32.mrb[43].mxu1  ;;  %9292 = vmatpush1.bf16.msra.mxu0 %v22502_v12  ;;  %10955 = vmatprep.subr.bf16.mxu1 %v22507_v11  ;;  %v28569_v12 = vld [vmem:[#allocation83_spill] sm:$0xff]  ;;  %v28587_v25 = vld [vmem:[#allocation92_spill] sm:$0xff] }
 0x72f   : > { %28560 = vst [vmem:[#allocation66_spill] sm:$0xff] %v25517_v62  ;;  %v25523_v59 = vadd.f32 %v9009_v39, %v28563_v14  ;;  %9145 = vmatmul.mubr.bf16.gmra.mrb[136].mxu0 %v28496_v31 }
 0x730   : > { %28562 = vst [vmem:[#allocation68_spill] sm:$0xff] %v25520_v28  ;;  %18393 = vmatmul.mubr.msk.bf16.gmra.mrb[84].mxu1 %vm1718_vm0, %v28497_v40  ;;  %9154 = vmatprep.mubr.bf16.mxu0 %v28500_v45 }
 0x731   : > { %28564 = vst [vmem:[#allocation69_spill] sm:$0xff] %v25523_v59  ;;  %9733 = vmatprep.mubr.bf16.mxu1 %v28339_v33 }
 0x733   : > { %v9013_v4 = vpop.f32.mrb[44].mxu1 }
 0x734   : > { %v25531_v3 = vadd.f32 %v9013_v4, %v28565_v0  ;;  %v9015_v32 = vpop.f32.mrb[45].mxu1  ;;  %v28573_v4 = vld [vmem:[#allocation85_spill] sm:$0xff] }
 0x735   : > { %v25534_v1 = vadd.f32 %v9015_v32, %v28567_v63  ;;  %v9017_v39 = vpop.f32.mrb[46].mxu1  ;;  %v28575_v63 = vld [vmem:[#allocation86_spill] sm:$0xff] }
 0x736   : > { %28566 = vst [vmem:[#allocation70_spill] sm:$0xff] %v25531_v3  ;;  %v25537_v11 = vadd.f32 %v9017_v39, %v28569_v12  ;;  %v9019_v6 = vpop.f32.mrb[47].mxu1  ;;  %v28579_v3 = vld [vmem:[#allocation88_spill] sm:$0xff] }
 0x737   : > { %28568 = vst [vmem:[#allocation71_spill] sm:$0xff] %v25534_v1  ;;  %v25540_v50 = vadd.f32 %v9019_v6, %v28571_v17  ;;  %9155 = vmatmul.mubr.bf16.gmra.mrb[140].mxu0 %v28501_v36  ;;  %v28577_v6 = vld [vmem:[#allocation87_spill] sm:$0xff] }
 0x738   : > { %28570 = vst [vmem:[#allocation73_spill] sm:$0xff] %v25537_v11  ;;  %18394 = vmatmul.mubr.msk.bf16.gmra.mrb[88].mxu1 %vm1718_vm0, %v28438_v34  ;;  %9164 = vmatprep.mubr.bf16.mxu0 %v24027_v38 }
 0x739   : > { %28572 = vst [vmem:[#allocation74_spill] sm:$0xff] %v25540_v50  ;;  %9743 = vmatprep.mubr.bf16.mxu1 %v28339_v33  ;;  %v22754_v50 = vld [vmem:[#allocation8 + $0x7c] ss:$12 sps:$4 sm:$0xff]  }
 0x73b   : > { %v9023_v14 = vpop.f32.mrb[48].mxu1 }
 0x73c   : > { %v25548_v0 = vadd.f32 %v9023_v14, %v28573_v4  ;;  %v9025_v32 = vpop.f32.mrb[49].mxu1  ;;  %v28581_v4 = vld [vmem:[#allocation89_spill] sm:$0xff] }
 0x73d   : > { %v25551_v39 = vadd.f32 %v9025_v32, %v28575_v63  ;;  %v9027_v12 = vpop.f32.mrb[50].mxu1 }
 0x73e   : > { %28574 = vst [vmem:[#allocation75_spill] sm:$0xff] %v25548_v0  ;;  %v25554_v17 = vadd.f32 %v9027_v12, %v28577_v6  ;;  %v9029_v11 = vpop.f32.mrb[51].mxu1  ;;  %v28583_v12 = vld [vmem:[#allocation90_spill] sm:$0xff] }
 0x73f   : > { %28576 = vst [vmem:[#allocation76_spill] sm:$0xff] %v25551_v39  ;;  %v25557_v28 = vadd.f32 %v9029_v11, %v28579_v3  ;;  %9165 = vmatmul.mubr.bf16.gmra.mrb[144].mxu0 %v24040_v47  ;;  %v28585_v3 = vld [vmem:[#allocation91_spill] sm:$0xff] }
 0x740   : > { %28578 = vst [vmem:[#allocation77_spill] sm:$0xff] %v25554_v17  ;;  %18395 = vmatmul.mubr.msk.bf16.gmra.mrb[92].mxu1 %vm1718_vm0, %v23991_v61  ;;  %9174 = vmatprep.mubr.bf16.mxu0 %v24044_v48 }
 0x741   : > { %28580 = vst [vmem:[#allocation78_spill] sm:$0xff] %v25557_v28  ;;  %9753 = vmatprep.mubr.bf16.mxu1 %v28339_v33 }
 0x743   : > { %v9033_v14 = vpop.f32.mrb[52].mxu1 }
 0x744   : > { %v25565_v32 = vadd.f32 %v9033_v14, %v28581_v4  ;;  %v9035_v63 = vpop.f32.mrb[53].mxu1  ;;  %v28589_v4 = vld [vmem:[#allocation93_spill] sm:$0xff] }
 0x745   : > { %v25568_v6 = vadd.f32 %v9035_v63, %v28583_v12  ;;  %v9037_v17 = vpop.f32.mrb[54].mxu1 }
 0x746   : > { %28582 = vst [vmem:[#allocation79_spill] sm:$0xff] %v25565_v32  ;;  %v25571_v11 = vadd.f32 %v9037_v17, %v28585_v3  ;;  %v9039_v0 = vpop.f32.mrb[55].mxu1  ;;  %v28591_v17 = vld [vmem:[#allocation94_spill] sm:$0xff] }
 0x747   : > { %28584 = vst [vmem:[#allocation80_spill] sm:$0xff] %v25568_v6  ;;  %v25574_v28 = vadd.f32 %v9039_v0, %v28587_v25  ;;  %9175 = vmatmul.mubr.bf16.gmra.mrb[148].mxu0 %v24057_v55  ;;  %v28593_v25 = vld [vmem:[#allocation95_spill] sm:$0xff] }
 0x748   : > { %28586 = vst [vmem:[#allocation81_spill] sm:$0xff] %v25571_v11  ;;  %18396 = vmatmul.mubr.msk.bf16.gmra.mrb[96].mxu1 %vm1718_vm0, %v24008_v20  ;;  %9184 = vmatprep.mubr.bf16.mxu0 %v24061_v56 }
 0x749   : > { %28588 = vst [vmem:[#allocation82_spill] sm:$0xff] %v25574_v28  ;;  %9763 = vmatprep.mubr.bf16.mxu1 %v28339_v33  ;;  %v28595_v28 = vld [vmem:[#allocation96_spill] sm:$0xff] }
 0x74b   : > { %v9043_v14 = vpop.f32.mrb[56].mxu1 }
 0x74c   : > { %v25582_v63 = vadd.f32 %v9043_v14, %v28589_v4  ;;  %v9045_v12 = vpop.f32.mrb[57].mxu1  ;;  %v28597_v4 = vld [vmem:[#allocation97_spill] sm:$0xff] }
 0x74d   : > { %v25585_v3 = vadd.f32 %v9045_v12, %v28591_v17  ;;  %v9047_v11 = vpop.f32.mrb[58].mxu1 }
 0x74e   : > { %28590 = vst [vmem:[#allocation83_spill] sm:$0xff] %v25582_v63  ;;  %v25588_v0 = vadd.f32 %v9047_v11, %v28593_v25  ;;  %v9049_v32 = vpop.f32.mrb[59].mxu1  ;;  %v28599_v11 = vld [vmem:[#allocation98_spill] sm:$0xff] }
 0x74f   : > { %28592 = vst [vmem:[#allocation84_spill] sm:$0xff] %v25585_v3  ;;  %v25591_v6 = vadd.f32 %v9049_v32, %v28595_v28  ;;  %9185 = vmatmul.mubr.bf16.gmra.mrb[152].mxu0 %v24074_v7  ;;  %v28601_v28 = vld [vmem:[#allocation99_spill] sm:$0xff] }
 0x750   : > { %28594 = vst [vmem:[#allocation85_spill] sm:$0xff] %v25588_v0  ;;  %18397 = vmatmul.mubr.msk.bf16.gmra.mrb[100].mxu1 %vm1718_vm0, %v24025_v37  ;;  %9194 = vmatprep.mubr.bf16.mxu0 %v24078_v13 }
 0x751   : > { %28596 = vst [vmem:[#allocation86_spill] sm:$0xff] %v25591_v6  ;;  %9773 = vmatprep.mubr.bf16.mxu1 %v28339_v33  ;;  %v28603_v6 = vld [vmem:[#allocation100_spill] sm:$0xff] }
 0x753   : > { %v9053_v14 = vpop.f32.mrb[60].mxu1 }
 0x754   : > { %v25599_v12 = vadd.f32 %v9053_v14, %v28597_v4  ;;  %v9055_v17 = vpop.f32.mrb[61].mxu1  ;;  %v28605_v4 = vld [vmem:[#allocation101_spill] sm:$0xff] }
 0x755   : > { %v25602_v25 = vadd.f32 %v9055_v17, %v28599_v11  ;;  %v9057_v0 = vpop.f32.mrb[62].mxu1 }
 0x756   : > { %28598 = vst [vmem:[#allocation87_spill] sm:$0xff] %v25599_v12  ;;  %v25605_v32 = vadd.f32 %v9057_v0, %v28601_v28  ;;  %v9059_v63 = vpop.f32.mrb[63].mxu1  ;;  %v28607_v0 = vld [vmem:[#allocation102_spill] sm:$0xff] }
 0x757   : > { %28600 = vst [vmem:[#allocation88_spill] sm:$0xff] %v25602_v25  ;;  %v25608_v3 = vadd.f32 %v9059_v63, %v28603_v6  ;;  %9195 = vmatmul.mubr.bf16.gmra.mrb[156].mxu0 %v24091_v26  ;;  %v28609_v6 = vld [vmem:[#allocation103_spill] sm:$0xff] }
 0x758   : > { %28602 = vst [vmem:[#allocation89_spill] sm:$0xff] %v25605_v32  ;;  %18398 = vmatmul.mubr.msk.bf16.gmra.mrb[104].mxu1 %vm1718_vm0, %v24042_v8  ;;  %9204 = vmatprep.mubr.bf16.mxu0 %v24095_v30 }
 0x759   : > { %28604 = vst [vmem:[#allocation90_spill] sm:$0xff] %v25608_v3  ;;  %9783 = vmatprep.mubr.bf16.mxu1 %v28339_v33  ;;  %v28611_v3 = vld [vmem:[#allocation104_spill] sm:$0xff] }
 0x75b   : > { %v9063_v14 = vpop.f32.mrb[64].mxu1 }
 0x75c   : > { %v25616_v17 = vadd.f32 %v9063_v14, %v28605_v4  ;;  %v9065_v11 = vpop.f32.mrb[65].mxu1  ;;  %v28613_v4 = vld [vmem:[#allocation105_spill] sm:$0xff] }
 0x75d   : > { %v25619_v28 = vadd.f32 %v9065_v11, %v28607_v0  ;;  %v9067_v32 = vpop.f32.mrb[66].mxu1 }
 0x75e   : > { %28606 = vst [vmem:[#allocation91_spill] sm:$0xff] %v25616_v17  ;;  %v25622_v63 = vadd.f32 %v9067_v32, %v28609_v6  ;;  %v9069_v12 = vpop.f32.mrb[67].mxu1  ;;  %v28615_v32 = vld [vmem:[#allocation106_spill] sm:$0xff] }
 0x75f   : > { %28608 = vst [vmem:[#allocation92_spill] sm:$0xff] %v25619_v28  ;;  %v25625_v25 = vadd.f32 %v9069_v12, %v28611_v3  ;;  %9205 = vmatmul.mubr.bf16.gmra.mrb[160].mxu0 %v24106_v2  ;;  %v28617_v3 = vld [vmem:[#allocation107_spill] sm:$0xff] }
 0x760   : > { %28610 = vst [vmem:[#allocation93_spill] sm:$0xff] %v25622_v63  ;;  %18399 = vmatmul.mubr.msk.bf16.gmra.mrb[108].mxu1 %vm1718_vm0, %v24059_v16  ;;  %9214 = vmatprep.mubr.bf16.mxu0 %v24108_v42 }
 0x761   : > { %28612 = vst [vmem:[#allocation94_spill] sm:$0xff] %v25625_v25  ;;  %9793 = vmatprep.mubr.bf16.mxu1 %v28339_v33  ;;  %v28619_v25 = vld [vmem:[#allocation108_spill] sm:$0xff] }
 0x763   : > { %v9073_v14 = vpop.f32.mrb[68].mxu1 }
 0x764   : > { %v25633_v11 = vadd.f32 %v9073_v14, %v28613_v4  ;;  %v9075_v0 = vpop.f32.mrb[69].mxu1  ;;  %v28621_v4 = vld [vmem:[#allocation109_spill] sm:$0xff] }
 0x765   : > { %v25636_v6 = vadd.f32 %v9075_v0, %v28615_v32  ;;  %v9077_v63 = vpop.f32.mrb[70].mxu1 }
 0x766   : > { %28614 = vst [vmem:[#allocation95_spill] sm:$0xff] %v25633_v11  ;;  %v25639_v12 = vadd.f32 %v9077_v63, %v28617_v3  ;;  %v9079_v17 = vpop.f32.mrb[71].mxu1  ;;  %v28623_v63 = vld [vmem:[#allocation110_spill] sm:$0xff] }
 0x767   : > { %28616 = vst [vmem:[#allocation96_spill] sm:$0xff] %v25636_v6  ;;  %v25642_v28 = vadd.f32 %v9079_v17, %v28619_v25  ;;  %9215 = vmatmul.mubr.bf16.gmra.mrb[164].mxu0 %v24119_v46  ;;  %v28625_v25 = vld [vmem:[#allocation111_spill] sm:$0xff] }
 0x768   : > { %28618 = vst [vmem:[#allocation97_spill] sm:$0xff] %v25639_v12  ;;  %18400 = vmatmul.mubr.msk.bf16.gmra.mrb[112].mxu1 %vm1718_vm0, %v24076_v9  ;;  %9224 = vmatprep.mubr.bf16.mxu0 %v24121_v10 }
 0x769   : > { %28620 = vst [vmem:[#allocation98_spill] sm:$0xff] %v25642_v28  ;;  %9803 = vmatprep.mubr.bf16.mxu1 %v28339_v33  ;;  %v28627_v28 = vld [vmem:[#allocation112_spill] sm:$0xff] }
 0x76b   : > { %v9083_v14 = vpop.f32.mrb[72].mxu1 }
 0x76c   : > { %v25650_v0 = vadd.f32 %v9083_v14, %v28621_v4  ;;  %v9085_v32 = vpop.f32.mrb[73].mxu1  ;;  %v22539_v14 = vld [vmem:[#allocation10 + $0xb60] ss:$36 sps:$4 sm:$0xff]   ;;  %v22540_v4 = vld [vmem:[#allocation10 + $0xde8] ss:$36 sps:$4 sm:$0xff]  }
 0x76d   : > { %v25653_v3 = vadd.f32 %v9085_v32, %v28623_v63  ;;  %v9087_v12 = vpop.f32.mrb[74].mxu1  ;;  %v22508_v32 = vld [vmem:[#allocation7 + $0x38] ss:$24 sps:$4 sm:$0xff]   ;;  %v22513_v63 = vld [vmem:[#allocation7 + $0x6c] ss:$24 sps:$4 sm:$0xff]  }
 0x76e   : > { %28622 = vst [vmem:[#allocation99_spill] sm:$0xff] %v25650_v0  ;;  %v25656_v17 = vadd.f32 %v9087_v12, %v28625_v25  ;;  %v9089_v11 = vpop.f32.mrb[75].mxu1  ;;  %v22510_v12 = vld [vmem:[#allocation7 + $0x3c] ss:$24 sps:$4 sm:$0xff]   ;;  %v22541_v25 = vld [vmem:[#allocation10 + $0xba8] ss:$36 sps:$4 sm:$0xff]  }
 0x76f   : > { %28624 = vst [vmem:[#allocation100_spill] sm:$0xff] %v25653_v3  ;;  %v25659_v6 = vadd.f32 %v9089_v11, %v28627_v28  ;;  %9225 = vmatmul.mubr.bf16.gmra.mrb[168].mxu0 %v24132_v54  ;;  %v22535_v28 = vld [vmem:[#allocation10 + $0xda0] ss:$36 sps:$4 sm:$0xff]   ;;  %v22543_v0 = vld [vmem:[#allocation10 + $0xbf0] ss:$36 sps:$4 sm:$0xff]  }
 0x770   : > { %28626 = vst [vmem:[#allocation101_spill] sm:$0xff] %v25656_v17  ;;  %18401 = vmatmul.mubr.msk.bf16.gmra.mrb[116].mxu1 %vm1718_vm0, %v24093_v29  ;;  %9234 = vmatprep.mubr.bf16.mxu0 %v24134_v57  ;;  %v22505_v11 = vld [vmem:[#allocation7 + $0x8] ss:$24 sps:$4 sm:$0xff]   ;;  %v22516_v17 = vld [vmem:[#allocation7 + $0x9c] ss:$24 sps:$4 sm:$0xff]  }
 0x771   : > { %28628 = vst [vmem:[#allocation102_spill] sm:$0xff] %v25659_v6  ;;  %9813 = vmatprep.mubr.bf16.mxu1 %v28339_v33  ;;  %18973 = vmatprep.subr.bf16.mxu0 %v22535_v28  ;;  %v22511_v28 = vld [vmem:[#allocation7 + $0x68] ss:$24 sps:$4 sm:$0xff]   ;;  %v22664_v3 = vld [vmem:[#allocation7 + $0x2e4] ss:$24 sps:$4 sm:$0xff]  }
 0x777   : > { %9235 = vmatmul.mubr.bf16.gmra.mrb[172].mxu0 %v24145_v15 }
 0x778   : > { %18402 = vmatmul.mubr.msk.bf16.gmra.mrb[120].mxu1 %vm1718_vm0, %v23892_v21  ;;  %9244 = vmatprep.mubr.bf16.mxu0 %v24147_v18 }
 0x779   : > { %9823 = vmatprep.mubr.bf16.mxu1 %v28339_v33 }
 0x77f   : > { %9245 = vmatmul.mubr.bf16.gmra.mrb[176].mxu0 %v28429_v35 }
 0x780   : > { %18403 = vmatmul.mubr.msk.bf16.gmra.mrb[124].mxu1 %vm1718_vm0, %v28334_v24  ;;  %9254 = vmatprep.mubr.bf16.mxu0 %v28430_v43 }
 0x781   : > { %9833 = vmatprep.mubr.bf16.mxu1 %v28339_v33 }
 0x787   : > { %9255 = vmatmul.mubr.bf16.gmra.mrb[180].mxu0 %v28431_v22 }
 0x788   : > { %18404 = vmatmul.mubr.msk.bf16.gmra.mrb[128].mxu1 %vm1718_vm0, %v28475_v27  ;;  %9264 = vmatprep.mubr.bf16.mxu0 %v28432_v53 }
 0x789   : > { %9843 = vmatprep.mubr.bf16.mxu1 %v28339_v33 }
 0x78f   : > { %9265 = vmatmul.mubr.bf16.gmra.mrb[184].mxu0 %v28433_v58 }
 0x790   : > { %18405 = vmatmul.mubr.msk.bf16.gmra.mrb[132].mxu1 %vm1718_vm0, %v28480_v23  ;;  %9274 = vmatprep.mubr.bf16.mxu0 %v28339_v33 }
 0x791   : > { %9853 = vmatprep.mubr.bf16.mxu1 %v28339_v33 }
 0x797   : > { %9275 = vmatmul.mubr.bf16.gmra.mrb[188].mxu0 %v28339_v33 }
 0x798   : > { %9854 = vmatmul.mubr.bf16.gmra.mrb[136].mxu1 %v28339_v33  ;;  %9317 = vmatprep.mubr.bf16.mxu0 %v28339_v33 }
 0x799   : > { %19265 = vmatprep.mubr.msk.bf16.mxu1 %vm1718_vm0, %v28435_v52 }
 0x79f   : > { %18376 = vmatmul.mubr.msk.bf16.vlgmr.msra.gmra.mrb[128].mxu0 %vm1718_vm0, %v28435_v52  ;;  %v22542_v52 = vld [vmem:[#allocation10 + $0xe30] ss:$36 sps:$4 sm:$0xff]  }
 0x7a0   : > { %19266 = vmatmul.mubr.msk.bf16.vlgmr.msra.gmra.mrb[140].mxu1 %vm1718_vm0, %v28490_v5  ;;  %9327 = vmatprep.mubr.bf16.mxu0 %v28339_v33 }
 0x7a1   : > { %10956 = vmatpush1.bf16.msra.mxu1 %v22505_v11  ;;  %19269 = vmatprep.mubr.msk.bf16.mxu1 %vm1718_vm0, %v28497_v40  ;;  %v22544_v11 = vld [vmem:[#allocation10 + $0xe78] ss:$36 sps:$4 sm:$0xff]  }
 0x7a2   : > { %10957 = vmatprep.subr.bf16.mxu1 %v22510_v12  ;;  %18974 = vmatpush3.bf16.msra.mxu0 %v22539_v14  ;;  %v22514_v12 = vld [vmem:[#allocation7 + $0x98] ss:$24 sps:$4 sm:$0xff]   ;;  %v22519_v14 = vld [vmem:[#allocation7 + $0xcc] ss:$24 sps:$4 sm:$0xff]  }
 0x7a3   : > { %18975 = vmatprep.subr.bf16.mxu0 %v22540_v4  ;;  %v22545_v4 = vld [vmem:[#allocation10 + $0xc38] ss:$36 sps:$4 sm:$0xff]  }
 0x7a5   : > { %10958 = vmatpush1.bf16.msra.mxu1 %v22508_v32  ;;  %v22517_v32 = vld [vmem:[#allocation7 + $0xc8] ss:$24 sps:$4 sm:$0xff]  }
 0x7a6   : > { %10959 = vmatprep.subr.bf16.mxu1 %v22513_v63  ;;  %18976 = vmatpush3.bf16.msra.mxu0 %v22541_v25  ;;  %v22522_v63 = vld [vmem:[#allocation7 + $0xfc] ss:$24 sps:$4 sm:$0xff]   ;;  %v22550_v25 = vld [vmem:[#allocation10 + $0xc80] ss:$36 sps:$4 sm:$0xff]  }
 0x7a7   : > { %18377 = vmatmul.mubr.msk.bf16.gmra.mrb[132].mxu0 %vm1718_vm0, %v28490_v5  ;;  %18977 = vmatprep.subr.bf16.mxu0 %v22542_v52  ;;  %v22546_v5 = vld [vmem:[#allocation10 + $0xec0] ss:$36 sps:$4 sm:$0xff]   ;;  %v22552_v52 = vld [vmem:[#allocation10 + $0xcc8] ss:$36 sps:$4 sm:$0xff]  }
 0x7a8   : > { %19270 = vmatmul.mubr.msk.bf16.gmra.mrb[144].mxu1 %vm1718_vm0, %v28438_v34  ;;  %9337 = vmatprep.mubr.bf16.mxu0 %v28339_v33 }
 0x7a9   : > { %19273 = vmatprep.mubr.msk.bf16.mxu1 %vm1718_vm0, %v23991_v61  ;;  %10960 = vmatpush1.bf16.msra.mxu1 %v22511_v28  ;;  %v22551_v28 = vld [vmem:[#allocation10 + $0xf08] ss:$36 sps:$4 sm:$0xff]  }
 0x7aa   : > { %10961 = vmatprep.subr.bf16.mxu1 %v22516_v17  ;;  %18978 = vmatpush3.bf16.msra.mxu0 %v22543_v0  ;;  %v22520_v0 = vld [vmem:[#allocation7 + $0xf8] ss:$24 sps:$4 sm:$0xff]   ;;  %v22525_v17 = vld [vmem:[#allocation7 + $0x12c] ss:$24 sps:$4 sm:$0xff]  }
 0x7ab   : > { %18979 = vmatprep.subr.bf16.mxu0 %v22544_v11  ;;  %v22523_v11 = vld [vmem:[#allocation7 + $0x128] ss:$24 sps:$4 sm:$0xff]  }
 0x7ad   : > { %10962 = vmatpush1.bf16.msra.mxu1 %v22514_v12  ;;  %v22528_v12 = vld [vmem:[#allocation7 + $0x15c] ss:$24 sps:$4 sm:$0xff]  }
 0x7ae   : > { %10963 = vmatprep.subr.bf16.mxu1 %v22519_v14  ;;  %18980 = vmatpush3.bf16.msra.mxu0 %v22545_v4  ;;  %v22554_v14 = vld [vmem:[#allocation10 + $0xd10] ss:$36 sps:$4 sm:$0xff]   ;;  %v22555_v4 = vld [vmem:[#allocation10 + $0xf98] ss:$36 sps:$4 sm:$0xff]  }
 0x7af   : > { %18378 = vmatmul.mubr.msk.bf16.gmra.mrb[136].mxu0 %vm1718_vm0, %v28497_v40  ;;  %18981 = vmatprep.subr.bf16.mxu0 %v22546_v5  ;;  %v22553_v40 = vld [vmem:[#allocation10 + $0xf50] ss:$36 sps:$4 sm:$0xff]  }
 0x7b0   : > { %19274 = vmatmul.mubr.msk.bf16.gmra.mrb[148].mxu1 %vm1718_vm0, %v24008_v20  ;;  %9347 = vmatprep.mubr.bf16.mxu0 %v28339_v33  ;;  %v22531_v5 = vld [vmem:[#allocation7 + $0x14] ss:$24 sps:$4 sm:$0xff]  }
 0x7b1   : > { %19277 = vmatprep.mubr.msk.bf16.mxu1 %vm1718_vm0, %v24025_v37  ;;  %10964 = vmatpush1.bf16.msra.mxu1 %v22517_v32  ;;  %v22526_v32 = vld [vmem:[#allocation7 + $0x158] ss:$24 sps:$4 sm:$0xff]  }
 0x7b2   : > { %10965 = vmatprep.subr.bf16.mxu1 %v22522_v63  ;;  %18982 = vmatpush3.bf16.msra.mxu0 %v22550_v25  ;;  %v22556_v63 = vld [vmem:[#allocation10 + $0xd58] ss:$36 sps:$4 sm:$0xff]   ;;  %v22538_v25 = vld [vmem:[#allocation7 + $0x74] ss:$24 sps:$4 sm:$0xff]  }
 0x7b3   : > { %18983 = vmatprep.subr.bf16.mxu0 %v22551_v28 }
 0x7b5   : > { %10966 = vmatpush1.bf16.msra.mxu1 %v22520_v0  ;;  %v22536_v0 = vld [vmem:[#allocation7 + $0x70] ss:$24 sps:$4 sm:$0xff]  }
 0x7b6   : > { %10967 = vmatprep.subr.bf16.mxu1 %v22525_v17  ;;  %18984 = vmatpush3.bf16.msra.mxu0 %v22552_v52  ;;  %v408_v17 = vld [vmem:[%s23839_s19 + $0x10] sm:$0xff]  ;;  %v409_v52 = vld [vmem:[%s23839_s19 + $0x18] sm:$0xff] }
 0x7b7   : > { %18379 = vmatmul.mubr.msk.bf16.gmra.mrb[140].mxu0 %vm1718_vm0, %v28438_v34  ;;  %18985 = vmatprep.subr.bf16.mxu0 %v22553_v40  ;;  %v22532_v34 = vld [vmem:[#allocation7 + $0x40] ss:$24 sps:$4 sm:$0xff]   ;;  %v22559_v40 = vld [vmem:[#allocation7 + $0xd4] ss:$24 sps:$4 sm:$0xff]  }
 0x7b8   : > { %19278 = vmatmul.mubr.msk.bf16.gmra.mrb[152].mxu1 %vm1718_vm0, %v24042_v8  ;;  %9357 = vmatprep.mubr.bf16.mxu0 %v28339_v33 }
 0x7b9   : > { %19281 = vmatprep.mubr.msk.bf16.mxu1 %vm1718_vm0, %v24059_v16  ;;  %10968 = vmatpush1.bf16.msra.mxu1 %v22523_v11  ;;  %v22547_v11 = vld [vmem:[#allocation7 + $0xa0] ss:$24 sps:$4 sm:$0xff]  }
 0x7ba   : > { %10969 = vmatprep.subr.bf16.mxu1 %v22528_v12  ;;  %18986 = vmatpush3.bf16.msra.mxu0 %v22554_v14  ;;  %v25761_v12 = vpack.c.bf16 %v409_v52, %v408_v17  ;;  %v22557_v14 = vld [vmem:[#allocation7 + $0xd0] ss:$24 sps:$4 sm:$0xff]  }
 0x7bb   : > { %18987 = vmatprep.subr.bf16.mxu0 %v22555_v4  ;;  %v410_v4 = vld [vmem:[%s23839_s19 + $0x20] sm:$0xff]  ;;  %v415_v17 = vld [vmem:[%s23839_s19 + $0x48] sm:$0xff] }
 0x7bd   : > { %10970 = vmatpush1.bf16.msra.mxu1 %v22526_v32  ;;  %v411_v32 = vld [vmem:[%s23839_s19 + $0x28] sm:$0xff] }
 0x7be   : > { %11148 = vmatprep.subr.bf16.mxu1 %v22531_v5  ;;  %18988 = vmatpush3.bf16.msra.mxu0 %v22556_v63  ;;  %v22560_v5 = vld [vmem:[#allocation7 + $0x100] ss:$24 sps:$4 sm:$0xff]   ;;  %v22565_v63 = vld [vmem:[#allocation7 + $0x134] ss:$24 sps:$4 sm:$0xff]  }
 0x7bf   : > { %18380 = vmatmul.mubr.msk.bf16.gmra.mrb[144].mxu0 %vm1718_vm0, %v23991_v61  ;;  %v22529_v61 = vld [vmem:[#allocation7 + $0x10] ss:$24 sps:$4 sm:$0xff]  }
 0x7c0   : > { %19282 = vmatmul.mubr.msk.bf16.gmra.mrb[156].mxu1 %vm1718_vm0, %v24076_v9  ;;  %9367 = vmatprep.mubr.bf16.mxu0 %v28339_v33 }
 0x7c1   : > { %19285 = vmatprep.mubr.msk.bf16.mxu1 %vm1718_vm0, %v24093_v29 }
 0x7c7   : > { %18381 = vmatmul.mubr.msk.bf16.gmra.mrb[148].mxu0 %vm1718_vm0, %v24008_v20  ;;  %v22534_v20 = vld [vmem:[#allocation7 + $0x44] ss:$24 sps:$4 sm:$0xff]  }
 0x7c8   : > { %19286 = vmatmul.mubr.msk.bf16.gmra.mrb[160].mxu1 %vm1718_vm0, %v23892_v21  ;;  %9377 = vmatprep.mubr.bf16.mxu0 %v28339_v33 }
 0x7c9   : > { %19289 = vmatprep.mubr.msk.bf16.mxu1 %vm1718_vm0, %v28334_v24 }
 0x7cf   : > { %18382 = vmatmul.mubr.msk.bf16.gmra.mrb[152].mxu0 %vm1718_vm0, %v24025_v37  ;;  %v406_v37 = vld [vmem:[%s23839_s19] sm:$0xff] }
 0x7d0   : > { %19290 = vmatmul.mubr.msk.bf16.gmra.mrb[164].mxu1 %vm1718_vm0, %v28475_v27  ;;  %9387 = vmatprep.mubr.bf16.mxu0 %v28339_v33 }
 0x7d1   : > { %19293 = vmatprep.mubr.msk.bf16.mxu1 %vm1718_vm0, %v28480_v23 }
 0x7d7   : > { %18383 = vmatmul.mubr.msk.bf16.gmra.mrb[156].mxu0 %vm1718_vm0, %v24042_v8  ;;  %v407_v8 = vld [vmem:[%s23839_s19 + $0x8] sm:$0xff] }
 0x7d8   : > { %19294 = vmatmul.mubr.bf16.gmra.mrb[168].mxu1 %v28339_v33  ;;  %9397 = vmatprep.mubr.bf16.mxu0 %v28339_v33  ;;  %v25752_v28 = vpack.c.bf16 %v407_v8, %v406_v37  ;;  %v412_v37 = vld [vmem:[%s23839_s19 + $0x30] sm:$0xff]  ;;  %v413_v8 = vld [vmem:[%s23839_s19 + $0x38] sm:$0xff] }
 0x7d9   : > { %10987 = vmatprep.mubr.bf16.mxu1 %v28339_v33 }
 0x7df   : > { %18384 = vmatmul.mubr.msk.bf16.gmra.mrb[160].mxu0 %vm1718_vm0, %v24059_v16  ;;  %v22549_v16 = vld [vmem:[#allocation7 + $0xa4] ss:$24 sps:$4 sm:$0xff]  }
 0x7e0   : > { %10988 = vmatmul.mubr.bf16.vlgmr.msra.gmra.mrb[236].mxu1 %v28339_v33  ;;  %9407 = vmatprep.mubr.bf16.mxu0 %v28339_v33 }
 0x7e1   : > { %11149 = vmatpush1.bf16.msra.mxu1 %v22529_v61  ;;  %10997 = vmatprep.mubr.bf16.mxu1 %v28339_v33  ;;  %v25770_v61 = vpack.c.bf16 %v411_v32, %v410_v4  ;;  %v421_v4 = vld [vmem:[%s23839_s19 + $0x78] sm:$0xff] }
 0x7e2   : > { %11150 = vmatprep.subr.bf16.mxu1 %v22534_v20  ;;  %v22563_v20 = vld [vmem:[#allocation7 + $0x130] ss:$24 sps:$4 sm:$0xff]  }
 0x7e5   : > { %11151 = vmatpush1.bf16.msra.mxu1 %v22532_v34  ;;  %v22566_v34 = vld [vmem:[#allocation7 + $0x160] ss:$24 sps:$4 sm:$0xff]  }
 0x7e6   : > { %11152 = vmatprep.subr.bf16.mxu1 %v22538_v25  ;;  %v22571_v25 = vld [vmem:[#allocation7 + $0x18c] ss:$24 sps:$4 sm:$0xff]  }
 0x7e7   : > { %18385 = vmatmul.mubr.msk.bf16.gmra.mrb[164].mxu0 %vm1718_vm0, %v24076_v9  ;;  %v22562_v9 = vld [vmem:[#allocation7 + $0x104] ss:$24 sps:$4 sm:$0xff]  }
 0x7e8   : > { %10998 = vmatmul.mubr.bf16.gmra.mrb[240].mxu1 %v25752_v28  ;;  %9417 = vmatprep.mubr.bf16.mxu0 %v28339_v33 }
 0x7e9   : > { %11007 = vmatprep.mubr.bf16.mxu1 %v28339_v33  ;;  %11153 = vmatpush1.bf16.msra.mxu1 %v22536_v0  ;;  %v25779_v0 = vpack.c.bf16 %v413_v8, %v412_v37  ;;  %v22586_v37 = vld [vmem:[#allocation7 + $0x64] ss:$24 sps:$4 sm:$0xff]  }
 0x7ea   : > { %11154 = vmatprep.subr.bf16.mxu1 %v22549_v16  ;;  %v414_v16 = vld [vmem:[%s23839_s19 + $0x40] sm:$0xff] }
 0x7eb   : > { %v25788_v52 = vpack.c.bf16 %v415_v17, %v414_v16  ;;  %v22592_v16 = vld [vmem:[#allocation7 + $0xc4] ss:$24 sps:$4 sm:$0xff]  }
 0x7ed   : > { %11155 = vmatpush1.bf16.msra.mxu1 %v22547_v11  ;;  %v417_v11 = vld [vmem:[%s23839_s19 + $0x58] sm:$0xff] }
 0x7ee   : > { %11156 = vmatprep.subr.bf16.mxu1 %v22559_v40 }
 0x7ef   : > { %18386 = vmatmul.mubr.msk.bf16.gmra.mrb[168].mxu0 %vm1718_vm0, %v24093_v29  ;;  %v22568_v29 = vld [vmem:[#allocation7 + $0x164] ss:$24 sps:$4 sm:$0xff]  }
 0x7f0   : > { %11008 = vmatmul.mubr.bf16.gmra.mrb[244].mxu1 %v25761_v12  ;;  %9427 = vmatprep.mubr.bf16.mxu0 %v28339_v33 }
 0x7f1   : > { %11017 = vmatprep.mubr.bf16.mxu1 %v28339_v33  ;;  %11157 = vmatpush1.bf16.msra.mxu1 %v22557_v14  ;;  %v419_v14 = vld [vmem:[%s23839_s19 + $0x68] sm:$0xff] }
 0x7f2   : > { %11158 = vmatprep.subr.bf16.mxu1 %v22562_v9 }
 0x7f5   : > { %11159 = vmatpush1.bf16.msra.mxu1 %v22560_v5  ;;  %v22575_v5 = vld [vmem:[#allocation7] ss:$24 sps:$4 sm:$0xff]  }
 0x7f6   : > { %11160 = vmatprep.subr.bf16.mxu1 %v22565_v63  ;;  %v22583_v63 = vld [vmem:[#allocation7 + $0x34] ss:$24 sps:$4 sm:$0xff]  }
 0x7f7   : > { %18387 = vmatmul.mubr.msk.bf16.gmra.mrb[172].mxu0 %vm1718_vm0, %v23892_v21  ;;  %v22577_v21 = vld [vmem:[#allocation7 + $0x4] ss:$24 sps:$4 sm:$0xff]  }
 0x7f8   : > { %11018 = vmatmul.mubr.bf16.gmra.mrb[248].mxu1 %v25770_v61  ;;  %9437 = vmatprep.mubr.bf16.mxu0 %v28339_v33 }
 0x7f9   : > { %11027 = vmatprep.mubr.bf16.mxu1 %v28339_v33  ;;  %11161 = vmatpush1.bf16.msra.mxu1 %v22563_v20  ;;  %v422_v20 = vld [vmem:[%s23839_s19 + $0x80] sm:$0xff] }
 0x7fa   : > { %11162 = vmatprep.subr.bf16.mxu1 %v22568_v29  ;;  %10762 = vmatprep.subr.bf16.mxu0 %v22577_v21  ;;  %v22581_v29 = vld [vmem:[#allocation7 + $0x30] ss:$24 sps:$4 sm:$0xff]  }
 0x7fb   : > { %v22587_v21 = vld [vmem:[#allocation7 + $0x90] ss:$24 sps:$4 sm:$0xff]  }
 0x7fd   : > { %11163 = vmatpush1.bf16.msra.mxu1 %v22566_v34  ;;  %v22584_v34 = vld [vmem:[#allocation7 + $0x60] ss:$24 sps:$4 sm:$0xff]  }
 0x7fe   : > { %12015 = vmatprep.subr.bf16.mxu1 %v22571_v25  ;;  %v425_v25 = vld [vmem:[%s23839_s19 + $0x98] sm:$0xff] }
 0x7ff   : > { %18388 = vmatmul.mubr.msk.bf16.gmra.mrb[176].mxu0 %vm1718_vm0, %v28334_v24  ;;  %v416_v24 = vld [vmem:[%s23839_s19 + $0x50] sm:$0xff] }
 0x800   : > { %11028 = vmatmul.mubr.bf16.gmra.mrb[252].mxu1 %v25779_v0  ;;  %9447 = vmatprep.mubr.bf16.mxu0 %v28339_v33  ;;  %v25797_v40 = vpack.c.bf16 %v417_v11, %v416_v24  ;;  %v22590_v24 = vld [vmem:[#allocation7 + $0xc0] ss:$24 sps:$4 sm:$0xff]   ;;  %v427_v11 = vld [vmem:[%s23839_s19 + $0xa8] sm:$0xff] }
 0x801   : > { %11037 = vmatprep.mubr.bf16.mxu1 %v28339_v33 }
 0x807   : > { %18389 = vmatmul.mubr.msk.bf16.gmra.mrb[180].mxu0 %vm1718_vm0, %v28475_v27  ;;  %v418_v27 = vld [vmem:[%s23839_s19 + $0x60] sm:$0xff] }
 0x808   : > { %11038 = vmatmul.mubr.bf16.gmra.mrb[0].mxu1 %v25788_v52  ;;  %9457 = vmatprep.mubr.bf16.mxu0 %v28339_v33  ;;  %v25806_v9 = vpack.c.bf16 %v419_v14, %v418_v27  ;;  %v22596_v27 = vld [vmem:[#allocation7 + $0xf0] ss:$24 sps:$4 sm:$0xff]   ;;  %v22601_v14 = vld [vmem:[#allocation7 + $0x124] ss:$24 sps:$4 sm:$0xff]  }
 0x809   : > { %11047 = vmatprep.mubr.bf16.mxu1 %v28339_v33 }
 0x80f   : > { %18390 = vmatmul.mubr.msk.bf16.gmra.mrb[184].mxu0 %vm1718_vm0, %v28480_v23  ;;  %v420_v23 = vld [vmem:[%s23839_s19 + $0x70] sm:$0xff] }
 0x810   : > { %11048 = vmatmul.mubr.bf16.gmra.mrb[4].mxu1 %v25797_v40  ;;  %9467 = vmatprep.mubr.bf16.mxu0 %v28339_v33  ;;  %v25814_v32 = vpack.c.bf16 %v421_v4, %v420_v23  ;;  %v22599_v4 = vld [vmem:[#allocation7 + $0x120] ss:$24 sps:$4 sm:$0xff]  }
 0x811   : > { %11057 = vmatprep.mubr.bf16.mxu1 %v28339_v33 }
 0x817   : > { %9468 = vmatmul.mubr.bf16.gmra.mrb[188].mxu0 %v28339_v33 }
 0x818   : > { %11058 = vmatmul.mubr.bf16.gmra.mrb[8].mxu1 %v25806_v9  ;;  %9896 = vmatprep.mubr.bf16.mxu0 %v28483_v19  ;;  %v423_v19 = vld [vmem:[%s23839_s19 + $0x88] sm:$0xff] }
 0x819   : > { %11067 = vmatprep.mubr.bf16.mxu1 %v28339_v33  ;;  %v25822_v8 = vpack.c.bf16 %v423_v19, %v422_v20 }
 0x81f   : > { %9897 = vmatmul.mubr.bf16.vlgmr.msra.gmra.mrb[64].mxu0 %v23971_v49  ;;  %v22589_v49 = vld [vmem:[#allocation7 + $0x94] ss:$24 sps:$4 sm:$0xff]  }
 0x820   : > { %11068 = vmatmul.mubr.bf16.gmra.mrb[172].mxu1 %v25814_v32  ;;  %9904 = vmatprep.mubr.bf16.mxu0 %v23975_v51  ;;  %v424_v51 = vld [vmem:[%s23839_s19 + $0x90] sm:$0xff] }
 0x821   : > { %11077 = vmatprep.mubr.bf16.mxu1 %v28339_v33  ;;  %10763 = vmatpush1.bf16.msra.mxu0 %v22575_v5  ;;  %v25830_v17 = vpack.c.bf16 %v425_v25, %v424_v51  ;;  %v429_v5 = vld [vmem:[%s23839_s19 + $0xb8] sm:$0xff]  ;;  %v22605_v51 = vld [vmem:[#allocation7 + $0x248] ss:$24 sps:$4 sm:$0xff]  }
 0x822   : > { %10764 = vmatprep.subr.bf16.mxu0 %v22583_v63  ;;  %v22602_v63 = vld [vmem:[#allocation7 + $0x150] ss:$24 sps:$4 sm:$0xff]   ;;  %v22610_v25 = vld [vmem:[#allocation7 + $0x27c] ss:$24 sps:$4 sm:$0xff]  }
 0x825   : > { %10765 = vmatpush1.bf16.msra.mxu0 %v22581_v29  ;;  %v433_v29 = vld [vmem:[%s23839_s19 + $0xd8] sm:$0xff] }
 0x826   : > { %10766 = vmatprep.subr.bf16.mxu0 %v22586_v37 }
 0x827   : > { %9905 = vmatmul.mubr.bf16.gmra.mrb[68].mxu0 %v23989_v60  ;;  %v22598_v60 = vld [vmem:[#allocation7 + $0xf4] ss:$24 sps:$4 sm:$0xff]  }
 0x828   : > { %11078 = vmatmul.mubr.bf16.gmra.mrb[176].mxu1 %v25822_v8  ;;  %9912 = vmatprep.mubr.bf16.mxu0 %v28493_v41  ;;  %v426_v41 = vld [vmem:[%s23839_s19 + $0xa0] sm:$0xff] }
 0x829   : > { %11087 = vmatprep.mubr.bf16.mxu1 %v28339_v33  ;;  %10767 = vmatpush1.bf16.msra.mxu0 %v22584_v34  ;;  %v25838_v23 = vpack.c.bf16 %v427_v11, %v426_v41  ;;  %v22616_v41 = vld [vmem:[#allocation7 + $0x2dc] ss:$24 sps:$4 sm:$0xff]  }
 0x82a   : > { %10768 = vmatprep.subr.bf16.mxu0 %v22589_v49  ;;  %v22578_v49 = vld [vmem:[#allocation7 + $0x1e8] ss:$24 sps:$4 sm:$0xff]  }
 0x82d   : > { %10769 = vmatpush1.bf16.msra.mxu0 %v22587_v21  ;;  %v22613_v21 = vld [vmem:[#allocation7 + $0x2ac] ss:$24 sps:$4 sm:$0xff]  }
 0x82e   : > { %10770 = vmatprep.subr.bf16.mxu0 %v22592_v16 }
 0x82f   : > { %9913 = vmatmul.mubr.bf16.gmra.mrb[72].mxu0 %v28496_v31  ;;  %v22604_v31 = vld [vmem:[#allocation7 + $0x154] ss:$24 sps:$4 sm:$0xff]  }
 0x830   : > { %11088 = vmatmul.mubr.bf16.gmra.mrb[180].mxu1 %v25830_v17  ;;  %9920 = vmatprep.mubr.bf16.mxu0 %v28500_v45  ;;  %v428_v45 = vld [vmem:[%s23839_s19 + $0xb0] sm:$0xff] }
 0x831   : > { %11097 = vmatprep.mubr.bf16.mxu1 %v28339_v33  ;;  %10771 = vmatpush1.bf16.msra.mxu0 %v22590_v24  ;;  %v25846_v20 = vpack.c.bf16 %v429_v5, %v428_v45 }
 0x832   : > { %10772 = vmatprep.subr.bf16.mxu0 %v22598_v60 }
 0x835   : > { %10773 = vmatpush1.bf16.msra.mxu0 %v22596_v27  ;;  %v22619_v27 = vld [vmem:[#allocation7 + $0x194] ss:$24 sps:$4 sm:$0xff]  }
 0x836   : > { %10774 = vmatprep.subr.bf16.mxu0 %v22601_v14 }
 0x837   : > { %9921 = vmatmul.mubr.bf16.gmra.mrb[76].mxu0 %v28501_v36  ;;  %v431_v36 = vld [vmem:[%s23839_s19 + $0xc8] sm:$0xff] }
 0x838   : > { %11098 = vmatmul.mubr.bf16.gmra.mrb[184].mxu1 %v25838_v23  ;;  %9928 = vmatprep.mubr.bf16.mxu0 %v24027_v38  ;;  %v430_v38 = vld [vmem:[%s23839_s19 + $0xc0] sm:$0xff] }
 0x839   : > { %11107 = vmatprep.mubr.bf16.mxu1 %v28339_v33  ;;  %10775 = vmatpush1.bf16.msra.mxu0 %v22599_v4  ;;  %v25854_v19 = vpack.c.bf16 %v431_v36, %v430_v38 }
 0x83a   : > { %10776 = vmatprep.subr.bf16.mxu0 %v22604_v31 }
 0x83d   : > { %10777 = vmatpush1.bf16.msra.mxu0 %v22602_v63 }
 0x83f   : > { %9929 = vmatmul.mubr.bf16.gmra.mrb[80].mxu0 %v24040_v47  ;;  %v432_v47 = vld [vmem:[%s23839_s19 + $0xd0] sm:$0xff] }
 0x840   : > { %11108 = vmatmul.mubr.bf16.gmra.mrb[188].mxu1 %v25846_v20  ;;  %9936 = vmatprep.mubr.bf16.mxu0 %v24044_v48  ;;  %v25862_v37 = vpack.c.bf16 %v433_v29, %v432_v47  ;;  %v434_v48 = vld [vmem:[%s23839_s19 + $0xe0] sm:$0xff] }
 0x841   : > { %11117 = vmatprep.mubr.bf16.mxu1 %v28339_v33 }
 0x847   : > { %9937 = vmatmul.mubr.bf16.gmra.mrb[84].mxu0 %v24057_v55  ;;  %v435_v55 = vld [vmem:[%s23839_s19 + $0xe8] sm:$0xff] }
 0x848   : > { %11118 = vmatmul.mubr.bf16.gmra.mrb[192].mxu1 %v25854_v19  ;;  %9944 = vmatprep.mubr.bf16.mxu0 %v24061_v56  ;;  %v25870_v34 = vpack.c.bf16 %v435_v55, %v434_v48  ;;  %v22569_v56 = vld [vmem:[#allocation7 + $0x188] ss:$24 sps:$4 sm:$0xff]  }
 0x849   : > { %11127 = vmatprep.mubr.bf16.mxu1 %v28339_v33 }
 0x84f   : > { %9945 = vmatmul.mubr.bf16.gmra.mrb[88].mxu0 %v24074_v7  ;;  %v22574_v7 = vld [vmem:[#allocation7 + $0x1bc] ss:$24 sps:$4 sm:$0xff]  }
 0x850   : > { %11128 = vmatmul.mubr.bf16.gmra.mrb[196].mxu1 %v25862_v37  ;;  %9952 = vmatprep.mubr.bf16.mxu0 %v24078_v13  ;;  %v22572_v13 = vld [vmem:[#allocation7 + $0x1b8] ss:$24 sps:$4 sm:$0xff]  }
 0x851   : > { %11137 = vmatprep.mubr.bf16.mxu1 %v28339_v33 }
 0x857   : > { %9953 = vmatmul.mubr.bf16.gmra.mrb[92].mxu0 %v24091_v26  ;;  %v22580_v26 = vld [vmem:[#allocation7 + $0x1ec] ss:$24 sps:$4 sm:$0xff]  }
 0x858   : > { %11138 = vmatmul.mubr.bf16.gmra.mrb[200].mxu1 %v25870_v34  ;;  %9960 = vmatprep.mubr.bf16.mxu0 %v24095_v30  ;;  %v22595_v30 = vld [vmem:[#allocation7 + $0x21c] ss:$24 sps:$4 sm:$0xff]  }
 0x859   : > { %11180 = vmatprep.mubr.bf16.mxu1 %v28339_v33 }
 0x85f   : > { %9961 = vmatmul.mubr.bf16.gmra.mrb[96].mxu0 %v24106_v2  ;;  %v22593_v2 = vld [vmem:[#allocation7 + $0x218] ss:$24 sps:$4 sm:$0xff]  }
 0x860   : > { %11181 = vmatmul.mubr.bf16.vlgmr.msra.gmra.mrb[76].mxu1 %v28339_v33  ;;  %9968 = vmatprep.mubr.bf16.mxu0 %v24108_v42  ;;  %v22607_v42 = vld [vmem:[#allocation7 + $0x24c] ss:$24 sps:$4 sm:$0xff]  }
 0x861   : > { %12016 = vmatpush1.bf16.msra.mxu1 %v22569_v56  ;;  %11190 = vmatprep.mubr.bf16.mxu1 %v28339_v33 }
 0x862   : > { %12017 = vmatprep.subr.bf16.mxu1 %v22574_v7  ;;  %v22623_v7 = vld [vmem:[#allocation7 + $0x180] ss:$24 sps:$4 sm:$0xff]  }
 0x865   : > { %12018 = vmatpush1.bf16.msra.mxu1 %v22572_v13  ;;  %v22631_v13 = vld [vmem:[#allocation7 + $0x1b4] ss:$24 sps:$4 sm:$0xff]  }
 0x866   : > { %12019 = vmatprep.subr.bf16.mxu1 %v22580_v26  ;;  %v22629_v26 = vld [vmem:[#allocation7 + $0x1b0] ss:$24 sps:$4 sm:$0xff]  }
 0x867   : > { %9969 = vmatmul.mubr.bf16.gmra.mrb[100].mxu0 %v24119_v46  ;;  %v22608_v46 = vld [vmem:[#allocation7 + $0x278] ss:$24 sps:$4 sm:$0xff]  }
 0x868   : > { %11191 = vmatmul.mubr.bf16.gmra.mrb[80].mxu1 %v25752_v28  ;;  %9976 = vmatprep.mubr.bf16.mxu0 %v24121_v10 }
 0x869   : > { %11200 = vmatprep.mubr.bf16.mxu1 %v28339_v33  ;;  %12020 = vmatpush1.bf16.msra.mxu1 %v22578_v49 }
 0x86a   : > { %12021 = vmatprep.subr.bf16.mxu1 %v22595_v30  ;;  %v22634_v30 = vld [vmem:[#allocation7 + $0x1e4] ss:$24 sps:$4 sm:$0xff]  }
 0x86d   : > { %12022 = vmatpush1.bf16.msra.mxu1 %v22593_v2 }
 0x86e   : > { %12023 = vmatprep.subr.bf16.mxu1 %v22607_v42 }
 0x86f   : > { %9977 = vmatmul.mubr.bf16.gmra.mrb[104].mxu0 %v24132_v54  ;;  %v22611_v54 = vld [vmem:[#allocation7 + $0x2a8] ss:$24 sps:$4 sm:$0xff]  }
 0x870   : > { %11201 = vmatmul.mubr.bf16.gmra.mrb[84].mxu1 %v25761_v12  ;;  %9984 = vmatprep.mubr.bf16.mxu0 %v24134_v57  ;;  %v22614_v57 = vld [vmem:[#allocation7 + $0x2d8] ss:$24 sps:$4 sm:$0xff]  }
 0x871   : > { %11210 = vmatprep.mubr.bf16.mxu1 %v28339_v33  ;;  %12024 = vmatpush1.bf16.msra.mxu1 %v22605_v51 }
 0x872   : > { %v25888_v10 = vpop.f32.mrb[128].mxu0  ;;  %12025 = vmatprep.subr.bf16.mxu1 %v22610_v25  ;;  %v22632_v25 = vld [vmem:[#allocation7 + $0x1e0] ss:$24 sps:$4 sm:$0xff]  }
 0x873   : > { %v25890_v16 = vpop.f32.mrb[129].mxu0 }
 0x874   : > { %28629 = vst [vmem:[#allocation103_spill] sm:$0xff] %v25890_v16  ;;  %v25892_v24 = vpop.f32.mrb[130].mxu0  ;;  %v22658_v16 = vld [vmem:[#allocation7 + $0x284] ss:$24 sps:$4 sm:$0xff]  }
 0x875   : > { %v25894_v60 = vpop.f32.mrb[131].mxu0  ;;  %12026 = vmatpush1.bf16.msra.mxu1 %v22608_v46  ;;  %v22637_v46 = vld [vmem:[#allocation7 + $0x214] ss:$24 sps:$4 sm:$0xff]  }
 0x876   : > { %28630 = vst [vmem:[#allocation104_spill] sm:$0xff] %v25894_v60  ;;  %12027 = vmatprep.subr.bf16.mxu1 %v22613_v21  ;;  %v22635_v21 = vld [vmem:[#allocation7 + $0x210] ss:$24 sps:$4 sm:$0xff]  }
 0x877   : > { %9985 = vmatmul.mubr.bf16.gmra.mrb[108].mxu0 %v24145_v15  ;;  %v22625_v15 = vld [vmem:[#allocation7 + $0x184] ss:$24 sps:$4 sm:$0xff]   ;;  %v22653_v60 = vld [vmem:[#allocation7 + $0x250] ss:$24 sps:$4 sm:$0xff]  }
 0x878   : > { %11211 = vmatmul.mubr.bf16.gmra.mrb[88].mxu1 %v25770_v61  ;;  %9992 = vmatprep.mubr.bf16.mxu0 %v24147_v18 }
 0x879   : > { %11220 = vmatprep.mubr.bf16.mxu1 %v28339_v33  ;;  %12028 = vmatpush1.bf16.msra.mxu1 %v22611_v54 }
 0x87a   : > { %v25900_v11 = vpop.f32.mrb[132].mxu0  ;;  %12029 = vmatprep.subr.bf16.mxu1 %v22616_v41  ;;  %11822 = vmatprep.subr.bf16.mxu0 %v22625_v15  ;;  %v22640_v41 = vld [vmem:[#allocation7 + $0x244] ss:$24 sps:$4 sm:$0xff]  }
 0x87b   : > { %v25902_v14 = vpop.f32.mrb[133].mxu0 }
 0x87c   : > { %28631 = vst [vmem:[#allocation105_spill] sm:$0xff] %v25902_v14  ;;  %v25904_v4 = vpop.f32.mrb[134].mxu0  ;;  %v22643_v14 = vld [vmem:[#allocation7 + $0x224] ss:$24 sps:$4 sm:$0xff]  }
 0x87d   : > { %v25906_v31 = vpop.f32.mrb[135].mxu0  ;;  %12030 = vmatpush1.bf16.msra.mxu1 %v22614_v57 }
 0x87e   : > { %28632 = vst [vmem:[#allocation106_spill] sm:$0xff] %v25906_v31  ;;  %12208 = vmatprep.subr.bf16.mxu1 %v22619_v27  ;;  %v22626_v31 = vld [vmem:[#allocation7 + $0x1f0] ss:$24 sps:$4 sm:$0xff]  }
 0x87f   : > { %9993 = vmatmul.mubr.bf16.gmra.mrb[112].mxu0 %v28429_v35 }
 0x880   : > { %11221 = vmatmul.mubr.bf16.gmra.mrb[92].mxu1 %v25779_v0  ;;  %10000 = vmatprep.mubr.bf16.mxu0 %v28430_v43 }
 0x881   : > { %11230 = vmatprep.mubr.bf16.mxu1 %v28339_v33 }
 0x882   : > { %v25912_v18 = vpop.f32.mrb[136].mxu0 }
 0x883   : > { %v25914_v45 = vpop.f32.mrb[137].mxu0 }
 0x884   : > { %28633 = vst [vmem:[#allocation107_spill] sm:$0xff] %v25914_v45  ;;  %v25916_v5 = vpop.f32.mrb[138].mxu0 }
 0x885   : > { %v25918_v63 = vpop.f32.mrb[139].mxu0 }
 0x886   : > { %28634 = vst [vmem:[#allocation108_spill] sm:$0xff] %v25918_v63 }
 0x887   : > { %10001 = vmatmul.mubr.bf16.gmra.mrb[116].mxu0 %v28431_v22 }
 0x888   : > { %11231 = vmatmul.mubr.bf16.gmra.mrb[96].mxu1 %v25788_v52  ;;  %10008 = vmatprep.mubr.bf16.mxu0 %v28432_v53 }
 0x889   : > { %11240 = vmatprep.mubr.bf16.mxu1 %v28339_v33 }
 0x88a   : > { %v25924_v35 = vpop.f32.mrb[140].mxu0 }
 0x88b   : > { %v25926_v43 = vpop.f32.mrb[141].mxu0 }
 0x88c   : > { %28635 = vst [vmem:[#allocation109_spill] sm:$0xff] %v25926_v43  ;;  %v25928_v38 = vpop.f32.mrb[142].mxu0  ;;  %v22628_v43 = vld [vmem:[#allocation7 + $0x1f4] ss:$24 sps:$4 sm:$0xff]  }
 0x88d   : > { %v25930_v36 = vpop.f32.mrb[143].mxu0 }
 0x88e   : > { %28636 = vst [vmem:[#allocation110_spill] sm:$0xff] %v25930_v36  ;;  %v22622_v36 = vld [vmem:[#allocation7 + $0x1c4] ss:$24 sps:$4 sm:$0xff]  }
 0x88f   : > { %10009 = vmatmul.mubr.bf16.gmra.mrb[120].mxu0 %v28433_v58 }
 0x890   : > { %11241 = vmatmul.mubr.bf16.gmra.mrb[100].mxu1 %v25797_v40  ;;  %10016 = vmatprep.mubr.bf16.mxu0 %v28339_v33 }
 0x891   : > { %11250 = vmatprep.mubr.bf16.mxu1 %v28339_v33 }
 0x892   : > { %v25936_v22 = vpop.f32.mrb[144].mxu0 }
 0x893   : > { %v25938_v53 = vpop.f32.mrb[145].mxu0 }
 0x894   : > { %28637 = vst [vmem:[#allocation111_spill] sm:$0xff] %v25938_v53  ;;  %v25940_v47 = vpop.f32.mrb[146].mxu0  ;;  %v22617_v53 = vld [vmem:[#allocation7 + $0x190] ss:$24 sps:$4 sm:$0xff]  }
 0x895   : > { %v25942_v29 = vpop.f32.mrb[147].mxu0 }
 0x896   : > { %28638 = vst [vmem:[#allocation112_spill] sm:$0xff] %v25942_v29 }
 0x897   : > { %10017 = vmatmul.mubr.bf16.gmra.mrb[124].mxu0 %v28339_v33 }
 0x898   : > { %11251 = vmatmul.mubr.bf16.gmra.mrb[104].mxu1 %v25806_v9  ;;  %10794 = vmatprep.mubr.bf16.mxu0 %v28339_v33 }
 0x899   : > { %11260 = vmatprep.mubr.bf16.mxu1 %v28339_v33 }
 0x89a   : > { %v25948_v58 = vpop.f32.mrb[148].mxu0 }
 0x89b   : > { %v25950_v48 = vpop.f32.mrb[149].mxu0 }
 0x89c   : > { %28639 = vst [vmem:[#allocation138_spill] sm:$0xff] %v25950_v48  ;;  %v25952_v55 = vpop.f32.mrb[150].mxu0 }
 0x89d   : > { %v25954_v56 = vpop.f32.mrb[151].mxu0 }
 0x89e   : > { %28640 = vst [vmem:[#allocation139_spill] sm:$0xff] %v25954_v56 }
 0x89f   : > { %10795 = vmatmul.mubr.bf16.vlgmr.msra.gmra.mrb[0].mxu0 %v28339_v33 }
 0x8a0   : > { %11261 = vmatmul.mubr.bf16.gmra.mrb[108].mxu1 %v25814_v32  ;;  %10804 = vmatprep.mubr.bf16.mxu0 %v28339_v33 }
 0x8a1   : > { %11270 = vmatprep.mubr.bf16.mxu1 %v28339_v33  ;;  %11823 = vmatpush1.bf16.msra.mxu0 %v22623_v7  ;;  %v22638_v7 = vld [vmem:[#allocation7 + $0x240] ss:$24 sps:$4 sm:$0xff]  }
 0x8a2   : > { %v25960_v49 = vpop.f32.mrb[152].mxu0  ;;  %11824 = vmatprep.subr.bf16.mxu0 %v22631_v13  ;;  %v22646_v13 = vld [vmem:[#allocation7 + $0x274] ss:$24 sps:$4 sm:$0xff]  }
 0x8a3   : > { %v25962_v2 = vpop.f32.mrb[153].mxu0 }
 0x8a4   : > { %28641 = vst [vmem:[#allocation140_spill] sm:$0xff] %v25962_v2  ;;  %v25964_v42 = vpop.f32.mrb[154].mxu0 }
 0x8a5   : > { %28642 = vst [vmem:[#allocation141_spill] sm:$0xff] %v25964_v42  ;;  %v25966_v51 = vpop.f32.mrb[155].mxu0  ;;  %11825 = vmatpush1.bf16.msra.mxu0 %v22629_v26  ;;  %v22644_v26 = vld [vmem:[#allocation7 + $0x270] ss:$24 sps:$4 sm:$0xff]  }
 0x8a6   : > { %28643 = vst [vmem:[#allocation142_spill] sm:$0xff] %v25966_v51  ;;  %11826 = vmatprep.subr.bf16.mxu0 %v22634_v30 }
 0x8a7   : > { %10805 = vmatmul.mubr.bf16.gmra.mrb[4].mxu0 %v25752_v28 }
 0x8a8   : > { %11271 = vmatmul.mubr.bf16.gmra.mrb[112].mxu1 %v25822_v8  ;;  %10814 = vmatprep.mubr.bf16.mxu0 %v28339_v33 }
 0x8a9   : > { %11280 = vmatprep.mubr.bf16.mxu1 %v28339_v33  ;;  %11827 = vmatpush1.bf16.msra.mxu0 %v22632_v25  ;;  %v22649_v25 = vld [vmem:[#allocation7 + $0x2a4] ss:$24 sps:$4 sm:$0xff]  }
 0x8aa   : > { %v25972_v54 = vpop.f32.mrb[156].mxu0  ;;  %11828 = vmatprep.subr.bf16.mxu0 %v22637_v46 }
 0x8ab   : > { %28644 = vst [vmem:[#allocation143_spill] sm:$0xff] %v25972_v54  ;;  %v25974_v57 = vpop.f32.mrb[157].mxu0  ;;  %v14489_v54 = vlaneseq }
 0x8ac   : > { %28645 = vst [vmem:[#allocation144_spill] sm:$0xff] %v25974_v57  ;;  %v25976_v27 = vpop.f32.mrb[158].mxu0  ;;  %v22652_v57 = vld [vmem:[#allocation7 + $0x2d4] ss:$24 sps:$4 sm:$0xff]  }
 0x8ad   : > { %28646 = vst [vmem:[#allocation145_spill] sm:$0xff] %v25976_v27  ;;  %v25978_v15 = vpop.f32.mrb[159].mxu0  ;;  %11829 = vmatpush1.bf16.msra.mxu0 %v22635_v21 }
 0x8ae   : > { %28647 = vst [vmem:[#allocation146_spill] sm:$0xff] %v25978_v15  ;;  %11830 = vmatprep.subr.bf16.mxu0 %v22640_v41  ;;  %v22647_v15 = vld [vmem:[#allocation7 + $0x2a0] ss:$24 sps:$4 sm:$0xff]  }
 0x8af   : > { %10815 = vmatmul.mubr.bf16.gmra.mrb[8].mxu0 %v25761_v12 }
 0x8b0   : > { %11281 = vmatmul.mubr.bf16.gmra.mrb[116].mxu1 %v25830_v17  ;;  %10824 = vmatprep.mubr.bf16.mxu0 %v28339_v33 }
 0x8b1   : > { %11290 = vmatprep.mubr.bf16.mxu1 %v28339_v33  ;;  %11831 = vmatpush1.bf16.msra.mxu0 %v22638_v7  ;;  %v22650_v7 = vld [vmem:[#allocation7 + $0x2d0] ss:$24 sps:$4 sm:$0xff]  }
 0x8b2   : > { %v25984_v30 = vpop.f32.mrb[160].mxu0  ;;  %11832 = vmatprep.subr.bf16.mxu0 %v22646_v13 }
 0x8b3   : > { %28648 = vst [vmem:[#allocation147_spill] sm:$0xff] %v25984_v30  ;;  %v25986_v46 = vpop.f32.mrb[161].mxu0 }
 0x8b4   : > { %28649 = vst [vmem:[#allocation148_spill] sm:$0xff] %v25986_v46  ;;  %v25988_v21 = vpop.f32.mrb[162].mxu0 }
 0x8b5   : > { %28650 = vst [vmem:[#allocation149_spill] sm:$0xff] %v25988_v21  ;;  %v25990_v41 = vpop.f32.mrb[163].mxu0  ;;  %11833 = vmatpush1.bf16.msra.mxu0 %v22644_v26 }
 0x8b6   : > { %28651 = vst [vmem:[#allocation150_spill] sm:$0xff] %v25990_v41  ;;  %11834 = vmatprep.subr.bf16.mxu0 %v22649_v25 }
 0x8b7   : > { %10825 = vmatmul.mubr.bf16.gmra.mrb[12].mxu0 %v25770_v61 }
 0x8b8   : > { %11291 = vmatmul.mubr.bf16.gmra.mrb[120].mxu1 %v25838_v23  ;;  %10834 = vmatprep.mubr.bf16.mxu0 %v28339_v33 }
 0x8b9   : > { %11300 = vmatprep.mubr.bf16.mxu1 %v28339_v33  ;;  %11835 = vmatpush1.bf16.msra.mxu0 %v22647_v15 }
 0x8ba   : > { %v25996_v13 = vpop.f32.mrb[164].mxu0  ;;  %11836 = vmatprep.subr.bf16.mxu0 %v22652_v57 }
 0x8bb   : > { %28652 = vst [vmem:[#allocation151_spill] sm:$0xff] %v25996_v13  ;;  %v25998_v46 = vpop.f32.mrb[165].mxu0 }
 0x8bc   : > { %28653 = vst [vmem:[#allocation152_spill] sm:$0xff] %v25998_v46  ;;  %v26000_v41 = vpop.f32.mrb[166].mxu0 }
 0x8bd   : > { %28654 = vst [vmem:[#allocation153_spill] sm:$0xff] %v26000_v41  ;;  %v26002_v26 = vpop.f32.mrb[167].mxu0  ;;  %11837 = vmatpush1.bf16.msra.mxu0 %v22650_v7 }
 0x8be   : > { %28655 = vst [vmem:[#allocation154_spill] sm:$0xff] %v26002_v26 }
 0x8bf   : > { %10835 = vmatmul.mubr.bf16.gmra.mrb[16].mxu0 %v25779_v0 }
 0x8c0   : > { %11301 = vmatmul.mubr.bf16.gmra.mrb[124].mxu1 %v25846_v20  ;;  %10844 = vmatprep.mubr.bf16.mxu0 %v28339_v33 }
 0x8c1   : > { %11310 = vmatprep.mubr.bf16.mxu1 %v28339_v33 }
 0x8c2   : > { %v26008_v15 = vpop.f32.mrb[168].mxu0 }
 0x8c3   : > { %28656 = vst [vmem:[#allocation155_spill] sm:$0xff] %v26008_v15  ;;  %v26010_v25 = vpop.f32.mrb[169].mxu0 }
 0x8c4   : > { %28657 = vst [vmem:[#allocation156_spill] sm:$0xff] %v26010_v25  ;;  %v26012_v57 = vpop.f32.mrb[170].mxu0 }
 0x8c5   : > { %28658 = vst [vmem:[#allocation157_spill] sm:$0xff] %v26012_v57  ;;  %v26014_v46 = vpop.f32.mrb[171].mxu0  ;;  %v22751_v57 = vld [vmem:[#allocation8 + $0x64] ss:$12 sps:$4 sm:$0xff]  }
 0x8c6   : > { %28659 = vst [vmem:[#allocation158_spill] sm:$0xff] %v26014_v46 }
 0x8c7   : > { %10845 = vmatmul.mubr.bf16.gmra.mrb[20].mxu0 %v25788_v52 }
 0x8c8   : > { %11311 = vmatmul.mubr.bf16.gmra.mrb[128].mxu1 %v25854_v19  ;;  %10854 = vmatprep.mubr.bf16.mxu0 %v28339_v33 }
 0x8c9   : > { %11320 = vmatprep.mubr.bf16.mxu1 %v28339_v33 }
 0x8ca   : > { %v26020_v7 = vpop.f32.mrb[172].mxu0 }
 0x8cb   : > { %28660 = vst [vmem:[#allocation159_spill] sm:$0xff] %v26020_v7  ;;  %v26022_v26 = vpop.f32.mrb[173].mxu0 }
 0x8cc   : > { %28661 = vst [vmem:[#allocation160_spill] sm:$0xff] %v26022_v26  ;;  %v26024_v51 = vpop.f32.mrb[174].mxu0 }
 0x8cd   : > { %28662 = vst [vmem:[#allocation161_spill] sm:$0xff] %v26024_v51  ;;  %v26026_v2 = vpop.f32.mrb[175].mxu0 }
 0x8ce   : > { %28663 = vst [vmem:[#allocation162_spill] sm:$0xff] %v26026_v2 }
 0x8cf   : > { %10855 = vmatmul.mubr.bf16.gmra.mrb[24].mxu0 %v25797_v40 }
 0x8d0   : > { %11321 = vmatmul.mubr.bf16.gmra.mrb[132].mxu1 %v25862_v37  ;;  %10864 = vmatprep.mubr.bf16.mxu0 %v28339_v33 }
 0x8d1   : > { %11330 = vmatprep.mubr.bf16.mxu1 %v28339_v33 }
 0x8d2   : > { %v26032_v46 = vpop.f32.mrb[176].mxu0 }
 0x8d3   : > { %28664 = vst [vmem:[#allocation163_spill] sm:$0xff] %v26032_v46  ;;  %v26034_v25 = vpop.f32.mrb[177].mxu0 }
 0x8d4   : > { %28665 = vst [vmem:[#allocation164_spill] sm:$0xff] %v26034_v25  ;;  %v26036_v56 = vpop.f32.mrb[178].mxu0 }
 0x8d5   : > { %28666 = vst [vmem:[#allocation165_spill] sm:$0xff] %v26036_v56  ;;  %v26038_v48 = vpop.f32.mrb[179].mxu0 }
 0x8d6   : > { %28667 = vst [vmem:[#allocation166_spill] sm:$0xff] %v26038_v48  ;;  %v22620_v48 = vld [vmem:[#allocation7 + $0x1c0] ss:$24 sps:$4 sm:$0xff]  }
 0x8d7   : > { %10865 = vmatmul.mubr.bf16.gmra.mrb[28].mxu0 %v25806_v9 }
 0x8d8   : > { %11331 = vmatmul.mubr.bf16.gmra.mrb[136].mxu1 %v25870_v34  ;;  %10874 = vmatprep.mubr.bf16.mxu0 %v28339_v33 }
 0x8d9   : > { %12047 = vmatprep.mubr.bf16.mxu1 %v28339_v33 }
 0x8da   : > { %v26044_v2 = vpop.f32.mrb[180].mxu0 }
 0x8db   : > { %28668 = vst [vmem:[#allocation167_spill] sm:$0xff] %v26044_v2  ;;  %v26046_v26 = vpop.f32.mrb[181].mxu0 }
 0x8dc   : > { %28669 = vst [vmem:[#allocation168_spill] sm:$0xff] %v26046_v26  ;;  %v26048_v29 = vpop.f32.mrb[182].mxu0 }
 0x8dd   : > { %28670 = vst [vmem:[#allocation169_spill] sm:$0xff] %v26048_v29  ;;  %v26050_v25 = vpop.f32.mrb[183].mxu0  ;;  %v28684_v29 = vld [vmem:[#allocation36_spill] sm:$0xff] }
 0x8de   : > { %28671 = vst [vmem:[#allocation170_spill] sm:$0xff] %v26050_v25 }
 0x8df   : > { %10875 = vmatmul.mubr.bf16.gmra.mrb[32].mxu0 %v25814_v32 }
 0x8e0   : > { %12048 = vmatmul.mubr.bf16.vlgmr.msra.gmra.mrb[236].mxu1 %v25752_v28  ;;  %10884 = vmatprep.mubr.bf16.mxu0 %v28339_v33 }
 0x8e1   : > { %12209 = vmatpush1.bf16.msra.mxu1 %v22617_v53  ;;  %12057 = vmatprep.mubr.bf16.mxu1 %v28339_v33 }
 0x8e2   : > { %12210 = vmatprep.subr.bf16.mxu1 %v22622_v36  ;;  %v26056_v63 = vpop.f32.mrb[184].mxu0  ;;  %v22641_v36 = vld [vmem:[#allocation7 + $0x220] ss:$24 sps:$4 sm:$0xff]  }
 0x8e3   : > { %28672 = vst [vmem:[#allocation171_spill] sm:$0xff] %v26056_v63  ;;  %v26058_v26 = vpop.f32.mrb[185].mxu0 }
 0x8e4   : > { %28673 = vst [vmem:[#allocation172_spill] sm:$0xff] %v26058_v26  ;;  %v26060_v45 = vpop.f32.mrb[186].mxu0  ;;  %v22655_v26 = vld [vmem:[#allocation7 + $0x254] ss:$24 sps:$4 sm:$0xff]  }
 0x8e5   : > { %28674 = vst [vmem:[#allocation173_spill] sm:$0xff] %v26060_v45  ;;  %12211 = vmatpush1.bf16.msra.mxu1 %v22620_v48  ;;  %v26062_v25 = vpop.f32.mrb[187].mxu0  ;;  %v28680_v45 = vld [vmem:[#allocation34_spill] sm:$0xff] }
 0x8e6   : > { %28675 = vst [vmem:[#allocation174_spill] sm:$0xff] %v26062_v25  ;;  %12212 = vmatprep.subr.bf16.mxu1 %v22628_v43 }
 0x8e7   : > { %10885 = vmatmul.mubr.bf16.gmra.mrb[36].mxu0 %v25822_v8 }
 0x8e8   : > { %12058 = vmatmul.mubr.bf16.gmra.mrb[240].mxu1 %v25761_v12  ;;  %10894 = vmatprep.mubr.bf16.mxu0 %v28339_v33 }
 0x8e9   : > { %12067 = vmatprep.mubr.bf16.mxu1 %v28339_v33  ;;  %12213 = vmatpush1.bf16.msra.mxu1 %v22626_v31 }
 0x8ea   : > { %v26068_v53 = vpop.f32.mrb[188].mxu0  ;;  %12214 = vmatprep.subr.bf16.mxu1 %v22643_v14  ;;  %v22656_v14 = vld [vmem:[#allocation7 + $0x280] ss:$24 sps:$4 sm:$0xff]  }
 0x8eb   : > { %28676 = vst [vmem:[#allocation175_spill] sm:$0xff] %v26068_v53  ;;  %v26070_v48 = vpop.f32.mrb[189].mxu0 }
 0x8ec   : > { %28677 = vst [vmem:[#allocation176_spill] sm:$0xff] %v26070_v48  ;;  %v26072_v25 = vpop.f32.mrb[190].mxu0  ;;  %v22661_v48 = vld [vmem:[#allocation7 + $0x2b4] ss:$24 sps:$4 sm:$0xff]  }
 0x8ed   : > { %28678 = vst [vmem:[#allocation177_spill] sm:$0xff] %v26072_v25  ;;  %v26074_v43 = vpop.f32.mrb[191].mxu0  ;;  %12215 = vmatpush1.bf16.msra.mxu1 %v22641_v36 }
 0x8ee   : > { %28679 = vst [vmem:[#allocation178_spill] sm:$0xff] %v26074_v43  ;;  %12216 = vmatprep.subr.bf16.mxu1 %v22655_v26  ;;  %v22659_v26 = vld [vmem:[#allocation7 + $0x2b0] ss:$24 sps:$4 sm:$0xff]  }
 0x8ef   : > { %10895 = vmatmul.mubr.bf16.gmra.mrb[40].mxu0 %v25830_v17 }
 0x8f0   : > { %12068 = vmatmul.mubr.bf16.gmra.mrb[244].mxu1 %v25770_v61  ;;  %10904 = vmatprep.mubr.bf16.mxu0 %v28339_v33 }
 0x8f1   : > { %12077 = vmatprep.mubr.bf16.mxu1 %v28339_v33  ;;  %12217 = vmatpush1.bf16.msra.mxu1 %v22653_v60 }
 0x8f2   : > { %v18989_v31 = vpop.f32.mrb[64].mxu0  ;;  %12218 = vmatprep.subr.bf16.mxu1 %v22658_v16  ;;  %v28682_v16 = vld [vmem:[#allocation35_spill] sm:$0xff] }
 0x8f3   : > { %v18990_v25 = vpop.f32.mrb[65].mxu0 }
 0x8f4   : > { %v18991_v6 = vadd.f32 %v18990_v25, %v18989_v31  ;;  %v18992_v43 = vpop.f32.mrb[66].mxu0  ;;  %v22662_v25 = vld [vmem:[#allocation7 + $0x2e0] ss:$24 sps:$4 sm:$0xff]  }
 0x8f5   : > { %v18993_v36 = vpop.f32.mrb[67].mxu0  ;;  %12219 = vmatpush1.bf16.msra.mxu1 %v22656_v14 }
 0x8f6   : > { %v18994_v53 = vadd.f32 %v18993_v36, %v18992_v43  ;;  %12220 = vmatprep.subr.bf16.mxu1 %v22661_v48  ;;  %v26081_v63 = vadd.f32 %v28680_v45, %v18991_v6  ;;  %v22667_v48 = vld [vmem:[#allocation7 + $0x30c] ss:$24 sps:$4 sm:$0xff]  }
 0x8f7   : > { %10905 = vmatmul.mubr.bf16.gmra.mrb[44].mxu0 %v25838_v23  ;;  %v22673_v36 = vld [vmem:[#allocation7 + $0x304] ss:$24 sps:$4 sm:$0xff]  }
 0x8f8   : > { %28681 = vst [vmem:[#allocation34_spill] sm:$0xff] %v26081_v63  ;;  %12078 = vmatmul.mubr.bf16.gmra.mrb[248].mxu1 %v25779_v0  ;;  %10914 = vmatprep.mubr.bf16.mxu0 %v28339_v33  ;;  %v26088_v60 = vadd.f32 %v28682_v16, %v18994_v53 }
 0x8f9   : > { %12087 = vmatprep.mubr.bf16.mxu1 %v28339_v33  ;;  %12221 = vmatpush1.bf16.msra.mxu1 %v22659_v26 }
 0x8fa   : > { %28683 = vst [vmem:[#allocation35_spill] sm:$0xff] %v26088_v60  ;;  %v18995_v14 = vpop.f32.mrb[68].mxu0  ;;  %12222 = vmatprep.subr.bf16.mxu1 %v22664_v3  ;;  %v28686_v3 = vld [vmem:[#allocation67_spill] sm:$0xff]  ;;  %12882 = vmatprep.subr.bf16.mxu0 %v22673_v36 }
 0x8fb   : > { %v18996_v43 = vpop.f32.mrb[69].mxu0 }
 0x8fc   : > { %v18997_v31 = vadd.f32 %v18996_v43, %v18995_v14  ;;  %v18998_v6 = vpop.f32.mrb[70].mxu0 }
 0x8fd   : > { %v18999_v45 = vpop.f32.mrb[71].mxu0  ;;  %12223 = vmatpush1.bf16.msra.mxu1 %v22662_v25 }
 0x8fe   : > { %v19000_v63 = vadd.f32 %v18999_v45, %v18998_v6  ;;  %13075 = vmatprep.subr.bf16.mxu1 %v22667_v48  ;;  %v26091_v2 = vadd.f32 %v28684_v29, %v18997_v31  ;;  %v28688_v29 = vld [vmem:[#allocation72_spill] sm:$0xff] }
 0x8ff   : > { %10915 = vmatmul.mubr.bf16.gmra.mrb[48].mxu0 %v25846_v20 }
 0x900   : > { %28685 = vst [vmem:[#allocation36_spill] sm:$0xff] %v26091_v2  ;;  %12088 = vmatmul.mubr.bf16.gmra.mrb[252].mxu1 %v25788_v52  ;;  %10924 = vmatprep.mubr.bf16.mxu0 %v28339_v33  ;;  %v26098_v53 = vadd.f32 %v28686_v3, %v19000_v63  ;;  %v28690_v63 = vld [vmem:[#allocation23_spill] sm:$0xff]  ;;  %v28704_v2 = vld [vmem:[#allocation118_spill] sm:$0xff] }
 0x901   : > { %12097 = vmatprep.mubr.bf16.mxu1 %v28339_v33 }
 0x902   : > { %28687 = vst [vmem:[#allocation67_spill] sm:$0xff] %v26098_v53  ;;  %v19001_v26 = vpop.f32.mrb[72].mxu0  ;;  %v22685_v53 = vld [vmem:[#allocation7 + $0x394] ss:$24 sps:$4 sm:$0xff]  }
 0x903   : > { %v19002_v16 = vpop.f32.mrb[73].mxu0 }
 0x904   : > { %v19003_v25 = vadd.f32 %v19002_v16, %v19001_v26  ;;  %v19004_v14 = vpop.f32.mrb[74].mxu0 }
 0x905   : > { %v19005_v48 = vpop.f32.mrb[75].mxu0 }
 0x906   : > { %v19006_v43 = vadd.f32 %v19005_v48, %v19004_v14  ;;  %v26101_v31 = vadd.f32 %v28688_v29, %v19003_v25  ;;  %v28692_v48 = vld [vmem:[#allocation24_spill] sm:$0xff]  ;;  %v28694_v29 = vld [vmem:[#allocation29_spill] sm:$0xff] }
 0x907   : > { %10925 = vmatmul.mubr.bf16.gmra.mrb[52].mxu0 %v25854_v19 }
 0x908   : > { %28689 = vst [vmem:[#allocation72_spill] sm:$0xff] %v26101_v31  ;;  %12098 = vmatmul.mubr.bf16.gmra.mrb[0].mxu1 %v25797_v40  ;;  %10934 = vmatprep.mubr.bf16.mxu0 %v28339_v33  ;;  %v26108_v6 = vadd.f32 %v28690_v63, %v19006_v43 }
 0x909   : > { %12107 = vmatprep.mubr.bf16.mxu1 %v28339_v33 }
 0x90a   : > { %28691 = vst [vmem:[#allocation23_spill] sm:$0xff] %v26108_v6  ;;  %v19007_v45 = vpop.f32.mrb[76].mxu0 }
 0x90b   : > { %v19008_v36 = vpop.f32.mrb[77].mxu0 }
 0x90c   : > { %v19009_v3 = vadd.f32 %v19008_v36, %v19007_v45  ;;  %v19010_v26 = vpop.f32.mrb[78].mxu0 }
 0x90d   : > { %v19011_v16 = vpop.f32.mrb[79].mxu0 }
 0x90e   : > { %v19012_v14 = vadd.f32 %v19011_v16, %v19010_v26  ;;  %v26111_v25 = vadd.f32 %v28692_v48, %v19009_v3  ;;  %v28696_v16 = vld [vmem:[#allocation114_spill] sm:$0xff]  ;;  %v28698_v48 = vld [vmem:[#allocation115_spill] sm:$0xff] }
 0x90f   : > { %10935 = vmatmul.mubr.bf16.gmra.mrb[56].mxu0 %v25862_v37 }
 0x910   : > { %28693 = vst [vmem:[#allocation24_spill] sm:$0xff] %v26111_v25  ;;  %12108 = vmatmul.mubr.bf16.gmra.mrb[4].mxu1 %v25806_v9  ;;  %10944 = vmatprep.mubr.bf16.mxu0 %v28339_v33  ;;  %v26118_v43 = vadd.f32 %v28694_v29, %v19012_v14 }
 0x911   : > { %12117 = vmatprep.mubr.bf16.mxu1 %v28339_v33 }
 0x912   : > { %28695 = vst [vmem:[#allocation29_spill] sm:$0xff] %v26118_v43  ;;  %v19013_v63 = vpop.f32.mrb[80].mxu0 }
 0x913   : > { %v19014_v6 = vpop.f32.mrb[81].mxu0 }
 0x914   : > { %v19015_v45 = vadd.f32 %v19014_v6, %v19013_v63  ;;  %v19016_v36 = vpop.f32.mrb[82].mxu0 }
 0x915   : > { %v19017_v31 = vpop.f32.mrb[83].mxu0 }
 0x916   : > { %v19018_v26 = vadd.f32 %v19017_v31, %v19016_v36  ;;  %v26121_v3 = vadd.f32 %v28696_v16, %v19015_v45  ;;  %v22671_v31 = vld [vmem:[#allocation7 + $0x300] ss:$24 sps:$4 sm:$0xff]   ;;  %v22679_v45 = vld [vmem:[#allocation7 + $0x334] ss:$24 sps:$4 sm:$0xff]  }
 0x917   : > { %10945 = vmatmul.mubr.bf16.gmra.mrb[60].mxu0 %v25870_v34  ;;  %v28700_v16 = vld [vmem:[#allocation116_spill] sm:$0xff] }
 0x918   : > { %28697 = vst [vmem:[#allocation114_spill] sm:$0xff] %v26121_v3  ;;  %12118 = vmatmul.mubr.bf16.gmra.mrb[8].mxu1 %v25814_v32  ;;  %11854 = vmatprep.mubr.bf16.mxu0 %v28339_v33  ;;  %v26128_v14 = vadd.f32 %v28698_v48, %v19018_v26  ;;  %v28702_v26 = vld [vmem:[#allocation117_spill] sm:$0xff] }
 0x919   : > { %12127 = vmatprep.mubr.bf16.mxu1 %v28339_v33 }
 0x91a   : > { %28699 = vst [vmem:[#allocation115_spill] sm:$0xff] %v26128_v14  ;;  %v19019_v29 = vpop.f32.mrb[84].mxu0 }
 0x91b   : > { %v19020_v43 = vpop.f32.mrb[85].mxu0 }
 0x91c   : > { %v19021_v6 = vadd.f32 %v19020_v43, %v19019_v29  ;;  %v19022_v63 = vpop.f32.mrb[86].mxu0  ;;  %v22677_v43 = vld [vmem:[#allocation7 + $0x330] ss:$24 sps:$4 sm:$0xff]  }
 0x91d   : > { %v19023_v25 = vpop.f32.mrb[87].mxu0 }
 0x91e   : > { %v19024_v36 = vadd.f32 %v19023_v25, %v19022_v63  ;;  %v26131_v3 = vadd.f32 %v28700_v16, %v19021_v6  ;;  %v22682_v25 = vld [vmem:[#allocation7 + $0x364] ss:$24 sps:$4 sm:$0xff]  }
 0x91f   : > { %11855 = vmatmul.mubr.bf16.vlgmr.msra.gmra.mrb[0].mxu0 %v25752_v28 }
 0x920   : > { %28701 = vst [vmem:[#allocation116_spill] sm:$0xff] %v26131_v3  ;;  %12128 = vmatmul.mubr.bf16.gmra.mrb[172].mxu1 %v25822_v8  ;;  %11864 = vmatprep.mubr.bf16.mxu0 %v28339_v33  ;;  %v26138_v48 = vadd.f32 %v28702_v26, %v19024_v36  ;;  %v22680_v3 = vld [vmem:[#allocation7 + $0x360] ss:$24 sps:$4 sm:$0xff]  }
 0x921   : > { %12137 = vmatprep.mubr.bf16.mxu1 %v28339_v33  ;;  %12883 = vmatpush1.bf16.msra.mxu0 %v22671_v31  ;;  %v28706_v31 = vld [vmem:[#allocation119_spill] sm:$0xff] }
 0x922   : > { %28703 = vst [vmem:[#allocation117_spill] sm:$0xff] %v26138_v48  ;;  %v19025_v29 = vpop.f32.mrb[88].mxu0  ;;  %12884 = vmatprep.subr.bf16.mxu0 %v22679_v45  ;;  %v22683_v45 = vld [vmem:[#allocation7 + $0x390] ss:$24 sps:$4 sm:$0xff]  }
 0x923   : > { %v19026_v63 = vpop.f32.mrb[89].mxu0 }
 0x924   : > { %v19027_v14 = vadd.f32 %v19026_v63, %v19025_v29  ;;  %v19028_v6 = vpop.f32.mrb[90].mxu0  ;;  %v22686_v63 = vld [vmem:[#allocation7 + $0x3c0] ss:$24 sps:$4 sm:$0xff]  }
 0x925   : > { %v19029_v16 = vpop.f32.mrb[91].mxu0  ;;  %12885 = vmatpush1.bf16.msra.mxu0 %v22677_v43  ;;  %v22688_v43 = vld [vmem:[#allocation7 + $0x3c4] ss:$24 sps:$4 sm:$0xff]  }
 0x926   : > { %v19030_v60 = vadd.f32 %v19029_v16, %v19028_v6  ;;  %12886 = vmatprep.subr.bf16.mxu0 %v22682_v25  ;;  %v26141_v56 = vadd.f32 %v28704_v2, %v19027_v14  ;;  %v22694_v16 = vld [vmem:[#allocation7 + $0x3f4] ss:$24 sps:$4 sm:$0xff]  }
 0x927   : > { %11865 = vmatmul.mubr.bf16.gmra.mrb[4].mxu0 %v25761_v12 }
 0x928   : > { %28705 = vst [vmem:[#allocation118_spill] sm:$0xff] %v26141_v56  ;;  %12138 = vmatmul.mubr.bf16.gmra.mrb[176].mxu1 %v25830_v17  ;;  %11874 = vmatprep.mubr.bf16.mxu0 %v28339_v33  ;;  %v26148_v36 = vadd.f32 %v28706_v31, %v19030_v60  ;;  %v28708_v56 = vld [vmem:[#allocation120_spill] sm:$0xff]  ;;  %v28710_v60 = vld [vmem:[#allocation121_spill] sm:$0xff] }
 0x929   : > { %12147 = vmatprep.mubr.bf16.mxu1 %v28339_v33  ;;  %12887 = vmatpush1.bf16.msra.mxu0 %v22680_v3  ;;  %v22692_v3 = vld [vmem:[#allocation7 + $0x3f0] ss:$24 sps:$4 sm:$0xff]  }
 0x92a   : > { %28707 = vst [vmem:[#allocation119_spill] sm:$0xff] %v26148_v36  ;;  %v19031_v26 = vpop.f32.mrb[92].mxu0  ;;  %12888 = vmatprep.subr.bf16.mxu0 %v22685_v53  ;;  %v28712_v36 = vld [vmem:[#allocation136_spill] sm:$0xff] }
 0x92b   : > { %v19032_v29 = vpop.f32.mrb[93].mxu0 }
 0x92c   : > { %v19033_v25 = vadd.f32 %v19032_v29, %v19031_v26  ;;  %v19034_v2 = vpop.f32.mrb[94].mxu0 }
 0x92d   : > { %v19035_v14 = vpop.f32.mrb[95].mxu0  ;;  %12889 = vmatpush1.bf16.msra.mxu0 %v22683_v45  ;;  %v22697_v45 = vld [vmem:[#allocation7 + $0x424] ss:$24 sps:$4 sm:$0xff]  }
 0x92e   : > { %v19036_v6 = vadd.f32 %v19035_v14, %v19034_v2  ;;  %12890 = vmatprep.subr.bf16.mxu0 %v22688_v43  ;;  %v26151_v48 = vadd.f32 %v28708_v56, %v19033_v25  ;;  %v22695_v25 = vld [vmem:[#allocation7 + $0x420] ss:$24 sps:$4 sm:$0xff]   ;;  %v22700_v14 = vld [vmem:[#allocation7 + $0x454] ss:$24 sps:$4 sm:$0xff]  }
 0x92f   : > { %11875 = vmatmul.mubr.bf16.gmra.mrb[8].mxu0 %v25770_v61 }
 0x930   : > { %28709 = vst [vmem:[#allocation120_spill] sm:$0xff] %v26151_v48  ;;  %12148 = vmatmul.mubr.bf16.gmra.mrb[180].mxu1 %v25838_v23  ;;  %11884 = vmatprep.mubr.bf16.mxu0 %v28339_v33  ;;  %v26158_v53 = vadd.f32 %v28710_v60, %v19036_v6 }
 0x931   : > { %12157 = vmatprep.mubr.bf16.mxu1 %v28339_v33  ;;  %12891 = vmatpush1.bf16.msra.mxu0 %v22686_v63  ;;  %v28714_v63 = vld [vmem:[#allocation137_spill] sm:$0xff] }
 0x932   : > { %28711 = vst [vmem:[#allocation121_spill] sm:$0xff] %v26158_v53  ;;  %v19037_v31 = vpop.f32.mrb[96].mxu0  ;;  %12892 = vmatprep.subr.bf16.mxu0 %v22694_v16  ;;  %v22698_v16 = vld [vmem:[#allocation7 + $0x450] ss:$24 sps:$4 sm:$0xff]  }
 0x933   : > { %v19038_v26 = vpop.f32.mrb[97].mxu0 }
 0x934   : > { %v19039_v43 = vadd.f32 %v19038_v26, %v19037_v31  ;;  %v19040_v56 = vpop.f32.mrb[98].mxu0 }
 0x935   : > { %v19041_v29 = vpop.f32.mrb[99].mxu0  ;;  %12893 = vmatpush1.bf16.msra.mxu0 %v22692_v3 }
 0x936   : > { %v19042_v2 = vadd.f32 %v19041_v29, %v19040_v56  ;;  %12894 = vmatprep.subr.bf16.mxu0 %v22697_v45  ;;  %v26161_v48 = vadd.f32 %v28712_v36, %v19039_v43  ;;  %v28716_v43 = vld [vmem:[#allocation122_spill] sm:$0xff]  ;;  %v28718_v29 = vld [vmem:[#allocation123_spill] sm:$0xff] }
 0x937   : > { %11885 = vmatmul.mubr.bf16.gmra.mrb[12].mxu0 %v25779_v0 }
 0x938   : > { %28713 = vst [vmem:[#allocation136_spill] sm:$0xff] %v26161_v48  ;;  %12158 = vmatmul.mubr.bf16.gmra.mrb[184].mxu1 %v25846_v20  ;;  %11894 = vmatprep.mubr.bf16.mxu0 %v28339_v33  ;;  %v26168_v6 = vadd.f32 %v28714_v63, %v19042_v2  ;;  %v28736_v48 = vld [vmem:[#allocation28_spill] sm:$0xff] }
 0x939   : > { %12167 = vmatprep.mubr.bf16.mxu1 %v28339_v33  ;;  %12895 = vmatpush1.bf16.msra.mxu0 %v22695_v25 }
 0x93a   : > { %28715 = vst [vmem:[#allocation137_spill] sm:$0xff] %v26168_v6  ;;  %v19043_v60 = vpop.f32.mrb[100].mxu0  ;;  %12896 = vmatprep.subr.bf16.mxu0 %v22700_v14 }
 0x93b   : > { %v19044_v3 = vpop.f32.mrb[101].mxu0 }
 0x93c   : > { %v19045_v31 = vadd.f32 %v19044_v3, %v19043_v60  ;;  %v19046_v45 = vpop.f32.mrb[102].mxu0 }
 0x93d   : > { %v19047_v36 = vpop.f32.mrb[103].mxu0  ;;  %12897 = vmatpush1.bf16.msra.mxu0 %v22698_v16 }
 0x93e   : > { %v19048_v26 = vadd.f32 %v19047_v36, %v19046_v45  ;;  %v26171_v56 = vadd.f32 %v28716_v43, %v19045_v31  ;;  %v28720_v45 = vld [vmem:[#allocation124_spill] sm:$0xff]  ;;  %v28722_v36 = vld [vmem:[#allocation125_spill] sm:$0xff] }
 0x93f   : > { %11895 = vmatmul.mubr.bf16.gmra.mrb[16].mxu0 %v25788_v52 }
 0x940   : > { %28717 = vst [vmem:[#allocation122_spill] sm:$0xff] %v26171_v56  ;;  %12168 = vmatmul.mubr.bf16.gmra.mrb[188].mxu1 %v25854_v19  ;;  %11904 = vmatprep.mubr.bf16.mxu0 %v28339_v33  ;;  %v26178_v25 = vadd.f32 %v28718_v29, %v19048_v26 }
 0x941   : > { %12177 = vmatprep.mubr.bf16.mxu1 %v28339_v33 }
 0x942   : > { %28719 = vst [vmem:[#allocation123_spill] sm:$0xff] %v26178_v25  ;;  %v19049_v2 = vpop.f32.mrb[104].mxu0 }
 0x943   : > { %v19050_v14 = vpop.f32.mrb[105].mxu0 }
 0x944   : > { %v19051_v63 = vadd.f32 %v19050_v14, %v19049_v2  ;;  %v19052_v60 = vpop.f32.mrb[106].mxu0 }
 0x945   : > { %v19053_v16 = vpop.f32.mrb[107].mxu0 }
 0x946   : > { %v19054_v3 = vadd.f32 %v19053_v16, %v19052_v60  ;;  %v26181_v31 = vadd.f32 %v28720_v45, %v19051_v63  ;;  %v28724_v16 = vld [vmem:[#allocation126_spill] sm:$0xff] }
 0x947   : > { %11905 = vmatmul.mubr.bf16.gmra.mrb[20].mxu0 %v25797_v40 }
 0x948   : > { %28721 = vst [vmem:[#allocation124_spill] sm:$0xff] %v26181_v31  ;;  %12178 = vmatmul.mubr.bf16.gmra.mrb[192].mxu1 %v25862_v37  ;;  %11914 = vmatprep.mubr.bf16.mxu0 %v28339_v33  ;;  %v26188_v26 = vadd.f32 %v28722_v36, %v19054_v3  ;;  %v436_v31 = vld [vmem:[%s23839_s19 + $0xf0] sm:$0xff]  ;;  %v437_v3 = vld [vmem:[%s23839_s19 + $0xf8] sm:$0xff] }
 0x949   : > { %12187 = vmatprep.mubr.bf16.mxu1 %v28339_v33  ;;  %v28726_v36 = vld [vmem:[#allocation22_spill] sm:$0xff]  ;;  %v26202_v6 = vpack.c.bf16 %v437_v3, %v436_v31 }
 0x94a   : > { %28723 = vst [vmem:[#allocation125_spill] sm:$0xff] %v26188_v26  ;;  %v19055_v43 = vpop.f32.mrb[108].mxu0 }
 0x94b   : > { %v19056_v29 = vpop.f32.mrb[109].mxu0 }
 0x94c   : > { %v19057_v2 = vadd.f32 %v19056_v29, %v19055_v43  ;;  %v19058_v14 = vpop.f32.mrb[110].mxu0 }
 0x94d   : > { %v19059_v60 = vpop.f32.mrb[111].mxu0 }
 0x94e   : > { %v19060_v63 = vadd.f32 %v19059_v60, %v19058_v14  ;;  %v26191_v45 = vadd.f32 %v28724_v16, %v19057_v2 }
 0x94f   : > { %11915 = vmatmul.mubr.bf16.gmra.mrb[24].mxu0 %v25806_v9 }
 0x950   : > { %28725 = vst [vmem:[#allocation126_spill] sm:$0xff] %v26191_v45  ;;  %12188 = vmatmul.mubr.bf16.gmra.mrb[196].mxu1 %v25870_v34  ;;  %11924 = vmatprep.mubr.bf16.mxu0 %v28339_v33  ;;  %v26200_v26 = vadd.f32 %v28726_v36, %v19060_v63  ;;  %v28728_v45 = vld [vmem:[#allocation127_spill] sm:$0xff]  ;;  %v28730_v63 = vld [vmem:[#allocation128_spill] sm:$0xff] }
 0x951   : > { %12197 = vmatprep.mubr.bf16.mxu1 %v28339_v33 }
 0x952   : > { %28727 = vst [vmem:[#allocation22_spill] sm:$0xff] %v26200_v26  ;;  %v19061_v43 = vpop.f32.mrb[112].mxu0  ;;  %v22665_v26 = vld [vmem:[#allocation7 + $0x308] ss:$24 sps:$4 sm:$0xff]  }
 0x953   : > { %v19062_v29 = vpop.f32.mrb[113].mxu0 }
 0x954   : > { %v19063_v14 = vadd.f32 %v19062_v29, %v19061_v43  ;;  %v19064_v2 = vpop.f32.mrb[114].mxu0 }
 0x955   : > { %v19065_v60 = vpop.f32.mrb[115].mxu0 }
 0x956   : > { %v19066_v16 = vadd.f32 %v19065_v60, %v19064_v2  ;;  %v26205_v25 = vadd.f32 %v28728_v45, %v19063_v14  ;;  %v22670_v60 = vld [vmem:[#allocation7 + $0x33c] ss:$24 sps:$4 sm:$0xff]   ;;  %v28732_v14 = vld [vmem:[#allocation113_spill] sm:$0xff] }
 0x957   : > { %11925 = vmatmul.mubr.bf16.gmra.mrb[28].mxu0 %v25814_v32 }
 0x958   : > { %28729 = vst [vmem:[#allocation127_spill] sm:$0xff] %v26205_v25  ;;  %12198 = vmatmul.mubr.bf16.gmra.mrb[200].mxu1 %v26202_v6  ;;  %11934 = vmatprep.mubr.bf16.mxu0 %v28339_v33  ;;  %v26212_v36 = vadd.f32 %v28730_v63, %v19066_v16  ;;  %v22668_v16 = vld [vmem:[#allocation7 + $0x338] ss:$24 sps:$4 sm:$0xff]   ;;  %v28734_v63 = vld [vmem:[#allocation129_spill] sm:$0xff] }
 0x959   : > { %12240 = vmatprep.mubr.bf16.mxu1 %v28339_v33 }
 0x95a   : > { %28731 = vst [vmem:[#allocation128_spill] sm:$0xff] %v26212_v36  ;;  %v19067_v31 = vpop.f32.mrb[116].mxu0 }
 0x95b   : > { %v19068_v3 = vpop.f32.mrb[117].mxu0 }
 0x95c   : > { %v19069_v43 = vadd.f32 %v19068_v3, %v19067_v31  ;;  %v19070_v29 = vpop.f32.mrb[118].mxu0  ;;  %v22676_v31 = vld [vmem:[#allocation7 + $0x36c] ss:$24 sps:$4 sm:$0xff]  }
 0x95d   : > { %v19071_v2 = vpop.f32.mrb[119].mxu0 }
 0x95e   : > { %v19072_v45 = vadd.f32 %v19071_v2, %v19070_v29  ;;  %v26215_v25 = vadd.f32 %v28732_v14, %v19069_v43 }
 0x95f   : > { %11935 = vmatmul.mubr.bf16.gmra.mrb[32].mxu0 %v25822_v8 }
 0x960   : > { %28733 = vst [vmem:[#allocation113_spill] sm:$0xff] %v26215_v25  ;;  %12241 = vmatmul.mubr.bf16.vlgmr.msra.gmra.mrb[76].mxu1 %v25752_v28  ;;  %11944 = vmatprep.mubr.bf16.mxu0 %v28339_v33  ;;  %v26221_v36 = vadd.f32 %v28734_v63, %v19072_v45  ;;  %v22674_v25 = vld [vmem:[#allocation7 + $0x368] ss:$24 sps:$4 sm:$0xff]  }
 0x961   : > { %13076 = vmatpush1.bf16.msra.mxu1 %v22665_v26  ;;  %12250 = vmatprep.mubr.bf16.mxu1 %v28339_v33  ;;  %v22691_v26 = vld [vmem:[#allocation7 + $0x39c] ss:$24 sps:$4 sm:$0xff]  }
 0x962   : > { %28735 = vst [vmem:[#allocation129_spill] sm:$0xff] %v26221_v36  ;;  %13077 = vmatprep.subr.bf16.mxu1 %v22670_v60  ;;  %v19073_v3 = vpop.f32.mrb[120].mxu0  ;;  %v28738_v60 = vld [vmem:[#allocation130_spill] sm:$0xff]  ;;  %v28740_v36 = vld [vmem:[#allocation131_spill] sm:$0xff] }
 0x963   : > { %v19074_v29 = vpop.f32.mrb[121].mxu0 }
 0x964   : > { %v19075_v2 = vadd.f32 %v19074_v29, %v19073_v3  ;;  %v19076_v43 = vpop.f32.mrb[122].mxu0 }
 0x965   : > { %13078 = vmatpush1.bf16.msra.mxu1 %v22668_v16  ;;  %v19077_v14 = vpop.f32.mrb[123].mxu0  ;;  %v22689_v16 = vld [vmem:[#allocation7 + $0x398] ss:$24 sps:$4 sm:$0xff]  }
 0x966   : > { %13079 = vmatprep.subr.bf16.mxu1 %v22676_v31  ;;  %v19078_v28 = vadd.f32 %v19077_v14, %v19076_v43  ;;  %v26225_v56 = vadd.f32 %v28736_v48, %v19075_v2  ;;  %v22703_v31 = vld [vmem:[#allocation7 + $0x3cc] ss:$24 sps:$4 sm:$0xff]   ;;  %v22701_v43 = vld [vmem:[#allocation7 + $0x3c8] ss:$24 sps:$4 sm:$0xff]  }
 0x967   : > { %11945 = vmatmul.mubr.bf16.gmra.mrb[36].mxu0 %v25830_v17 }
 0x968   : > { %28737 = vst [vmem:[#allocation28_spill] sm:$0xff] %v26225_v56  ;;  %12251 = vmatmul.mubr.bf16.gmra.mrb[80].mxu1 %v25761_v12  ;;  %11954 = vmatprep.mubr.bf16.mxu0 %v28339_v33  ;;  %v26232_v45 = vadd.f32 %v28738_v60, %v19078_v28  ;;  %v22706_v56 = vld [vmem:[#allocation7 + $0x3fc] ss:$24 sps:$4 sm:$0xff]   ;;  %v22709_v60 = vld [vmem:[#allocation7 + $0x42c] ss:$24 sps:$4 sm:$0xff]  }
 0x969   : > { %12260 = vmatprep.mubr.bf16.mxu1 %v28339_v33  ;;  %13080 = vmatpush1.bf16.msra.mxu1 %v22674_v25  ;;  %v28742_v25 = vld [vmem:[#allocation132_spill] sm:$0xff] }
 0x96a   : > { %28739 = vst [vmem:[#allocation130_spill] sm:$0xff] %v26232_v45  ;;  %v19079_v63 = vpop.f32.mrb[124].mxu0  ;;  %13081 = vmatprep.subr.bf16.mxu1 %v22691_v26  ;;  %v22704_v26 = vld [vmem:[#allocation7 + $0x3f8] ss:$24 sps:$4 sm:$0xff]  }
 0x96b   : > { %v19080_v3 = vpop.f32.mrb[125].mxu0  ;;  %v22748_v45 = vld [vmem:[#allocation8 + $0x4c] ss:$12 sps:$4 sm:$0xff]  }
 0x96c   : > { %v19081_v29 = vadd.f32 %v19080_v3, %v19079_v63  ;;  %v19082_v48 = vpop.f32.mrb[126].mxu0  ;;  %v22710_v63 = vld [vmem:[#allocation7 + $0x458] ss:$24 sps:$4 sm:$0xff]   ;;  %v22718_v3 = vld [vmem:[#allocation7 + $0x344] ss:$24 sps:$4 sm:$0xff]  }
 0x96d   : > { %v19083_v2 = vpop.f32.mrb[127].mxu0  ;;  %13082 = vmatpush1.bf16.msra.mxu1 %v22689_v16  ;;  %v22707_v16 = vld [vmem:[#allocation7 + $0x428] ss:$24 sps:$4 sm:$0xff]  }
 0x96e   : > { %v19084_v14 = vadd.f32 %v19083_v2, %v19082_v48  ;;  %13083 = vmatprep.subr.bf16.mxu1 %v22703_v31  ;;  %v26235_v53 = vadd.f32 %v28740_v36, %v19081_v29  ;;  %v22712_v36 = vld [vmem:[#allocation7 + $0x45c] ss:$24 sps:$4 sm:$0xff]   ;;  %v22716_v29 = vld [vmem:[#allocation7 + $0x340] ss:$24 sps:$4 sm:$0xff]   ;;  %v22719_v2 = vld [vmem:[#allocation7 + $0x370] ss:$24 sps:$4 sm:$0xff]  }
 0x96f   : > { %11955 = vmatmul.mubr.bf16.gmra.mrb[40].mxu0 %v25838_v23  ;;  %v22715_v31 = vld [vmem:[#allocation7 + $0x314] ss:$24 sps:$4 sm:$0xff]  }
 0x970   : > { %28741 = vst [vmem:[#allocation131_spill] sm:$0xff] %v26235_v53  ;;  %12261 = vmatmul.mubr.bf16.gmra.mrb[84].mxu1 %v25770_v61  ;;  %11964 = vmatprep.mubr.bf16.mxu0 %v28339_v33  ;;  %v26242_v28 = vadd.f32 %v28742_v25, %v19084_v14  ;;  %v22721_v48 = vld [vmem:[#allocation7 + $0x374] ss:$24 sps:$4 sm:$0xff]   ;;  %v22722_v14 = vld [vmem:[#allocation7 + $0x3a0] ss:$24 sps:$4 sm:$0xff]  }
 0x971   : > { %12270 = vmatprep.mubr.bf16.mxu1 %v28339_v33  ;;  %13084 = vmatpush1.bf16.msra.mxu1 %v22701_v43  ;;  %v22724_v43 = vld [vmem:[#allocation7 + $0x3a4] ss:$24 sps:$4 sm:$0xff]   ;;  %v22727_v25 = vld [vmem:[#allocation7 + $0x3d4] ss:$24 sps:$4 sm:$0xff]  }
 0x972   : > { %28743 = vst [vmem:[#allocation132_spill] sm:$0xff] %v26242_v28  ;;  %13085 = vmatprep.subr.bf16.mxu1 %v22706_v56  ;;  %v22713_v56 = vld [vmem:[#allocation7 + $0x310] ss:$24 sps:$4 sm:$0xff]  }
 0x975   : > { %13086 = vmatpush1.bf16.msra.mxu1 %v22704_v26  ;;  %v22725_v26 = vld [vmem:[#allocation7 + $0x3d0] ss:$24 sps:$4 sm:$0xff]  }
 0x976   : > { %13087 = vmatprep.subr.bf16.mxu1 %v22709_v60  ;;  %v22730_v60 = vld [vmem:[#allocation7 + $0x404] ss:$24 sps:$4 sm:$0xff]  }
 0x977   : > { %11965 = vmatmul.mubr.bf16.gmra.mrb[44].mxu0 %v25846_v20 }
 0x978   : > { %12271 = vmatmul.mubr.bf16.gmra.mrb[88].mxu1 %v25779_v0  ;;  %11974 = vmatprep.mubr.bf16.mxu0 %v28339_v33 }
 0x979   : > { %12280 = vmatprep.mubr.bf16.mxu1 %v28339_v33  ;;  %13088 = vmatpush1.bf16.msra.mxu1 %v22707_v16  ;;  %v22728_v16 = vld [vmem:[#allocation7 + $0x400] ss:$24 sps:$4 sm:$0xff]  }
 0x97a   : > { %13089 = vmatprep.subr.bf16.mxu1 %v22712_v36  ;;  %v22733_v36 = vld [vmem:[#allocation7 + $0x434] ss:$24 sps:$4 sm:$0xff]  }
 0x97d   : > { %13090 = vmatpush1.bf16.msra.mxu1 %v22710_v63  ;;  %v22731_v63 = vld [vmem:[#allocation7 + $0x430] ss:$24 sps:$4 sm:$0xff]  }
 0x97e   : > { %13268 = vmatprep.subr.bf16.mxu1 %v22715_v31  ;;  %v22736_v31 = vld [vmem:[#allocation7 + $0x464] ss:$24 sps:$4 sm:$0xff]  }
 0x97f   : > { %11975 = vmatmul.mubr.bf16.gmra.mrb[48].mxu0 %v25854_v19 }
 0x980   : > { %12281 = vmatmul.mubr.bf16.gmra.mrb[92].mxu1 %v25788_v52  ;;  %11984 = vmatprep.mubr.bf16.mxu0 %v28339_v33 }
 0x981   : > { %12290 = vmatprep.mubr.bf16.mxu1 %v28339_v33 }
 0x987   : > { %11985 = vmatmul.mubr.bf16.gmra.mrb[52].mxu0 %v25862_v37 }
 0x988   : > { %12291 = vmatmul.mubr.bf16.gmra.mrb[96].mxu1 %v25797_v40  ;;  %11994 = vmatprep.mubr.bf16.mxu0 %v28339_v33 }
 0x989   : > { %12300 = vmatprep.mubr.bf16.mxu1 %v28339_v33 }
 0x98f   : > { %11995 = vmatmul.mubr.bf16.gmra.mrb[56].mxu0 %v25870_v34 }
 0x990   : > { %12301 = vmatmul.mubr.bf16.gmra.mrb[100].mxu1 %v25806_v9  ;;  %12004 = vmatprep.mubr.bf16.mxu0 %v28339_v33 }
 0x991   : > { %12310 = vmatprep.mubr.bf16.mxu1 %v28339_v33 }
 0x997   : > { %12005 = vmatmul.mubr.bf16.gmra.mrb[60].mxu0 %v26202_v6 }
 0x998   : > { %12311 = vmatmul.mubr.bf16.gmra.mrb[104].mxu1 %v25814_v32  ;;  %12914 = vmatprep.mubr.bf16.mxu0 %v28339_v33 }
 0x999   : > { %12320 = vmatprep.mubr.bf16.mxu1 %v28339_v33 }
 0x99f   : > { %12915 = vmatmul.mubr.bf16.vlgmr.msra.gmra.mrb[0].mxu0 %v25761_v12 }
 0x9a0   : > { %12321 = vmatmul.mubr.bf16.gmra.mrb[108].mxu1 %v25822_v8  ;;  %12924 = vmatprep.mubr.bf16.mxu0 %v28339_v33 }
 0x9a1   : > { %12330 = vmatprep.mubr.bf16.mxu1 %v28339_v33 }
 0x9a7   : > { %12925 = vmatmul.mubr.bf16.gmra.mrb[4].mxu0 %v25770_v61 }
 0x9a8   : > { %12331 = vmatmul.mubr.bf16.gmra.mrb[112].mxu1 %v25830_v17  ;;  %12934 = vmatprep.mubr.bf16.mxu0 %v28339_v33 }
 0x9a9   : > { %12340 = vmatprep.mubr.bf16.mxu1 %v28339_v33 }
 0x9af   : > { %12935 = vmatmul.mubr.bf16.gmra.mrb[8].mxu0 %v25779_v0 }
 0x9b0   : > { %12341 = vmatmul.mubr.bf16.gmra.mrb[116].mxu1 %v25838_v23  ;;  %12944 = vmatprep.mubr.bf16.mxu0 %v28339_v33 }
 0x9b1   : > { %12350 = vmatprep.mubr.bf16.mxu1 %v28339_v33 }
 0x9b7   : > { %12945 = vmatmul.mubr.bf16.gmra.mrb[12].mxu0 %v25788_v52 }
 0x9b8   : > { %12351 = vmatmul.mubr.bf16.gmra.mrb[120].mxu1 %v25846_v20  ;;  %12954 = vmatprep.mubr.bf16.mxu0 %v28339_v33 }
 0x9b9   : > { %12360 = vmatprep.mubr.bf16.mxu1 %v28339_v33 }
 0x9bf   : > { %12955 = vmatmul.mubr.bf16.gmra.mrb[16].mxu0 %v25797_v40 }
 0x9c0   : > { %12361 = vmatmul.mubr.bf16.gmra.mrb[124].mxu1 %v25854_v19  ;;  %12964 = vmatprep.mubr.bf16.mxu0 %v28339_v33 }
 0x9c1   : > { %12370 = vmatprep.mubr.bf16.mxu1 %v28339_v33 }
 0x9c7   : > { %12965 = vmatmul.mubr.bf16.gmra.mrb[20].mxu0 %v25806_v9 }
 0x9c8   : > { %12371 = vmatmul.mubr.bf16.gmra.mrb[128].mxu1 %v25862_v37  ;;  %12974 = vmatprep.mubr.bf16.mxu0 %v28339_v33 }
 0x9c9   : > { %12380 = vmatprep.mubr.bf16.mxu1 %v28339_v33 }
 0x9cf   : > { %12975 = vmatmul.mubr.bf16.gmra.mrb[24].mxu0 %v25814_v32 }
 0x9d0   : > { %12381 = vmatmul.mubr.bf16.gmra.mrb[132].mxu1 %v25870_v34  ;;  %12984 = vmatprep.mubr.bf16.mxu0 %v28339_v33 }
 0x9d1   : > { %12390 = vmatprep.mubr.bf16.mxu1 %v28339_v33 }
 0x9d7   : > { %12985 = vmatmul.mubr.bf16.gmra.mrb[28].mxu0 %v25822_v8 }
 0x9d8   : > { %12391 = vmatmul.mubr.bf16.gmra.mrb[136].mxu1 %v26202_v6  ;;  %12994 = vmatprep.mubr.bf16.mxu0 %v28339_v33 }
 0x9d9   : > { %13107 = vmatprep.mubr.bf16.mxu1 %v28339_v33 }
 0x9df   : > { %12995 = vmatmul.mubr.bf16.gmra.mrb[32].mxu0 %v25830_v17 }
 0x9e0   : > { %13108 = vmatmul.mubr.bf16.vlgmr.msra.gmra.mrb[236].mxu1 %v25761_v12  ;;  %13004 = vmatprep.mubr.bf16.mxu0 %v28339_v33 }
 0x9e1   : > { %13269 = vmatpush1.bf16.msra.mxu1 %v22713_v56  ;;  %13117 = vmatprep.mubr.bf16.mxu1 %v28339_v33  ;;  %v22734_v56 = vld [vmem:[#allocation7 + $0x460] ss:$24 sps:$4 sm:$0xff]  }
 0x9e2   : > { %13270 = vmatprep.subr.bf16.mxu1 %v22718_v3  ;;  %v22737_v3 = vld [vmem:[#allocation8] ss:$12 sps:$4 sm:$0xff]  }
 0x9e5   : > { %13271 = vmatpush1.bf16.msra.mxu1 %v22716_v29  ;;  %v22739_v29 = vld [vmem:[#allocation8 + $0x4] ss:$12 sps:$4 sm:$0xff]  }
 0x9e6   : > { %13272 = vmatprep.subr.bf16.mxu1 %v22721_v48  ;;  %15155 = vmatprep.subr.bf16.mxu0 %v22739_v29  ;;  %v22740_v48 = vld [vmem:[#allocation8 + $0x18] ss:$12 sps:$4 sm:$0xff]  }
 0x9e7   : > { %13005 = vmatmul.mubr.bf16.gmra.mrb[36].mxu0 %v25838_v23 }
 0x9e8   : > { %13118 = vmatmul.mubr.bf16.gmra.mrb[240].mxu1 %v25770_v61  ;;  %13014 = vmatprep.mubr.bf16.mxu0 %v28339_v33 }
 0x9e9   : > { %13127 = vmatprep.mubr.bf16.mxu1 %v28339_v33  ;;  %13273 = vmatpush1.bf16.msra.mxu1 %v22719_v2  ;;  %v22742_v2 = vld [vmem:[#allocation8 + $0x1c] ss:$12 sps:$4 sm:$0xff]  }
 0x9ea   : > { %13274 = vmatprep.subr.bf16.mxu1 %v22724_v43  ;;  %15156 = vmatpush1.bf16.msra.mxu0 %v22737_v3 }
 0x9eb   : > { %15157 = vmatprep.subr.bf16.mxu0 %v22742_v2 }
 0x9ed   : > { %13275 = vmatpush1.bf16.msra.mxu1 %v22722_v14 }
 0x9ee   : > { %13276 = vmatprep.subr.bf16.mxu1 %v22727_v25  ;;  %15158 = vmatpush1.bf16.msra.mxu0 %v22740_v48 }
 0x9ef   : > { %13015 = vmatmul.mubr.bf16.gmra.mrb[40].mxu0 %v25846_v20 }
 0x9f0   : > { %13128 = vmatmul.mubr.bf16.gmra.mrb[244].mxu1 %v25779_v0  ;;  %13024 = vmatprep.mubr.bf16.mxu0 %v28339_v33 }
 0x9f1   : > { %13137 = vmatprep.mubr.bf16.mxu1 %v28339_v33  ;;  %13277 = vmatpush1.bf16.msra.mxu1 %v22725_v26 }
 0x9f2   : > { %13278 = vmatprep.subr.bf16.mxu1 %v22730_v60 }
 0x9f5   : > { %13279 = vmatpush1.bf16.msra.mxu1 %v22728_v16 }
 0x9f6   : > { %13280 = vmatprep.subr.bf16.mxu1 %v22733_v36  ;;  %v22743_v36 = vld [vmem:[#allocation8 + $0x30] ss:$12 sps:$4 sm:$0xff]  }
 0x9f7   : > { %13025 = vmatmul.mubr.bf16.gmra.mrb[44].mxu0 %v25854_v19 }
 0x9f8   : > { %13138 = vmatmul.mubr.bf16.gmra.mrb[248].mxu1 %v25788_v52  ;;  %13034 = vmatprep.mubr.bf16.mxu0 %v28339_v33 }
 0x9f9   : > { %13147 = vmatprep.mubr.bf16.mxu1 %v28339_v33  ;;  %13281 = vmatpush1.bf16.msra.mxu1 %v22731_v63  ;;  %v22745_v63 = vld [vmem:[#allocation8 + $0x34] ss:$12 sps:$4 sm:$0xff]  }
 0x9fa   : > { %13282 = vmatprep.subr.bf16.mxu1 %v22736_v31  ;;  %15159 = vmatprep.subr.bf16.mxu0 %v22745_v63 }
 0x9fb   : > { %15160 = vmatpush1.bf16.msra.mxu0 %v22743_v36 }
 0x9fc   : > { %15161 = vmatprep.subr.bf16.mxu0 %v22748_v45 }
 0x9fd   : > { %13283 = vmatpush1.bf16.msra.mxu1 %v22734_v56 }
 0x9ff   : > { %13035 = vmatmul.mubr.bf16.gmra.mrb[48].mxu0 %v25862_v37 }
 0xa00   : > { %13148 = vmatmul.mubr.bf16.gmra.mrb[252].mxu1 %v25797_v40  ;;  %13044 = vmatprep.mubr.bf16.mxu0 %v28339_v33 }
 0xa01   : > { %13157 = vmatprep.mubr.bf16.mxu1 %v28339_v33 }
 0xa07   : > { %13045 = vmatmul.mubr.bf16.gmra.mrb[52].mxu0 %v25870_v34 }
 0xa08   : > { %13158 = vmatmul.mubr.bf16.gmra.mrb[0].mxu1 %v25806_v9  ;;  %13054 = vmatprep.mubr.bf16.mxu0 %v28339_v33 }
 0xa09   : > { %13167 = vmatprep.mubr.bf16.mxu1 %v28339_v33 }
 0xa0f   : > { %13055 = vmatmul.mubr.bf16.gmra.mrb[56].mxu0 %v26202_v6 }
 0xa10   : > { %13168 = vmatmul.mubr.bf16.gmra.mrb[4].mxu1 %v25814_v32  ;;  %13064 = vmatprep.mubr.bf16.mxu0 %v28339_v33 }
 0xa11   : > { %13177 = vmatprep.mubr.bf16.mxu1 %v28339_v33 }
 0xa17   : > { %13065 = vmatmul.mubr.bf16.gmra.mrb[60].mxu0 %v28339_v33 }
 0xa18   : > { %13178 = vmatmul.mubr.bf16.gmra.mrb[8].mxu1 %v25822_v8  ;;  %15187 = vmatprep.mubr.bf16.mxu0 %v28339_v33 }
 0xa19   : > { %13187 = vmatprep.mubr.bf16.mxu1 %v28339_v33 }
 0xa20   : > { %13188 = vmatmul.mubr.bf16.gmra.mrb[172].mxu1 %v25830_v17 }
 0xa21   : > { %13197 = vmatprep.mubr.bf16.mxu1 %v28339_v33 }
 0xa28   : > { %13198 = vmatmul.mubr.bf16.gmra.mrb[176].mxu1 %v25838_v23 }
 0xa29   : > { %13207 = vmatprep.mubr.bf16.mxu1 %v28339_v33 }
 0xa30   : > { %13208 = vmatmul.mubr.bf16.gmra.mrb[180].mxu1 %v25846_v20 }
 0xa31   : > { %13217 = vmatprep.mubr.bf16.mxu1 %v28339_v33 }
 0xa38   : > { %13218 = vmatmul.mubr.bf16.gmra.mrb[184].mxu1 %v25854_v19 }
 0xa39   : > { %13227 = vmatprep.mubr.bf16.mxu1 %v28339_v33 }
 0xa40   : > { %13228 = vmatmul.mubr.bf16.gmra.mrb[188].mxu1 %v25862_v37 }
 0xa41   : > { %13237 = vmatprep.mubr.bf16.mxu1 %v28339_v33 }
 0xa48   : > { %13238 = vmatmul.mubr.bf16.gmra.mrb[192].mxu1 %v25870_v34 }
 0xa49   : > { %13247 = vmatprep.mubr.bf16.mxu1 %v28339_v33 }
 0xa50   : > { %13248 = vmatmul.mubr.bf16.gmra.mrb[196].mxu1 %v26202_v6 }
 0xa51   : > { %13257 = vmatprep.mubr.bf16.mxu1 %v28339_v33 }
 0xa58   : > { %13258 = vmatmul.mubr.bf16.gmra.mrb[200].mxu1 %v28339_v33 }
 0xa59   : > { %13300 = vmatprep.mubr.bf16.mxu1 %v28339_v33 }
 0xa60   : > { %13301 = vmatmul.mubr.bf16.vlgmr.msra.gmra.mrb[76].mxu1 %v25761_v12 }
 0xa61   : > { %13310 = vmatprep.mubr.bf16.mxu1 %v28339_v33 }
 0xa68   : > { %13311 = vmatmul.mubr.bf16.gmra.mrb[80].mxu1 %v25770_v61 }
 0xa69   : > { %13320 = vmatprep.mubr.bf16.mxu1 %v28339_v33 }
 0xa70   : > { %13321 = vmatmul.mubr.bf16.gmra.mrb[84].mxu1 %v25779_v0 }
 0xa71   : > { %13330 = vmatprep.mubr.bf16.mxu1 %v28339_v33 }
 0xa72   : > { %v26350_v43 = vpop.f32.mrb[0].mxu0 }
 0xa73   : > { %v26352_v14 = vpop.f32.mrb[1].mxu0  ;;  %v28215_v12 = vrot.slane %v26350_v43, 7 }
 0xa74   : > { %v12920_v25 = vpop.f32.mrb[2].mxu0  ;;  %v28214_v60 = vrot.slane %v26352_v14, 7 }
 0xa75   : > { %v13912_v26 = vrot.slane %v12920_v25, 7  ;;  %v12922_v61 = vpop.f32.mrb[3].mxu0 }
 0xa76   : > { %v13914_v16 = vrot.slane %v12922_v61, 7 }
 0xa77   : > { %v26360_v0 = vsel %vm13909_vm1, %v28215_v12, %v13912_v26 }
 0xa78   : > { %13331 = vmatmul.mubr.bf16.gmra.mrb[88].mxu1 %v25788_v52  ;;  %v26366_v31 = vsel %vm13909_vm1, %v28214_v60, %v13914_v16 }
 0xa79   : > { %13340 = vmatprep.mubr.bf16.mxu1 %v28339_v33 }
 0xa7a   : > { %v26368_v56 = vpop.f32.mrb[4].mxu0 }
 0xa7b   : > { %v26370_v3 = vpop.f32.mrb[5].mxu0  ;;  %v28216_v52 = vrot.slane %v26368_v56, 7 }
 0xa7c   : > { %v12930_v29 = vpop.f32.mrb[6].mxu0  ;;  %v28217_v25 = vrot.slane %v26370_v3, 7 }
 0xa7d   : > { %v13918_v48 = vrot.slane %v12930_v29, 7  ;;  %v12932_v2 = vpop.f32.mrb[7].mxu0 }
 0xa7e   : > { %v13920_v26 = vrot.slane %v12932_v2, 7 }
 0xa7f   : > { %v26378_v61 = vsel %vm13909_vm1, %v28216_v52, %v13918_v48  ;;  %v22746_v52 = vld [vmem:[#allocation8 + $0x48] ss:$12 sps:$4 sm:$0xff]  }
 0xa80   : > { %13341 = vmatmul.mubr.bf16.gmra.mrb[92].mxu1 %v25797_v40  ;;  %v26384_v16 = vsel %vm13909_vm1, %v28217_v25, %v13920_v26  ;;  %15162 = vmatpush1.bf16.msra.mxu0 %v22746_v52 }
 0xa81   : > { %13350 = vmatprep.mubr.bf16.mxu1 %v28339_v33  ;;  %15163 = vmatprep.subr.bf16.mxu0 %v22751_v57 }
 0xa82   : > { %v26386_v36 = vpop.f32.mrb[8].mxu0 }
 0xa83   : > { %v26388_v63 = vpop.f32.mrb[9].mxu0  ;;  %v28218_v2 = vrot.slane %v26386_v36, 7 }
 0xa84   : > { %v12940_v29 = vpop.f32.mrb[10].mxu0  ;;  %v28219_v12 = vrot.slane %v26388_v63, 7 }
 0xa85   : > { %v13924_v40 = vrot.slane %v12940_v29, 7  ;;  %v12942_v60 = vpop.f32.mrb[11].mxu0 }
 0xa86   : > { %v13926_v48 = vrot.slane %v12942_v60, 7 }
 0xa87   : > { %v26396_v26 = vsel %vm13909_vm1, %v28218_v2, %v13924_v40 }
 0xa88   : > { %13351 = vmatmul.mubr.bf16.gmra.mrb[96].mxu1 %v25806_v9  ;;  %v26402_v25 = vsel %vm13909_vm1, %v28219_v12, %v13926_v48 }
 0xa89   : > { %13360 = vmatprep.mubr.bf16.mxu1 %v28339_v33 }
 0xa8a   : > { %v26404_v29 = vpop.f32.mrb[12].mxu0 }
 0xa8b   : > { %v26406_v60 = vpop.f32.mrb[13].mxu0  ;;  %v28220_v9 = vrot.slane %v26404_v29, 7 }
 0xa8c   : > { %v12950_v28 = vpop.f32.mrb[14].mxu0  ;;  %v28221_v40 = vrot.slane %v26406_v60, 7 }
 0xa8d   : > { %v13930_v53 = vrot.slane %v12950_v28, 7  ;;  %v12952_v46 = vpop.f32.mrb[15].mxu0 }
 0xa8e   : > { %v13932_v2 = vrot.slane %v12952_v46, 7 }
 0xa8f   : > { %v26414_v48 = vsel %vm13909_vm1, %v28220_v9, %v13930_v53  ;;  %v22749_v9 = vld [vmem:[#allocation8 + $0x60] ss:$12 sps:$4 sm:$0xff]  }
 0xa90   : > { %13361 = vmatmul.mubr.bf16.gmra.mrb[100].mxu1 %v25814_v32  ;;  %v26420_v45 = vsel %vm13909_vm1, %v28221_v40, %v13932_v2  ;;  %15164 = vmatpush1.bf16.msra.mxu0 %v22749_v9 }
 0xa91   : > { %13370 = vmatprep.mubr.bf16.mxu1 %v28339_v33  ;;  %15165 = vmatprep.subr.bf16.mxu0 %v22754_v50 }
 0xa92   : > { %v26422_v52 = vpop.f32.mrb[16].mxu0 }
 0xa93   : > { %v26424_v28 = vpop.f32.mrb[17].mxu0  ;;  %v28222_v46 = vrot.slane %v26422_v52, 7 }
 0xa94   : > { %v12960_v12 = vpop.f32.mrb[18].mxu0  ;;  %v28223_v7 = vrot.slane %v26424_v28, 7 }
 0xa95   : > { %v13936_v32 = vrot.slane %v12960_v12, 7  ;;  %v12962_v51 = vpop.f32.mrb[19].mxu0 }
 0xa96   : > { %v13938_v53 = vrot.slane %v12962_v51, 7 }
 0xa97   : > { %v26432_v2 = vsel %vm13909_vm1, %v28222_v46, %v13936_v32 }
 0xa98   : > { %13371 = vmatmul.mubr.bf16.gmra.mrb[104].mxu1 %v25822_v8  ;;  %v26438_v40 = vsel %vm13909_vm1, %v28223_v7, %v13938_v53 }
 0xa99   : > { %13380 = vmatprep.mubr.bf16.mxu1 %v28339_v33 }
 0xa9a   : > { %v26440_v12 = vpop.f32.mrb[20].mxu0 }
 0xa9b   : > { %v26442_v51 = vpop.f32.mrb[21].mxu0  ;;  %v28224_v8 = vrot.slane %v26440_v12, 7 }
 0xa9c   : > { %v12970_v15 = vpop.f32.mrb[22].mxu0  ;;  %v28225_v32 = vrot.slane %v26442_v51, 7 }
 0xa9d   : > { %v13942_v41 = vrot.slane %v12970_v15, 7  ;;  %v12972_v13 = vpop.f32.mrb[23].mxu0 }
 0xa9e   : > { %v13944_v46 = vrot.slane %v12972_v13, 7 }
 0xa9f   : > { %v26450_v53 = vsel %vm13909_vm1, %v28224_v8, %v13942_v41  ;;  %v22752_v8 = vld [vmem:[#allocation8 + $0x78] ss:$12 sps:$4 sm:$0xff]  }
 0xaa0   : > { %13381 = vmatmul.mubr.bf16.gmra.mrb[108].mxu1 %v25830_v17  ;;  %v26456_v57 = vsel %vm13909_vm1, %v28225_v32, %v13944_v46  ;;  %15166 = vmatpush1.bf16.msra.mxu0 %v22752_v8 }
 0xaa1   : > { %13390 = vmatprep.mubr.bf16.mxu1 %v28339_v33 }
 0xaa2   : > { %v26458_v9 = vpop.f32.mrb[24].mxu0 }
 0xaa3   : > { %v26460_v15 = vpop.f32.mrb[25].mxu0  ;;  %v28226_v13 = vrot.slane %v26458_v9, 7 }
 0xaa4   : > { %28744 = vst [vmem:[#allocation179_spill] sm:$0xff] %v26460_v15  ;;  %v12980_v7 = vpop.f32.mrb[26].mxu0  ;;  %v28227_v21 = vrot.slane %v26460_v15, 7  ;;  %v22757_v15 = vld [vmem:[#allocation8 + $0x94] ss:$12 sps:$4 sm:$0xff]  }
 0xaa5   : > { %v13948_v17 = vrot.slane %v12980_v7, 7  ;;  %v12982_v39 = vpop.f32.mrb[27].mxu0  ;;  %15167 = vmatprep.subr.bf16.mxu0 %v22757_v15 }
 0xaa6   : > { %v13950_v41 = vrot.slane %v12982_v39, 7 }
 0xaa7   : > { %v26468_v46 = vsel %vm13909_vm1, %v28226_v13, %v13948_v17 }
 0xaa8   : > { %13391 = vmatmul.mubr.bf16.gmra.mrb[112].mxu1 %v25838_v23  ;;  %28745 = vst [vmem:[#allocation180_spill] sm:$0xff] %v26468_v46  ;;  %v26474_v32 = vsel %vm13909_vm1, %v28227_v21, %v13950_v41  ;;  %v28751_v21 = vld [vmem:[#allocation133_spill] sm:$0xff] }
 0xaa9   : > { %13400 = vmatprep.mubr.bf16.mxu1 %v28339_v33  ;;  %28746 = vst [vmem:[#allocation181_spill] sm:$0xff] %v26474_v32  ;;  %v28754_v32 = vld [vmem:[#allocation134_spill] sm:$0xff] }
 0xaaa   : > { %v26476_v7 = vpop.f32.mrb[28].mxu0 }
 0xaab   : > { %28747 = vst [vmem:[#allocation182_spill] sm:$0xff] %v26476_v7  ;;  %v26478_v39 = vpop.f32.mrb[29].mxu0  ;;  %v28229_v23 = vrot.slane %v26476_v7, 7  ;;  %v28752_v7 = vrot.slane %v26350_v43, 7 }
 0xaac   : > { %28748 = vst [vmem:[#allocation183_spill] sm:$0xff] %v26478_v39  ;;  %v12990_v30 = vpop.f32.mrb[30].mxu0  ;;  %v28230_v17 = vrot.slane %v26478_v39, 7  ;;  %v22755_v39 = vld [vmem:[#allocation8 + $0x90] ss:$12 sps:$4 sm:$0xff]  }
 0xaad   : > { %v13954_v1 = vrot.slane %v12990_v30, 7  ;;  %v12992_v27 = vpop.f32.mrb[31].mxu0  ;;  %15168 = vmatpush1.bf16.msra.mxu0 %v22755_v39  ;;  %v28760_v39 = vrot.slane %v26370_v3, 7 }
 0xaae   : > { %v13956_v13 = vrot.slane %v12992_v27, 7 }
 0xaaf   : > { %v26486_v41 = vsel %vm13909_vm1, %v28229_v23, %v13954_v1  ;;  %v14070_v1 = vsel %vm13909_vm1, 0.0, %v28752_v7  ;;  %v28753_v23 = vrot.slane %v26352_v14, 7 }
 0xab0   : > { %13401 = vmatmul.mubr.bf16.gmra.mrb[116].mxu1 %v25846_v20  ;;  %28749 = vst [vmem:[#allocation184_spill] sm:$0xff] %v26486_v41  ;;  %v26492_v50 = vsel %vm13909_vm1, %v28230_v17, %v13956_v13 }
 0xab1   : > { %13410 = vmatprep.mubr.bf16.mxu1 %v28339_v33  ;;  %28750 = vst [vmem:[#allocation185_spill] sm:$0xff] %v26492_v50  ;;  %v14071_v41 = vsel %vm13909_vm1, 0.0, %v28753_v23 }
 0xab2   : > { %v26494_v8 = vpop.f32.mrb[32].mxu0 }
 0xab3   : > { %v13109_v30 = vpop.f32.mrb[236].mxu1  ;;  %v26497_v27 = vpop.f32.mrb[33].mxu0  ;;  %v28234_v62 = vrot.slane %v26494_v8, 7 }
 0xab4   : > { %v13717_v59 = vadd.f32 %v28751_v21, %v13109_v30  ;;  %v13111_v20 = vpop.f32.mrb[237].mxu1  ;;  %v13000_v17 = vpop.f32.mrb[34].mxu0  ;;  %v28233_v7 = vrot.slane %v26497_v27, 7 }
 0xab5   : > { %v13718_v13 = vadd.f32 %v13111_v20, %v25888_v10  ;;  %v13113_v50 = vpop.f32.mrb[238].mxu1  ;;  %v13960_v30 = vrot.slane %v13000_v17, 7  ;;  %v13002_v42 = vpop.f32.mrb[35].mxu0 }
 0xab6   : > { %v26507_v21 = vadd.f32 %v14070_v1, %v13717_v59  ;;  %v13719_v46 = vadd.f32 %v28754_v32, %v13113_v50  ;;  %v13115_v43 = vpop.f32.mrb[239].mxu1  ;;  %v13962_v23 = vrot.slane %v13002_v42, 7  ;;  %v26523_v32 = vshrl.u32 %v14489_v54, 7  ;;  %v26534_v42 = vld [vmem:[#allocation11] sm:$0x3]  ;;  %v28757_v54 = vld [vmem:[#allocation27_spill] sm:$0xff] }
 0xab7   : > { %v26511_v14 = vadd.f32 %v14071_v41, %v13718_v13  ;;  %v13720_v10 = vadd.f32 %v13115_v43, %v25892_v24  ;;  %v26521_v59 = vsel %vm13909_vm1, %v28234_v62, %v13960_v30  ;;  %v22758_v1 = vld [vmem:[#allocation8 + $0x8] ss:$12 sps:$4 sm:$0xff]   ;;  %v28759_v13 = vrot.slane %v26368_v56, 7 }
 0xab8   : > { %v26515_v20 = vadd.f32 %v26360_v0, %v13719_v46  ;;  %13411 = vmatmul.mubr.bf16.gmra.mrb[120].mxu1 %v25854_v19  ;;  %v26532_v24 = vsel %vm13909_vm1, %v28233_v7, %v13962_v23  ;;  %v14491_v19 = vsub.s32 0, %v26523_v32  ;;  %v14073_v43 = vsel %vm13909_vm1, 0.0, %v28760_v39  ;;  %19297 = vmatprep.subr.bf16.mxu1 %v22758_v1 }
 0xab9   : > { %28755 = vst [vmem:[#allocation133_spill] sm:$0xff] %v26511_v14  ;;  %v26526_v17 = vadd.f32 %v26366_v31, %v13720_v10  ;;  %13420 = vmatprep.mubr.bf16.mxu1 %v28339_v33  ;;  %v14072_v30 = vsel %vm13909_vm1, 0.0, %v28759_v13  ;;  %19298 = vmatpush3.bf16.msra.mxu1 %v22758_v1  ;;  %v22763_v1 = vld [vmem:[#allocation8 + $0x38] ss:$12 sps:$4 sm:$0xff]  }
 0xaba   : > { %v26537_v0 = vpop.f32.mrb[36].mxu0  ;;  %v26543_v50 = vrot.slane %v26534_v42, %v14491_v19  ;;  %v28761_v19 = vld [vmem:[#allocation32_spill] sm:$0xff] }
 0xabb   : > { %28756 = vst [vmem:[#allocation134_spill] sm:$0xff] %v26526_v17  ;;  %v13119_v15 = vpop.f32.mrb[240].mxu1  ;;  %v26540_v41 = vpop.f32.mrb[37].mxu0 }
 0xabc   : > { %v13721_v46 = vadd.f32 %v28757_v54, %v13119_v15  ;;  %v13121_v31 = vpop.f32.mrb[241].mxu1  ;;  %28758 = vst [vmem:[#allocation27_spill] sm:$0xff] %v26543_v50  ;;  %v13010_v10 = vpop.f32.mrb[38].mxu0  ;;  %v28237_v15 = vrot.slane %v26537_v0, 7  ;;  %v28236_v56 = vrot.slane %v26540_v41, 7 }
 0xabd   : > { %v13722_v23 = vadd.f32 %v13121_v31, %v25900_v11  ;;  %v13123_v7 = vpop.f32.mrb[242].mxu1  ;;  %v13966_v62 = vrot.slane %v13010_v10, 7  ;;  %v13012_v17 = vpop.f32.mrb[39].mxu0 }
 0xabe   : > { %v26553_v54 = vadd.f32 %v14072_v30, %v13721_v46  ;;  %v13723_v50 = vadd.f32 %v28761_v19, %v13123_v7  ;;  %v13125_v14 = vpop.f32.mrb[243].mxu1  ;;  %v13968_v3 = vrot.slane %v13012_v17, 7  ;;  %v22759_v46 = vld [vmem:[#allocation8 + $0x20] ss:$12 sps:$4 sm:$0xff]  }
 0xabf   : > { %v26557_v13 = vadd.f32 %v14073_v43, %v13722_v23  ;;  %v13724_v39 = vadd.f32 %v13125_v14, %v25904_v4  ;;  %v26567_v7 = vsel %vm13909_vm1, %v28237_v15, %v13966_v62  ;;  %19299 = vmatprep.subr.bf16.mxu1 %v22759_v46  ;;  %v28763_v14 = vld [vmem:[#allocation21_spill] sm:$0xff]  ;;  %v28765_v43 = vrot.slane %v26388_v63, 7 }
 0xac0   : > { %v26561_v11 = vadd.f32 %v26378_v61, %v13723_v50  ;;  %13421 = vmatmul.mubr.bf16.gmra.mrb[124].mxu1 %v25862_v37  ;;  %v26576_v4 = vsel %vm13909_vm1, %v28236_v56, %v13968_v3 }
 0xac1   : > { %v26570_v31 = vadd.f32 %v26384_v16, %v13724_v39  ;;  %13430 = vmatprep.mubr.bf16.mxu1 %v28339_v33  ;;  %19300 = vmatpush3.bf16.msra.mxu1 %v22759_v46  ;;  %v28764_v16 = vrot.slane %v26386_v36, 7  ;;  %v14075_v23 = vsel %vm13909_vm1, 0.0, %v28765_v43 }
 0xac2   : > { %v26578_v61 = vpop.f32.mrb[40].mxu0  ;;  %19301 = vmatprep.subr.bf16.mxu1 %v22763_v1 }
 0xac3   : > { %28762 = vst [vmem:[#allocation32_spill] sm:$0xff] %v26570_v31  ;;  %v13129_v37 = vpop.f32.mrb[244].mxu1  ;;  %v26581_v62 = vpop.f32.mrb[41].mxu0  ;;  %v14074_v30 = vsel %vm13909_vm1, 0.0, %v28764_v16  ;;  %v28239_v39 = vrot.slane %v26578_v61, 7 }
 0xac4   : > { %v13725_v17 = vadd.f32 %v28763_v14, %v13129_v37  ;;  %v13131_v50 = vpop.f32.mrb[245].mxu1  ;;  %v13020_v19 = vpop.f32.mrb[42].mxu0  ;;  %v28766_v14 = vld [vmem:[#allocation49_spill] sm:$0xff]  ;;  %v28238_v36 = vrot.slane %v26581_v62, 7 }
 0xac5   : > { %v13726_v10 = vadd.f32 %v13131_v50, %v25912_v18  ;;  %v13133_v3 = vpop.f32.mrb[246].mxu1  ;;  %v13972_v37 = vrot.slane %v13020_v19, 7  ;;  %v13022_v15 = vpop.f32.mrb[43].mxu0  ;;  %19302 = vmatpush3.bf16.msra.mxu1 %v22763_v1 }
 0xac6   : > { %v26591_v46 = vadd.f32 %v14074_v30, %v13725_v17  ;;  %v13727_v56 = vadd.f32 %v28766_v14, %v13133_v3  ;;  %v13135_v31 = vpop.f32.mrb[247].mxu1  ;;  %v13974_v63 = vrot.slane %v13022_v15, 7  ;;  %v22764_v15 = vld [vmem:[#allocation8 + $0x50] ss:$12 sps:$4 sm:$0xff]  }
 0xac7   : > { %v26595_v16 = vadd.f32 %v14075_v23, %v13726_v10  ;;  %v13728_v43 = vadd.f32 %v13135_v31, %v25916_v5  ;;  %v26605_v17 = vsel %vm13909_vm1, %v28239_v39, %v13972_v37  ;;  %19303 = vmatprep.subr.bf16.mxu1 %v22764_v15  ;;  %v28770_v10 = vrot.slane %v26406_v60, 7 }
 0xac8   : > { %v26599_v18 = vadd.f32 %v26396_v26, %v13727_v56  ;;  %13431 = vmatmul.mubr.bf16.gmra.mrb[128].mxu1 %v25870_v34  ;;  %v26614_v5 = vsel %vm13909_vm1, %v28238_v36, %v13974_v63  ;;  %v28768_v34 = vld [vmem:[#allocation51_spill] sm:$0xff]  ;;  %v28771_v36 = vld [vmem:[#allocation53_spill] sm:$0xff] }
 0xac9   : > { %v26608_v50 = vadd.f32 %v26402_v25, %v13728_v43  ;;  %13440 = vmatprep.mubr.bf16.mxu1 %v28339_v33  ;;  %19304 = vmatpush3.bf16.msra.mxu1 %v22764_v15  ;;  %v28769_v25 = vrot.slane %v26404_v29, 7  ;;  %v14077_v19 = vsel %vm13909_vm1, 0.0, %v28770_v10  ;;  %v22765_v63 = vld [vmem:[#allocation8 + $0x68] ss:$12 sps:$4 sm:$0xff]  }
 0xaca   : > { %v26616_v26 = vpop.f32.mrb[44].mxu0  ;;  %19305 = vmatprep.subr.bf16.mxu1 %v22765_v63 }
 0xacb   : > { %28767 = vst [vmem:[#allocation21_spill] sm:$0xff] %v26608_v50  ;;  %v13139_v56 = vpop.f32.mrb[248].mxu1  ;;  %v26619_v1 = vpop.f32.mrb[45].mxu0  ;;  %v14076_v23 = vsel %vm13909_vm1, 0.0, %v28769_v25  ;;  %v28241_v43 = vrot.slane %v26616_v26, 7 }
 0xacc   : > { %v13729_v31 = vadd.f32 %v28768_v34, %v13139_v56  ;;  %v13141_v30 = vpop.f32.mrb[249].mxu1  ;;  %v13030_v37 = vpop.f32.mrb[46].mxu0  ;;  %v28240_v25 = vrot.slane %v26619_v1, 7 }
 0xacd   : > { %v13730_v3 = vadd.f32 %v13141_v30, %v25924_v35  ;;  %v13143_v14 = vpop.f32.mrb[250].mxu1  ;;  %v13978_v34 = vrot.slane %v13030_v37, 7  ;;  %v13032_v39 = vpop.f32.mrb[47].mxu0  ;;  %19306 = vmatpush3.bf16.msra.mxu1 %v22765_v63 }
 0xace   : > { %v26629_v56 = vadd.f32 %v14076_v23, %v13729_v31  ;;  %v13731_v15 = vadd.f32 %v28771_v36, %v13143_v14  ;;  %v13145_v29 = vpop.f32.mrb[251].mxu1  ;;  %v13980_v60 = vrot.slane %v13032_v39, 7  ;;  %v22762_v36 = vld [vmem:[#allocation8 + $0xac] ss:$12 sps:$4 sm:$0xff]   ;;  %v28776_v14 = vrot.slane %v26422_v52, 7 }
 0xacf   : > { %v26633_v50 = vadd.f32 %v14077_v19, %v13730_v3  ;;  %v13732_v10 = vadd.f32 %v13145_v29, %v25928_v38  ;;  %v26643_v31 = vsel %vm13909_vm1, %v28241_v43, %v13978_v34  ;;  %v22766_v39 = vld [vmem:[#allocation8 + $0x80] ss:$12 sps:$4 sm:$0xff]   ;;  %15169 = vmatprep.subr.bf16.mxu0 %v22762_v36  ;;  %v28775_v19 = vld [vmem:[#allocation55_spill] sm:$0xff] }
 0xad0   : > { %v26637_v35 = vadd.f32 %v26414_v48, %v13731_v15  ;;  %13441 = vmatmul.mubr.bf16.gmra.mrb[132].mxu1 %v26202_v6  ;;  %v26652_v38 = vsel %vm13909_vm1, %v28240_v25, %v13980_v60  ;;  %v22760_v48 = vld [vmem:[#allocation8 + $0xa8] ss:$12 sps:$4 sm:$0xff]   ;;  %19307 = vmatprep.subr.bf16.mxu1 %v22766_v39  ;;  %v14078_v34 = vsel %vm13909_vm1, 0.0, %v28776_v14  ;;  %v28777_v15 = vrot.slane %v26424_v28, 7  ;;  %v22767_v36 = vld [vmem:[#allocation8 + $0x98] ss:$12 sps:$4 sm:$0xff]  }
 0xad1   : > { %28772 = vst [vmem:[#allocation49_spill] sm:$0xff] %v26633_v50  ;;  %v26646_v30 = vadd.f32 %v26420_v45, %v13732_v10  ;;  %13450 = vmatprep.mubr.bf16.mxu1 %v28339_v33  ;;  %15170 = vmatpush1.bf16.msra.mxu0 %v22760_v48  ;;  %v28779_v25 = vld [vmem:[#allocation57_spill] sm:$0xff] }
 0xad2   : > { %28773 = vst [vmem:[#allocation51_spill] sm:$0xff] %v26637_v35  ;;  %v26654_v6 = vpop.f32.mrb[48].mxu0  ;;  %v14079_v63 = vsel %vm13909_vm1, 0.0, %v28777_v15  ;;  %19308 = vmatpush3.bf16.msra.mxu1 %v22766_v39  ;;  %v28784_v15 = vld [vmem:[#allocation59_spill] sm:$0xff] }
 0xad3   : > { %28774 = vst [vmem:[#allocation53_spill] sm:$0xff] %v26646_v30  ;;  %v13149_v23 = vpop.f32.mrb[252].mxu1  ;;  %v26657_v45 = vpop.f32.mrb[49].mxu0  ;;  %v28243_v48 = vrot.slane %v26654_v6, 7  ;;  %19309 = vmatprep.subr.bf16.mxu1 %v22767_v36 }
 0xad4   : > { %v13733_v3 = vadd.f32 %v28775_v19, %v13149_v23  ;;  %v13151_v37 = vpop.f32.mrb[253].mxu1  ;;  %v13040_v60 = vpop.f32.mrb[50].mxu0  ;;  %15188 = vmatmul.mubr.bf16.vlgmr.msra.gmra.mrb[192].mxu0 %v28339_v33  ;;  %v28242_v28 = vrot.slane %v26657_v45, 7 }
 0xad5   : > { %v13734_v29 = vadd.f32 %v13151_v37, %v25936_v22  ;;  %v13153_v10 = vpop.f32.mrb[254].mxu1  ;;  %v13984_v19 = vrot.slane %v13040_v60, 7  ;;  %v13042_v52 = vpop.f32.mrb[51].mxu0  ;;  %15197 = vmatprep.mubr.bf16.mxu0 %v28339_v33 }
 0xad6   : > { %v26667_v23 = vadd.f32 %v14078_v34, %v13733_v3  ;;  %v13735_v43 = vadd.f32 %v28779_v25, %v13153_v10  ;;  %v13155_v30 = vpop.f32.mrb[255].mxu1  ;;  %v13986_v22 = vrot.slane %v13042_v52, 7  ;;  %19310 = vmatpush3.bf16.msra.mxu1 %v22767_v36 }
 0xad7   : > { %v26672_v14 = vadd.f32 %v14079_v63, %v13734_v29  ;;  %v13736_v37 = vadd.f32 %v13155_v30, %v25940_v47  ;;  %v26683_v25 = vsel %vm13909_vm1, %v28243_v48, %v13984_v19  ;;  %v28783_v30 = vld [vmem:[#allocation37_spill] sm:$0xff]  ;;  %v28786_v19 = vld [vmem:[#allocation38_spill] sm:$0xff] }
 0xad8   : > { %28778 = vst [vmem:[#allocation55_spill] sm:$0xff] %v26667_v23  ;;  %v26677_v39 = vadd.f32 %v26432_v2, %v13735_v43  ;;  %13451 = vmatmul.mubr.bf16.gmra.mrb[136].mxu1 %v28339_v33  ;;  %v26691_v47 = vsel %vm13909_vm1, %v28242_v28, %v13986_v22  ;;  %v28787_v28 = vrot.slane %v26442_v51, 7  ;;  %v28790_v48 = vld [vmem:[#allocation61_spill] sm:$0xff] }
 0xad9   : > { %28780 = vst [vmem:[#allocation57_spill] sm:$0xff] %v26672_v14  ;;  %v26686_v3 = vadd.f32 %v26438_v40, %v13736_v37  ;;  %19313 = vmatprep.mubr.bf16.mxu1 %v28339_v33  ;;  %v28785_v40 = vrot.slane %v26440_v12, 7  ;;  %v28821_v23 = vld [vmem:[#allocation145_spill] sm:$0xff] }
 0xada   : > { %28781 = vst [vmem:[#allocation186_spill] sm:$0xff] %v26677_v39  ;;  %v13046_v2 = vpop.f32.mrb[52].mxu0 }
 0xadb   : > { %28782 = vst [vmem:[#allocation187_spill] sm:$0xff] %v26686_v3  ;;  %v13159_v43 = vpop.f32.mrb[0].mxu1  ;;  %v26695_v34 = vadd.f32 %v13046_v2, %v28783_v30  ;;  %v13048_v29 = vpop.f32.mrb[53].mxu0  ;;  %v14080_v10 = vsel %vm13909_vm1, 0.0, %v28785_v40  ;;  %v14081_v2 = vsel %vm13909_vm1, 0.0, %v28787_v28 }
 0xadc   : > { %v13737_v63 = vadd.f32 %v28784_v15, %v13159_v43  ;;  %v13161_v60 = vpop.f32.mrb[1].mxu1  ;;  %v26702_v52 = vadd.f32 %v13048_v29, %v28786_v19  ;;  %v13050_v22 = vpop.f32.mrb[54].mxu0  ;;  %v28789_v43 = vld [vmem:[#allocation39_spill] sm:$0xff]  ;;  %v28792_v29 = vld [vmem:[#allocation40_spill] sm:$0xff] }
 0xadd   : > { %v13738_v36 = vadd.f32 %v13161_v60, %v25948_v58  ;;  %v13163_v37 = vpop.f32.mrb[2].mxu1  ;;  %v19454_v15 = vadd.f32 %v13050_v22, %v28789_v43  ;;  %v13052_v12 = vpop.f32.mrb[55].mxu0  ;;  %v22771_v60 = vld [vmem:[#allocation8 + $0xb0] ss:$12 sps:$4 sm:$0xff]   ;;  %v28246_v14 = vrot.slane %v26695_v34, 7  ;;  %v28796_v43 = vrot.slane %v26458_v9, 7 }
 0xade   : > { %v26708_v30 = vadd.f32 %v14080_v10, %v13737_v63  ;;  %v13739_v33 = vadd.f32 %v28790_v48, %v13163_v37  ;;  %v13165_v3 = vpop.f32.mrb[3].mxu1  ;;  %v19456_v19 = vadd.f32 %v13052_v12, %v28792_v29  ;;  %v28245_v63 = vrot.slane %v26702_v52, 7  ;;  %19311 = vmatprep.subr.bf16.mxu1 %v22771_v60  ;;  %v28797_v12 = vld [vmem:[#allocation42_spill] sm:$0xff] }
 0xadf   : > { %v26712_v40 = vadd.f32 %v14081_v2, %v13738_v36  ;;  %v13740_v58 = vadd.f32 %v13165_v3, %v25952_v55  ;;  %v13990_v51 = vrot.slane %v19454_v15, 7  ;;  %19312 = vmatpush3.bf16.msra.mxu1 %v22771_v60  ;;  %v14082_v15 = vsel %vm13909_vm1, 0.0, %v28796_v43 }
 0xae0   : > { %28788 = vst [vmem:[#allocation37_spill] sm:$0xff] %v26708_v30  ;;  %v26718_v28 = vadd.f32 %v26450_v53, %v13739_v33  ;;  %v13992_v10 = vrot.slane %v19456_v19, 7  ;;  %v28795_v53 = vld [vmem:[#allocation41_spill] sm:$0xff] }
 0xae1   : > { %28791 = vst [vmem:[#allocation59_spill] sm:$0xff] %v26712_v40  ;;  %v26722_v48 = vadd.f32 %v26456_v57, %v13740_v58  ;;  %v26727_v36 = vsel %vm13909_vm1, %v28246_v14, %v13990_v51  ;;  %v28798_v51 = vld [vmem:[#allocation179_spill] sm:$0xff]  ;;  %v28805_v40 = vld [vmem:[#allocation141_spill] sm:$0xff] }
 0xae2   : > { %28793 = vst [vmem:[#allocation38_spill] sm:$0xff] %v26718_v28  ;;  %v13056_v55 = vpop.f32.mrb[56].mxu0  ;;  %v26732_v33 = vsel %vm13909_vm1, %v28245_v63, %v13992_v10  ;;  %v28799_v10 = vrot.slane %v28798_v51, 7  ;;  %v28802_v63 = vld [vmem:[#allocation64_spill] sm:$0xff] }
 0xae3   : > { %28794 = vst [vmem:[#allocation39_spill] sm:$0xff] %v26722_v48  ;;  %v13169_v3 = vpop.f32.mrb[4].mxu1  ;;  %v26735_v22 = vadd.f32 %v13056_v55, %v28795_v53  ;;  %v13058_v37 = vpop.f32.mrb[57].mxu0  ;;  %v28806_v51 = vld [vmem:[#allocation180_spill] sm:$0xff] }
 0xae4   : > { %v13741_v57 = vadd.f32 %v25500_v44, %v13169_v3  ;;  %v13171_v2 = vpop.f32.mrb[5].mxu1  ;;  %v26742_v29 = vadd.f32 %v13058_v37, %v28797_v12  ;;  %v13060_v58 = vpop.f32.mrb[58].mxu0  ;;  %v14083_v55 = vsel %vm13909_vm1, 0.0, %v28799_v10  ;;  %v28801_v44 = vld [vmem:[#allocation43_spill] sm:$0xff]  ;;  %v28804_v37 = vld [vmem:[#allocation44_spill] sm:$0xff] }
 0xae5   : > { %v13742_v19 = vadd.f32 %v13171_v2, %v25960_v49  ;;  %v13173_v60 = vpop.f32.mrb[6].mxu1  ;;  %v19462_v3 = vadd.f32 %v13060_v58, %v28801_v44  ;;  %v13062_v9 = vpop.f32.mrb[59].mxu0  ;;  %v28247_v2 = vrot.slane %v26735_v22, 7  ;;  %v28808_v58 = vld [vmem:[#allocation181_spill] sm:$0xff] }
 0xae6   : > { %v26748_v53 = vadd.f32 %v14082_v15, %v13741_v57  ;;  %v13743_v14 = vadd.f32 %v28802_v63, %v13173_v60  ;;  %v13175_v48 = vpop.f32.mrb[7].mxu1  ;;  %v19464_v12 = vadd.f32 %v13062_v9, %v28804_v37  ;;  %v28248_v57 = vrot.slane %v26742_v29, 7  ;;  %v28812_v37 = vld [vmem:[#allocation182_spill] sm:$0xff] }
 0xae7   : > { %v26752_v43 = vadd.f32 %v14083_v55, %v13742_v19  ;;  %v13744_v49 = vadd.f32 %v13175_v48, %v28805_v40  ;;  %v13996_v28 = vrot.slane %v19462_v3, 7  ;;  %v28811_v55 = vld [vmem:[#allocation66_spill] sm:$0xff] }
 0xae8   : > { %28800 = vst [vmem:[#allocation61_spill] sm:$0xff] %v26748_v53  ;;  %v26758_v30 = vadd.f32 %v28806_v51, %v13743_v14  ;;  %v13998_v15 = vrot.slane %v19464_v12, 7  ;;  %v28810_v14 = vld [vmem:[#allocation45_spill] sm:$0xff]  ;;  %v28813_v12 = vrot.slane %v28812_v37, 7 }
 0xae9   : > { %28803 = vst [vmem:[#allocation40_spill] sm:$0xff] %v26752_v43  ;;  %v26762_v10 = vadd.f32 %v28808_v58, %v13744_v49  ;;  %v26767_v63 = vsel %vm13909_vm1, %v28247_v2, %v13996_v28  ;;  %v28814_v28 = vld [vmem:[#allocation46_spill] sm:$0xff]  ;;  %v28815_v58 = vld [vmem:[#allocation143_spill] sm:$0xff] }
 0xaea   : > { %28807 = vst [vmem:[#allocation41_spill] sm:$0xff] %v26758_v30  ;;  %v13066_v19 = vpop.f32.mrb[60].mxu0  ;;  %v26772_v40 = vsel %vm13909_vm1, %v28248_v57, %v13998_v15  ;;  %v14084_v49 = vsel %vm13909_vm1, 0.0, %v28813_v12  ;;  %v28816_v15 = vld [vmem:[#allocation183_spill] sm:$0xff]  ;;  %v28819_v30 = vld [vmem:[#allocation69_spill] sm:$0xff] }
 0xaeb   : > { %28809 = vst [vmem:[#allocation42_spill] sm:$0xff] %v26762_v10  ;;  %v13179_v60 = vpop.f32.mrb[8].mxu1  ;;  %v26775_v48 = vadd.f32 %v13066_v19, %v28810_v14  ;;  %v13068_v3 = vpop.f32.mrb[61].mxu0  ;;  %v28817_v57 = vrot.slane %v28816_v15, 7  ;;  %v28822_v15 = vld [vmem:[#allocation184_spill] sm:$0xff] }
 0xaec   : > { %v13745_v44 = vadd.f32 %v28811_v55, %v13179_v60  ;;  %v13181_v9 = vpop.f32.mrb[9].mxu1  ;;  %v26782_v51 = vadd.f32 %v13068_v3, %v28814_v28  ;;  %v13070_v10 = vpop.f32.mrb[62].mxu0  ;;  %v28818_v60 = vld [vmem:[#allocation47_spill] sm:$0xff]  ;;  %v28820_v3 = vld [vmem:[#allocation48_spill] sm:$0xff] }
 0xaed   : > { %v13746_v2 = vadd.f32 %v13181_v9, %v28815_v58  ;;  %v13183_v43 = vpop.f32.mrb[10].mxu1  ;;  %v14085_v19 = vsel %vm13909_vm1, 0.0, %v28817_v57  ;;  %v19470_v55 = vadd.f32 %v13070_v10, %v28818_v60  ;;  %v13072_v37 = vpop.f32.mrb[63].mxu0  ;;  %v28250_v58 = vrot.slane %v26775_v48, 7  ;;  %v28823_v10 = vld [vmem:[#allocation185_spill] sm:$0xff] }
 0xaee   : > { %v26788_v14 = vadd.f32 %v14084_v49, %v13745_v44  ;;  %v13747_v53 = vadd.f32 %v28819_v30, %v13183_v43  ;;  %v13185_v39 = vpop.f32.mrb[11].mxu1  ;;  %v19472_v28 = vadd.f32 %v13072_v37, %v28820_v3  ;;  %v28249_v57 = vrot.slane %v26782_v51, 7 }
 0xaef   : > { %v26792_v12 = vadd.f32 %v14085_v19, %v13746_v2  ;;  %v13748_v9 = vadd.f32 %v13185_v39, %v28821_v23  ;;  %v14002_v50 = vrot.slane %v19470_v55, 7  ;;  %v28824_v39 = vld [vmem:[#allocation71_spill] sm:$0xff]  ;;  %v28825_v19 = vrot.slane %v26494_v8, 7 }
 0xaf0   : > { %v26798_v35 = vadd.f32 %v28822_v15, %v13747_v53  ;;  %v14004_v44 = vrot.slane %v19472_v28, 7  ;;  %v28826_v55 = vld [vmem:[#allocation147_spill] sm:$0xff]  ;;  %v22768_v28 = vld [vmem:[#allocation8 + $0xc0] ss:$12 sps:$4 sm:$0xff]  }
 0xaf1   : > { %v26802_v49 = vadd.f32 %v28823_v10, %v13748_v9  ;;  %v26807_v30 = vsel %vm13909_vm1, %v28250_v58, %v14002_v50  ;;  %v14086_v60 = vsel %vm13909_vm1, 0.0, %v28825_v19  ;;  %v22770_v9 = vld [vmem:[#allocation8 + $0xc4] ss:$12 sps:$4 sm:$0xff]   ;;  %v28827_v50 = vrot.slane %v26497_v27, 7 }
 0xaf2   : > { %v26812_v23 = vsel %vm13909_vm1, %v28249_v57, %v14004_v44  ;;  %v28828_v44 = vld [vmem:[#allocation74_spill] sm:$0xff]  ;;  %15766 = vmatprep.subr.bf16.mxu0 %v22770_v9 }
 0xaf3   : > { %v13189_v43 = vpop.f32.mrb[172].mxu1  ;;  %v14087_v15 = vsel %vm13909_vm1, 0.0, %v28827_v50  ;;  %15767 = vmatpush1.bf16.msra.mxu0 %v22768_v28  ;;  %v28834_v28 = vld [vmem:[#allocation78_spill] sm:$0xff] }
 0xaf4   : > { %v13749_v53 = vadd.f32 %v28824_v39, %v13189_v43  ;;  %v13191_v2 = vpop.f32.mrb[173].mxu1  ;;  %v28829_v39 = vld [vmem:[#allocation149_spill] sm:$0xff] }
 0xaf5   : > { %v13750_v37 = vadd.f32 %v13191_v2, %v28826_v55  ;;  %v13193_v3 = vpop.f32.mrb[174].mxu1  ;;  %v28830_v55 = vld [vmem:[#allocation76_spill] sm:$0xff] }
 0xaf6   : > { %v26822_v10 = vadd.f32 %v14086_v60, %v13749_v53  ;;  %v13751_v57 = vadd.f32 %v28828_v44, %v13193_v3  ;;  %v13195_v58 = vpop.f32.mrb[175].mxu1  ;;  %v28831_v60 = vrot.slane %v26537_v0, 7 }
 0xaf7   : > { %v26825_v43 = vadd.f32 %v14087_v15, %v13750_v37  ;;  %v13752_v8 = vadd.f32 %v13195_v58, %v28829_v39  ;;  %v28832_v37 = vld [vmem:[#allocation151_spill] sm:$0xff]  ;;  %v28833_v58 = vrot.slane %v26540_v41, 7 }
 0xaf8   : > { %v26829_v19 = vadd.f32 %v26521_v59, %v13751_v57  ;;  %v14088_v3 = vsel %vm13909_vm1, 0.0, %v28831_v60  ;;  %v28836_v60 = vld [vmem:[#allocation80_spill] sm:$0xff] }
 0xaf9   : > { %v26832_v2 = vadd.f32 %v26532_v24, %v13752_v8  ;;  %v14089_v59 = vsel %vm13909_vm1, 0.0, %v28833_v58  ;;  %v28835_v8 = vld [vmem:[#allocation153_spill] sm:$0xff] }
 0xafb   : > { %v13199_v27 = vpop.f32.mrb[176].mxu1 }
 0xafc   : > { %v13753_v50 = vadd.f32 %v28830_v55, %v13199_v27  ;;  %v13201_v53 = vpop.f32.mrb[177].mxu1 }
 0xafd   : > { %v13754_v15 = vadd.f32 %v13201_v53, %v28832_v37  ;;  %v13203_v44 = vpop.f32.mrb[178].mxu1 }
 0xafe   : > { %v26842_v57 = vadd.f32 %v14088_v3, %v13753_v50  ;;  %v13755_v24 = vadd.f32 %v28834_v28, %v13203_v44  ;;  %v13205_v9 = vpop.f32.mrb[179].mxu1  ;;  %v28837_v50 = vrot.slane %v26578_v61, 7  ;;  %v28838_v44 = vld [vmem:[#allocation155_spill] sm:$0xff] }
 0xaff   : > { %v26845_v39 = vadd.f32 %v14089_v59, %v13754_v15  ;;  %v13756_v27 = vadd.f32 %v13205_v9, %v28835_v8  ;;  %v28839_v59 = vrot.slane %v26581_v62, 7 }
 0xb00   : > { %v26849_v0 = vadd.f32 %v26567_v7, %v13755_v24  ;;  %v14090_v3 = vsel %vm13909_vm1, 0.0, %v28837_v50  ;;  %v28840_v24 = vld [vmem:[#allocation82_spill] sm:$0xff]  ;;  %v28843_v50 = vld [vmem:[#allocation84_spill] sm:$0xff] }
 0xb01   : > { %v26852_v55 = vadd.f32 %v26576_v4, %v13756_v27  ;;  %v14091_v28 = vsel %vm13909_vm1, 0.0, %v28839_v59  ;;  %v28841_v27 = vld [vmem:[#allocation157_spill] sm:$0xff] }
 0xb02   : > { %v22772_v59 = vld [vmem:[#allocation8 + $0xd8] ss:$12 sps:$4 sm:$0xff]  }
 0xb03   : > { %v13209_v53 = vpop.f32.mrb[180].mxu1 }
 0xb04   : > { %v13757_v41 = vadd.f32 %v28836_v60, %v13209_v53  ;;  %v13211_v37 = vpop.f32.mrb[181].mxu1 }
 0xb05   : > { %v13758_v58 = vadd.f32 %v13211_v37, %v28838_v44  ;;  %v13213_v15 = vpop.f32.mrb[182].mxu1 }
 0xb06   : > { %v26862_v7 = vadd.f32 %v14090_v3, %v13757_v41  ;;  %v13759_v4 = vadd.f32 %v28840_v24, %v13213_v15  ;;  %v13215_v9 = vpop.f32.mrb[183].mxu1  ;;  %v22774_v41 = vld [vmem:[#allocation8 + $0xdc] ss:$12 sps:$4 sm:$0xff]   ;;  %v28844_v3 = vrot.slane %v26616_v26, 7 }
 0xb07   : > { %v26865_v8 = vadd.f32 %v14091_v28, %v13758_v58  ;;  %v13760_v53 = vadd.f32 %v13215_v9, %v28841_v27  ;;  %v28845_v58 = vld [vmem:[#allocation159_spill] sm:$0xff]  ;;  %v28846_v9 = vrot.slane %v26619_v1, 7  ;;  %15768 = vmatprep.subr.bf16.mxu0 %v22774_v41 }
 0xb08   : > { %v26869_v61 = vadd.f32 %v26605_v17, %v13759_v4  ;;  %v14092_v15 = vsel %vm13909_vm1, 0.0, %v28844_v3  ;;  %15769 = vmatpush1.bf16.msra.mxu0 %v22772_v59  ;;  %v28849_v3 = vld [vmem:[#allocation88_spill] sm:$0xff]  ;;  %v28851_v41 = vld [vmem:[#allocation163_spill] sm:$0xff] }
 0xb09   : > { %v26872_v60 = vadd.f32 %v26614_v5, %v13760_v53  ;;  %v14093_v17 = vsel %vm13909_vm1, 0.0, %v28846_v9  ;;  %v28847_v5 = vld [vmem:[#allocation86_spill] sm:$0xff] }
 0xb0b   : > { %28842 = vst [vmem:[#allocation179_spill] sm:$0xff] %v26872_v60  ;;  %v13219_v37 = vpop.f32.mrb[184].mxu1 }
 0xb0c   : > { %v13761_v62 = vadd.f32 %v28843_v50, %v13219_v37  ;;  %v13221_v44 = vpop.f32.mrb[185].mxu1  ;;  %v28848_v50 = vld [vmem:[#allocation161_spill] sm:$0xff] }
 0xb0d   : > { %v13762_v28 = vadd.f32 %v13221_v44, %v28845_v58  ;;  %v13223_v24 = vpop.f32.mrb[186].mxu1 }
 0xb0e   : > { %v26882_v4 = vadd.f32 %v14092_v15, %v13761_v62  ;;  %v13763_v27 = vadd.f32 %v28847_v5, %v13223_v24  ;;  %v13225_v53 = vpop.f32.mrb[187].mxu1  ;;  %v28850_v15 = vrot.slane %v26654_v6, 7  ;;  %v28853_v5 = vld [vmem:[#allocation90_spill] sm:$0xff] }
 0xb0f   : > { %v26885_v37 = vadd.f32 %v14093_v17, %v13762_v28  ;;  %v13764_v60 = vadd.f32 %v13225_v53, %v28848_v50  ;;  %v28852_v17 = vrot.slane %v26657_v45, 7  ;;  %v28854_v53 = vld [vmem:[#allocation165_spill] sm:$0xff] }
 0xb10   : > { %v26889_v26 = vadd.f32 %v26643_v31, %v13763_v27  ;;  %v14094_v24 = vsel %vm13909_vm1, 0.0, %v28850_v15 }
 0xb11   : > { %v26892_v44 = vadd.f32 %v26652_v38, %v13764_v60  ;;  %v14095_v59 = vsel %vm13909_vm1, 0.0, %v28852_v17  ;;  %v28858_v17 = vrot.slane %v26702_v52, 7 }
 0xb13   : > { %v13229_v1 = vpop.f32.mrb[188].mxu1 }
 0xb14   : > { %v13765_v58 = vadd.f32 %v28849_v3, %v13229_v1  ;;  %v13231_v62 = vpop.f32.mrb[189].mxu1 }
 0xb15   : > { %v13766_v28 = vadd.f32 %v13231_v62, %v28851_v41  ;;  %v13233_v9 = vpop.f32.mrb[190].mxu1  ;;  %v28855_v62 = vld [vmem:[#allocation92_spill] sm:$0xff]  ;;  %v28857_v41 = vld [vmem:[#allocation167_spill] sm:$0xff] }
 0xb16   : > { %v26902_v31 = vadd.f32 %v14094_v24, %v13765_v58  ;;  %v13767_v38 = vadd.f32 %v28853_v5, %v13233_v9  ;;  %v13235_v60 = vpop.f32.mrb[191].mxu1  ;;  %v28856_v58 = vrot.slane %v26695_v34, 7  ;;  %v28859_v5 = vld [vmem:[#allocation94_spill] sm:$0xff] }
 0xb17   : > { %v26905_v27 = vadd.f32 %v14095_v59, %v13766_v28  ;;  %v13768_v50 = vadd.f32 %v13235_v60, %v28854_v53  ;;  %v14097_v59 = vsel %vm13909_vm1, 0.0, %v28858_v17  ;;  %v28860_v53 = vld [vmem:[#allocation169_spill] sm:$0xff] }
 0xb18   : > { %v26909_v6 = vadd.f32 %v26683_v25, %v13767_v38  ;;  %v14096_v24 = vsel %vm13909_vm1, 0.0, %v28856_v58 }
 0xb19   : > { %v26912_v1 = vadd.f32 %v26691_v47, %v13768_v50 }
 0xb1b   : > { %v13239_v3 = vpop.f32.mrb[192].mxu1 }
 0xb1c   : > { %v13769_v45 = vadd.f32 %v28855_v62, %v13239_v3  ;;  %v13241_v15 = vpop.f32.mrb[193].mxu1  ;;  %v22775_v3 = vld [vmem:[#allocation8 + $0xf0] ss:$12 sps:$4 sm:$0xff]   ;;  %v22777_v62 = vld [vmem:[#allocation8 + $0xf4] ss:$12 sps:$4 sm:$0xff]  }
 0xb1d   : > { %v13770_v9 = vadd.f32 %v13241_v15, %v28857_v41  ;;  %v13243_v28 = vpop.f32.mrb[194].mxu1  ;;  %15770 = vmatprep.subr.bf16.mxu0 %v22777_v62  ;;  %v28862_v41 = vrot.slane %v26735_v22, 7 }
 0xb1e   : > { %v26922_v25 = vadd.f32 %v14096_v24, %v13769_v45  ;;  %v13771_v47 = vadd.f32 %v28859_v5, %v13243_v28  ;;  %v13245_v38 = vpop.f32.mrb[195].mxu1  ;;  %15771 = vmatpush1.bf16.msra.mxu0 %v22775_v3  ;;  %v28861_v45 = vld [vmem:[#allocation96_spill] sm:$0xff]  ;;  %v28863_v28 = vld [vmem:[#allocation171_spill] sm:$0xff]  ;;  %v28866_v3 = vld [vmem:[#allocation173_spill] sm:$0xff] }
 0xb1f   : > { %v26925_v60 = vadd.f32 %v14097_v59, %v13770_v9  ;;  %v13772_v50 = vadd.f32 %v13245_v38, %v28860_v53  ;;  %v14098_v9 = vsel %vm13909_vm1, 0.0, %v28862_v41 }
 0xb20   : > { %v26929_v34 = vadd.f32 %v26727_v36, %v13771_v47  ;;  %v28864_v36 = vrot.slane %v26742_v29, 7 }
 0xb21   : > { %v26932_v15 = vadd.f32 %v26732_v33, %v13772_v50  ;;  %v28865_v33 = vld [vmem:[#allocation98_spill] sm:$0xff] }
 0xb22   : > { %v14099_v5 = vsel %vm13909_vm1, 0.0, %v28864_v36  ;;  %v28870_v36 = vrot.slane %v26782_v51, 7 }
 0xb23   : > { %v13249_v52 = vpop.f32.mrb[196].mxu1 }
 0xb24   : > { %v13773_v58 = vadd.f32 %v28861_v45, %v13249_v52  ;;  %v13251_v24 = vpop.f32.mrb[197].mxu1 }
 0xb25   : > { %v13774_v17 = vadd.f32 %v13251_v24, %v28863_v28  ;;  %v13253_v59 = vpop.f32.mrb[198].mxu1  ;;  %v28867_v24 = vld [vmem:[#allocation100_spill] sm:$0xff]  ;;  %v28869_v28 = vld [vmem:[#allocation175_spill] sm:$0xff] }
 0xb26   : > { %v26942_v47 = vadd.f32 %v14098_v9, %v13773_v58  ;;  %v13775_v38 = vadd.f32 %v28865_v33, %v13253_v59  ;;  %v13255_v53 = vpop.f32.mrb[199].mxu1  ;;  %v28868_v58 = vrot.slane %v26775_v48, 7  ;;  %v28871_v33 = vld [vmem:[#allocation102_spill] sm:$0xff] }
 0xb27   : > { %v26945_v50 = vadd.f32 %v14099_v5, %v13774_v17  ;;  %v13776_v62 = vadd.f32 %v13255_v53, %v28866_v3  ;;  %v14101_v5 = vsel %vm13909_vm1, 0.0, %v28870_v36  ;;  %v28872_v3 = vld [vmem:[#allocation177_spill] sm:$0xff] }
 0xb28   : > { %v26949_v22 = vadd.f32 %v26767_v63, %v13775_v38  ;;  %v14100_v9 = vsel %vm13909_vm1, 0.0, %v28868_v58 }
 0xb29   : > { %v26952_v52 = vadd.f32 %v26772_v40, %v13776_v62 }
 0xb2b   : > { %v13259_v45 = vpop.f32.mrb[200].mxu1 }
 0xb2c   : > { %v13777_v29 = vadd.f32 %v28867_v24, %v13259_v45  ;;  %v13261_v41 = vpop.f32.mrb[201].mxu1  ;;  %v22778_v24 = vld [vmem:[#allocation8 + $0x108] ss:$12 sps:$4 sm:$0xff]  }
 0xb2d   : > { %v13778_v59 = vadd.f32 %v13261_v41, %v28869_v28  ;;  %v13263_v17 = vpop.f32.mrb[202].mxu1  ;;  %v22780_v41 = vld [vmem:[#allocation8 + $0x10c] ss:$12 sps:$4 sm:$0xff]  }
 0xb2e   : > { %v26962_v63 = vadd.f32 %v14100_v9, %v13777_v29  ;;  %v13779_v40 = vadd.f32 %v28871_v33, %v13263_v17  ;;  %v13265_v38 = vpop.f32.mrb[203].mxu1  ;;  %15772 = vmatprep.subr.bf16.mxu0 %v22780_v41  ;;  %v14495_v29 = vsub.s32 1, %v26523_v32  ;;  %v28876_v41 = vld [vmem:[#allocation134_spill] sm:$0xff] }
 0xb2f   : > { %v26965_v53 = vadd.f32 %v14101_v5, %v13778_v59  ;;  %v13780_v62 = vadd.f32 %v13265_v38, %v28872_v3  ;;  %15773 = vmatpush1.bf16.msra.mxu0 %v22778_v24 }
 0xb30   : > { %v26969_v48 = vadd.f32 %v26807_v30, %v13779_v40  ;;  %v26978_v33 = vrot.slane %v26534_v42, %v14495_v29 }
 0xb31   : > { %v26972_v45 = vadd.f32 %v26812_v23, %v13780_v62  ;;  %v28875_v62 = vld [vmem:[#allocation133_spill] sm:$0xff] }
 0xb33   : > { %v13302_v51 = vpop.f32.mrb[76].mxu1 }
 0xb34   : > { %v13304_v58 = vpop.f32.mrb[77].mxu1  ;;  %v14167_v28 = vrot.slane %v13302_v51, 1 }
 0xb35   : > { %v13306_v9 = vpop.f32.mrb[78].mxu1  ;;  %v14170_v36 = vrot.slane %v13304_v58, 1 }
 0xb36   : > { %v14168_v59 = vrot.slane %v13306_v9, 1  ;;  %v13308_v17 = vpop.f32.mrb[79].mxu1 }
 0xb37   : > { %v14171_v5 = vrot.slane %v13308_v17, 1 }
 0xb38   : > { %v14169_v30 = vsel %vm14166_vm2, %v14167_v28, %v14168_v59  ;;  %v14327_v23 = vsel %vm14166_vm2, %v14168_v59, 0.0 }
 0xb39   : > { %v26981_v40 = vadd.f32 %v26507_v21, %v14169_v30  ;;  %v26984_v32 = vadd.f32 %v26515_v20, %v14327_v23  ;;  %v14172_v38 = vsel %vm14166_vm2, %v14170_v36, %v14171_v5  ;;  %v14328_v3 = vsel %vm14166_vm2, %v14171_v5, 0.0 }
 0xb3a   : > { %v14424_v24 = vadd.f32 %v28875_v62, %v14172_v38  ;;  %v14426_v51 = vadd.f32 %v28876_v41, %v14328_v3  ;;  %v22781_v62 = vld [vmem:[#allocation8 + $0x120] ss:$12 sps:$4 sm:$0xff]   ;;  %v22783_v3 = vld [vmem:[#allocation8 + $0x124] ss:$12 sps:$4 sm:$0xff]  }
 0xb3b   : > { %28873 = vst [vmem:[#allocation43_spill] sm:$0xff] %v26981_v40  ;;  %28874 = vst [vmem:[#allocation64_spill] sm:$0xff] %v26984_v32  ;;  %v13312_v58 = vpop.f32.mrb[80].mxu1  ;;  %15774 = vmatprep.subr.bf16.mxu0 %v22783_v3 }
 0xb3c   : > { %v14500_v9 = vadd.f32 %v26978_v33, %v14424_v24  ;;  %v14502_v42 = vadd.f32 %v26978_v33, %v14426_v51  ;;  %v13314_v29 = vpop.f32.mrb[81].mxu1  ;;  %v14173_v28 = vrot.slane %v13312_v58, 1  ;;  %15775 = vmatpush1.bf16.msra.mxu0 %v22781_v62 }
 0xb3d   : > { %v13316_v21 = vpop.f32.mrb[82].mxu1  ;;  %v14176_v23 = vrot.slane %v13314_v29, 1 }
 0xb3e   : > { %v18597_v59 = vmul.f32 -1.442695, %v14500_v9  ;;  %v18598_v17 = vmul.f32 -1.442695, %v14502_v42  ;;  %v14174_v20 = vrot.slane %v13316_v21, 1  ;;  %v13318_v30 = vpop.f32.mrb[83].mxu1 }
 0xb3f   : > { %v14177_v36 = vrot.slane %v13318_v30, 1  ;;  %v28879_v42 = vld [vmem:[#allocation32_spill] sm:$0xff] }
 0xb40   : > { %v14175_v5 = vsel %vm14166_vm2, %v14173_v28, %v14174_v20  ;;  %v14329_v38 = vsel %vm14166_vm2, %v14174_v20, 0.0  ;;  %22833 = vpow2.f32 %v18597_v59 }
 0xb41   : > { %v26995_v24 = vadd.f32 %v26553_v54, %v14175_v5  ;;  %v26998_v41 = vadd.f32 %v26561_v11, %v14329_v38  ;;  %v14178_v51 = vsel %vm14166_vm2, %v14176_v23, %v14177_v36  ;;  %22835 = vpow2.f32 %v18598_v17 }
 0xb42   : > { %v14330_v58 = vsel %vm14166_vm2, %v14177_v36, 0.0  ;;  %v14428_v9 = vadd.f32 %v26557_v13, %v14178_v51 }
 0xb43   : > { %28877 = vst [vmem:[#allocation44_spill] sm:$0xff] %v26995_v24  ;;  %28878 = vst [vmem:[#allocation141_spill] sm:$0xff] %v26998_v41  ;;  %v14430_v29 = vadd.f32 %v28879_v42, %v14330_v58  ;;  %v13322_v28 = vpop.f32.mrb[84].mxu1 }
 0xb44   : > { %v14504_v21 = vadd.f32 %v26978_v33, %v14428_v9  ;;  %v13324_v59 = vpop.f32.mrb[85].mxu1  ;;  %v14179_v30 = vrot.slane %v13322_v28, 1  ;;  %v27015_v9 = vld [vmem:[#allocation8 + $0xc8] ss:$12 sps:$4 sm:$0xff]  }
 0xb45   : > { %v14506_v54 = vadd.f32 %v26978_v33, %v14430_v29  ;;  %v13326_v20 = vpop.f32.mrb[86].mxu1  ;;  %v14182_v38 = vrot.slane %v13324_v59, 1  ;;  %19345 = vmatprep.subr.bf16.mxu1 %v27015_v9 }
 0xb46   : > { %v18599_v11 = vmul.f32 -1.442695, %v14504_v21  ;;  %v14180_v5 = vrot.slane %v13326_v20, 1  ;;  %v13328_v23 = vpop.f32.mrb[87].mxu1  ;;  %v28882_v21 = vld [vmem:[#allocation21_spill] sm:$0xff] }
 0xb47   : > { %v18600_v17 = vmul.f32 -1.442695, %v14506_v54  ;;  %v14183_v36 = vrot.slane %v13328_v23, 1 }
 0xb48   : > { %v14181_v13 = vsel %vm14166_vm2, %v14179_v30, %v14180_v5  ;;  %v14331_v3 = vsel %vm14166_vm2, %v14180_v5, 0.0  ;;  %22837 = vpow2.f32 %v18599_v11 }
 0xb49   : > { %v27009_v62 = vadd.f32 %v26591_v46, %v14181_v13  ;;  %v27012_v51 = vadd.f32 %v26599_v18, %v14331_v3  ;;  %v14184_v58 = vsel %vm14166_vm2, %v14182_v38, %v14183_v36  ;;  %22839 = vpow2.f32 %v18600_v17 }
 0xb4a   : > { %v14332_v42 = vsel %vm14166_vm2, %v14183_v36, 0.0  ;;  %v14432_v29 = vadd.f32 %v26595_v16, %v14184_v58  ;;  %v22834_v28 = vpop.eup %22833 }
 0xb4b   : > { %28880 = vst [vmem:[#allocation180_spill] sm:$0xff] %v27009_v62  ;;  %28881 = vst [vmem:[#allocation181_spill] sm:$0xff] %v27012_v51  ;;  %v14434_v59 = vadd.f32 %v28882_v21, %v14332_v42  ;;  %v13332_v54 = vpop.f32.mrb[88].mxu1  ;;  %v22836_v46 = vpop.eup %22835  ;;  %v14851_v20 = vadd.f32 1.0, %v22834_v28 }
 0xb4c   : > { %v14508_v18 = vadd.f32 %v26978_v33, %v14432_v29  ;;  %v13334_v11 = vpop.f32.mrb[89].mxu1  ;;  %v14852_v30 = vadd.f32 1.0, %v22836_v46  ;;  %v14185_v38 = vrot.slane %v13332_v54, 1  ;;  %v28884_v46 = vld [vmem:[#allocation51_spill] sm:$0xff] }
 0xb4d   : > { %v13336_v5 = vpop.f32.mrb[90].mxu1  ;;  %22841 = vrcp.f32 %v14851_v20  ;;  %v14510_v23 = vadd.f32 %v26978_v33, %v14434_v59  ;;  %v14188_v16 = vrot.slane %v13334_v11, 1 }
 0xb4e   : > { %v18601_v17 = vmul.f32 -1.442695, %v14508_v18  ;;  %v13338_v36 = vpop.f32.mrb[91].mxu1  ;;  %22843 = vrcp.f32 %v14852_v30  ;;  %v14186_v13 = vrot.slane %v13336_v5, 1  ;;  %v28886_v18 = vld [vmem:[#allocation49_spill] sm:$0xff] }
 0xb4f   : > { %v14189_v3 = vrot.slane %v13338_v36, 1  ;;  %v18602_v58 = vmul.f32 -1.442695, %v14510_v23 }
 0xb50   : > { %v14187_v42 = vsel %vm14166_vm2, %v14185_v38, %v14186_v13  ;;  %v14333_v28 = vsel %vm14166_vm2, %v14186_v13, 0.0  ;;  %22845 = vpow2.f32 %v18601_v17 }
 0xb51   : > { %v14190_v29 = vsel %vm14166_vm2, %v14188_v16, %v14189_v3  ;;  %v27027_v21 = vadd.f32 %v26629_v56, %v14187_v42  ;;  %v27030_v59 = vadd.f32 %v28884_v46, %v14333_v28  ;;  %22847 = vpow2.f32 %v18602_v58  ;;  %v28887_v16 = vld [vmem:[#allocation53_spill] sm:$0xff] }
 0xb52   : > { %v22838_v54 = vpop.eup %22837  ;;  %v14334_v20 = vsel %vm14166_vm2, %v14189_v3, 0.0  ;;  %v14436_v11 = vadd.f32 %v28886_v18, %v14190_v29  ;;  %v22784_v28 = vld [vmem:[#allocation8 + $0x138] ss:$12 sps:$4 sm:$0xff]  }
 0xb53   : > { %28883 = vst [vmem:[#allocation45_spill] sm:$0xff] %v27027_v21  ;;  %28885 = vst [vmem:[#allocation66_spill] sm:$0xff] %v27030_v59  ;;  %v13342_v30 = vpop.f32.mrb[92].mxu1  ;;  %v22840_v5 = vpop.eup %22839  ;;  %v14853_v23 = vadd.f32 1.0, %v22838_v54  ;;  %v14438_v17 = vadd.f32 %v28887_v16, %v14334_v20  ;;  %v22786_v54 = vld [vmem:[#allocation8 + $0x13c] ss:$12 sps:$4 sm:$0xff]  }
 0xb54   : > { %v13344_v38 = vpop.f32.mrb[93].mxu1  ;;  %v14854_v36 = vadd.f32 1.0, %v22840_v5  ;;  %v14512_v56 = vadd.f32 %v26978_v33, %v14436_v11  ;;  %v14191_v46 = vrot.slane %v13342_v30, 1  ;;  %v23153_v21 = vld [vmem:[%s23839_s19] sm:$0xff]  ;;  %v23154_v11 = vld [vmem:[%s23839_s19 + $0x8] sm:$0xff]  ;;  %15776 = vmatprep.subr.bf16.mxu0 %v22786_v54 }
 0xb55   : > { %v13346_v13 = vpop.f32.mrb[94].mxu1  ;;  %22849 = vrcp.f32 %v14853_v23  ;;  %v14514_v58 = vadd.f32 %v26978_v33, %v14438_v17  ;;  %v14194_v20 = vrot.slane %v13344_v38, 1  ;;  %v28888_v17 = vld [vmem:[#allocation55_spill] sm:$0xff]  ;;  %v28890_v30 = vld [vmem:[#allocation186_spill] sm:$0xff]  ;;  %15777 = vmatpush1.bf16.msra.mxu0 %v22784_v28  ;;  %v28893_v54 = vld [vmem:[#allocation57_spill] sm:$0xff]  ;;  %v28895_v28 = vmov 0  }
 0xb56   : > { %v13348_v42 = vpop.f32.mrb[95].mxu1  ;;  %22851 = vrcp.f32 %v14854_v36  ;;  %v18603_v3 = vmul.f32 -1.442695, %v14512_v56  ;;  %v14192_v18 = vrot.slane %v13346_v13, 1 }
 0xb57   : > { %v22842_v29 = vpop.eup %22841  ;;  %v18604_v51 = vmul.f32 -1.442695, %v14514_v58  ;;  %v14195_v16 = vrot.slane %v13348_v42, 1 }
 0xb58   : > { %v22844_v59 = vpop.eup %22843  ;;  %v14947_v5 = vmul.f32 %v23153_v21, %v22842_v29  ;;  %22853 = vpow2.f32 %v18603_v3  ;;  %v14193_v23 = vsel %vm14166_vm2, %v14191_v46, %v14192_v18  ;;  %v14335_v36 = vsel %vm14166_vm2, %v14192_v18, 0.0  ;;  %v22791_v3 = vld [vmem:[#allocation8 + $0xe0] ss:$12 sps:$4 sm:$0xff]  }
 0xb59   : > { %v14948_v62 = vmul.f32 %v23154_v11, %v22844_v59  ;;  %22855 = vpow2.f32 %v18604_v51  ;;  %v27042_v56 = vadd.f32 %v28888_v17, %v14193_v23  ;;  %v27045_v13 = vadd.f32 %v28890_v30, %v14335_v36  ;;  %v28894_v23 = vld [vmem:[#allocation187_spill] sm:$0xff] }
 0xb5a   : > { %v22846_v21 = vpop.eup %22845  ;;  %v14196_v59 = vsel %vm14166_vm2, %v14194_v20, %v14195_v16  ;;  %v14336_v42 = vsel %vm14166_vm2, %v14195_v16, 0.0  ;;  %v22792_v17 = vld [vmem:[#allocation8 + $0xf8] ss:$12 sps:$4 sm:$0xff]  }
 0xb5b   : > { %28889 = vst [vmem:[#allocation182_spill] sm:$0xff] %v27042_v56  ;;  %28891 = vst [vmem:[#allocation46_spill] sm:$0xff] %v27045_v13  ;;  %v13352_v41 = vpop.f32.mrb[96].mxu1  ;;  %v27047_v38 = vpack.c.bf16 %v14948_v62, %v14947_v5  ;;  %v22848_v29 = vpop.eup %22847  ;;  %v14855_v46 = vadd.f32 1.0, %v22846_v21  ;;  %v14440_v11 = vadd.f32 %v28893_v54, %v14196_v59  ;;  %v14442_v36 = vadd.f32 %v28894_v23, %v14336_v42  ;;  %v23155_v21 = vld [vmem:[%s23839_s19 + $0x10] sm:$0xff] }
 0xb5c   : > { %v13354_v58 = vpop.f32.mrb[97].mxu1  ;;  %v14856_v18 = vadd.f32 1.0, %v22848_v29  ;;  %v22789_v42 = vld [vmem:[#allocation8 + $0x154] ss:$12 sps:$4 sm:$0xff]   ;;  %v23156_v29 = vld [vmem:[%s23839_s19 + $0x18] sm:$0xff]  ;;  %v14197_v13 = vrot.slane %v13352_v41, 1 }
 0xb5d   : > { %28892 = vst [vmem:[#allocation143_spill] sm:$0xff] %v27047_v38  ;;  %v13356_v51 = vpop.f32.mrb[98].mxu1  ;;  %15198 = vmatmul.mubr.bf16.gmra.mrb[196].mxu0 %v27047_v38  ;;  %19314 = vmatmul.mubr.bf16.vlgmr.msra.gmra.mrb[140].mxu1 %v27047_v38  ;;  %22857 = vrcp.f32 %v14855_v46  ;;  %v14516_v20 = vadd.f32 %v26978_v33, %v14440_v11  ;;  %v14518_v16 = vadd.f32 %v26978_v33, %v14442_v36  ;;  %v22787_v46 = vld [vmem:[#allocation8 + $0x150] ss:$12 sps:$4 sm:$0xff]  }
 0xb5e   : > { %v13358_v62 = vpop.f32.mrb[99].mxu1  ;;  %15207 = vmatprep.mubr.bf16.mxu0 %v28895_v28  ;;  %19346 = vmatpush3.bf16.msra.mxu1 %v27015_v9  ;;  %22859 = vrcp.f32 %v14856_v18  ;;  %v14198_v56 = vrot.slane %v13356_v51, 1  ;;  %v22793_v18 = vld [vmem:[#allocation8 + $0x110] ss:$12 sps:$4 sm:$0xff]  }
 0xb5f   : > { %v22850_v5 = vpop.eup %22849  ;;  %19347 = vmatprep.subr.bf16.mxu1 %v22791_v3  ;;  %v18605_v23 = vmul.f32 -1.442695, %v14516_v20  ;;  %v14201_v24 = vrot.slane %v13358_v62, 1  ;;  %15778 = vmatprep.subr.bf16.mxu0 %v22789_v42  ;;  %v18606_v36 = vmul.f32 -1.442695, %v14518_v16  ;;  %v14200_v20 = vrot.slane %v13354_v58, 1 }
 0xb60   : > { %v22852_v30 = vpop.eup %22851  ;;  %v14949_v59 = vmul.f32 %v23155_v21, %v22850_v5  ;;  %15779 = vmatpush1.bf16.msra.mxu0 %v22787_v46  ;;  %v22796_v5 = vld [vmem:[#allocation8 + $0x16c] ss:$12 sps:$4 sm:$0xff]   ;;  %v14199_v41 = vsel %vm14166_vm2, %v14197_v13, %v14198_v56  ;;  %v14337_v51 = vsel %vm14166_vm2, %v14198_v56, 0.0  ;;  %v22794_v42 = vld [vmem:[#allocation8 + $0x168] ss:$12 sps:$4 sm:$0xff]  }
 0xb61   : > { %v14950_v54 = vmul.f32 %v23156_v29, %v22852_v30  ;;  %22861 = vpow2.f32 %v18605_v23  ;;  %v28897_v29 = vld [vmem:[#allocation37_spill] sm:$0xff]  ;;  %v14202_v13 = vsel %vm14166_vm2, %v14200_v20, %v14201_v24  ;;  %v14338_v56 = vsel %vm14166_vm2, %v14201_v24, 0.0  ;;  %15780 = vmatprep.subr.bf16.mxu0 %v22796_v5 }
 0xb62   : > { %19348 = vmatpush3.bf16.msra.mxu1 %v22791_v3  ;;  %v22854_v11 = vpop.eup %22853  ;;  %v27066_v38 = vadd.f32 %v28897_v29, %v14199_v41  ;;  %v22797_v58 = vld [vmem:[#allocation8 + $0x128] ss:$12 sps:$4 sm:$0xff]   ;;  %v22803_v23 = vld [vmem:[#allocation8 + $0x184] ss:$12 sps:$4 sm:$0xff]  }
 0xb63   : > { %v13362_v9 = vpop.f32.mrb[100].mxu1  ;;  %v27061_v32 = vpack.c.bf16 %v14950_v54, %v14949_v59  ;;  %19349 = vmatprep.subr.bf16.mxu1 %v22792_v17  ;;  %v22856_v21 = vpop.eup %22855  ;;  %v14857_v30 = vadd.f32 1.0, %v22854_v11  ;;  %v28899_v59 = vld [vmem:[#allocation38_spill] sm:$0xff]  ;;  %v28901_v11 = vld [vmem:[#allocation59_spill] sm:$0xff]  ;;  %v23157_v20 = vld [vmem:[%s23839_s19 + $0x20] sm:$0xff] }
 0xb64   : > { %v13364_v40 = vpop.f32.mrb[101].mxu1  ;;  %v14858_v3 = vadd.f32 1.0, %v22856_v21  ;;  %28898 = vst [vmem:[#allocation47_spill] sm:$0xff] %v27066_v38  ;;  %v27069_v54 = vadd.f32 %v28899_v59, %v14337_v51  ;;  %v14444_v21 = vadd.f32 %v28901_v11, %v14202_v13  ;;  %v28902_v41 = vld [vmem:[#allocation39_spill] sm:$0xff]  ;;  %15781 = vmatpush1.bf16.msra.mxu0 %v22794_v42  ;;  %v14203_v24 = vrot.slane %v13362_v9, 1 }
 0xb65   : > { %28896 = vst [vmem:[#allocation183_spill] sm:$0xff] %v27061_v32  ;;  %v13366_v62 = vpop.f32.mrb[102].mxu1  ;;  %15208 = vmatmul.mubr.bf16.gmra.mrb[200].mxu0 %v27061_v32  ;;  %19317 = vmatprep.mubr.bf16.mxu1 %v27061_v32  ;;  %22863 = vrcp.f32 %v14857_v30  ;;  %v14446_v30 = vadd.f32 %v28902_v41, %v14338_v56 }
 0xb66   : > { %28900 = vst [vmem:[#allocation69_spill] sm:$0xff] %v27069_v54  ;;  %v13368_v16 = vpop.f32.mrb[103].mxu1  ;;  %15217 = vmatprep.mubr.bf16.mxu0 %v28895_v28  ;;  %19350 = vmatpush3.bf16.msra.mxu1 %v22792_v17  ;;  %22865 = vrcp.f32 %v14858_v3  ;;  %v14204_v59 = vrot.slane %v13366_v62, 1  ;;  %v23158_v17 = vld [vmem:[%s23839_s19 + $0x28] sm:$0xff]  ;;  %v14520_v54 = vadd.f32 %v26978_v33, %v14444_v21  ;;  %v14206_v62 = vrot.slane %v13364_v40, 1 }
 0xb67   : > { %19351 = vmatprep.subr.bf16.mxu1 %v22793_v18  ;;  %v22858_v46 = vpop.eup %22857  ;;  %22867 = vpow2.f32 %v18606_v36  ;;  %16377 = vmatprep.subr.bf16.mxu0 %v22803_v23  ;;  %v14522_v5 = vadd.f32 %v26978_v33, %v14446_v30  ;;  %v14207_v38 = vrot.slane %v13368_v16, 1  ;;  %v28904_v21 = vld [vmem:[#allocation61_spill] sm:$0xff] }
 0xb68   : > { %v22860_v51 = vpop.eup %22859  ;;  %v14951_v29 = vmul.f32 %v23157_v20, %v22858_v46  ;;  %v14205_v36 = vsel %vm14166_vm2, %v14203_v24, %v14204_v59  ;;  %v14339_v13 = vsel %vm14166_vm2, %v14204_v59, 0.0  ;;  %v18607_v9 = vmul.f32 -1.442695, %v14520_v54  ;;  %v22798_v46 = vld [vmem:[#allocation8 + $0x140] ss:$12 sps:$4 sm:$0xff]   ;;  %v28906_v16 = vld [vmem:[#allocation41_spill] sm:$0xff] }
 0xb69   : > { %v14952_v3 = vmul.f32 %v23158_v17, %v22860_v51  ;;  %v18608_v41 = vmul.f32 -1.442695, %v14522_v5  ;;  %v27087_v51 = vadd.f32 %v28904_v21, %v14205_v36  ;;  %v27090_v30 = vadd.f32 %v28906_v16, %v14339_v13  ;;  %v28908_v54 = vld [vmem:[#allocation40_spill] sm:$0xff]  ;;  %v28909_v17 = vld [vmem:[#allocation42_spill] sm:$0xff]  ;;  %v22799_v5 = vld [vmem:[#allocation8 + $0x158] ss:$12 sps:$4 sm:$0xff]  }
 0xb6a   : > { %19352 = vmatpush3.bf16.msra.mxu1 %v22793_v18  ;;  %v14208_v24 = vsel %vm14166_vm2, %v14206_v62, %v14207_v38  ;;  %22869 = vpow2.f32 %v18607_v9  ;;  %v23159_v13 = vld [vmem:[%s23839_s19 + $0x30] sm:$0xff] }
 0xb6b   : > { %v13372_v32 = vpop.f32.mrb[104].mxu1  ;;  %19353 = vmatprep.subr.bf16.mxu1 %v22797_v58  ;;  %v27084_v56 = vpack.c.bf16 %v14952_v3, %v14951_v29  ;;  %v22862_v11 = vpop.eup %22861  ;;  %28905 = vst [vmem:[#allocation145_spill] sm:$0xff] %v27087_v51  ;;  %28907 = vst [vmem:[#allocation184_spill] sm:$0xff] %v27090_v30  ;;  %v14340_v29 = vsel %vm14166_vm2, %v14207_v38, 0.0  ;;  %v14448_v59 = vadd.f32 %v28908_v54, %v14208_v24 }
 0xb6c   : > { %v13374_v42 = vpop.f32.mrb[105].mxu1  ;;  %v14859_v20 = vadd.f32 1.0, %v22862_v11  ;;  %v14450_v3 = vadd.f32 %v28909_v17, %v14340_v29  ;;  %v23160_v11 = vld [vmem:[%s23839_s19 + $0x38] sm:$0xff] }
 0xb6d   : > { %28903 = vst [vmem:[#allocation48_spill] sm:$0xff] %v27084_v56  ;;  %v13376_v23 = vpop.f32.mrb[106].mxu1  ;;  %15218 = vmatmul.mubr.bf16.gmra.mrb[204].mxu0 %v27084_v56  ;;  %19318 = vmatmul.mubr.bf16.gmra.mrb[144].mxu1 %v27084_v56  ;;  %v14524_v9 = vadd.f32 %v26978_v33, %v14448_v59  ;;  %v22800_v29 = vld [vmem:[#allocation8 + $0x170] ss:$12 sps:$4 sm:$0xff]  }
 0xb6e   : > { %v13378_v18 = vpop.f32.mrb[107].mxu1  ;;  %15227 = vmatprep.mubr.bf16.mxu0 %v28895_v28  ;;  %19354 = vmatpush3.bf16.msra.mxu1 %v22797_v58  ;;  %22871 = vrcp.f32 %v14859_v20  ;;  %v14526_v16 = vadd.f32 %v26978_v33, %v14450_v3  ;;  %v14209_v20 = vrot.slane %v13372_v32, 1  ;;  %v14210_v51 = vrot.slane %v13376_v23, 1 }
 0xb6f   : > { %v22864_v40 = vpop.eup %22863  ;;  %19355 = vmatprep.subr.bf16.mxu1 %v22798_v46  ;;  %22873 = vpow2.f32 %v18608_v41  ;;  %v18609_v17 = vmul.f32 -1.442695, %v14524_v9  ;;  %v14213_v3 = vrot.slane %v13378_v18, 1 }
 0xb70   : > { %v22866_v36 = vpop.eup %22865  ;;  %v14953_v38 = vmul.f32 %v23159_v13, %v22864_v40  ;;  %v18610_v56 = vmul.f32 -1.442695, %v14526_v16  ;;  %v14212_v40 = vrot.slane %v13374_v42, 1  ;;  %v14341_v59 = vsel %vm14166_vm2, %v14210_v51, 0.0 }
 0xb71   : > { %v22868_v62 = vpop.eup %22867  ;;  %v14954_v21 = vmul.f32 %v23160_v11, %v22866_v36  ;;  %v14211_v36 = vsel %vm14166_vm2, %v14209_v20, %v14210_v51  ;;  %v27111_v23 = vadd.f32 %v26798_v35, %v14341_v59  ;;  %v23161_v20 = vld [vmem:[%s23839_s19 + $0x40] sm:$0xff] }
 0xb72   : > { %v14860_v30 = vadd.f32 1.0, %v22868_v62  ;;  %19356 = vmatpush3.bf16.msra.mxu1 %v22798_v46  ;;  %v27108_v32 = vadd.f32 %v26788_v14, %v14211_v36  ;;  %v14214_v42 = vsel %vm14166_vm2, %v14212_v40, %v14213_v3  ;;  %v14342_v46 = vsel %vm14166_vm2, %v14213_v3, 0.0 }
 0xb73   : > { %v13382_v58 = vpop.f32.mrb[108].mxu1  ;;  %v27103_v54 = vpack.c.bf16 %v14954_v21, %v14953_v38  ;;  %19357 = vmatprep.subr.bf16.mxu1 %v22799_v5  ;;  %v14452_v14 = vadd.f32 %v26792_v12, %v14214_v42  ;;  %v14454_v35 = vadd.f32 %v26802_v49, %v14342_v46  ;;  %v23162_v46 = vld [vmem:[%s23839_s19 + $0x48] sm:$0xff] }
 0xb74   : > { %v13384_v24 = vpop.f32.mrb[109].mxu1  ;;  %22875 = vrcp.f32 %v14860_v30  ;;  %v22870_v51 = vpop.eup %22869 }
 0xb75   : > { %v13386_v41 = vpop.f32.mrb[110].mxu1  ;;  %22877 = vpow2.f32 %v18609_v17  ;;  %15228 = vmatmul.mubr.bf16.gmra.mrb[208].mxu0 %v27103_v54  ;;  %19321 = vmatprep.mubr.bf16.mxu1 %v27103_v54  ;;  %v14861_v18 = vadd.f32 1.0, %v22870_v51  ;;  %v14528_v62 = vadd.f32 %v26978_v33, %v14452_v14  ;;  %v14530_v12 = vadd.f32 %v26978_v33, %v14454_v35 }
 0xb76   : > { %v13388_v13 = vpop.f32.mrb[111].mxu1  ;;  %22879 = vpow2.f32 %v18610_v56  ;;  %15237 = vmatprep.mubr.bf16.mxu0 %v28895_v28  ;;  %19358 = vmatpush3.bf16.msra.mxu1 %v22799_v5  ;;  %v14215_v56 = vrot.slane %v13382_v58, 1  ;;  %v14216_v9 = vrot.slane %v13386_v41, 1  ;;  %v14218_v40 = vrot.slane %v13384_v24, 1 }
 0xb77   : > { %19359 = vmatprep.subr.bf16.mxu1 %v22800_v29  ;;  %22881 = vrcp.f32 %v14861_v18  ;;  %v14219_v16 = vrot.slane %v13388_v13, 1  ;;  %v18611_v36 = vmul.f32 -1.442695, %v14528_v62 }
 0xb78   : > { %v22872_v30 = vpop.eup %22871  ;;  %v14217_v59 = vsel %vm14166_vm2, %v14215_v56, %v14216_v9  ;;  %v14343_v58 = vsel %vm14166_vm2, %v14216_v9, 0.0 }
 0xb79   : > { %v22874_v38 = vpop.eup %22873  ;;  %v14955_v17 = vmul.f32 %v23161_v20, %v22872_v30  ;;  %v27126_v42 = vadd.f32 %v26822_v10, %v14217_v59  ;;  %v27129_v41 = vadd.f32 %v26829_v19, %v14343_v58  ;;  %v14220_v24 = vsel %vm14166_vm2, %v14218_v40, %v14219_v16 }
 0xb7a   : > { %19360 = vmatpush3.bf16.msra.mxu1 %v22800_v29  ;;  %v14862_v21 = vadd.f32 1.0, %v22874_v38  ;;  %v18612_v30 = vmul.f32 -1.442695, %v14530_v12  ;;  %v14344_v18 = vsel %vm14166_vm2, %v14219_v16, 0.0  ;;  %v14456_v10 = vadd.f32 %v26825_v43, %v14220_v24  ;;  %v23164_v24 = vld [vmem:[%s23839_s19 + $0x58] sm:$0xff] }
 0xb7b   : > { %v13392_v11 = vpop.f32.mrb[112].mxu1 }
 0xb7c   : > { %v13394_v5 = vpop.f32.mrb[113].mxu1  ;;  %22883 = vrcp.f32 %v14862_v21  ;;  %v14458_v21 = vadd.f32 %v26832_v2, %v14344_v18  ;;  %v14532_v9 = vadd.f32 %v26978_v33, %v14456_v10  ;;  %v14221_v20 = vrot.slane %v13392_v11, 1  ;;  %v23163_v2 = vld [vmem:[%s23839_s19 + $0x50] sm:$0xff] }
 0xb7d   : > { %v13396_v49 = vpop.f32.mrb[114].mxu1  ;;  %22885 = vpow2.f32 %v18611_v36 }
 0xb7e   : > { %v13398_v3 = vpop.f32.mrb[115].mxu1  ;;  %v22876_v29 = vpop.eup %22875  ;;  %v14534_v36 = vadd.f32 %v26978_v33, %v14458_v21  ;;  %v18613_v59 = vmul.f32 -1.442695, %v14532_v9 }
 0xb7f   : > { %v22878_v13 = vpop.eup %22877  ;;  %v14956_v51 = vmul.f32 %v23162_v46, %v22876_v29  ;;  %v14225_v43 = vrot.slane %v13398_v3, 1  ;;  %v14224_v29 = vrot.slane %v13394_v5, 1  ;;  %v27153_v3 = vld [vmem:[#allocation8 + $0x188] ss:$12 sps:$4 sm:$0xff]  }
 0xb80   : > { %v22880_v14 = vpop.eup %22879  ;;  %v14863_v35 = vadd.f32 1.0, %v22878_v13  ;;  %v18614_v11 = vmul.f32 -1.442695, %v14534_v36  ;;  %19393 = vmatprep.subr.bf16.mxu1 %v27153_v3  ;;  %v23165_v36 = vld [vmem:[%s23839_s19 + $0x60] sm:$0xff] }
 0xb81   : > { %v27134_v38 = vpack.c.bf16 %v14956_v51, %v14955_v17  ;;  %v14864_v62 = vadd.f32 1.0, %v22880_v14  ;;  %v14222_v17 = vrot.slane %v13396_v49, 1  ;;  %v22882_v40 = vpop.eup %22881  ;;  %v14346_v5 = vsel %vm14166_vm2, %v14225_v43, 0.0 }
 0xb82   : > { %22887 = vrcp.f32 %v14863_v35  ;;  %v14957_v58 = vmul.f32 %v23163_v2, %v22882_v40 }
 0xb83   : > { %v27137_v56 = vpop.f32.mrb[116].mxu1  ;;  %22889 = vrcp.f32 %v14864_v62  ;;  %15238 = vmatmul.mubr.bf16.gmra.mrb[212].mxu0 %v27134_v38  ;;  %19322 = vmatmul.mubr.bf16.gmra.mrb[148].mxu1 %v27134_v38  ;;  %v14223_v13 = vsel %vm14166_vm2, %v14221_v20, %v14222_v17  ;;  %v14345_v46 = vsel %vm14166_vm2, %v14222_v17, 0.0 }
 0xb84   : > { %v27139_v19 = vpop.f32.mrb[117].mxu1  ;;  %22891 = vpow2.f32 %v18612_v30  ;;  %15247 = vmatprep.mubr.bf16.mxu0 %v28895_v28  ;;  %v27151_v49 = vadd.f32 %v26842_v57, %v14223_v13  ;;  %v27157_v35 = vadd.f32 %v26849_v0, %v14345_v46  ;;  %v14226_v30 = vsel %vm14166_vm2, %v14224_v29, %v14225_v43  ;;  %v23166_v13 = vld [vmem:[%s23839_s19 + $0x68] sm:$0xff] }
 0xb85   : > { %v13406_v16 = vpop.f32.mrb[118].mxu1  ;;  %22893 = vpow2.f32 %v18613_v59  ;;  %v14460_v18 = vadd.f32 %v26845_v39, %v14226_v30  ;;  %v14462_v0 = vadd.f32 %v26852_v55, %v14346_v5  ;;  %v14230_v5 = vrot.slane %v27139_v19, 1 }
 0xb86   : > { %v13408_v12 = vpop.f32.mrb[119].mxu1  ;;  %v22884_v51 = vpop.eup %22883  ;;  %22895 = vpow2.f32 %v18614_v11  ;;  %v14228_v55 = vrot.slane %v13406_v16, 1 }
 0xb87   : > { %v14958_v14 = vmul.f32 %v23164_v24, %v22884_v51  ;;  %v22886_v21 = vpop.eup %22885  ;;  %v14536_v43 = vadd.f32 %v26978_v33, %v14460_v18  ;;  %v14538_v2 = vadd.f32 %v26978_v33, %v14462_v0  ;;  %v14231_v11 = vrot.slane %v13408_v12, 1 }
 0xb88   : > { %v14865_v17 = vadd.f32 1.0, %v22886_v21  ;;  %v14347_v18 = vsel %vm14166_vm2, %v14228_v55, 0.0 }
 0xb89   : > { %v27165_v57 = vpack.c.bf16 %v14958_v14, %v14957_v58  ;;  %v14227_v58 = vrot.slane %v27137_v56, 1  ;;  %v18615_v51 = vmul.f32 -1.442695, %v14536_v43  ;;  %v18616_v16 = vmul.f32 -1.442695, %v14538_v2 }
 0xb8a   : > { %22897 = vrcp.f32 %v14865_v17  ;;  %v27189_v0 = vadd.f32 %v26869_v61, %v14347_v18  ;;  %v14232_v17 = vsel %vm14166_vm2, %v14230_v5, %v14231_v11  ;;  %v14348_v43 = vsel %vm14166_vm2, %v14231_v11, 0.0 }
 0xb8b   : > { %v27162_v62 = vpop.f32.mrb[120].mxu1  ;;  %15248 = vmatmul.mubr.bf16.gmra.mrb[216].mxu0 %v27165_v57  ;;  %19325 = vmatprep.mubr.bf16.mxu1 %v27165_v57  ;;  %v14229_v14 = vsel %vm14166_vm2, %v14227_v58, %v14228_v55  ;;  %22899 = vpow2.f32 %v18615_v51 }
 0xb8c   : > { %v27167_v10 = vpop.f32.mrb[121].mxu1  ;;  %v22888_v20 = vpop.eup %22887  ;;  %15257 = vmatprep.mubr.bf16.mxu0 %v28895_v28  ;;  %v27186_v21 = vadd.f32 %v26862_v7, %v14229_v14 }
 0xb8d   : > { %v13416_v9 = vpop.f32.mrb[122].mxu1  ;;  %v22890_v40 = vpop.eup %22889  ;;  %v14959_v59 = vmul.f32 %v23165_v36, %v22888_v20 }
 0xb8e   : > { %v27173_v39 = vpop.f32.mrb[123].mxu1  ;;  %v22892_v29 = vpop.eup %22891  ;;  %v14960_v46 = vmul.f32 %v23166_v13, %v22890_v40  ;;  %v14464_v40 = vadd.f32 %v26865_v8, %v14232_v17  ;;  %v14233_v8 = vrot.slane %v27162_v62, 1  ;;  %v14234_v13 = vrot.slane %v13416_v9, 1 }
 0xb8f   : > { %v14866_v24 = vadd.f32 1.0, %v22892_v29  ;;  %v22894_v56 = vpop.eup %22893 }
 0xb90   : > { %v27181_v30 = vpack.c.bf16 %v14960_v46, %v14959_v59  ;;  %v14867_v20 = vadd.f32 1.0, %v22894_v56  ;;  %v22896_v7 = vpop.eup %22895  ;;  %v28910_v59 = vld [vmem:[#allocation179_spill] sm:$0xff]  ;;  %v14540_v55 = vadd.f32 %v26978_v33, %v14464_v40  ;;  %v14237_v46 = vrot.slane %v27173_v39, 1 }
 0xb91   : > { %22901 = vrcp.f32 %v14866_v24  ;;  %v14466_v61 = vadd.f32 %v28910_v59, %v14348_v43  ;;  %v14868_v58 = vadd.f32 1.0, %v22896_v7  ;;  %v14236_v24 = vrot.slane %v27167_v10, 1 }
 0xb92   : > { %19326 = vmatmul.mubr.bf16.gmra.mrb[152].mxu1 %v27181_v30  ;;  %22903 = vrcp.f32 %v14867_v20  ;;  %v18617_v11 = vmul.f32 -1.442695, %v14540_v55  ;;  %v14235_v14 = vsel %vm14166_vm2, %v14233_v8, %v14234_v13  ;;  %v14349_v5 = vsel %vm14166_vm2, %v14234_v13, 0.0 }
 0xb93   : > { %v27191_v12 = vpop.f32.mrb[124].mxu1  ;;  %15258 = vmatmul.mubr.bf16.gmra.mrb[220].mxu0 %v27181_v30  ;;  %22905 = vpow2.f32 %v18616_v16  ;;  %v14542_v29 = vadd.f32 %v26978_v33, %v14466_v61  ;;  %v23167_v16 = vld [vmem:[%s23839_s19 + $0x70] sm:$0xff]  ;;  %v27217_v62 = vadd.f32 %v26882_v4, %v14235_v14  ;;  %v27220_v9 = vadd.f32 %v26889_v26, %v14349_v5  ;;  %v23168_v61 = vld [vmem:[%s23839_s19 + $0x78] sm:$0xff] }
 0xb94   : > { %v27196_v19 = vpop.f32.mrb[125].mxu1  ;;  %15267 = vmatprep.mubr.bf16.mxu0 %v28895_v28  ;;  %22907 = vrcp.f32 %v14868_v58  ;;  %v22898_v51 = vpop.eup %22897  ;;  %v14238_v40 = vsel %vm14166_vm2, %v14236_v24, %v14237_v46  ;;  %v14350_v7 = vsel %vm14166_vm2, %v14237_v46, 0.0  ;;  %v23169_v24 = vld [vmem:[%s23839_s19 + $0x80] sm:$0xff] }
 0xb95   : > { %v27199_v36 = vpop.f32.mrb[126].mxu1  ;;  %v22900_v56 = vpop.eup %22899  ;;  %v14961_v20 = vmul.f32 %v23167_v16, %v22898_v51  ;;  %v18618_v17 = vmul.f32 -1.442695, %v14542_v29  ;;  %22909 = vpow2.f32 %v18617_v11  ;;  %v14468_v4 = vadd.f32 %v26885_v37, %v14238_v40 }
 0xb96   : > { %v27203_v2 = vpop.f32.mrb[127].mxu1  ;;  %v14869_v43 = vadd.f32 1.0, %v22900_v56  ;;  %v14470_v26 = vadd.f32 %v26892_v44, %v14350_v7  ;;  %v14239_v11 = vrot.slane %v27191_v12, 1  ;;  %v14242_v56 = vrot.slane %v27196_v19, 1  ;;  %v23170_v12 = vld [vmem:[%s23839_s19 + $0x88] sm:$0xff] }
 0xb97   : > { %v14544_v51 = vadd.f32 %v26978_v33, %v14468_v4  ;;  %v14240_v37 = vrot.slane %v27199_v36, 1 }
 0xb98   : > { %22911 = vrcp.f32 %v14869_v43  ;;  %v14546_v46 = vadd.f32 %v26978_v33, %v14470_v26 }
 0xb99   : > { %22913 = vpow2.f32 %v18618_v17  ;;  %v18619_v16 = vmul.f32 -1.442695, %v14544_v51  ;;  %v14243_v17 = vrot.slane %v27203_v2, 1  ;;  %v14241_v19 = vsel %vm14166_vm2, %v14239_v11, %v14240_v37 }
 0xb9a   : > { %v14351_v40 = vsel %vm14166_vm2, %v14240_v37, 0.0  ;;  %v27253_v36 = vadd.f32 %v26902_v31, %v14241_v19 }
 0xb9b   : > { %v27213_v18 = vpop.f32.mrb[128].mxu1  ;;  %v22902_v10 = vpop.eup %22901  ;;  %v14244_v4 = vsel %vm14166_vm2, %v14242_v56, %v14243_v17  ;;  %v14352_v51 = vsel %vm14166_vm2, %v14243_v17, 0.0 }
 0xb9c   : > { %v27222_v39 = vpop.f32.mrb[129].mxu1  ;;  %v14962_v58 = vmul.f32 %v23168_v61, %v22902_v10  ;;  %v22904_v29 = vpop.eup %22903  ;;  %v27256_v61 = vadd.f32 %v26909_v6, %v14351_v40  ;;  %v14474_v6 = vadd.f32 %v26912_v1, %v14352_v51  ;;  %v14245_v37 = vrot.slane %v27213_v18, 1 }
 0xb9d   : > { %v27226_v59 = vpop.f32.mrb[130].mxu1  ;;  %v22906_v13 = vpop.eup %22905  ;;  %v14963_v14 = vmul.f32 %v23169_v24, %v22904_v29  ;;  %v14248_v40 = vrot.slane %v27222_v39, 1 }
 0xb9e   : > { %v27229_v55 = vpop.f32.mrb[131].mxu1  ;;  %v27233_v8 = vpack.c.bf16 %v14962_v58, %v14961_v20  ;;  %v14870_v5 = vadd.f32 1.0, %v22906_v13  ;;  %v22908_v44 = vpop.eup %22907  ;;  %v18620_v20 = vmul.f32 -1.442695, %v14546_v46  ;;  %v14472_v46 = vadd.f32 %v26905_v27, %v14244_v4 }
 0xb9f   : > { %v14964_v43 = vmul.f32 %v23170_v12, %v22908_v44  ;;  %v22910_v29 = vpop.eup %22909  ;;  %v14246_v44 = vrot.slane %v27226_v59, 1  ;;  %v14249_v1 = vrot.slane %v27229_v55, 1  ;;  %v23172_v55 = vld [vmem:[%s23839_s19 + $0x98] sm:$0xff] }
 0xba0   : > { %15268 = vmatmul.mubr.bf16.gmra.mrb[224].mxu0 %v27233_v8  ;;  %19329 = vmatprep.mubr.bf16.mxu1 %v27233_v8  ;;  %22915 = vrcp.f32 %v14870_v5  ;;  %v14871_v13 = vadd.f32 1.0, %v22910_v29  ;;  %v14548_v24 = vadd.f32 %v26978_v33, %v14472_v46  ;;  %v14550_v5 = vadd.f32 %v26978_v33, %v14474_v6 }
 0xba1   : > { %15277 = vmatprep.mubr.bf16.mxu0 %v28895_v28  ;;  %22917 = vpow2.f32 %v18619_v16  ;;  %v27260_v58 = vpack.c.bf16 %v14964_v43, %v14963_v14  ;;  %v14247_v4 = vsel %vm14166_vm2, %v14245_v37, %v14246_v44  ;;  %v14353_v18 = vsel %vm14166_vm2, %v14246_v44, 0.0 }
 0xba2   : > { %22919 = vpow2.f32 %v18620_v20  ;;  %v22912_v31 = vpop.eup %22911  ;;  %v18621_v27 = vmul.f32 -1.442695, %v14548_v24  ;;  %v23171_v20 = vld [vmem:[%s23839_s19 + $0x90] sm:$0xff]  ;;  %v18622_v12 = vmul.f32 -1.442695, %v14550_v5  ;;  %v27290_v51 = vadd.f32 %v26922_v25, %v14247_v4 }
 0xba3   : > { %v27245_v10 = vpop.f32.mrb[132].mxu1  ;;  %19330 = vmatmul.mubr.bf16.gmra.mrb[156].mxu1 %v27260_v58  ;;  %v22914_v11 = vpop.eup %22913  ;;  %22921 = vrcp.f32 %v14871_v13  ;;  %v14965_v17 = vmul.f32 %v23171_v20, %v22912_v31  ;;  %v27293_v46 = vadd.f32 %v26929_v34, %v14353_v18  ;;  %v14354_v39 = vsel %vm14166_vm2, %v14249_v1, 0.0  ;;  %v23173_v20 = vld [vmem:[%s23839_s19 + $0xa0] sm:$0xff]  ;;  %v23174_v18 = vld [vmem:[%s23839_s19 + $0xa8] sm:$0xff] }
 0xba4   : > { %v27250_v7 = vpop.f32.mrb[133].mxu1  ;;  %v14872_v14 = vadd.f32 1.0, %v22914_v11  ;;  %v14250_v11 = vsel %vm14166_vm2, %v14248_v40, %v14249_v1  ;;  %v14478_v25 = vadd.f32 %v26932_v15, %v14354_v39  ;;  %v14251_v37 = vrot.slane %v27245_v10, 1 }
 0xba5   : > { %v27258_v2 = vpop.f32.mrb[134].mxu1  ;;  %v14476_v5 = vadd.f32 %v26925_v60, %v14250_v11 }
 0xba6   : > { %v27263_v26 = vpop.f32.mrb[135].mxu1  ;;  %22923 = vrcp.f32 %v14872_v14  ;;  %v14252_v44 = vrot.slane %v27258_v2, 1  ;;  %v14554_v1 = vadd.f32 %v26978_v33, %v14478_v25  ;;  %v23175_v25 = vld [vmem:[%s23839_s19 + $0xb0] sm:$0xff] }
 0xba7   : > { %22925 = vpow2.f32 %v18621_v27  ;;  %v14552_v27 = vadd.f32 %v26978_v33, %v14476_v5  ;;  %v14255_v60 = vrot.slane %v27263_v26, 1 }
 0xba8   : > { %15278 = vmatmul.mubr.bf16.gmra.mrb[228].mxu0 %v27260_v58  ;;  %22927 = vpow2.f32 %v18622_v12  ;;  %v14254_v12 = vrot.slane %v27250_v7, 1  ;;  %v14355_v4 = vsel %vm14166_vm2, %v14252_v44, 0.0 }
 0xba9   : > { %15287 = vmatprep.mubr.bf16.mxu0 %v28895_v28  ;;  %v14356_v7 = vsel %vm14166_vm2, %v14255_v60, 0.0 }
 0xbaa   : > { %v22916_v19 = vpop.eup %22915  ;;  %v14256_v26 = vsel %vm14166_vm2, %v14254_v12, %v14255_v60 }
 0xbab   : > { %v27273_v56 = vpop.f32.mrb[136].mxu1  ;;  %v22918_v59 = vpop.eup %22917  ;;  %v14966_v13 = vmul.f32 %v23172_v55, %v22916_v19  ;;  %v14253_v19 = vsel %vm14166_vm2, %v14251_v37, %v14252_v44  ;;  %v18624_v55 = vmul.f32 -1.442695, %v14554_v1  ;;  %v23176_v37 = vld [vmem:[%s23839_s19 + $0xb8] sm:$0xff] }
 0xbac   : > { %v27278_v16 = vpop.f32.mrb[137].mxu1  ;;  %v22920_v31 = vpop.eup %22919  ;;  %v14873_v6 = vadd.f32 1.0, %v22918_v59  ;;  %v27314_v10 = vadd.f32 %v26942_v47, %v14253_v19  ;;  %v14480_v47 = vadd.f32 %v26945_v50, %v14256_v26  ;;  %v14257_v60 = vrot.slane %v27273_v56, 1  ;;  %v23177_v26 = vld [vmem:[%s23839_s19 + $0xc0] sm:$0xff] }
 0xbad   : > { %v27281_v43 = vpop.f32.mrb[138].mxu1  ;;  %v27297_v24 = vpack.c.bf16 %v14966_v13, %v14965_v17  ;;  %v14874_v14 = vadd.f32 1.0, %v22920_v31  ;;  %v22922_v34 = vpop.eup %22921  ;;  %v18623_v17 = vmul.f32 -1.442695, %v14552_v27  ;;  %v27318_v13 = vadd.f32 %v26949_v22, %v14355_v4 }
 0xbae   : > { %v27286_v29 = vpop.f32.mrb[139].mxu1  ;;  %22929 = vrcp.f32 %v14873_v6  ;;  %v14967_v15 = vmul.f32 %v23173_v20, %v22922_v34  ;;  %28911 = vst [vmem:[#allocation185_spill] sm:$0xff] %v27314_v10  ;;  %v14482_v22 = vadd.f32 %v26952_v52, %v14356_v7  ;;  %v14556_v27 = vadd.f32 %v26978_v33, %v14480_v47  ;;  %v23178_v47 = vld [vmem:[%s23839_s19 + $0xc8] sm:$0xff] }
 0xbaf   : > { %22931 = vrcp.f32 %v14874_v14  ;;  %19333 = vmatprep.mubr.bf16.mxu1 %v27297_v24  ;;  %28912 = vst [vmem:[#allocation71_spill] sm:$0xff] %v27318_v13  ;;  %v14258_v52 = vrot.slane %v27281_v43, 1  ;;  %v14261_v20 = vrot.slane %v27286_v29, 1  ;;  %v14260_v12 = vrot.slane %v27278_v16, 1 }
 0xbb0   : > { %15288 = vmatmul.mubr.bf16.gmra.mrb[232].mxu0 %v27297_v24  ;;  %v22924_v40 = vpop.eup %22923  ;;  %22933 = vpow2.f32 %v18623_v17  ;;  %v14558_v50 = vadd.f32 %v26978_v33, %v14482_v22  ;;  %v18625_v1 = vmul.f32 -1.442695, %v14556_v27 }
 0xbb1   : > { %15297 = vmatprep.mubr.bf16.mxu0 %v28895_v28  ;;  %v22926_v2 = vpop.eup %22925  ;;  %v14968_v59 = vmul.f32 %v23174_v18, %v22924_v40  ;;  %v14259_v19 = vsel %vm14166_vm2, %v14257_v60, %v14258_v52  ;;  %v14357_v40 = vsel %vm14166_vm2, %v14258_v52, 0.0  ;;  %v14262_v43 = vsel %vm14166_vm2, %v14260_v12, %v14261_v20 }
 0xbb2   : > { %v14875_v31 = vadd.f32 1.0, %v22926_v2  ;;  %v22928_v11 = vpop.eup %22927  ;;  %v18626_v17 = vmul.f32 -1.442695, %v14558_v50  ;;  %v27342_v4 = vadd.f32 %v26962_v63, %v14259_v19  ;;  %v27345_v56 = vadd.f32 %v26969_v48, %v14357_v40  ;;  %v23181_v40 = vld [vmem:[%s23839_s19 + $0xe0] sm:$0xff] }
 0xbb3   : > { %v27322_v6 = vpack.c.bf16 %v14968_v59, %v14967_v15  ;;  %v14876_v14 = vadd.f32 1.0, %v22928_v11  ;;  %v14358_v29 = vsel %vm14166_vm2, %v14261_v20, 0.0  ;;  %v14484_v16 = vadd.f32 %v26965_v53, %v14262_v43 }
 0xbb4   : > { %22935 = vrcp.f32 %v14875_v31  ;;  %28913 = vst [vmem:[#allocation147_spill] sm:$0xff] %v27342_v4  ;;  %28914 = vst [vmem:[#allocation74_spill] sm:$0xff] %v27345_v56  ;;  %v14486_v63 = vadd.f32 %v26972_v45, %v14358_v29 }
 0xbb5   : > { %22937 = vpow2.f32 %v18624_v55  ;;  %19334 = vmatmul.mubr.bf16.gmra.mrb[160].mxu1 %v27322_v6  ;;  %v14560_v48 = vadd.f32 %v26978_v33, %v14484_v16 }
 0xbb6   : > { %22939 = vrcp.f32 %v14876_v14  ;;  %v14562_v53 = vadd.f32 %v26978_v33, %v14486_v63  ;;  %v28915_v63 = vld [vmem:[#allocation143_spill] sm:$0xff] }
 0xbb7   : > { %22941 = vpow2.f32 %v18625_v1  ;;  %v18627_v14 = vmul.f32 -1.442695, %v14560_v48  ;;  %v23180_v1 = vld [vmem:[%s23839_s19 + $0xd8] sm:$0xff] }
 0xbb8   : > { %v22930_v39 = vpop.eup %22929  ;;  %15298 = vmatmul.mubr.bf16.gmra.mrb[236].mxu0 %v27322_v6  ;;  %22943 = vpow2.f32 %v18626_v17  ;;  %v18628_v45 = vmul.f32 -1.442695, %v14562_v53  ;;  %v22806_v53 = vld [vmem:[#allocation8 + $0x19c] ss:$12 sps:$4 sm:$0xff]  }
 0xbb9   : > { %v22932_v5 = vpop.eup %22931  ;;  %v14969_v34 = vmul.f32 %v23175_v25, %v22930_v39  ;;  %15307 = vmatprep.mubr.bf16.mxu0 %v28895_v28 }
 0xbba   : > { %v14970_v44 = vmul.f32 %v23176_v37, %v22932_v5  ;;  %v22934_v2 = vpop.eup %22933  ;;  %v23179_v37 = vld [vmem:[%s23839_s19 + $0xd0] sm:$0xff] }
 0xbbb   : > { %v14877_v59 = vadd.f32 1.0, %v22934_v2  ;;  %v23182_v2 = vld [vmem:[%s23839_s19 + $0xe8] sm:$0xff] }
 0xbbc   : > { %v27336_v15 = vpack.c.bf16 %v14970_v44, %v14969_v34 }
 0xbbd   : > { %22945 = vrcp.f32 %v14877_v59 }
 0xbbe   : > { %19337 = vmatprep.mubr.bf16.mxu1 %v27336_v15  ;;  %v22936_v18 = vpop.eup %22935 }
 0xbbf   : > { %v22938_v55 = vpop.eup %22937  ;;  %v14971_v31 = vmul.f32 %v23177_v26, %v22936_v18  ;;  %v23183_v26 = vld [vmem:[%s23839_s19 + $0xf0] sm:$0xff] }
 0xbc0   : > { %15308 = vmatmul.mubr.bf16.gmra.mrb[240].mxu0 %v27336_v15  ;;  %v14878_v7 = vadd.f32 1.0, %v22938_v55  ;;  %v22940_v11 = vpop.eup %22939  ;;  %v22801_v55 = vld [vmem:[#allocation8 + $0x180] ss:$12 sps:$4 sm:$0xff]  }
 0xbc1   : > { %15317 = vmatprep.mubr.bf16.mxu0 %v28895_v28  ;;  %v14972_v39 = vmul.f32 %v23178_v47, %v22940_v11  ;;  %v22942_v22 = vpop.eup %22941  ;;  %v23184_v11 = vld [vmem:[%s23839_s19 + $0xf8] sm:$0xff] }
 0xbc2   : > { %22947 = vrcp.f32 %v14878_v7  ;;  %v14879_v25 = vadd.f32 1.0, %v22942_v22  ;;  %v22944_v34 = vpop.eup %22943  ;;  %v28917_v22 = vld [vmem:[#allocation48_spill] sm:$0xff] }
 0xbc3   : > { %v27358_v5 = vpack.c.bf16 %v14972_v39, %v14971_v31  ;;  %22949 = vpow2.f32 %v18627_v14  ;;  %v14880_v33 = vadd.f32 1.0, %v22944_v34  ;;  %v28916_v39 = vld [vmem:[#allocation183_spill] sm:$0xff]  ;;  %v22811_v14 = vld [vmem:[#allocation8 + $0x1a0] ss:$12 sps:$4 sm:$0xff]  }
 0xbc4   : > { %22951 = vrcp.f32 %v14879_v25  ;;  %v22809_v34 = vld [vmem:[#allocation8 + $0x1b4] ss:$12 sps:$4 sm:$0xff]  }
 0xbc5   : > { %19338 = vmatmul.mubr.bf16.gmra.mrb[164].mxu1 %v27358_v5  ;;  %22953 = vpow2.f32 %v18628_v45  ;;  %v22804_v45 = vld [vmem:[#allocation8 + $0x198] ss:$12 sps:$4 sm:$0xff]  }
 0xbc6   : > { %22955 = vrcp.f32 %v14880_v33  ;;  %v22807_v33 = vld [vmem:[#allocation8 + $0x1b0] ss:$12 sps:$4 sm:$0xff]  }
 0xbc7   : > { %v22946_v27 = vpop.eup %22945 }
 0xbc8   : > { %15318 = vmatmul.mubr.bf16.gmra.mrb[244].mxu0 %v27358_v5  ;;  %v14973_v44 = vmul.f32 %v23179_v37, %v22946_v27  ;;  %v22812_v27 = vld [vmem:[#allocation8 + $0x1b8] ss:$12 sps:$4 sm:$0xff]  }
 0xbc9   : > { %15327 = vmatprep.mubr.bf16.mxu0 %v28895_v28  ;;  %v22816_v37 = vld [vmem:[#allocation8 + $0x1cc] ss:$12 sps:$4 sm:$0xff]  }
 0xbcc   : > { %v22948_v50 = vpop.eup %22947 }
 0xbcd   : > { %v14974_v60 = vmul.f32 %v23180_v1, %v22948_v50  ;;  %v22950_v20 = vpop.eup %22949  ;;  %v22814_v50 = vld [vmem:[#allocation8 + $0x1c8] ss:$12 sps:$4 sm:$0xff]  }
 0xbce   : > { %v22952_v17 = vpop.eup %22951  ;;  %v14881_v12 = vadd.f32 1.0, %v22950_v20  ;;  %v22817_v1 = vld [vmem:[#allocation8 + $0x1e8] ss:$12 sps:$4 sm:$0xff]  }
 0xbcf   : > { %v27365_v52 = vpack.c.bf16 %v14974_v60, %v14973_v44  ;;  %v22954_v19 = vpop.eup %22953  ;;  %v14975_v43 = vmul.f32 %v23181_v40, %v22952_v17  ;;  %v22813_v44 = vld [vmem:[#allocation8 + $0x1d0] ss:$12 sps:$4 sm:$0xff]   ;;  %v22821_v60 = vld [vmem:[#allocation8 + $0x1e0] ss:$12 sps:$4 sm:$0xff]   ;;  %v22819_v40 = vld [vmem:[#allocation8 + $0x218] ss:$12 sps:$4 sm:$0xff]  }
 0xbd0   : > { %v14882_v29 = vadd.f32 1.0, %v22954_v19  ;;  %22957 = vrcp.f32 %v14881_v12  ;;  %v22956_v16 = vpop.eup %22955  ;;  %v22826_v20 = vld [vmem:[#allocation8 + $0x1fc] ss:$12 sps:$4 sm:$0xff]   ;;  %v22818_v17 = vld [vmem:[#allocation8 + $0x200] ss:$12 sps:$4 sm:$0xff]  }
 0xbd1   : > { %15328 = vmatmul.mubr.bf16.gmra.mrb[248].mxu0 %v27365_v52  ;;  %19341 = vmatprep.mubr.bf16.mxu1 %v27365_v52  ;;  %v14976_v18 = vmul.f32 %v23182_v2, %v22956_v16  ;;  %v22824_v12 = vld [vmem:[#allocation8 + $0x1f8] ss:$12 sps:$4 sm:$0xff]   ;;  %v22829_v19 = vld [vmem:[#allocation8 + $0x214] ss:$12 sps:$4 sm:$0xff]   ;;  %v22820_v16 = vld [vmem:[#allocation8 + $0x230] ss:$12 sps:$4 sm:$0xff]  }
 0xbd2   : > { %15337 = vmatprep.mubr.bf16.mxu0 %v28895_v28  ;;  %22959 = vrcp.f32 %v14882_v29  ;;  %v22832_v29 = vld [vmem:[#allocation8 + $0x22c] ss:$12 sps:$4 sm:$0xff]   ;;  %v22830_v2 = vld [vmem:[#allocation8 + $0x228] ss:$12 sps:$4 sm:$0xff]  }
 0xbd3   : > { %v27372_v59 = vpack.c.bf16 %v14976_v18, %v14975_v43  ;;  %v22827_v43 = vld [vmem:[#allocation8 + $0x210] ss:$12 sps:$4 sm:$0xff]  }
 0xbd5   : > { %19342 = vmatmul.mubr.bf16.gmra.mrb[168].mxu1 %v27372_v59 }
 0xbd6   : > { %19361 = vmatprep.mubr.bf16.mxu1 %v28915_v63 }
 0xbd9   : > { %15338 = vmatmul.mubr.bf16.gmra.mrb[252].mxu0 %v27372_v59 }
 0xbda   : > { %15798 = vmatprep.mubr.bf16.mxu0 %v28895_v28  ;;  %v22958_v48 = vpop.eup %22957 }
 0xbdb   : > { %v14977_v31 = vmul.f32 %v23183_v26, %v22958_v48 }
 0xbdc   : > { %v22960_v7 = vpop.eup %22959 }
 0xbdd   : > { %v14978_v47 = vmul.f32 %v23184_v11, %v22960_v7  ;;  %19362 = vmatmul.mubr.bf16.vlgmr.msra.gmra.mrb[140].mxu1 %v28916_v39  ;;  %v28922_v7 = vld [vmem:[#allocation24_spill] sm:$0xff] }
 0xbde   : > { %19365 = vmatprep.mubr.bf16.mxu1 %v28917_v22  ;;  %19394 = vmatpush3.bf16.msra.mxu1 %v27153_v3  ;;  %v22823_v3 = vld [vmem:[#allocation8 + $0x1e4] ss:$12 sps:$4 sm:$0xff]  }
 0xbdf   : > { %v27383_v25 = vpack.c.bf16 %v14978_v47, %v14977_v31  ;;  %19395 = vmatprep.subr.bf16.mxu1 %v22811_v14  ;;  %v28923_v47 = vld [vmem:[#allocation72_spill] sm:$0xff] }
 0xbe1   : > { %15799 = vmatmul.mubr.bf16.vlgmr.msra.gmra.mrb[192].mxu0 %v28915_v63 }
 0xbe2   : > { %16378 = vmatpush1.bf16.msra.mxu0 %v22801_v55  ;;  %15808 = vmatprep.mubr.bf16.mxu0 %v28895_v28 }
 0xbe3   : > { %16379 = vmatprep.subr.bf16.mxu0 %v22806_v53  ;;  %19396 = vmatpush3.bf16.msra.mxu1 %v22811_v14 }
 0xbe4   : > { %19397 = vmatprep.subr.bf16.mxu1 %v22812_v27 }
 0xbe5   : > { %19366 = vmatmul.mubr.bf16.gmra.mrb[144].mxu1 %v27103_v54 }
 0xbe6   : > { %16380 = vmatpush1.bf16.msra.mxu0 %v22804_v45  ;;  %19369 = vmatprep.mubr.bf16.mxu1 %v27134_v38 }
 0xbe7   : > { %16381 = vmatprep.subr.bf16.mxu0 %v22809_v34  ;;  %19398 = vmatpush3.bf16.msra.mxu1 %v22812_v27  ;;  %v28925_v34 = vld [vmem:[#allocation23_spill] sm:$0xff] }
 0xbe8   : > { %19399 = vmatprep.subr.bf16.mxu1 %v22813_v44 }
 0xbe9   : > { %15809 = vmatmul.mubr.bf16.gmra.mrb[196].mxu0 %v28916_v39 }
 0xbea   : > { %15818 = vmatprep.mubr.bf16.mxu0 %v28895_v28  ;;  %16382 = vmatpush1.bf16.msra.mxu0 %v22807_v33 }
 0xbeb   : > { %16383 = vmatprep.subr.bf16.mxu0 %v22816_v37  ;;  %19400 = vmatpush3.bf16.msra.mxu1 %v22813_v44 }
 0xbec   : > { %19401 = vmatprep.subr.bf16.mxu1 %v22817_v1 }
 0xbed   : > { %19370 = vmatmul.mubr.bf16.gmra.mrb[148].mxu1 %v27165_v57 }
 0xbee   : > { %16384 = vmatpush1.bf16.msra.mxu0 %v22814_v50  ;;  %19373 = vmatprep.mubr.bf16.mxu1 %v27181_v30 }
 0xbef   : > { %16385 = vmatprep.subr.bf16.mxu0 %v22823_v3  ;;  %19402 = vmatpush3.bf16.msra.mxu1 %v22817_v1 }
 0xbf0   : > { %19403 = vmatprep.subr.bf16.mxu1 %v22818_v17 }
 0xbf1   : > { %15819 = vmatmul.mubr.bf16.gmra.mrb[200].mxu0 %v28917_v22 }
 0xbf2   : > { %15828 = vmatprep.mubr.bf16.mxu0 %v28895_v28  ;;  %16386 = vmatpush1.bf16.msra.mxu0 %v22821_v60 }
 0xbf3   : > { %16387 = vmatprep.subr.bf16.mxu0 %v22826_v20  ;;  %19404 = vmatpush3.bf16.msra.mxu1 %v22818_v17  ;;  %v28926_v20 = vld [vmem:[#allocation116_spill] sm:$0xff] }
 0xbf4   : > { %19405 = vmatprep.subr.bf16.mxu1 %v22819_v40 }
 0xbf5   : > { %19374 = vmatmul.mubr.bf16.gmra.mrb[152].mxu1 %v27233_v8 }
 0xbf6   : > { %16388 = vmatpush1.bf16.msra.mxu0 %v22824_v12  ;;  %19377 = vmatprep.mubr.bf16.mxu1 %v27260_v58 }
 0xbf7   : > { %16389 = vmatprep.subr.bf16.mxu0 %v22829_v19  ;;  %19406 = vmatpush3.bf16.msra.mxu1 %v22819_v40  ;;  %v28927_v19 = vld [vmem:[#allocation114_spill] sm:$0xff] }
 0xbf8   : > { %19407 = vmatprep.subr.bf16.mxu1 %v22820_v16 }
 0xbf9   : > { %15829 = vmatmul.mubr.bf16.gmra.mrb[204].mxu0 %v27103_v54 }
 0xbfa   : > { %15838 = vmatprep.mubr.bf16.mxu0 %v28895_v28  ;;  %16390 = vmatpush1.bf16.msra.mxu0 %v22827_v43 }
 0xbfb   : > { %16391 = vmatprep.subr.bf16.mxu0 %v22832_v29  ;;  %19408 = vmatpush3.bf16.msra.mxu1 %v22820_v16  ;;  %v28928_v29 = vld [vmem:[#allocation117_spill] sm:$0xff] }
 0xbfd   : > { %19378 = vmatmul.mubr.bf16.gmra.mrb[156].mxu1 %v27297_v24 }
 0xbfe   : > { %16392 = vmatpush1.bf16.msra.mxu0 %v22830_v2  ;;  %19381 = vmatprep.mubr.bf16.mxu1 %v27322_v6 }
 0xc01   : > { %15839 = vmatmul.mubr.bf16.gmra.mrb[208].mxu0 %v27134_v38 }
 0xc02   : > { %15848 = vmatprep.mubr.bf16.mxu0 %v28895_v28 }
 0xc05   : > { %19382 = vmatmul.mubr.bf16.gmra.mrb[160].mxu1 %v27336_v15 }
 0xc06   : > { %19385 = vmatprep.mubr.bf16.mxu1 %v27358_v5 }
 0xc09   : > { %15849 = vmatmul.mubr.bf16.gmra.mrb[212].mxu0 %v27165_v57 }
 0xc0a   : > { %15858 = vmatprep.mubr.bf16.mxu0 %v28895_v28 }
 0xc0d   : > { %19386 = vmatmul.mubr.bf16.gmra.mrb[164].mxu1 %v27365_v52 }
 0xc0e   : > { %19389 = vmatprep.mubr.bf16.mxu1 %v27372_v59 }
 0xc11   : > { %15859 = vmatmul.mubr.bf16.gmra.mrb[216].mxu0 %v27181_v30 }
 0xc12   : > { %15868 = vmatprep.mubr.bf16.mxu0 %v28895_v28 }
 0xc15   : > { %19390 = vmatmul.mubr.bf16.gmra.mrb[168].mxu1 %v27383_v25 }
 0xc16   : > { %19409 = vmatprep.mubr.bf16.mxu1 %v28916_v39 }
 0xc19   : > { %15869 = vmatmul.mubr.bf16.gmra.mrb[220].mxu0 %v27233_v8 }
 0xc1a   : > { %15878 = vmatprep.mubr.bf16.mxu0 %v28895_v28 }
 0xc1d   : > { %19410 = vmatmul.mubr.bf16.vlgmr.msra.gmra.mrb[140].mxu1 %v28917_v22 }
 0xc1e   : > { %19413 = vmatprep.mubr.bf16.mxu1 %v27103_v54 }
 0xc21   : > { %15879 = vmatmul.mubr.bf16.gmra.mrb[224].mxu0 %v27260_v58 }
 0xc22   : > { %15888 = vmatprep.mubr.bf16.mxu0 %v28895_v28 }
 0xc25   : > { %19414 = vmatmul.mubr.bf16.gmra.mrb[144].mxu1 %v27134_v38 }
 0xc26   : > { %19417 = vmatprep.mubr.bf16.mxu1 %v27165_v57 }
 0xc29   : > { %15889 = vmatmul.mubr.bf16.gmra.mrb[228].mxu0 %v27297_v24 }
 0xc2a   : > { %15898 = vmatprep.mubr.bf16.mxu0 %v28895_v28 }
 0xc2d   : > { %19418 = vmatmul.mubr.bf16.gmra.mrb[148].mxu1 %v27181_v30 }
 0xc2e   : > { %19421 = vmatprep.mubr.bf16.mxu1 %v27233_v8 }
 0xc31   : > { %15899 = vmatmul.mubr.bf16.gmra.mrb[232].mxu0 %v27322_v6 }
 0xc32   : > { %15908 = vmatprep.mubr.bf16.mxu0 %v28895_v28 }
 0xc35   : > { %19422 = vmatmul.mubr.bf16.gmra.mrb[152].mxu1 %v27260_v58 }
 0xc36   : > { %19425 = vmatprep.mubr.bf16.mxu1 %v27297_v24 }
 0xc39   : > { %15909 = vmatmul.mubr.bf16.gmra.mrb[236].mxu0 %v27336_v15 }
 0xc3a   : > { %15918 = vmatprep.mubr.bf16.mxu0 %v28895_v28 }
 0xc3d   : > { %19426 = vmatmul.mubr.bf16.gmra.mrb[156].mxu1 %v27322_v6 }
 0xc3e   : > { %19429 = vmatprep.mubr.bf16.mxu1 %v27336_v15 }
 0xc41   : > { %15919 = vmatmul.mubr.bf16.gmra.mrb[240].mxu0 %v27358_v5 }
 0xc42   : > { %15928 = vmatprep.mubr.bf16.mxu0 %v28895_v28 }
 0xc45   : > { %19430 = vmatmul.mubr.bf16.gmra.mrb[160].mxu1 %v27358_v5 }
 0xc46   : > { %19433 = vmatprep.mubr.bf16.mxu1 %v27365_v52 }
 0xc49   : > { %15929 = vmatmul.mubr.bf16.gmra.mrb[244].mxu0 %v27365_v52 }
 0xc4a   : > { %15938 = vmatprep.mubr.bf16.mxu0 %v28895_v28 }
 0xc4d   : > { %19434 = vmatmul.mubr.bf16.gmra.mrb[164].mxu1 %v27372_v59 }
 0xc4e   : > { %19437 = vmatprep.mubr.bf16.mxu1 %v27383_v25 }
 0xc51   : > { %15939 = vmatmul.mubr.bf16.gmra.mrb[248].mxu0 %v27372_v59 }
 0xc52   : > { %15948 = vmatprep.mubr.bf16.mxu0 %v28895_v28 }
 0xc55   : > { %19438 = vmatmul.mubr.bf16.gmra.mrb[168].mxu1 %v28895_v28 }
 0xc59   : > { %15949 = vmatmul.mubr.bf16.gmra.mrb[252].mxu0 %v27383_v25 }
 0xc5a   : > { %16409 = vmatprep.mubr.bf16.mxu0 %v28895_v28 }
 0xc61   : > { %16410 = vmatmul.mubr.bf16.vlgmr.msra.gmra.mrb[192].mxu0 %v28916_v39 }
 0xc62   : > { %16419 = vmatprep.mubr.bf16.mxu0 %v28895_v28 }
 0xc69   : > { %16420 = vmatmul.mubr.bf16.gmra.mrb[196].mxu0 %v28917_v22  ;;  %v28924_v22 = vld [vmem:[#allocation29_spill] sm:$0xff] }
 0xc6a   : > { %16429 = vmatprep.mubr.bf16.mxu0 %v28895_v28 }
 0xc71   : > { %16430 = vmatmul.mubr.bf16.gmra.mrb[200].mxu0 %v27103_v54 }
 0xc72   : > { %16439 = vmatprep.mubr.bf16.mxu0 %v28895_v28 }
 0xc79   : > { %16440 = vmatmul.mubr.bf16.gmra.mrb[204].mxu0 %v27134_v38  ;;  %v28918_v38 = vld [vmem:[#allocation36_spill] sm:$0xff] }
 0xc7a   : > { %16449 = vmatprep.mubr.bf16.mxu0 %v28895_v28 }
 0xc81   : > { %16450 = vmatmul.mubr.bf16.gmra.mrb[208].mxu0 %v27165_v57 }
 0xc82   : > { %16459 = vmatprep.mubr.bf16.mxu0 %v28895_v28 }
 0xc89   : > { %16460 = vmatmul.mubr.bf16.gmra.mrb[212].mxu0 %v27181_v30 }
 0xc8a   : > { %16469 = vmatprep.mubr.bf16.mxu0 %v28895_v28 }
 0xc91   : > { %16470 = vmatmul.mubr.bf16.gmra.mrb[216].mxu0 %v27233_v8  ;;  %v28919_v8 = vld [vmem:[#allocation34_spill] sm:$0xff] }
 0xc92   : > { %16479 = vmatprep.mubr.bf16.mxu0 %v28895_v28 }
 0xc99   : > { %16480 = vmatmul.mubr.bf16.gmra.mrb[220].mxu0 %v27260_v58 }
 0xc9a   : > { %16489 = vmatprep.mubr.bf16.mxu0 %v28895_v28 }
 0xca1   : > { %16490 = vmatmul.mubr.bf16.gmra.mrb[224].mxu0 %v27297_v24 }
 0xca2   : > { %16499 = vmatprep.mubr.bf16.mxu0 %v28895_v28 }
 0xca9   : > { %16500 = vmatmul.mubr.bf16.gmra.mrb[228].mxu0 %v27322_v6  ;;  %v28920_v6 = vld [vmem:[#allocation67_spill] sm:$0xff] }
 0xcaa   : > { %16509 = vmatprep.mubr.bf16.mxu0 %v28895_v28 }
 0xcb1   : > { %16510 = vmatmul.mubr.bf16.gmra.mrb[232].mxu0 %v27336_v15 }
 0xcb2   : > { %16519 = vmatprep.mubr.bf16.mxu0 %v28895_v28 }
 0xcb9   : > { %16520 = vmatmul.mubr.bf16.gmra.mrb[236].mxu0 %v27358_v5 }
 0xcba   : > { %16529 = vmatprep.mubr.bf16.mxu0 %v28895_v28 }
 0xcc1   : > { %16530 = vmatmul.mubr.bf16.gmra.mrb[240].mxu0 %v27365_v52  ;;  %v28921_v52 = vld [vmem:[#allocation35_spill] sm:$0xff] }
 0xcc2   : > { %16539 = vmatprep.mubr.bf16.mxu0 %v28895_v28 }
 0xcc9   : > { %16540 = vmatmul.mubr.bf16.gmra.mrb[244].mxu0 %v27372_v59 }
 0xcca   : > { %16549 = vmatprep.mubr.bf16.mxu0 %v28895_v28 }
 0xcd1   : > { %16550 = vmatmul.mubr.bf16.gmra.mrb[248].mxu0 %v27383_v25 }
 0xcd2   : > { %16559 = vmatprep.mubr.bf16.mxu0 %v28895_v28 }
 0xcd9   : > { %16560 = vmatmul.mubr.bf16.gmra.mrb[252].mxu0 %v28895_v28 }
 0xcf0   : > { %v19411_v54 = vpop.f32.mrb[140].mxu1 }
 0xcf1   : > { %v19539_v57 = vadd.f32 %v28918_v38, %v19411_v54  ;;  %v16604_v30 = vpop.f32.mrb[141].mxu1  ;;  %v28929_v54 = vld [vmem:[#allocation115_spill] sm:$0xff] }
 0xcf2   : > { %v19542_v58 = vadd.f32 %v28919_v8, %v16604_v30  ;;  %v19412_v24 = vpop.f32.mrb[142].mxu1 }
 0xcf3   : > { %v27480_v15 = vadd.f32 %v28920_v6, %v19412_v24  ;;  %v16607_v5 = vpop.f32.mrb[143].mxu1  ;;  %v17086_v59 = vrot.slane %v19539_v57, 1 }
 0xcf4   : > { %v27483_v18 = vadd.f32 %v28921_v52, %v16607_v5  ;;  %v17083_v48 = vrot.slane %v19542_v58, 1  ;;  %v28930_v52 = vld [vmem:[#allocation120_spill] sm:$0xff] }
 0xcf5   : > { %v28265_v63 = vrot.slane %v27480_v15, 1 }
 0xcf6   : > { %v28267_v28 = vrot.slane %v27483_v18, 1 }
 0xcf7   : > { %v27490_v55 = vsel %vm14166_vm2, %v17086_v59, %v28265_v63 }
 0xcf8   : > { %v19415_v26 = vpop.f32.mrb[144].mxu1  ;;  %v27495_v31 = vsel %vm14166_vm2, %v17083_v48, %v28267_v28 }
 0xcf9   : > { %v19551_v53 = vadd.f32 %v28922_v7, %v19415_v26  ;;  %v16620_v11 = vpop.f32.mrb[145].mxu1  ;;  %v28931_v26 = vld [vmem:[#allocation118_spill] sm:$0xff] }
 0xcfa   : > { %v19554_v39 = vadd.f32 %v28923_v47, %v16620_v11  ;;  %v19416_v14 = vpop.f32.mrb[146].mxu1  ;;  %v28932_v11 = vld [vmem:[#allocation121_spill] sm:$0xff] }
 0xcfb   : > { %v27500_v45 = vadd.f32 %v28924_v22, %v19416_v14  ;;  %v16623_v25 = vpop.f32.mrb[147].mxu1  ;;  %v17092_v27 = vrot.slane %v19551_v53, 1  ;;  %v28933_v14 = vld [vmem:[#allocation119_spill] sm:$0xff] }
 0xcfc   : > { %v27503_v33 = vadd.f32 %v28925_v34, %v16623_v25  ;;  %v17089_v44 = vrot.slane %v19554_v39, 1 }
 0xcfd   : > { %v28263_v37 = vrot.slane %v27500_v45, 1 }
 0xcfe   : > { %v28264_v50 = vrot.slane %v27503_v33, 1 }
 0xcff   : > { %v27510_v3 = vsel %vm14166_vm2, %v17092_v27, %v28263_v37  ;;  %v28954_v37 = vld [vmem:[#allocation66_spill] sm:$0xff] }
 0xd00   : > { %v19419_v1 = vpop.f32.mrb[148].mxu1  ;;  %v27515_v60 = vsel %vm14166_vm2, %v17089_v44, %v28264_v50  ;;  %v28955_v50 = vld [vmem:[#allocation127_spill] sm:$0xff] }
 0xd01   : > { %v19563_v17 = vadd.f32 %v28926_v20, %v19419_v1  ;;  %v16636_v12 = vpop.f32.mrb[149].mxu1 }
 0xd02   : > { %v19566_v40 = vadd.f32 %v28927_v19, %v16636_v12  ;;  %v19420_v43 = vpop.f32.mrb[150].mxu1  ;;  %v28934_v12 = vld [vmem:[#allocation122_spill] sm:$0xff] }
 0xd03   : > { %v27520_v16 = vadd.f32 %v28928_v29, %v19420_v43  ;;  %v16639_v2 = vpop.f32.mrb[151].mxu1  ;;  %v17098_v57 = vrot.slane %v19563_v17, 1  ;;  %v28935_v43 = vld [vmem:[#allocation136_spill] sm:$0xff] }
 0xd04   : > { %v27523_v38 = vadd.f32 %v28929_v54, %v16639_v2  ;;  %v17095_v8 = vrot.slane %v19566_v40, 1  ;;  %v28936_v54 = vld [vmem:[#allocation43_spill] sm:$0xff] }
 0xd05   : > { %v28261_v30 = vrot.slane %v27520_v16, 1 }
 0xd06   : > { %v28262_v58 = vrot.slane %v27523_v38, 1 }
 0xd07   : > { %v27530_v24 = vsel %vm14166_vm2, %v17098_v57, %v28261_v30  ;;  %v28937_v57 = vld [vmem:[#allocation27_spill] sm:$0xff] }
 0xd08   : > { %v19423_v6 = vpop.f32.mrb[152].mxu1  ;;  %v27535_v5 = vsel %vm14166_vm2, %v17095_v8, %v28262_v58  ;;  %v14499_v8 = vadd.f32 %v28937_v57, %v28936_v54 }
 0xd09   : > { %v19575_v59 = vadd.f32 %v28930_v52, %v19423_v6  ;;  %v16652_v48 = vpop.f32.mrb[153].mxu1  ;;  %v28938_v6 = vld [vmem:[#allocation123_spill] sm:$0xff] }
 0xd0a   : > { %v19578_v7 = vadd.f32 %v28931_v26, %v16652_v48  ;;  %v19424_v53 = vpop.f32.mrb[154].mxu1  ;;  %v28939_v48 = vld [vmem:[#allocation137_spill] sm:$0xff] }
 0xd0b   : > { %v27540_v47 = vadd.f32 %v28932_v11, %v19424_v53  ;;  %v16655_v39 = vpop.f32.mrb[155].mxu1  ;;  %v17104_v25 = vrot.slane %v19575_v59, 1 }
 0xd0c   : > { %v27543_v22 = vadd.f32 %v28933_v14, %v16655_v39  ;;  %v17101_v27 = vrot.slane %v19578_v7, 1  ;;  %v18565_v14 = vmul.f32 -1.442695, %v14499_v8  ;;  %v28943_v8 = vld [vmem:[#allocation124_spill] sm:$0xff] }
 0xd0d   : > { %v28258_v34 = vrot.slane %v27540_v47, 1 }
 0xd0e   : > { %v28259_v44 = vrot.slane %v27543_v22, 1  ;;  %22961 = vpow2.f32 %v18565_v14 }
 0xd0f   : > { %v27550_v1 = vsel %vm14166_vm2, %v17104_v25, %v28258_v34 }
 0xd10   : > { %v19427_v20 = vpop.f32.mrb[156].mxu1  ;;  %v27555_v17 = vsel %vm14166_vm2, %v17101_v27, %v28259_v44  ;;  %v28940_v27 = vld [vmem:[#allocation64_spill] sm:$0xff] }
 0xd11   : > { %v19587_v19 = vadd.f32 %v28934_v12, %v19427_v20  ;;  %v16668_v40 = vpop.f32.mrb[157].mxu1  ;;  %v14501_v20 = vadd.f32 %v28937_v57, %v28940_v27  ;;  %v28945_v27 = vld [vmem:[#allocation22_spill] sm:$0xff] }
 0xd12   : > { %v19590_v29 = vadd.f32 %v28935_v43, %v16668_v40  ;;  %v19428_v2 = vpop.f32.mrb[158].mxu1 }
 0xd13   : > { %v27562_v52 = vadd.f32 %v28938_v6, %v19428_v2  ;;  %v16671_v59 = vpop.f32.mrb[159].mxu1  ;;  %v17110_v7 = vrot.slane %v19587_v19, 1  ;;  %v28941_v19 = vld [vmem:[#allocation126_spill] sm:$0xff]  ;;  %v28942_v2 = vld [vmem:[#allocation44_spill] sm:$0xff]  ;;  %v18566_v44 = vmul.f32 -1.442695, %v14501_v20 }
 0xd14   : > { %v27565_v26 = vadd.f32 %v28939_v48, %v16671_v59  ;;  %v17107_v11 = vrot.slane %v19590_v29, 1  ;;  %v14503_v54 = vadd.f32 %v28937_v57, %v28942_v2  ;;  %v28944_v48 = vld [vmem:[#allocation141_spill] sm:$0xff] }
 0xd15   : > { %v28257_v53 = vrot.slane %v27562_v52, 1  ;;  %22963 = vpow2.f32 %v18566_v44 }
 0xd16   : > { %v28260_v39 = vrot.slane %v27565_v26, 1 }
 0xd17   : > { %v27572_v25 = vsel %vm14166_vm2, %v17110_v7, %v28257_v53  ;;  %v14505_v7 = vadd.f32 %v28937_v57, %v28944_v48 }
 0xd18   : > { %v19431_v12 = vpop.f32.mrb[160].mxu1  ;;  %v27579_v40 = vsel %vm14166_vm2, %v17107_v11, %v28260_v39  ;;  %v28947_v11 = vld [vmem:[#allocation180_spill] sm:$0xff] }
 0xd19   : > { %v19599_v43 = vadd.f32 %v28941_v19, %v19431_v12  ;;  %v16684_v29 = vpop.f32.mrb[161].mxu1  ;;  %v14507_v39 = vadd.f32 %v28937_v57, %v28947_v11  ;;  %v28948_v12 = vld [vmem:[#allocation125_spill] sm:$0xff] }
 0xd1a   : > { %v19602_v6 = vadd.f32 %v28943_v8, %v16684_v29  ;;  %v19432_v59 = vpop.f32.mrb[162].mxu1  ;;  %v18567_v29 = vmul.f32 -1.442695, %v14503_v54  ;;  %v28950_v8 = vld [vmem:[#allocation181_spill] sm:$0xff] }
 0xd1b   : > { %v27588_v53 = vadd.f32 %v28945_v27, %v19432_v59  ;;  %v16687_v34 = vpop.f32.mrb[163].mxu1  ;;  %v17116_v30 = vrot.slane %v19599_v43, 1  ;;  %v14509_v14 = vadd.f32 %v28937_v57, %v28950_v8  ;;  %v18568_v59 = vmul.f32 -1.442695, %v14505_v7  ;;  %v28951_v27 = vld [vmem:[#allocation45_spill] sm:$0xff] }
 0xd1c   : > { %v27593_v19 = vadd.f32 %v28948_v12, %v16687_v34  ;;  %v17113_v58 = vrot.slane %v19602_v6, 1  ;;  %v14511_v20 = vadd.f32 %v28937_v57, %v28951_v27  ;;  %v18569_v34 = vmul.f32 -1.442695, %v14507_v39  ;;  %v28953_v6 = vld [vmem:[#allocation113_spill] sm:$0xff] }
 0xd1d   : > { %28946 = vst [vmem:[#allocation149_spill] sm:$0xff] %v27588_v53  ;;  %v28266_v2 = vrot.slane %v27588_v53, 1  ;;  %22965 = vpow2.f32 %v18567_v29  ;;  %v18570_v7 = vmul.f32 -1.442695, %v14509_v14  ;;  %v14513_v27 = vadd.f32 %v28937_v57, %v28954_v37  ;;  %v28956_v39 = vld [vmem:[#allocation129_spill] sm:$0xff] }
 0xd1e   : > { %28949 = vst [vmem:[#allocation76_spill] sm:$0xff] %v27593_v19  ;;  %v28268_v48 = vrot.slane %v27593_v19, 1  ;;  %22967 = vpow2.f32 %v18568_v59  ;;  %v18571_v44 = vmul.f32 -1.442695, %v14511_v20  ;;  %v28961_v20 = vld [vmem:[#allocation46_spill] sm:$0xff] }
 0xd1f   : > { %v27604_v11 = vsel %vm14166_vm2, %v17116_v30, %v28266_v2  ;;  %22969 = vpow2.f32 %v18569_v34 }
 0xd20   : > { %28952 = vst [vmem:[#allocation151_spill] sm:$0xff] %v27604_v11  ;;  %v19435_v43 = vpop.f32.mrb[164].mxu1  ;;  %v27609_v54 = vsel %vm14166_vm2, %v17113_v58, %v28268_v48  ;;  %v28958_v58 = vld [vmem:[#allocation128_spill] sm:$0xff]  ;;  %22971 = vpow2.f32 %v18570_v7 }
 0xd21   : > { %v19611_v12 = vadd.f32 %v28953_v6, %v19435_v43  ;;  %v16700_v8 = vpop.f32.mrb[165].mxu1  ;;  %v22962_v43 = vpop.eup %22961  ;;  %v28960_v6 = vld [vmem:[#allocation182_spill] sm:$0xff]  ;;  %22973 = vpow2.f32 %v18571_v44 }
 0xd22   : > { %v19614_v63 = vadd.f32 %v28955_v50, %v16700_v8  ;;  %v19436_v30 = vpop.f32.mrb[166].mxu1  ;;  %v14515_v29 = vadd.f32 %v28937_v57, %v28960_v6  ;;  %v18572_v50 = vmul.f32 -1.442695, %v14513_v27  ;;  %v14659_v34 = vadd.f32 1.0, %v22962_v43  ;;  %v28965_v27 = vld [vmem:[#allocation131_spill] sm:$0xff] }
 0xd23   : > { %v27616_v2 = vadd.f32 %v28956_v39, %v19436_v30  ;;  %v16703_v28 = vpop.f32.mrb[167].mxu1  ;;  %v17122_v14 = vrot.slane %v19611_v12, 1  ;;  %v14517_v30 = vadd.f32 %v28937_v57, %v28961_v20  ;;  %v28963_v39 = vld [vmem:[#allocation47_spill] sm:$0xff]  ;;  %v22964_v20 = vpop.eup %22963 }
 0xd24   : > { %v27619_v48 = vadd.f32 %v28958_v58, %v16703_v28  ;;  %v17119_v8 = vrot.slane %v19614_v63, 1  ;;  %v14519_v12 = vadd.f32 %v28937_v57, %v28963_v39  ;;  %v18573_v7 = vmul.f32 -1.442695, %v14515_v29  ;;  %v28968_v39 = vld [vmem:[#allocation132_spill] sm:$0xff]  ;;  %v28970_v29 = vld [vmem:[#allocation130_spill] sm:$0xff] }
 0xd25   : > { %28957 = vst [vmem:[#allocation78_spill] sm:$0xff] %v27616_v2  ;;  %v28270_v37 = vrot.slane %v27616_v2, 1  ;;  %22975 = vpow2.f32 %v18572_v50  ;;  %v28966_v2 = vld [vmem:[#allocation69_spill] sm:$0xff]  ;;  %v18574_v56 = vmul.f32 -1.442695, %v14517_v30 }
 0xd26   : > { %28959 = vst [vmem:[#allocation153_spill] sm:$0xff] %v27619_v48  ;;  %v28273_v59 = vrot.slane %v27619_v48, 1  ;;  %22977 = vrcp.f32 %v14659_v34 }
 0xd27   : > { %v27630_v28 = vsel %vm14166_vm2, %v17122_v14, %v28270_v37  ;;  %v14521_v14 = vadd.f32 %v28937_v57, %v28966_v2  ;;  %v28967_v37 = vld [vmem:[#allocation28_spill] sm:$0xff]  ;;  %v22966_v53 = vpop.eup %22965  ;;  %22979 = vpow2.f32 %v18573_v7 }
 0xd28   : > { %28962 = vst [vmem:[#allocation80_spill] sm:$0xff] %v27630_v28  ;;  %v19439_v58 = vpop.f32.mrb[168].mxu1  ;;  %v27637_v63 = vsel %vm14166_vm2, %v17119_v8, %v28273_v59  ;;  %v18575_v8 = vmul.f32 -1.442695, %v14519_v12  ;;  %v14661_v11 = vadd.f32 1.0, %v22966_v53  ;;  %22981 = vpow2.f32 %v18574_v56  ;;  %v28976_v53 = vld [vmem:[#allocation25_spill] sm:$0xff] }
 0xd29   : > { %28964 = vst [vmem:[#allocation155_spill] sm:$0xff] %v27637_v63  ;;  %v19623_v44 = vadd.f32 %v28965_v27, %v19439_v58  ;;  %v16716_v6 = vpop.f32.mrb[169].mxu1  ;;  %v22968_v58 = vpop.eup %22967  ;;  %v14660_v27 = vadd.f32 1.0, %v22964_v20 }
 0xd2a   : > { %v19626_v43 = vadd.f32 %v28967_v37, %v16716_v6  ;;  %v19440_v28 = vpop.f32.mrb[170].mxu1  ;;  %v22970_v63 = vpop.eup %22969  ;;  %v18576_v37 = vmul.f32 -1.442695, %v14521_v14  ;;  %v28972_v6 = vld [vmem:[#allocation145_spill] sm:$0xff]  ;;  %v14662_v12 = vadd.f32 1.0, %v22968_v58  ;;  %22983 = vpow2.f32 %v18575_v8 }
 0xd2b   : > { %v27644_v4 = vadd.f32 %v28968_v39, %v19440_v28  ;;  %v16719_v48 = vpop.f32.mrb[171].mxu1  ;;  %v17128_v50 = vrot.slane %v19623_v44, 1  ;;  %v14523_v30 = vadd.f32 %v28937_v57, %v28972_v6  ;;  %v22972_v34 = vpop.eup %22971  ;;  %22985 = vrcp.f32 %v14660_v27  ;;  %v28979_v27 = vld [vmem:[#allocation104_spill] sm:$0xff] }
 0xd2c   : > { %v27647_v59 = vadd.f32 %v28970_v29, %v16719_v48  ;;  %v17125_v28 = vrot.slane %v19626_v43, 1  ;;  %v22974_v20 = vpop.eup %22973  ;;  %v14663_v14 = vadd.f32 1.0, %v22970_v63  ;;  %v28975_v43 = vld [vmem:[#allocation184_spill] sm:$0xff]  ;;  %22987 = vpow2.f32 %v18576_v37 }
 0xd2d   : > { %28969 = vst [vmem:[#allocation82_spill] sm:$0xff] %v27644_v4  ;;  %v28274_v2 = vrot.slane %v27644_v4, 1  ;;  %v14525_v56 = vadd.f32 %v28937_v57, %v28975_v43  ;;  %22989 = vrcp.f32 %v14661_v11  ;;  %v14664_v4 = vadd.f32 1.0, %v22972_v34 }
 0xd2e   : > { %28971 = vst [vmem:[#allocation157_spill] sm:$0xff] %v27647_v59  ;;  %v28277_v39 = vrot.slane %v27647_v59, 1  ;;  %v28978_v59 = vld [vmem:[#allocation30_spill] sm:$0xff]  ;;  %22991 = vrcp.f32 %v14662_v12  ;;  %v14665_v63 = vadd.f32 1.0, %v22974_v20 }
 0xd2f   : > { %v27656_v48 = vsel %vm14166_vm2, %v17128_v50, %v28274_v2  ;;  %v18577_v50 = vmul.f32 -1.442695, %v14523_v30  ;;  %v28977_v2 = vld [vmem:[#allocation103_spill] sm:$0xff]  ;;  %22993 = vrcp.f32 %v14663_v14  ;;  %v18578_v43 = vmul.f32 -1.442695, %v14525_v56 }
 0xd30   : > { %28973 = vst [vmem:[#allocation84_spill] sm:$0xff] %v27656_v48  ;;  %v27661_v44 = vsel %vm14166_vm2, %v17125_v28, %v28277_v39  ;;  %v28980_v56 = vrot.slane %v27483_v18, 1 }
 0xd31   : > { %28974 = vst [vmem:[#allocation159_spill] sm:$0xff] %v27661_v44  ;;  %v22976_v44 = vpop.eup %22975  ;;  %22995 = vpow2.f32 %v18577_v50 }
 0xd32   : > { %v27670_v30 = vpop.eup %22977  ;;  %22997 = vrcp.f32 %v14664_v4  ;;  %v14666_v34 = vadd.f32 1.0, %v22976_v44  ;;  %v14527_v44 = vadd.f32 %v28937_v57, %v27108_v32  ;;  %v28984_v32 = vld [vmem:[#allocation106_spill] sm:$0xff] }
 0xd33   : > { %v22980_v11 = vpop.eup %22979  ;;  %22999 = vrcp.f32 %v14665_v63 }
 0xd34   : > { %v16411_v7 = vpop.f32.mrb[192].mxu0  ;;  %v22982_v14 = vpop.eup %22981  ;;  %23001 = vpow2.f32 %v18578_v43  ;;  %v28983_v43 = vld [vmem:[#allocation135_spill] sm:$0xff] }
 0xd35   : > { %v16827_v29 = vadd.f32 %v28976_v53, %v16411_v7  ;;  %v16413_v6 = vpop.f32.mrb[193].mxu0  ;;  %v27672_v53 = vld [vmem:[#allocation13] ss:$0 sm:$0xff]  ;;  %v22984_v4 = vpop.eup %22983  ;;  %23003 = vrcp.f32 %v14666_v34 }
 0xd36   : > { %v16859_v58 = vadd.f32 %v16413_v6, %v28977_v2  ;;  %v16415_v8 = vpop.f32.mrb[194].mxu0  ;;  %v28981_v6 = vld [vmem:[#allocation31_spill] sm:$0xff]  ;;  %v27684_v63 = vpop.eup %22985 }
 0xd37   : > { %v16955_v48 = vrot.slane %v16827_v29, 7  ;;  %v16828_v28 = vadd.f32 %v28978_v59, %v16415_v8  ;;  %v16417_v39 = vpop.f32.mrb[195].mxu0  ;;  %v17163_v29 = vsel %vm14166_vm2, %v28980_v56, 0.0 }
 0xd38   : > { %v16860_v13 = vadd.f32 %v16417_v39, %v28979_v27  ;;  %v14667_v27 = vadd.f32 1.0, %v22980_v11 }
 0xd39   : > { %v17035_v7 = vsel %vm13909_vm1, 0.0, %v16955_v48  ;;  %v16956_v37 = vrot.slane %v16828_v28, 7  ;;  %v28982_v28 = vld [vmem:[#allocation105_spill] sm:$0xff] }
 0xd3a   : > { %v17179_v2 = vadd.f32 %v17035_v7, %v16859_v58 }
 0xd3b   : > { %v16957_v59 = vsel %vm13909_vm1, %v16955_v48, %v16956_v37 }
 0xd3c   : > { %v17211_v12 = vadd.f32 %v17179_v2, %v27495_v31  ;;  %v17180_v39 = vadd.f32 %v16957_v59, %v16860_v13  ;;  %v16421_v20 = vpop.f32.mrb[196].mxu0  ;;  %v22988_v2 = vpop.eup %22987  ;;  %v14668_v59 = vadd.f32 1.0, %v22982_v14 }
 0xd3d   : > { %v16829_v50 = vadd.f32 %v28981_v6, %v16421_v20  ;;  %v16423_v58 = vpop.f32.mrb[197].mxu0 }
 0xd3e   : > { %v17250_v48 = vadd.f32 %v27672_v53, %v17211_v12  ;;  %v17212_v8 = vadd.f32 %v17180_v39, %v17163_v29  ;;  %v16861_v31 = vadd.f32 %v16423_v58, %v28982_v28  ;;  %v16425_v13 = vpop.f32.mrb[198].mxu0  ;;  %v27689_v12 = vpop.eup %22989  ;;  %v14669_v39 = vadd.f32 1.0, %v22984_v4 }
 0xd3f   : > { %v16958_v18 = vrot.slane %v16829_v50, 7  ;;  %v16830_v7 = vadd.f32 %v28983_v43, %v16425_v13  ;;  %v16427_v37 = vpop.f32.mrb[199].mxu0  ;;  %v14529_v29 = vadd.f32 %v28937_v57, %v27111_v23  ;;  %v27694_v6 = vpop.eup %22991  ;;  %v17314_v50 = vsub.f32 1.0, %v27670_v30 }
 0xd40   : > { %23005 = vtanh.f32 %v17250_v48  ;;  %v17251_v20 = vadd.f32 %v27672_v53, %v17212_v8  ;;  %v16862_v56 = vadd.f32 %v16427_v37, %v28984_v32  ;;  %v18579_v58 = vmul.f32 -1.442695, %v14527_v44  ;;  %v27697_v48 = vpop.eup %22993 }
 0xd41   : > { %v17036_v34 = vsel %vm13909_vm1, 0.0, %v16958_v18  ;;  %v16959_v11 = vrot.slane %v16830_v7, 7  ;;  %v17315_v8 = vsub.f32 1.0, %v27684_v63  ;;  %v14670_v28 = vadd.f32 1.0, %v22988_v2  ;;  %v22996_v13 = vpop.eup %22995 }
 0xd42   : > { %23007 = vtanh.f32 %v17251_v20  ;;  %v17181_v14 = vadd.f32 %v17036_v34, %v16861_v31  ;;  %v27703_v32 = vpop.eup %22997  ;;  %v18580_v44 = vmul.f32 -1.442695, %v14529_v29  ;;  %v28985_v31 = vrot.slane %v27480_v15, 1  ;;  %v28988_v15 = vld [vmem:[#allocation26_spill] sm:$0xff] }
 0xd43   : > { %23009 = vrcp.f32 %v14667_v27  ;;  %v16960_v4 = vsel %vm13909_vm1, %v16958_v18, %v16959_v11  ;;  %v28986_v27 = vld [vmem:[#allocation33_spill] sm:$0xff]  ;;  %v27709_v18 = vpop.eup %22999 }
 0xd44   : > { %23011 = vrcp.f32 %v14668_v59  ;;  %v17213_v43 = vadd.f32 %v17181_v14, %v27490_v55  ;;  %v17182_v7 = vadd.f32 %v16960_v4, %v16862_v56  ;;  %v16431_v37 = vpop.f32.mrb[200].mxu0  ;;  %v17164_v20 = vsel %vm14166_vm2, %v28985_v31, 0.0  ;;  %v28987_v55 = vld [vmem:[#allocation107_spill] sm:$0xff]  ;;  %v23002_v4 = vpop.eup %23001 }
 0xd45   : > { %23013 = vrcp.f32 %v14669_v39  ;;  %v16831_v2 = vadd.f32 %v28986_v27, %v16431_v37  ;;  %v16433_v34 = vpop.f32.mrb[201].mxu0  ;;  %v14671_v39 = vadd.f32 1.0, %v22996_v13  ;;  %v14531_v37 = vadd.f32 %v28937_v57, %v27126_v42  ;;  %v28989_v27 = vld [vmem:[#allocation108_spill] sm:$0xff] }
 0xd46   : > { %23015 = vpow2.f32 %v18579_v58  ;;  %v17252_v59 = vadd.f32 %v27672_v53, %v17213_v43  ;;  %v17214_v11 = vadd.f32 %v17182_v7, %v17164_v20  ;;  %v16863_v56 = vadd.f32 %v16433_v34, %v28987_v55  ;;  %v16435_v14 = vpop.f32.mrb[202].mxu0  ;;  %v27718_v7 = vpop.eup %23003  ;;  %v23185_v55 = vld [vmem:[%s23839_s19] sm:$0xff]  ;;  %v23186_v20 = vld [vmem:[%s23839_s19 + $0x8] sm:$0xff] }
 0xd47   : > { %23017 = vrcp.f32 %v14670_v28  ;;  %v16961_v29 = vrot.slane %v16831_v2, 7  ;;  %v16832_v23 = vadd.f32 %v28988_v15, %v16435_v14  ;;  %v16437_v31 = vpop.f32.mrb[203].mxu0  ;;  %v17346_v14 = vmul.f32 %v23185_v55, %v17314_v50 }
 0xd48   : > { %23019 = vtanh.f32 %v17252_v59  ;;  %v17253_v58 = vadd.f32 %v27672_v53, %v17214_v11  ;;  %v16864_v43 = vadd.f32 %v16437_v31, %v28989_v27  ;;  %v14672_v59 = vadd.f32 1.0, %v23002_v4 }
 0xd49   : > { %23021 = vpow2.f32 %v18580_v44  ;;  %v17037_v28 = vsel %vm13909_vm1, 0.0, %v16961_v29  ;;  %v16962_v13 = vrot.slane %v16832_v23, 7  ;;  %v18581_v27 = vmul.f32 -1.442695, %v14531_v37 }
 0xd4a   : > { %v23006_v2 = vpop.eup %23005  ;;  %23023 = vtanh.f32 %v17253_v58  ;;  %v17183_v42 = vadd.f32 %v17037_v28, %v16863_v56  ;;  %v17347_v44 = vmul.f32 %v23186_v20, %v17315_v8  ;;  %v28990_v50 = vrot.slane %v27503_v33, 1  ;;  %v28992_v20 = vld [vmem:[#allocation109_spill] sm:$0xff] }
 0xd4b   : > { %23025 = vrcp.f32 %v14671_v39  ;;  %v17378_v11 = vmul.f32 %v23006_v2, %v27670_v30  ;;  %v16963_v15 = vsel %vm13909_vm1, %v16961_v29, %v16962_v13  ;;  %v28991_v39 = vld [vmem:[#allocation50_spill] sm:$0xff]  ;;  %v28993_v2 = vld [vmem:[#allocation52_spill] sm:$0xff] }
 0xd4c   : > { %v23008_v31 = vpop.eup %23007  ;;  %v17215_v10 = vadd.f32 %v17183_v42, %v27515_v60  ;;  %v17184_v23 = vadd.f32 %v16963_v15, %v16864_v43  ;;  %v16441_v19 = vpop.f32.mrb[204].mxu0  ;;  %v17165_v56 = vsel %vm14166_vm2, %v28990_v50, 0.0  ;;  %v14533_v60 = vadd.f32 %v28937_v57, %v27129_v41 }
 0xd4d   : > { %v27728_v34 = vpop.eup %23009  ;;  %v17410_v4 = vadd.f32 %v17378_v11, %v17346_v14  ;;  %v17379_v30 = vmul.f32 %v23008_v31, %v27684_v63  ;;  %v16833_v29 = vadd.f32 %v28991_v39, %v16441_v19  ;;  %v16443_v58 = vpop.f32.mrb[205].mxu0  ;;  %23027 = vrcp.f32 %v14672_v59  ;;  %v28994_v11 = vld [vmem:[#allocation110_spill] sm:$0xff] }
 0xd4e   : > { %v27735_v37 = vpop.eup %23011  ;;  %v17254_v8 = vadd.f32 %v27672_v53, %v17215_v10  ;;  %v17216_v43 = vadd.f32 %v17184_v23, %v17165_v56  ;;  %v16865_v28 = vadd.f32 %v16443_v58, %v28992_v20  ;;  %v16445_v13 = vpop.f32.mrb[206].mxu0  ;;  %v17319_v10 = vsub.f32 1.0, %v27703_v32  ;;  %v23187_v58 = vld [vmem:[%s23839_s19 + $0x10] sm:$0xff] }
 0xd4f   : > { %v27741_v33 = vpop.eup %23013  ;;  %17442 = vst [vmem:[%s27745_s17] sm:$0xff] %v17410_v4  ;;  %v17411_v19 = vadd.f32 %v17379_v30, %v17347_v44  ;;  %v16964_v63 = vrot.slane %v16833_v29, 7  ;;  %v16834_v55 = vadd.f32 %v28993_v2, %v16445_v13  ;;  %v16447_v41 = vpop.f32.mrb[207].mxu0  ;;  %v17320_v31 = vsub.f32 1.0, %v27709_v18  ;;  %v23188_v2 = vld [vmem:[%s23839_s19 + $0x18] sm:$0xff] }
 0xd50   : > { %v23016_v14 = vpop.eup %23015  ;;  %23029 = vtanh.f32 %v17254_v8  ;;  %v17255_v42 = vadd.f32 %v27672_v53, %v17216_v43  ;;  %v16866_v59 = vadd.f32 %v16447_v41, %v28994_v11  ;;  %v17321_v56 = vsub.f32 1.0, %v27718_v7 }
 0xd51   : > { %v27752_v15 = vpop.eup %23017  ;;  %23031 = vpow2.f32 %v18581_v27  ;;  %17443 = vst [vmem:[%s27745_s17 + $0x8] sm:$0xff] %v17411_v19  ;;  %v17038_v44 = vsel %vm13909_vm1, 0.0, %v16964_v63  ;;  %v16965_v23 = vrot.slane %v16834_v55, 7  ;;  %v18582_v4 = vmul.f32 -1.442695, %v14533_v60 }
 0xd52   : > { %v23020_v50 = vpop.eup %23019  ;;  %23033 = vtanh.f32 %v17255_v42  ;;  %v17185_v30 = vadd.f32 %v17038_v44, %v16865_v28  ;;  %v14673_v29 = vadd.f32 1.0, %v23016_v14  ;;  %v28995_v8 = vsub.f32 1.0, %v27689_v12 }
 0xd53   : > { %v23022_v39 = vpop.eup %23021  ;;  %v17380_v20 = vmul.f32 %v23020_v50, %v27689_v12  ;;  %v16966_v27 = vsel %vm13909_vm1, %v16964_v63, %v16965_v23  ;;  %v14535_v19 = vadd.f32 %v28937_v57, %v27151_v49  ;;  %v28996_v55 = vsub.f32 1.0, %v27694_v6  ;;  %v28998_v23 = vld [vmem:[#allocation54_spill] sm:$0xff] }
 0xd54   : > { %v17348_v43 = vmul.f32 %v23187_v58, %v28995_v8  ;;  %v23024_v13 = vpop.eup %23023  ;;  %v17217_v28 = vadd.f32 %v17185_v30, %v27510_v3  ;;  %v17186_v41 = vadd.f32 %v16966_v27, %v16866_v59  ;;  %v16451_v14 = vpop.f32.mrb[208].mxu0  ;;  %v28997_v11 = vrot.slane %v27500_v45, 1 }
 0xd55   : > { %v17349_v60 = vmul.f32 %v23188_v2, %v28996_v55  ;;  %v27769_v42 = vpop.eup %23025  ;;  %v17381_v44 = vmul.f32 %v23024_v13, %v27694_v6  ;;  %v16835_v49 = vadd.f32 %v28998_v23, %v16451_v14  ;;  %v16453_v50 = vpop.f32.mrb[209].mxu0  ;;  %23035 = vpow2.f32 %v18582_v4  ;;  %v28999_v2 = vld [vmem:[#allocation111_spill] sm:$0xff]  ;;  %v29001_v55 = vld [vmem:[#allocation112_spill] sm:$0xff] }
 0xd56   : > { %v17166_v12 = vsel %vm14166_vm2, %v28997_v11, 0.0  ;;  %v17412_v63 = vadd.f32 %v17380_v20, %v17348_v43  ;;  %v17256_v58 = vadd.f32 %v27672_v53, %v17217_v28  ;;  %v16867_v3 = vadd.f32 %v16453_v50, %v28999_v2  ;;  %v16455_v59 = vpop.f32.mrb[210].mxu0  ;;  %v29000_v43 = vld [vmem:[#allocation56_spill] sm:$0xff] }
 0xd57   : > { %v17218_v8 = vadd.f32 %v17186_v41, %v17166_v12  ;;  %v14537_v30 = vadd.f32 %v28937_v57, %v27157_v35  ;;  %v17413_v45 = vadd.f32 %v17381_v44, %v17349_v60  ;;  %v16967_v27 = vrot.slane %v16835_v49, 7  ;;  %v16457_v6 = vpop.f32.mrb[211].mxu0  ;;  %v27784_v41 = vpop.eup %23027  ;;  %v23189_v49 = vld [vmem:[%s23839_s19 + $0x20] sm:$0xff] }
 0xd58   : > { %17444 = vst [vmem:[%s27745_s17 + $0x10] sm:$0xff] %v17412_v63  ;;  %v16836_v20 = vadd.f32 %v29000_v43, %v16455_v59  ;;  %v18583_v13 = vmul.f32 -1.442695, %v14535_v19  ;;  %23037 = vtanh.f32 %v17256_v58  ;;  %v16868_v28 = vadd.f32 %v16457_v6, %v29001_v55  ;;  %v23190_v59 = vld [vmem:[%s23839_s19 + $0x28] sm:$0xff] }
 0xd59   : > { %v17257_v4 = vadd.f32 %v27672_v53, %v17218_v8  ;;  %v17322_v14 = vsub.f32 1.0, %v27728_v34  ;;  %23039 = vrcp.f32 %v14673_v29  ;;  %17445 = vst [vmem:[%s27745_s17 + $0x18] sm:$0xff] %v17413_v45  ;;  %v17039_v35 = vsel %vm13909_vm1, 0.0, %v16967_v27 }
 0xd5a   : > { %v16968_v60 = vrot.slane %v16836_v20, 7  ;;  %v23030_v11 = vpop.eup %23029  ;;  %v17323_v12 = vsub.f32 1.0, %v27735_v37  ;;  %v14674_v19 = vadd.f32 1.0, %v23022_v39  ;;  %v17187_v63 = vadd.f32 %v17039_v35, %v16867_v3 }
 0xd5b   : > { %23041 = vtanh.f32 %v17257_v4  ;;  %v23032_v44 = vpop.eup %23031  ;;  %v18584_v23 = vmul.f32 -1.442695, %v14537_v30  ;;  %v29002_v50 = vsub.f32 1.0, %v27697_v48  ;;  %v17382_v8 = vmul.f32 %v23030_v11, %v27697_v48  ;;  %v29004_v4 = vld [vmem:[#allocation58_spill] sm:$0xff] }
 0xd5c   : > { %v16969_v29 = vsel %vm13909_vm1, %v16967_v27, %v16968_v60  ;;  %v23034_v2 = vpop.eup %23033  ;;  %23043 = vpow2.f32 %v18583_v13  ;;  %v17351_v45 = vmul.f32 %v23190_v59, %v17319_v10  ;;  %v17219_v39 = vadd.f32 %v17187_v63, %v27535_v5  ;;  %v16461_v43 = vpop.f32.mrb[212].mxu0  ;;  %v29005_v60 = vld [vmem:[#allocation138_spill] sm:$0xff]  ;;  %v29006_v63 = vld [vmem:[#allocation60_spill] sm:$0xff] }
 0xd5d   : > { %v17350_v58 = vmul.f32 %v23189_v49, %v29002_v50  ;;  %v17188_v3 = vadd.f32 %v16969_v29, %v16868_v28  ;;  %v29003_v30 = vrot.slane %v27523_v38, 1  ;;  %v17383_v48 = vmul.f32 %v23034_v2, %v27703_v32  ;;  %v16463_v55 = vpop.f32.mrb[213].mxu0 }
 0xd5e   : > { %v16837_v27 = vadd.f32 %v29004_v4, %v16461_v43  ;;  %23045 = vrcp.f32 %v14674_v19  ;;  %v17258_v13 = vadd.f32 %v27672_v53, %v17219_v39  ;;  %v16869_v10 = vadd.f32 %v16463_v55, %v29005_v60  ;;  %v16465_v5 = vpop.f32.mrb[214].mxu0  ;;  %v23192_v55 = vld [vmem:[%s23839_s19 + $0x38] sm:$0xff] }
 0xd5f   : > { %v17167_v20 = vsel %vm14166_vm2, %v29003_v30, 0.0  ;;  %v17414_v6 = vadd.f32 %v17382_v8, %v17350_v58  ;;  %v14539_v28 = vadd.f32 %v28937_v57, %v27186_v21  ;;  %v17415_v38 = vadd.f32 %v17383_v48, %v17351_v45  ;;  %v16467_v32 = vpop.f32.mrb[215].mxu0  ;;  %v23036_v50 = vpop.eup %23035  ;;  %v29007_v8 = vld [vmem:[#allocation139_spill] sm:$0xff] }
 0xd60   : > { %v17220_v35 = vadd.f32 %v17188_v3, %v17167_v20  ;;  %v16970_v11 = vrot.slane %v16837_v27, 7  ;;  %v16838_v49 = vadd.f32 %v29006_v63, %v16465_v5  ;;  %v14541_v19 = vadd.f32 %v28937_v57, %v27189_v0  ;;  %v23191_v20 = vld [vmem:[%s23839_s19 + $0x30] sm:$0xff] }
 0xd61   : > { %17446 = vst [vmem:[%s27745_s17 + $0x20] sm:$0xff] %v17414_v6  ;;  %23047 = vtanh.f32 %v17258_v13  ;;  %v16870_v29 = vadd.f32 %v16467_v32, %v29007_v8  ;;  %v17324_v2 = vsub.f32 1.0, %v27741_v33  ;;  %17447 = vst [vmem:[%s27745_s17 + $0x28] sm:$0xff] %v17415_v38  ;;  %v17325_v39 = vsub.f32 1.0, %v27752_v15  ;;  %v29010_v32 = vld [vmem:[#allocation140_spill] sm:$0xff]  ;;  %v29011_v8 = vld [vmem:[#allocation63_spill] sm:$0xff] }
 0xd62   : > { %v17259_v58 = vadd.f32 %v27672_v53, %v17220_v35  ;;  %23049 = vpow2.f32 %v18584_v23  ;;  %v17040_v21 = vsel %vm13909_vm1, 0.0, %v16970_v11  ;;  %v16971_v59 = vrot.slane %v16838_v49, 7  ;;  %v23038_v45 = vpop.eup %23037 }
 0xd63   : > { %v14675_v3 = vadd.f32 1.0, %v23032_v44  ;;  %v17189_v0 = vadd.f32 %v17040_v21, %v16869_v10  ;;  %v27818_v43 = vpop.eup %23039  ;;  %v18585_v30 = vmul.f32 -1.442695, %v14539_v28  ;;  %v17352_v6 = vmul.f32 %v23191_v20, %v17320_v31  ;;  %v29009_v28 = vld [vmem:[#allocation62_spill] sm:$0xff] }
 0xd64   : > { %23051 = vtanh.f32 %v17259_v58  ;;  %v17384_v23 = vmul.f32 %v23038_v45, %v27709_v18  ;;  %v16972_v48 = vsel %vm13909_vm1, %v16970_v11, %v16971_v59  ;;  %v18586_v27 = vmul.f32 -1.442695, %v14541_v19  ;;  %v16471_v60 = vpop.f32.mrb[216].mxu0 }
 0xd65   : > { %v23042_v4 = vpop.eup %23041  ;;  %v17353_v13 = vmul.f32 %v23192_v55, %v17321_v56  ;;  %v17221_v44 = vadd.f32 %v17189_v0, %v27530_v24  ;;  %v17190_v35 = vadd.f32 %v16972_v48, %v16870_v29  ;;  %v29008_v10 = vrot.slane %v27520_v16, 1  ;;  %v16473_v11 = vpop.f32.mrb[217].mxu0 }
 0xd66   : > { %v17416_v31 = vadd.f32 %v17384_v23, %v17352_v6  ;;  %v17385_v18 = vmul.f32 %v23042_v4, %v27718_v7  ;;  %v16839_v38 = vadd.f32 %v29009_v28, %v16471_v60  ;;  %v23044_v63 = vpop.eup %23043  ;;  %23053 = vrcp.f32 %v14675_v3  ;;  %v16475_v19 = vpop.f32.mrb[218].mxu0  ;;  %v29012_v3 = vld [vmem:[#allocation142_spill] sm:$0xff] }
 0xd67   : > { %v17168_v5 = vsel %vm14166_vm2, %v29008_v10, 0.0  ;;  %v17260_v49 = vadd.f32 %v27672_v53, %v17221_v44  ;;  %v16871_v24 = vadd.f32 %v16473_v11, %v29010_v32  ;;  %23055 = vpow2.f32 %v18585_v30  ;;  %v16477_v21 = vpop.f32.mrb[219].mxu0 }
 0xd68   : > { %v17222_v56 = vadd.f32 %v17190_v35, %v17168_v5  ;;  %17448 = vst [vmem:[%s27745_s17 + $0x30] sm:$0xff] %v17416_v31  ;;  %v17417_v16 = vadd.f32 %v17385_v18, %v17353_v13  ;;  %v16973_v58 = vrot.slane %v16839_v38, 7  ;;  %v16840_v29 = vadd.f32 %v29011_v8, %v16475_v19  ;;  %v27838_v7 = vpop.eup %23045  ;;  %v23193_v35 = vld [vmem:[%s23839_s19 + $0x40] sm:$0xff] }
 0xd69   : > { %v17326_v59 = vsub.f32 1.0, %v27769_v42  ;;  %23057 = vtanh.f32 %v17260_v49  ;;  %v16872_v0 = vadd.f32 %v16477_v21, %v29012_v3  ;;  %v17327_v20 = vsub.f32 1.0, %v27784_v41  ;;  %v29014_v49 = vld [vmem:[#allocation65_spill] sm:$0xff]  ;;  %v29015_v19 = vld [vmem:[#allocation144_spill] sm:$0xff] }
 0xd6a   : > { %v17261_v45 = vadd.f32 %v27672_v53, %v17222_v56  ;;  %23059 = vpow2.f32 %v18586_v27  ;;  %17449 = vst [vmem:[%s27745_s17 + $0x38] sm:$0xff] %v17417_v16  ;;  %v17041_v30 = vsel %vm13909_vm1, 0.0, %v16973_v58  ;;  %v16974_v6 = vrot.slane %v16840_v29, 7  ;;  %v29016_v8 = vld [vmem:[#allocation68_spill] sm:$0xff] }
 0xd6b   : > { %v23048_v23 = vpop.eup %23047  ;;  %v14676_v48 = vadd.f32 1.0, %v23036_v50  ;;  %v14677_v4 = vadd.f32 1.0, %v23044_v63  ;;  %v17191_v55 = vadd.f32 %v17041_v30, %v16871_v24  ;;  %v14543_v44 = vadd.f32 %v28937_v57, %v27217_v62  ;;  %v23194_v50 = vld [vmem:[%s23839_s19 + $0x48] sm:$0xff] }
 0xd6c   : > { %23061 = vtanh.f32 %v17261_v45  ;;  %v23050_v13 = vpop.eup %23049  ;;  %v17354_v60 = vmul.f32 %v23193_v35, %v17322_v14  ;;  %v17386_v27 = vmul.f32 %v23048_v23, %v27728_v34  ;;  %v16975_v10 = vsel %vm13909_vm1, %v16973_v58, %v16974_v6  ;;  %v16481_v38 = vpop.f32.mrb[220].mxu0 }
 0xd6d   : > { %v14545_v31 = vadd.f32 %v28937_v57, %v27220_v9  ;;  %v17355_v18 = vmul.f32 %v23194_v50, %v17323_v12  ;;  %v17223_v28 = vadd.f32 %v17191_v55, %v27555_v17  ;;  %v17192_v62 = vadd.f32 %v16975_v10, %v16872_v0  ;;  %v16483_v32 = vpop.f32.mrb[221].mxu0  ;;  %v29017_v0 = vld [vmem:[#allocation146_spill] sm:$0xff] }
 0xd6e   : > { %v23052_v5 = vpop.eup %23051  ;;  %v29013_v11 = vrot.slane %v27543_v22, 1  ;;  %v17418_v34 = vadd.f32 %v17386_v27, %v17354_v60  ;;  %v16841_v56 = vadd.f32 %v29014_v49, %v16481_v38  ;;  %23063 = vrcp.f32 %v14676_v48  ;;  %v16485_v17 = vpop.f32.mrb[222].mxu0 }
 0xd6f   : > { %v17387_v63 = vmul.f32 %v23052_v5, %v27735_v37  ;;  %v17262_v9 = vadd.f32 %v27672_v53, %v17223_v28  ;;  %v16873_v12 = vadd.f32 %v16483_v32, %v29015_v19  ;;  %v18587_v16 = vmul.f32 -1.442695, %v14543_v44  ;;  %v16487_v21 = vpop.f32.mrb[223].mxu0  ;;  %v23195_v5 = vld [vmem:[%s23839_s19 + $0x50] sm:$0xff]  ;;  %v23196_v28 = vld [vmem:[%s23839_s19 + $0x58] sm:$0xff] }
 0xd70   : > { %v17169_v14 = vsel %vm14166_vm2, %v29013_v11, 0.0  ;;  %17450 = vst [vmem:[%s27745_s17 + $0x40] sm:$0xff] %v17418_v34  ;;  %v16976_v22 = vrot.slane %v16841_v56, 7  ;;  %v16842_v29 = vadd.f32 %v29016_v8, %v16485_v17  ;;  %v27868_v45 = vpop.eup %23053  ;;  %v18588_v37 = vmul.f32 -1.442695, %v14545_v31 }
 0xd71   : > { %v17224_v24 = vadd.f32 %v17192_v62, %v17169_v14  ;;  %v17419_v58 = vadd.f32 %v17387_v63, %v17355_v18  ;;  %23065 = vtanh.f32 %v17262_v9  ;;  %v16874_v30 = vadd.f32 %v16487_v21, %v29017_v0  ;;  %v23056_v6 = vpop.eup %23055  ;;  %v29019_v63 = vld [vmem:[#allocation70_spill] sm:$0xff] }
 0xd72   : > { %v17328_v23 = vsub.f32 1.0, %v27818_v43  ;;  %23067 = vrcp.f32 %v14677_v4  ;;  %v17042_v48 = vsel %vm13909_vm1, 0.0, %v16976_v22  ;;  %v16977_v55 = vrot.slane %v16842_v29, 7  ;;  %v29022_v29 = vld [vmem:[#allocation150_spill] sm:$0xff] }
 0xd73   : > { %v17263_v3 = vadd.f32 %v27672_v53, %v17224_v24  ;;  %17451 = vst [vmem:[%s27745_s17 + $0x48] sm:$0xff] %v17419_v58  ;;  %v23058_v44 = vpop.eup %23057  ;;  %v17329_v35 = vsub.f32 1.0, %v27838_v7  ;;  %v14678_v60 = vadd.f32 1.0, %v23050_v13  ;;  %v17193_v27 = vadd.f32 %v17042_v48, %v16873_v12  ;;  %v29020_v24 = vld [vmem:[#allocation148_spill] sm:$0xff] }
 0xd74   : > { %v23060_v10 = vpop.eup %23059  ;;  %v17356_v31 = vmul.f32 %v23195_v5, %v17324_v2  ;;  %v17388_v50 = vmul.f32 %v23058_v44, %v27741_v33  ;;  %v16978_v4 = vsel %vm13909_vm1, %v16976_v22, %v16977_v55  ;;  %v17357_v62 = vmul.f32 %v23196_v28, %v17325_v39  ;;  %v16491_v11 = vpop.f32.mrb[224].mxu0  ;;  %v23197_v44 = vld [vmem:[%s23839_s19 + $0x60] sm:$0xff] }
 0xd75   : > { %23069 = vtanh.f32 %v17263_v3  ;;  %v17225_v13 = vadd.f32 %v17193_v27, %v27550_v1  ;;  %v17194_v38 = vadd.f32 %v16978_v4, %v16874_v30  ;;  %v29018_v14 = vrot.slane %v27540_v47, 1  ;;  %v16493_v56 = vpop.f32.mrb[225].mxu0  ;;  %v23198_v4 = vld [vmem:[%s23839_s19 + $0x68] sm:$0xff] }
 0xd76   : > { %23071 = vpow2.f32 %v18587_v16  ;;  %v23062_v18 = vpop.eup %23061  ;;  %v17420_v2 = vadd.f32 %v17388_v50, %v17356_v31  ;;  %v16843_v49 = vadd.f32 %v29019_v63, %v16491_v11  ;;  %v14547_v32 = vadd.f32 %v28937_v57, %v27253_v36  ;;  %v16495_v19 = vpop.f32.mrb[226].mxu0  ;;  %v29021_v16 = vld [vmem:[#allocation73_spill] sm:$0xff]  ;;  %v29025_v63 = vld [vmem:[#allocation152_spill] sm:$0xff] }
 0xd77   : > { %23073 = vpow2.f32 %v18588_v37  ;;  %v17170_v34 = vsel %vm14166_vm2, %v29018_v14, 0.0  ;;  %v17389_v33 = vmul.f32 %v23062_v18, %v27752_v15  ;;  %v17264_v9 = vadd.f32 %v27672_v53, %v17225_v13  ;;  %v16497_v15 = vpop.f32.mrb[227].mxu0  ;;  %v29024_v14 = vld [vmem:[#allocation75_spill] sm:$0xff] }
 0xd78   : > { %v17226_v39 = vadd.f32 %v17194_v38, %v17170_v34  ;;  %v16875_v1 = vadd.f32 %v16493_v56, %v29020_v24  ;;  %v14679_v12 = vadd.f32 1.0, %v23056_v6  ;;  %17452 = vst [vmem:[%s27745_s17 + $0x50] sm:$0xff] %v17420_v2  ;;  %v16979_v17 = vrot.slane %v16843_v49, 7  ;;  %v27896_v22 = vpop.eup %23063 }
 0xd79   : > { %v17421_v47 = vadd.f32 %v17389_v33, %v17357_v62  ;;  %v16844_v58 = vadd.f32 %v29021_v16, %v16495_v19  ;;  %v14549_v8 = vadd.f32 %v28937_v57, %v27256_v61  ;;  %23075 = vtanh.f32 %v17264_v9  ;;  %v29026_v9 = vld [vmem:[#allocation77_spill] sm:$0xff]  ;;  %v29027_v19 = vld [vmem:[#allocation154_spill] sm:$0xff] }
 0xd7a   : > { %v17265_v36 = vadd.f32 %v27672_v53, %v17226_v39  ;;  %v16876_v21 = vadd.f32 %v16497_v15, %v29022_v29  ;;  %v17330_v37 = vsub.f32 1.0, %v27868_v45  ;;  %23077 = vrcp.f32 %v14678_v60 }
 0xd7b   : > { %17453 = vst [vmem:[%s27745_s17 + $0x58] sm:$0xff] %v17421_v47  ;;  %v17043_v3 = vsel %vm13909_vm1, 0.0, %v16979_v17  ;;  %v16980_v0 = vrot.slane %v16844_v58, 7  ;;  %v23066_v30 = vpop.eup %23065  ;;  %v14680_v6 = vadd.f32 1.0, %v23060_v10  ;;  %v18589_v48 = vmul.f32 -1.442695, %v14547_v32 }
 0xd7c   : > { %23079 = vtanh.f32 %v17265_v36  ;;  %v17195_v55 = vadd.f32 %v17043_v3, %v16875_v1  ;;  %v27905_v61 = vpop.eup %23067  ;;  %v17358_v27 = vmul.f32 %v23197_v44, %v17326_v59  ;;  %v17390_v5 = vmul.f32 %v23066_v30, %v27769_v42  ;;  %v16501_v62 = vpop.f32.mrb[228].mxu0 }
 0xd7d   : > { %23081 = vrcp.f32 %v14679_v12  ;;  %v16981_v60 = vsel %vm13909_vm1, %v16979_v17, %v16980_v0  ;;  %v18590_v50 = vmul.f32 -1.442695, %v14549_v8  ;;  %v17359_v10 = vmul.f32 %v23198_v4, %v17327_v20  ;;  %v16503_v2 = vpop.f32.mrb[229].mxu0  ;;  %v29029_v4 = vld [vmem:[#allocation79_spill] sm:$0xff] }
 0xd7e   : > { %v17227_v18 = vadd.f32 %v17195_v55, %v27579_v40  ;;  %v17196_v28 = vadd.f32 %v16981_v60, %v16876_v21  ;;  %v29023_v38 = vrot.slane %v27565_v26, 1  ;;  %v17422_v11 = vadd.f32 %v17390_v5, %v17358_v27  ;;  %v16505_v56 = vpop.f32.mrb[230].mxu0  ;;  %v23199_v21 = vld [vmem:[%s23839_s19 + $0x70] sm:$0xff]  ;;  %v23200_v55 = vld [vmem:[%s23839_s19 + $0x78] sm:$0xff] }
 0xd7f   : > { %v23070_v31 = vpop.eup %23069  ;;  %v16845_v34 = vadd.f32 %v29024_v14, %v16501_v62  ;;  %23083 = vpow2.f32 %v18589_v48  ;;  %v16877_v49 = vadd.f32 %v16503_v2, %v29025_v63  ;;  %v16846_v39 = vadd.f32 %v29026_v9, %v16505_v56  ;;  %v16507_v24 = vpop.f32.mrb[231].mxu0  ;;  %v29030_v62 = vld [vmem:[#allocation156_spill] sm:$0xff]  ;;  %v29032_v2 = vld [vmem:[#allocation158_spill] sm:$0xff] }
 0xd80   : > { %v23072_v13 = vpop.eup %23071  ;;  %v17171_v59 = vsel %vm14166_vm2, %v29023_v38, 0.0  ;;  %v17391_v42 = vmul.f32 %v23070_v31, %v27784_v41  ;;  %v17266_v20 = vadd.f32 %v27672_v53, %v17227_v18  ;;  %23085 = vrcp.f32 %v14680_v6  ;;  %17454 = vst [vmem:[%s27745_s17 + $0x60] sm:$0xff] %v17422_v11 }
 0xd81   : > { %v23074_v33 = vpop.eup %23073  ;;  %v17228_v40 = vadd.f32 %v17196_v28, %v17171_v59  ;;  %v16982_v32 = vrot.slane %v16845_v34, 7  ;;  %v14551_v41 = vadd.f32 %v28937_v57, %v27290_v51  ;;  %v16878_v12 = vadd.f32 %v16507_v24, %v29027_v19  ;;  %v29031_v59 = vld [vmem:[#allocation81_spill] sm:$0xff] }
 0xd82   : > { %v17423_v26 = vadd.f32 %v17391_v42, %v17359_v10  ;;  %23087 = vtanh.f32 %v17266_v20  ;;  %v17331_v47 = vsub.f32 1.0, %v27896_v22  ;;  %v16983_v16 = vrot.slane %v16846_v39, 7  ;;  %v23201_v24 = vld [vmem:[%s23839_s19 + $0x80] sm:$0xff] }
 0xd83   : > { %v17267_v1 = vadd.f32 %v27672_v53, %v17228_v40  ;;  %23089 = vpow2.f32 %v18590_v50  ;;  %v17044_v17 = vsel %vm13909_vm1, 0.0, %v16982_v32  ;;  %v23076_v58 = vpop.eup %23075  ;;  %v14681_v15 = vadd.f32 1.0, %v23072_v13 }
 0xd84   : > { %17455 = vst [vmem:[%s27745_s17 + $0x68] sm:$0xff] %v17423_v26  ;;  %v14682_v8 = vadd.f32 1.0, %v23074_v33  ;;  %v17197_v36 = vadd.f32 %v17044_v17, %v16877_v49  ;;  %v27932_v51 = vpop.eup %23077  ;;  %v14553_v29 = vadd.f32 %v28937_v57, %v27293_v46  ;;  %v17360_v3 = vmul.f32 %v23199_v21, %v17328_v23  ;;  %v16511_v60 = vpop.f32.mrb[232].mxu0  ;;  %v23202_v17 = vld [vmem:[%s23839_s19 + $0x88] sm:$0xff] }
 0xd85   : > { %23091 = vtanh.f32 %v17267_v1  ;;  %v17392_v0 = vmul.f32 %v23076_v58, %v27818_v43  ;;  %v16984_v30 = vsel %vm13909_vm1, %v16982_v32, %v16983_v16  ;;  %v18591_v48 = vmul.f32 -1.442695, %v14551_v41  ;;  %v16513_v18 = vpop.f32.mrb[233].mxu0 }
 0xd86   : > { %v23080_v6 = vpop.eup %23079  ;;  %v17361_v44 = vmul.f32 %v23200_v55, %v17329_v35  ;;  %v17229_v27 = vadd.f32 %v17197_v36, %v27572_v25  ;;  %v17198_v5 = vadd.f32 %v16984_v30, %v16878_v12  ;;  %v29028_v31 = vrot.slane %v27562_v52, 1  ;;  %v16515_v13 = vpop.f32.mrb[234].mxu0  ;;  %v29033_v36 = vld [vmem:[#allocation76_spill] sm:$0xff] }
 0xd87   : > { %v27945_v46 = vpop.eup %23081  ;;  %v17424_v43 = vadd.f32 %v17392_v0, %v17360_v3  ;;  %v17393_v50 = vmul.f32 %v23080_v6, %v27838_v7  ;;  %v16847_v10 = vadd.f32 %v29029_v4, %v16511_v60  ;;  %23093 = vrcp.f32 %v14681_v15  ;;  %v16517_v42 = vpop.f32.mrb[235].mxu0  ;;  %v29035_v3 = vld [vmem:[#allocation83_spill] sm:$0xff]  ;;  %v29036_v6 = vld [vmem:[#allocation185_spill] sm:$0xff] }
 0xd88   : > { %v17172_v23 = vsel %vm14166_vm2, %v29028_v31, 0.0  ;;  %v17268_v35 = vadd.f32 %v27672_v53, %v17229_v27  ;;  %v16879_v25 = vadd.f32 %v16513_v18, %v29030_v62  ;;  %23095 = vrcp.f32 %v14682_v8  ;;  %v29039_v4 = vld [vmem:[#allocation71_spill] sm:$0xff] }
 0xd89   : > { %v17230_v28 = vadd.f32 %v17198_v5, %v17172_v23  ;;  %17456 = vst [vmem:[%s27745_s17 + $0x70] sm:$0xff] %v17424_v43  ;;  %v17425_v38 = vadd.f32 %v17393_v50, %v17361_v44  ;;  %v16985_v52 = vrot.slane %v16847_v10, 7  ;;  %v16848_v11 = vadd.f32 %v29031_v59, %v16515_v13  ;;  %v23084_v14 = vpop.eup %23083  ;;  %v29037_v44 = vld [vmem:[#allocation160_spill] sm:$0xff]  ;;  %v29038_v23 = vld [vmem:[#allocation85_spill] sm:$0xff] }
 0xd8a   : > { %v18592_v7 = vmul.f32 -1.442695, %v14553_v29  ;;  %23097 = vtanh.f32 %v17268_v35  ;;  %v16880_v33 = vadd.f32 %v16517_v42, %v29032_v2  ;;  %v27958_v20 = vpop.eup %23085  ;;  %v17332_v56 = vsub.f32 1.0, %v27905_v61  ;;  %v29040_v35 = vld [vmem:[#allocation162_spill] sm:$0xff] }
 0xd8b   : > { %v17269_v34 = vadd.f32 %v27672_v53, %v17230_v28  ;;  %23099 = vpow2.f32 %v18591_v48  ;;  %17457 = vst [vmem:[%s27745_s17 + $0x78] sm:$0xff] %v17425_v38  ;;  %v17045_v40 = vsel %vm13909_vm1, 0.0, %v16985_v52  ;;  %v16986_v63 = vrot.slane %v16848_v11, 7 }
 0xd8c   : > { %v23088_v49 = vpop.eup %23087  ;;  %v17333_v26 = vsub.f32 1.0, %v27932_v51  ;;  %v17199_v32 = vadd.f32 %v17045_v40, %v16879_v25  ;;  %v14683_v39 = vadd.f32 1.0, %v23084_v14  ;;  %v17362_v41 = vmul.f32 %v23201_v24, %v17330_v37  ;;  %v16521_v8 = vpop.f32.mrb[236].mxu0 }
 0xd8d   : > { %23101 = vtanh.f32 %v17269_v34  ;;  %v23090_v9 = vpop.eup %23089  ;;  %v17394_v1 = vmul.f32 %v23088_v49, %v27868_v45  ;;  %v16987_v19 = vsel %vm13909_vm1, %v16985_v52, %v16986_v63  ;;  %v17363_v16 = vmul.f32 %v23202_v17, %v17331_v47  ;;  %v16523_v30 = vpop.f32.mrb[237].mxu0  ;;  %v23204_v49 = vld [vmem:[%s23839_s19 + $0x98] sm:$0xff] }
 0xd8e   : > { %23103 = vpow2.f32 %v18592_v7  ;;  %v17231_v58 = vadd.f32 %v17199_v32, %v27609_v54  ;;  %v17200_v15 = vadd.f32 %v16987_v19, %v16880_v33  ;;  %v29034_v29 = vrot.slane %v29033_v36, 1  ;;  %v16525_v27 = vpop.f32.mrb[238].mxu0  ;;  %v23203_v7 = vld [vmem:[%s23839_s19 + $0x90] sm:$0xff]  ;;  %v29045_v36 = vld [vmem:[#allocation164_spill] sm:$0xff] }
 0xd8f   : > { %v23092_v12 = vpop.eup %23091  ;;  %v17426_v37 = vadd.f32 %v17394_v1, %v17362_v41  ;;  %v16849_v0 = vadd.f32 %v29035_v3, %v16521_v8  ;;  %v14555_v48 = vadd.f32 %v28937_v57, %v29036_v6  ;;  %v16881_v54 = vadd.f32 %v16523_v30, %v29037_v44  ;;  %v29042_v1 = vld [vmem:[#allocation149_spill] sm:$0xff] }
 0xd90   : > { %v17173_v21 = vsel %vm14166_vm2, %v29034_v29, 0.0  ;;  %v17395_v45 = vmul.f32 %v23092_v12, %v27896_v22  ;;  %v17270_v55 = vadd.f32 %v27672_v53, %v17231_v58  ;;  %v14684_v5 = vadd.f32 1.0, %v23090_v9  ;;  %v16527_v22 = vpop.f32.mrb[239].mxu0  ;;  %v29041_v9 = vld [vmem:[#allocation151_spill] sm:$0xff]  ;;  %v29047_v30 = vld [vmem:[#allocation89_spill] sm:$0xff] }
 0xd91   : > { %v17232_v47 = vadd.f32 %v17200_v15, %v17173_v21  ;;  %17458 = vst [vmem:[%s27745_s17 + $0x80] sm:$0xff] %v17426_v37  ;;  %v16988_v31 = vrot.slane %v16849_v0, 7  ;;  %v16850_v43 = vadd.f32 %v29038_v23, %v16525_v27  ;;  %v27984_v50 = vpop.eup %23093  ;;  %v14557_v10 = vadd.f32 %v28937_v57, %v29039_v4  ;;  %v29046_v37 = vld [vmem:[#allocation147_spill] sm:$0xff]  ;;  %v29049_v23 = vld [vmem:[#allocation74_spill] sm:$0xff] }
 0xd92   : > { %v17427_v60 = vadd.f32 %v17395_v45, %v17363_v16  ;;  %23105 = vtanh.f32 %v17270_v55  ;;  %v16882_v28 = vadd.f32 %v16527_v22, %v29040_v35  ;;  %v27990_v62 = vpop.eup %23095  ;;  %v17334_v25 = vsub.f32 1.0, %v27945_v46  ;;  %v29044_v16 = vld [vmem:[#allocation87_spill] sm:$0xff] }
 0xd93   : > { %v17271_v18 = vadd.f32 %v27672_v53, %v17232_v47  ;;  %23107 = vrcp.f32 %v14683_v39  ;;  %v17046_v13 = vsel %vm13909_vm1, 0.0, %v16988_v31  ;;  %v16989_v38 = vrot.slane %v16850_v43, 7  ;;  %v29048_v47 = vld [vmem:[#allocation166_spill] sm:$0xff] }
 0xd94   : > { %17459 = vst [vmem:[%s27745_s17 + $0x88] sm:$0xff] %v17427_v60  ;;  %v23098_v52 = vpop.eup %23097  ;;  %v17335_v59 = vsub.f32 1.0, %v27958_v20  ;;  %v18593_v11 = vmul.f32 -1.442695, %v14555_v48  ;;  %v17201_v42 = vadd.f32 %v17046_v13, %v16881_v54  ;;  %v17364_v34 = vmul.f32 %v23203_v7, %v17332_v56  ;;  %v16531_v41 = vpop.f32.mrb[240].mxu0 }
 0xd95   : > { %23109 = vtanh.f32 %v17271_v18  ;;  %v23100_v14 = vpop.eup %23099  ;;  %v17396_v2 = vmul.f32 %v23098_v52, %v27905_v61  ;;  %v16990_v33 = vsel %vm13909_vm1, %v16988_v31, %v16989_v38  ;;  %v18594_v63 = vmul.f32 -1.442695, %v14557_v10  ;;  %v16533_v58 = vpop.f32.mrb[241].mxu0  ;;  %v23205_v10 = vld [vmem:[%s23839_s19 + $0xa0] sm:$0xff]  ;;  %v23206_v38 = vld [vmem:[%s23839_s19 + $0xa8] sm:$0xff] }
 0xd96   : > { %23111 = vrcp.f32 %v14684_v5  ;;  %v17365_v32 = vmul.f32 %v23204_v49, %v17333_v26  ;;  %v17233_v39 = vadd.f32 %v17201_v42, %v29041_v9  ;;  %v17202_v24 = vadd.f32 %v16990_v33, %v16882_v28  ;;  %v16535_v21 = vpop.f32.mrb[242].mxu0  ;;  %v28033_v9 = vld [vmem:[#allocation13] ss:$0 sm:$0xff] }
 0xd97   : > { %v23102_v40 = vpop.eup %23101  ;;  %v29043_v19 = vrot.slane %v29042_v1, 1  ;;  %v17428_v17 = vadd.f32 %v17396_v2, %v17364_v34  ;;  %v16851_v61 = vadd.f32 %v29044_v16, %v16531_v41  ;;  %23113 = vpow2.f32 %v18593_v11  ;;  %v16537_v6 = vpop.f32.mrb[243].mxu0  ;;  %v29050_v11 = vld [vmem:[#allocation155_spill] sm:$0xff]  ;;  %v29051_v34 = vld [vmem:[#allocation153_spill] sm:$0xff] }
 0xd98   : > { %v17397_v56 = vmul.f32 %v23102_v40, %v27932_v51  ;;  %v23104_v15 = vpop.eup %23103  ;;  %v17272_v8 = vadd.f32 %v27672_v53, %v17233_v39  ;;  %v16883_v29 = vadd.f32 %v16533_v58, %v29045_v36  ;;  %v14559_v45 = vadd.f32 %v28937_v57, %v29046_v37  ;;  %v29053_v40 = vld [vmem:[#allocation91_spill] sm:$0xff] }
 0xd99   : > { %v17174_v12 = vsel %vm14166_vm2, %v29043_v19, 0.0  ;;  %17460 = vst [vmem:[%s27745_s17 + $0x90] sm:$0xff] %v17428_v17  ;;  %v16991_v0 = vrot.slane %v16851_v61, 7  ;;  %v16852_v51 = vadd.f32 %v29047_v30, %v16535_v21  ;;  %v14685_v48 = vadd.f32 1.0, %v23100_v14  ;;  %v29055_v17 = vld [vmem:[#allocation93_spill] sm:$0xff] }
 0xd9a   : > { %v17234_v26 = vadd.f32 %v17202_v24, %v17174_v12  ;;  %v17429_v3 = vadd.f32 %v17397_v56, %v17365_v32  ;;  %23115 = vtanh.f32 %v17272_v8  ;;  %v16884_v44 = vadd.f32 %v16537_v6, %v29048_v47  ;;  %v29054_v24 = vld [vmem:[#allocation168_spill] sm:$0xff] }
 0xd9b   : > { %v17336_v54 = vsub.f32 1.0, %v27984_v50  ;;  %23117 = vpow2.f32 %v18594_v63  ;;  %v17047_v27 = vsel %vm13909_vm1, 0.0, %v16991_v0  ;;  %v16992_v5 = vrot.slane %v16852_v51, 7  ;;  %v29057_v47 = vld [vmem:[#allocation80_spill] sm:$0xff] }
 0xd9c   : > { %v17273_v55 = vadd.f32 %v27672_v53, %v17234_v26  ;;  %17461 = vst [vmem:[%s27745_s17 + $0x98] sm:$0xff] %v17429_v3  ;;  %v23106_v60 = vpop.eup %23105  ;;  %v14686_v31 = vadd.f32 1.0, %v23104_v15  ;;  %v14561_v43 = vadd.f32 %v28937_v57, %v29049_v23  ;;  %v17203_v22 = vadd.f32 %v17047_v27, %v16883_v29  ;;  %v16541_v57 = vpop.f32.mrb[244].mxu0  ;;  %v29056_v15 = vld [vmem:[#allocation170_spill] sm:$0xff] }
 0xd9d   : > { %v28019_v4 = vpop.eup %23107  ;;  %v18595_v53 = vmul.f32 -1.442695, %v14559_v45  ;;  %v17366_v18 = vmul.f32 %v23205_v10, %v17334_v25  ;;  %v17398_v35 = vmul.f32 %v23106_v60, %v27945_v46  ;;  %v16993_v28 = vsel %vm13909_vm1, %v16991_v0, %v16992_v5  ;;  %v16543_v49 = vpop.f32.mrb[245].mxu0  ;;  %v23208_v45 = vld [vmem:[%s23839_s19 + $0xb0] sm:$0xff] }
 0xd9e   : > { %23119 = vtanh.f32 %v17273_v55  ;;  %v17367_v52 = vmul.f32 %v23206_v38, %v17335_v59  ;;  %v17235_v42 = vadd.f32 %v17203_v22, %v29050_v11  ;;  %v17204_v14 = vadd.f32 %v16993_v28, %v16884_v44  ;;  %v16545_v1 = vpop.f32.mrb[246].mxu0  ;;  %v29058_v60 = vld [vmem:[#allocation78_spill] sm:$0xff]  ;;  %v29060_v22 = vld [vmem:[#allocation95_spill] sm:$0xff] }
 0xd9f   : > { %v23110_v13 = vpop.eup %23109  ;;  %23121 = vrcp.f32 %v14685_v48  ;;  %v29052_v2 = vrot.slane %v29051_v34, 1  ;;  %v17430_v25 = vadd.f32 %v17398_v35, %v17366_v18  ;;  %v16853_v63 = vadd.f32 %v29053_v40, %v16541_v57  ;;  %v23209_v48 = vld [vmem:[%s23839_s19 + $0xb8] sm:$0xff]  ;;  %v29062_v57 = vld [vmem:[#allocation97_spill] sm:$0xff] }
 0xda0   : > { %v28026_v7 = vpop.eup %23111  ;;  %v17399_v46 = vmul.f32 %v23110_v13, %v27958_v20  ;;  %v18596_v32 = vmul.f32 -1.442695, %v14561_v43  ;;  %v17274_v59 = vadd.f32 %v28033_v9, %v17235_v42  ;;  %v16885_v41 = vadd.f32 %v16543_v49, %v29054_v24  ;;  %v16547_v20 = vpop.f32.mrb[247].mxu0  ;;  %v29061_v13 = vld [vmem:[#allocation172_spill] sm:$0xff] }
 0xda1   : > { %v17175_v33 = vsel %vm14166_vm2, %v29052_v2, 0.0  ;;  %23123 = vpow2.f32 %v18595_v53  ;;  %17462 = vst [vmem:[%s27745_s17 + $0xa0] sm:$0xff] %v17430_v25  ;;  %v16994_v12 = vrot.slane %v16853_v63, 7  ;;  %v16854_v56 = vadd.f32 %v29055_v17, %v16545_v1  ;;  %v23114_v16 = vpop.eup %23113  ;;  %v29063_v25 = vld [vmem:[#allocation174_spill] sm:$0xff]  ;;  %v23210_v24 = vld [vmem:[%s23839_s19 + $0xc0] sm:$0xff] }
 0xda2   : > { %v17236_v39 = vadd.f32 %v17204_v14, %v17175_v33  ;;  %v17431_v19 = vadd.f32 %v17399_v46, %v17367_v52  ;;  %v17337_v61 = vsub.f32 1.0, %v27990_v62  ;;  %23125 = vtanh.f32 %v17274_v59 }
 0xda3   : > { %v16886_v8 = vadd.f32 %v16547_v20, %v29056_v15  ;;  %23127 = vrcp.f32 %v14686_v31  ;;  %v17048_v26 = vsel %vm13909_vm1, 0.0, %v16994_v12  ;;  %v16995_v36 = vrot.slane %v16854_v56, 7  ;;  %v23211_v56 = vld [vmem:[%s23839_s19 + $0xc8] sm:$0xff] }
 0xda4   : > { %v17275_v58 = vadd.f32 %v28033_v9, %v17236_v39  ;;  %17463 = vst [vmem:[%s27745_s17 + $0xa8] sm:$0xff] %v17431_v19  ;;  %v23116_v29 = vpop.eup %23115  ;;  %v17205_v21 = vadd.f32 %v17048_v26, %v16885_v41  ;;  %v17368_v3 = vmul.f32 %v23208_v45, %v17336_v54  ;;  %v14687_v6 = vadd.f32 1.0, %v23114_v16  ;;  %v16551_v5 = vpop.f32.mrb[248].mxu0  ;;  %v29064_v16 = vld [vmem:[#allocation159_spill] sm:$0xff]  ;;  %v29065_v26 = vld [vmem:[#allocation157_spill] sm:$0xff] }
 0xda5   : > { %v23118_v37 = vpop.eup %23117  ;;  %v17400_v0 = vmul.f32 %v23116_v29, %v27984_v50  ;;  %v16996_v30 = vsel %vm13909_vm1, %v16994_v12, %v16995_v36  ;;  %v17369_v55 = vmul.f32 %v23209_v48, %v17337_v61  ;;  %v29059_v31 = vrot.slane %v29058_v60, 1  ;;  %v16553_v53 = vpop.f32.mrb[249].mxu0 }
 0xda6   : > { %23129 = vtanh.f32 %v17275_v58  ;;  %v17237_v44 = vadd.f32 %v17205_v21, %v29057_v47  ;;  %v17206_v27 = vadd.f32 %v16996_v30, %v16886_v8  ;;  %v16855_v50 = vadd.f32 %v29060_v22, %v16551_v5  ;;  %v16555_v52 = vpop.f32.mrb[250].mxu0 }
 0xda7   : > { %23131 = vpow2.f32 %v18596_v32  ;;  %v17176_v23 = vsel %vm14166_vm2, %v29059_v31, 0.0  ;;  %v17432_v43 = vadd.f32 %v17400_v0, %v17368_v3  ;;  %v17338_v18 = vsub.f32 1.0, %v28019_v4  ;;  %v16557_v34 = vpop.f32.mrb[251].mxu0 }
 0xda8   : > { %v23120_v51 = vpop.eup %23119  ;;  %v17276_v35 = vadd.f32 %v28033_v9, %v17237_v44  ;;  %v17238_v28 = vadd.f32 %v17206_v27, %v17176_v23  ;;  %v16887_v38 = vadd.f32 %v16553_v53, %v29061_v13  ;;  %v14688_v11 = vadd.f32 1.0, %v23118_v37  ;;  %v29069_v27 = vld [vmem:[#allocation101_spill] sm:$0xff]  ;;  %v29070_v23 = vld [vmem:[#allocation178_spill] sm:$0xff] }
 0xda9   : > { %v17401_v54 = vmul.f32 %v23120_v51, %v27990_v62  ;;  %v28054_v10 = vpop.eup %23121  ;;  %17464 = vst [vmem:[%s27745_s17 + $0xb0] sm:$0xff] %v17432_v43  ;;  %v16997_v14 = vrot.slane %v16855_v50, 7  ;;  %v16856_v62 = vadd.f32 %v29062_v57, %v16555_v52  ;;  %v17339_v2 = vsub.f32 1.0, %v28026_v7  ;;  %v29068_v51 = vld [vmem:[#allocation176_spill] sm:$0xff] }
 0xdaa   : > { %23133 = vtanh.f32 %v17276_v35  ;;  %v17277_v33 = vadd.f32 %v28033_v9, %v17238_v28  ;;  %v16888_v46 = vadd.f32 %v16557_v34, %v29063_v25  ;;  %v17370_v41 = vmul.f32 %v23210_v24, %v17338_v18  ;;  %v23212_v28 = vld [vmem:[%s23839_s19 + $0xd0] sm:$0xff] }
 0xdab   : > { %v17433_v42 = vadd.f32 %v17401_v54, %v17369_v55  ;;  %v23124_v40 = vpop.eup %23123  ;;  %23135 = vrcp.f32 %v14687_v6  ;;  %v17049_v63 = vsel %vm13909_vm1, 0.0, %v16997_v14  ;;  %v16998_v49 = vrot.slane %v16856_v62, 7  ;;  %v29072_v34 = vld [vmem:[#allocation82_spill] sm:$0xff] }
 0xdac   : > { %v23126_v32 = vpop.eup %23125  ;;  %23137 = vtanh.f32 %v17277_v33  ;;  %v17207_v59 = vadd.f32 %v17049_v63, %v16887_v38  ;;  %v14689_v17 = vadd.f32 1.0, %v23124_v40  ;;  %v17371_v20 = vmul.f32 %v23211_v56, %v17339_v2  ;;  %v16561_v15 = vpop.f32.mrb[252].mxu0 }
 0xdad   : > { %17465 = vst [vmem:[%s27745_s17 + $0xb8] sm:$0xff] %v17433_v42  ;;  %v23128_v39 = vpop.eup %23127  ;;  %23139 = vrcp.f32 %v14688_v11  ;;  %v17402_v1 = vmul.f32 %v23126_v32, %v28019_v4  ;;  %v16999_v19 = vsel %vm13909_vm1, %v16997_v14, %v16998_v49  ;;  %v29066_v36 = vrot.slane %v29065_v26, 1  ;;  %v29067_v4 = vld [vmem:[#allocation99_spill] sm:$0xff]  ;;  %v16563_v3 = vpop.f32.mrb[253].mxu0  ;;  %v29071_v42 = vld [vmem:[#allocation84_spill] sm:$0xff] }
 0xdae   : > { %v17239_v61 = vadd.f32 %v17207_v59, %v29064_v16  ;;  %v17208_v58 = vadd.f32 %v16999_v19, %v16888_v46  ;;  %v16857_v45 = vadd.f32 %v29067_v4, %v16561_v15  ;;  %v16889_v6 = vadd.f32 %v16563_v3, %v29068_v51  ;;  %v16565_v48 = vpop.f32.mrb[254].mxu0  ;;  %v23213_v46 = vld [vmem:[%s23839_s19 + $0xd8] sm:$0xff]  ;;  %v23215_v16 = vld [vmem:[%s23839_s19 + $0xe8] sm:$0xff] }
 0xdaf   : > { %v17177_v29 = vsel %vm14166_vm2, %v29066_v36, 0.0  ;;  %v17434_v21 = vadd.f32 %v17402_v1, %v17370_v41  ;;  %v17340_v55 = vsub.f32 1.0, %v28054_v10  ;;  %v16858_v5 = vadd.f32 %v29069_v27, %v16565_v48  ;;  %v16567_v60 = vpop.f32.mrb[255].mxu0  ;;  %v23217_v3 = vld [vmem:[%s23839_s19 + $0xf8] sm:$0xff] }
 0xdb0   : > { %v23130_v12 = vpop.eup %23129  ;;  %v17278_v0 = vadd.f32 %v28033_v9, %v17239_v61  ;;  %v17240_v30 = vadd.f32 %v17208_v58, %v17177_v29  ;;  %v17000_v44 = vrot.slane %v16857_v45, 7  ;;  %v16890_v43 = vadd.f32 %v16567_v60, %v29070_v23  ;;  %v23216_v29 = vld [vmem:[%s23839_s19 + $0xf0] sm:$0xff] }
 0xdb1   : > { %v23132_v8 = vpop.eup %23131  ;;  %v17403_v37 = vmul.f32 %v23130_v12, %v28026_v7  ;;  %17466 = vst [vmem:[%s27745_s17 + $0xc0] sm:$0xff] %v17434_v21  ;;  %v17341_v54 = vsub.f32 1.0, %v23128_v39  ;;  %v17001_v50 = vrot.slane %v16858_v5, 7  ;;  %v17372_v13 = vmul.f32 %v23212_v28, %v17340_v55  ;;  %v23214_v12 = vld [vmem:[%s23839_s19 + $0xe0] sm:$0xff] }
 0xdb2   : > { %v14690_v7 = vadd.f32 1.0, %v23132_v8  ;;  %23141 = vtanh.f32 %v17278_v0  ;;  %v17279_v31 = vadd.f32 %v28033_v9, %v17240_v30  ;;  %v17050_v22 = vsel %vm13909_vm1, 0.0, %v17000_v44 }
 0xdb3   : > { %v17435_v47 = vadd.f32 %v17403_v37, %v17371_v20  ;;  %23143 = vrcp.f32 %v14689_v17  ;;  %v17209_v18 = vadd.f32 %v17050_v22, %v16889_v6  ;;  %v17002_v52 = vsel %vm13909_vm1, %v17000_v44, %v17001_v50 }
 0xdb4   : > { %v23134_v53 = vpop.eup %23133  ;;  %23145 = vtanh.f32 %v17279_v31  ;;  %v17210_v57 = vadd.f32 %v17002_v52, %v16890_v43  ;;  %v29073_v2 = vrot.slane %v29072_v34, 1  ;;  %v17373_v40 = vmul.f32 %v23213_v46, %v17341_v54 }
 0xdb5   : > { %17467 = vst [vmem:[%s27745_s17 + $0xc8] sm:$0xff] %v17435_v47  ;;  %v23136_v35 = vpop.eup %23135  ;;  %v17404_v38 = vmul.f32 %v23134_v53, %v28054_v10  ;;  %23147 = vrcp.f32 %v14690_v7  ;;  %v17241_v14 = vadd.f32 %v17209_v18, %v29071_v42 }
 0xdb6   : > { %v23138_v11 = vpop.eup %23137  ;;  %v17178_v33 = vsel %vm14166_vm2, %v29073_v2, 0.0  ;;  %v17342_v32 = vsub.f32 1.0, %v23136_v35 }
 0xdb7   : > { %v23140_v62 = vpop.eup %23139  ;;  %v17436_v25 = vadd.f32 %v17404_v38, %v17372_v13  ;;  %v17405_v63 = vmul.f32 %v23138_v11, %v23128_v39  ;;  %v17280_v10 = vadd.f32 %v28033_v9, %v17241_v14  ;;  %v17242_v49 = vadd.f32 %v17210_v57, %v17178_v33 }
 0xdb8   : > { %v17343_v41 = vsub.f32 1.0, %v23140_v62  ;;  %v17374_v39 = vmul.f32 %v23214_v12, %v17342_v32 }
 0xdb9   : > { %17468 = vst [vmem:[%s27745_s17 + $0xd0] sm:$0xff] %v17436_v25  ;;  %v17437_v59 = vadd.f32 %v17405_v63, %v17373_v40  ;;  %23149 = vtanh.f32 %v17280_v10  ;;  %v17281_v24 = vadd.f32 %v28033_v9, %v17242_v49 }
 0xdba   : > { %v17375_v61 = vmul.f32 %v23215_v16, %v17343_v41 }
 0xdbb   : > { %17469 = vst [vmem:[%s27745_s17 + $0xd8] sm:$0xff] %v17437_v59  ;;  %23151 = vtanh.f32 %v17281_v24 }
 0xdbc   : > { %v23142_v1 = vpop.eup %23141 }
 0xdbd   : > { %v23144_v19 = vpop.eup %23143  ;;  %v17406_v17 = vmul.f32 %v23142_v1, %v23136_v35 }
 0xdbe   : > { %v23146_v56 = vpop.eup %23145  ;;  %v17344_v15 = vsub.f32 1.0, %v23144_v19 }
 0xdbf   : > { %v17438_v20 = vadd.f32 %v17406_v17, %v17374_v39  ;;  %v17407_v58 = vmul.f32 %v23146_v56, %v23140_v62  ;;  %v23148_v9 = vpop.eup %23147 }
 0xdc0   : > { %v17345_v26 = vsub.f32 1.0, %v23148_v9  ;;  %v17376_v21 = vmul.f32 %v23216_v29, %v17344_v15 }
 0xdc1   : > { %17470 = vst [vmem:[%s27745_s17 + $0xe0] sm:$0xff] %v17438_v20  ;;  %v17439_v8 = vadd.f32 %v17407_v58, %v17375_v61 }
 0xdc2   : > { %v17377_v0 = vmul.f32 %v23217_v3, %v17345_v26 }
 0xdc3   : > { %17471 = vst [vmem:[%s27745_s17 + $0xe8] sm:$0xff] %v17439_v8  ;;  %v23150_v36 = vpop.eup %23149 }
 0xdc4   : > { %v17408_v37 = vmul.f32 %v23150_v36, %v23144_v19 }
 0xdc5   : > { %v23152_v4 = vpop.eup %23151 }
 0xdc6   : > { %v17440_v45 = vadd.f32 %v17408_v37, %v17376_v21  ;;  %v17409_v30 = vmul.f32 %v23152_v4, %v23148_v9 }
 0xdc8   : > { %17472 = vst [vmem:[%s27745_s17 + $0xf0] sm:$0xff] %v17440_v45  ;;  %v17441_v51 = vadd.f32 %v17409_v30, %v17377_v0 }
 0xdca   : > { %17473 = vst [vmem:[%s27745_s17 + $0xf8] sm:$0xff] %v17441_v51 }
 0xdcb   : > { %23431 = shalt.err (!%p23428_p8)
}
 0xdcc   : > { %s23432_s21 = scalar_lea.hbm %s28108_s2, 4096  ;;  %s23436_s19 = scalar_lea.hbm %s28163_s7, 8192 }
 0xdcd   : > { %p23433_p4 = scmp.ne.s32.totalorder %s28108_s2, %s23432_s21  ;;  %p23437_p11 = scmp.lt.u32.totalorder %s28108_s2, %s28163_s7 }
 0xdce   : > { %p23438_p3 = scmp.lt.u32.totalorder %s23436_s19, %s23432_s21  ;;  %p23440_p2 = scmp.lt.u32.totalorder %s23432_s21, %s28108_s2 }
 0xdcf   : > { %p23434_p1 = pnand %p23433_p4, %p29074_p13 }
 0xdd0   : > { %p23439_p12 = por %p23438_p3, %p23437_p11 }
 0xdd1   : > { %p23435_p10 = pneg %p23434_p1 }
 0xdd2   : > { %p23441_p6 = por %p23440_p2, %p23439_p12 }
 0xdd4   : > { %p23442_p9 = pnand %p23441_p6, %p23435_p10 }
 0xdd6   : > { %23445 = shalt.err (!%p23442_p9)
}
 0xdd7   : > { %s23519_s4 = smov 128   ;;  %s23520_s8 = smov 8  }
 0xdd8   : > { %21652 = dma.vmem_to_hbm [thread:$0]  (%p29074_p13), %s28110_s22, 4096, %s28108_s2, %s17475_s30, %s23519_s4, %s23519_s4, %s23520_s8  }
 0xdd9 PF: > { %s17503_s17 = sand.u32 1, %s23488_s24   ;;  %p29075_p0 = scmp.ne.s32.totalorder %s28294_s20, 0 }
 0xdda   : > { %p29076_p5 = scmp.ge.s32.totalorder %s23500_s27, 2  ;;  %s17504_s12 = scalar_lea.sflag [#allocation4], %s17503_s17 }
 0xddc   : > { %p21678_p7 = pnand %p29076_p5, %p29075_p0 }
 0xdde   : > { %23483 = dma.done.wait (!%p21678_p7), %s17504_s12, 4096  }
 0xddf   : > { %23485 = vsyncadd (!%p21678_p7), %s17504_s12, 4294963200  ;;  %p25_p8 = scmp.ge.s32.totalorder %s23718_s11, 4   ;;  %s29077_s24 = smov %s23492_s25 }
 0xde0   : > { %s29078_s25 = smov %s23496_s26  ;;  %s29079_s26 = smov %s23730_s15 }
 0xde1   : > { %s29080_s27 = smov %s23718_s11  ;;  %27 = sbr.rel (!%p25_p8) target bundleno = 15 (0xf), region = 132 }
 0xde8   :  { %17509 = vsyncpa [#allocation3], 1 }
 0xde9   :  { %17511 = vsyncpa [#allocation3 + $0x1], 1 }
 0xdea   :  { %17512 = vsyncpa [#allocation6], 1 }
 0xdeb   :  { %17514 = vsyncpa [#allocation6 + $0x1], 1 }
 0xdec   :  { %17515 = vsyncpa [#allocation9], 1 }
 0xded   :  { %17516 = vsyncpa [#allocation12], 1 }
 0xdee   :  { %17517 = vsyncpa [#allocation4], 1 }
 0xdef   :  { %17519 = vsyncpa [#allocation4 + $0x1], 1 }

</bundles_post_ra>
